<compile_context>
chip_gen: v5e
topology: v5e:2x2
jax: 0.10.0
libtpu: 0.0.40
codegen_flags: <defaults>
</compile_context>

<pallas_src>
import functools

import jax
import jax.numpy as jnp
from jax import lax
from jax.experimental import pallas as pl
from jax.experimental.pallas import tpu as pltpu

_LANE = 128                      # lane alignment for channel / K / N padding
_SUB = 16                        # bf16 sublane packing for the row (M) axis
_TM = 256                        # max row tile for the M-parallel GEMM grid
_VMEM_LIMIT = 32 * 1024 * 1024   # safe scoped-VMEM cap on v5e/v6e/v7x


def _round_up(x, m):
    return (x + m - 1) // m * m


def _choose_rows(m):
    """Row padding + row-tile size: one tile when small, _TM-wide tiles when big."""
    if m <= _TM:
        mp = _round_up(m, _SUB)
        return mp, mp
    mp = _round_up(m, _TM)
    return mp, _TM


# ----------------------------------------------------------------------------
# Pallas kernels
# ----------------------------------------------------------------------------

def _gemm_bias_kernel(x_ref, w_ref, b_ref, o_ref, *, apply_relu):
    # bf16 x bf16 on the MXU, f32 accumulator, f32 bias/ReLU epilogue.
    acc = jnp.dot(x_ref[...], w_ref[...], preferred_element_type=jnp.float32)
    acc = acc + b_ref[...]                      # (1, N) broadcasts over rows
    if apply_relu:
        acc = jnp.maximum(acc, 0.0)
    o_ref[...] = acc.astype(o_ref.dtype)


def _avgpool_kernel(p_ref, o_ref, *, kk):
    # p_ref: (kk, tm, C) shifted slabs; accumulate along the (small) leading
    # axis with plain VPU adds -- no sublane padding, no XLU reduce.
    acc = p_ref[0].astype(jnp.float32)
    for t in range(1, kk):
        acc = acc + p_ref[t].astype(jnp.float32)
    o_ref[...] = (acc * (1.0 / kk)).astype(o_ref.dtype)


def _tail_kernel(x_ref,
                 w3_ref, b3_ref, w4_ref, b4_ref, w5_ref, b5_ref,
                 f1w_ref, f1b_ref, f2w_ref, f2b_ref, f3w_ref, f3b_ref,
                 o_ref):
    # conv3/conv4/conv5 (center-tap GEMMs on 1x1 maps) + fc1/fc2/fc3 fused:
    # the activation stays in VMEM/vregs across all six layers.
    def layer(h, w_ref, b_ref, relu):
        acc = jnp.dot(h, w_ref[...], preferred_element_type=jnp.float32)
        acc = acc + b_ref[...]
        if relu:
            acc = jnp.maximum(acc, 0.0)
        return acc

    h = x_ref[...]
    for w_ref, b_ref in ((w3_ref, b3_ref), (w4_ref, b4_ref), (w5_ref, b5_ref),
                         (f1w_ref, f1b_ref), (f2w_ref, f2b_ref)):
        h = layer(h, w_ref, b_ref, True).astype(jnp.bfloat16)
    o_ref[...] = layer(h, f3w_ref, f3b_ref, False)       # final layer: no ReLU, f32


# ----------------------------------------------------------------------------
# Layer wrappers (thin JAX glue around the Pallas kernels)
# ----------------------------------------------------------------------------

def gemm_bias(x, w, b, *, relu, out_dtype=jnp.bfloat16):
    """y = x @ w + b (optional ReLU). x:(Mp,Kp) bf16, w:(Kp,Np) bf16, b:(1,Np) f32."""
    mp, kp = x.shape
    _, np_ = w.shape
    tm = mp if mp <= _TM else _TM
    assert mp % tm == 0
    cost = pl.CostEstimate(
        flops=2 * mp * kp * np_, transcendentals=0,
        bytes_accessed=2 * (mp * kp + kp * np_ + mp * np_) + 4 * np_)
    return pl.pallas_call(
        functools.partial(_gemm_bias_kernel, apply_relu=relu),
        out_shape=jax.ShapeDtypeStruct((mp, np_), out_dtype),
        grid=(mp // tm,),
        in_specs=[
            pl.BlockSpec((tm, kp), lambda i: (i, 0)),
            pl.BlockSpec((kp, np_), lambda i: (0, 0)),
            pl.BlockSpec((1, np_), lambda i: (0, 0)),
        ],
        out_specs=pl.BlockSpec((tm, np_), lambda i: (i, 0)),
        compiler_params=pltpu.CompilerParams(
            dimension_semantics=("parallel",), vmem_limit_bytes=_VMEM_LIMIT),
        cost_estimate=cost,
    )(x, w, b)


def conv2d(x_nhwc, w_kp_np, b_1np, *, kh, kw, stride, pad):
    """PyTorch-semantics Conv2d + ReLU.

    Patch extraction is a single XLA op whose feature dim is channel-major
    (index = c*kh*kw + ki*kw + kj); the prepared weight matrix uses the same
    flattening order. Output keeps a 128-padded (zero-tail) channel layout.
    """
    n = x_nhwc.shape[0]
    patches = lax.conv_general_dilated_patches(
        x_nhwc, (kh, kw), (stride, stride), [(pad, pad), (pad, pad)],
        dimension_numbers=("NHWC", "HWIO", "NHWC"))
    _, oh, ow, k = patches.shape
    m = n * oh * ow
    kp, np_ = w_kp_np.shape
    mp, _ = _choose_rows(m)
    p2 = jnp.pad(patches.reshape(m, k), ((0, mp - m), (0, kp - k)))
    y = gemm_bias(p2, w_kp_np, b_1np, relu=True)
    return y[:m].reshape(n, oh, ow, np_)


def avgpool2d(x_nhwc, k, stride):
    """PyTorch-semantics AvgPool2d via k*k shifted slabs + VPU accumulation."""
    n, h, w, c = x_nhwc.shape
    oh = (h - k) // stride + 1
    ow = (w - k) // stride + 1
    hi = stride * (oh - 1) + 1
    wi = stride * (ow - 1) + 1
    slabs = [x_nhwc[:, i:i + hi:stride, j:j + wi:stride, :]
             for i in range(k) for j in range(k)]
    kk = k * k
    m = n * oh * ow
    p = jnp.stack(slabs, axis=0).reshape(kk, m, c)
    mp, tm = _choose_rows(m)
    p = jnp.pad(p, ((0, 0), (0, mp - m), (0, 0)))
    out = pl.pallas_call(
        functools.partial(_avgpool_kernel, kk=kk),
        out_shape=jax.ShapeDtypeStruct((mp, c), x_nhwc.dtype),
        grid=(mp // tm,),
        in_specs=[pl.BlockSpec((kk, tm, c), lambda i: (0, i, 0))],
        out_specs=pl.BlockSpec((tm, c), lambda i: (i, 0)),
        compiler_params=pltpu.CompilerParams(
            dimension_semantics=("parallel",), vmem_limit_bytes=_VMEM_LIMIT),
        cost_estimate=pl.CostEstimate(
            flops=kk * mp * c, transcendentals=0,
            bytes_accessed=2 * (kk * mp * c + mp * c)),
    )(p)
    return out[:m].reshape(n, oh, ow, c)


def fused_tail(h, pp):
    """Single pallas_call for conv3..conv5 (center-tap GEMMs) + fc1/fc2/fc3."""
    m, c = h.shape
    mp, tm = _choose_rows(m)
    hp = jnp.pad(h, ((0, mp - m), (0, 0)))
    names = ("conv3", "conv4", "conv5", "fc1", "fc2", "fc3")
    args = [hp]
    in_specs = [pl.BlockSpec((tm, c), lambda i: (i, 0))]
    flops, wbytes = 0, 0
    for name in names:
        wt, bt = pp[name]
        args += [wt, bt]
        in_specs += [pl.BlockSpec(wt.shape, lambda i: (0, 0)),
                     pl.BlockSpec(bt.shape, lambda i: (0, 0))]
        flops += 2 * mp * wt.shape[0] * wt.shape[1]
        wbytes += 2 * wt.shape[0] * wt.shape[1] + 4 * bt.shape[1]
    np_out = pp["fc3"][0].shape[1]
    out = pl.pallas_call(
        _tail_kernel,
        out_shape=jax.ShapeDtypeStruct((mp, np_out), jnp.float32),
        grid=(mp // tm,),
        in_specs=in_specs,
        out_specs=pl.BlockSpec((tm, np_out), lambda i: (i, 0)),
        compiler_params=pltpu.CompilerParams(
            dimension_semantics=("parallel",), vmem_limit_bytes=_VMEM_LIMIT),
        cost_estimate=pl.CostEstimate(
            flops=flops, transcendentals=0,
            bytes_accessed=wbytes + 2 * mp * c + 4 * mp * np_out),
    )(*args)
    return out[:m]


# ----------------------------------------------------------------------------
# One-time parameter preparation (pad / reorder / transpose / cast to bf16)
# ----------------------------------------------------------------------------

def _prep_conv(w, b, *, cin_padded):
    o, i, kh, kw = w.shape
    wp = jnp.zeros((o, cin_padded, kh, kw), jnp.float32).at[:, :i].set(w)
    k = cin_padded * kh * kw
    kp, np_ = _round_up(k, _LANE), _round_up(o, _LANE)
    wm = jnp.zeros((kp, np_), jnp.float32).at[:k, :o].set(wp.reshape(o, k).T)
    bm = jnp.zeros((1, np_), jnp.float32).at[0, :o].set(b)
    return wm.astype(jnp.bfloat16), bm


def _prep_center_tap(w, b):
    # k=3, pad=1 conv on a 1x1 spatial map == GEMM with the center tap only.
    o, i, kh, kw = w.shape
    wc = w[:, :, kh // 2, kw // 2]
    kp, np_ = _round_up(i, _LANE), _round_up(o, _LANE)
    wm = jnp.zeros((kp, np_), jnp.float32).at[:i, :o].set(wc.T)
    bm = jnp.zeros((1, np_), jnp.float32).at[0, :o].set(b)
    return wm.astype(jnp.bfloat16), bm


def _prep_fc(w, b):
    o, i = w.shape
    kp, np_ = _round_up(i, _LANE), _round_up(o, _LANE)
    wm = jnp.zeros((kp, np_), jnp.float32).at[:i, :o].set(w.T)
    bm = jnp.zeros((1, np_), jnp.float32).at[0, :o].set(b)
    return wm.astype(jnp.bfloat16), bm


def prepare_params(raw):
    return {
        "conv1": _prep_conv(*raw["conv1"], cin_padded=3),
        "conv2": _prep_conv(*raw["conv2"], cin_padded=_LANE),  # input carries 128-padded channels
        "conv3": _prep_center_tap(*raw["conv3"]),
        "conv4": _prep_center_tap(*raw["conv4"]),
        "conv5": _prep_center_tap(*raw["conv5"]),
        "fc1": _prep_fc(*raw["fc1"]),
        "fc2": _prep_fc(*raw["fc2"]),
        "fc3": _prep_fc(*raw["fc3"]),
    }


# ----------------------------------------------------------------------------
# Deterministic init (PyTorch-default-style uniform fan-in bounds)
# ----------------------------------------------------------------------------

def init_conv(key, o, i, kh, kw):
    k1, k2 = jax.random.split(key)
    bound = 1.0 / float(i * kh * kw) ** 0.5
    w = jax.random.uniform(k1, (o, i, kh, kw), jnp.float32, -bound, bound)
    b = jax.random.uniform(k2, (o,), jnp.float32, -bound, bound)
    return w, b


def init_linear(key, in_f, out_f):
    k1, k2 = jax.random.split(key)
    bound = 1.0 / float(in_f) ** 0.5
    w = jax.random.uniform(k1, (out_f, in_f), jnp.float32, -bound, bound)
    b = jax.random.uniform(k2, (out_f,), jnp.float32, -bound, bound)
    return w, b


# ----------------------------------------------------------------------------
# Full AlexNet forward (num_classes=10 branch)
# ----------------------------------------------------------------------------

def alexnet_forward(x_nchw, pp):
    n = x_nchw.shape[0]
    x = jnp.transpose(x_nchw, (0, 2, 3, 1)).astype(jnp.bfloat16)   # NCHW -> NHWC

    # features (activations stay bf16 with zero-filled 128-padded channel tails)
    x = conv2d(x, *pp["conv1"], kh=11, kw=11, stride=4, pad=9)     # (N,10,10,128)
    x = avgpool2d(x, 3, 2)                                         # (N, 4, 4,128)
    x = conv2d(x, *pp["conv2"], kh=5, kw=5, stride=1, pad=1)       # (N, 2, 2,256)
    x = avgpool2d(x, 2, 1)                                         # (N, 1, 1,256)

    # conv3..conv5 operate on 1x1 maps (required by the 256-wide fc head); the
    # NHWC flatten equals the NCHW flatten only because spatial dims are 1x1.
    assert x.shape[1] == 1 and x.shape[2] == 1, x.shape

    h = x.reshape(n, x.shape[3])                                   # (N, 256) bf16
    logits = fused_tail(h, pp)                                     # (N, 128) f32
    return logits[:, :10]


if __name__ == "__main__":
    key = jax.random.PRNGKey(0)
    keys = jax.random.split(key, 9)
    raw_params = {
        "conv1": init_conv(keys[0], 96, 3, 11, 11),
        "conv2": init_conv(keys[1], 256, 96, 5, 5),
        "conv3": init_conv(keys[2], 384, 256, 3, 3),
        "conv4": init_conv(keys[3], 384, 384, 3, 3),
        "conv5": init_conv(keys[4], 256, 384, 3, 3),
        "fc1": init_linear(keys[5], 256, 256),
        "fc2": init_linear(keys[6], 256, 256),
        "fc3": init_linear(keys[7], 256, 10),
    }
    params = prepare_params(raw_params)   # one-time weight prep, outside forward

    # NOTE: at batch=2 the network is launch/DMA-latency bound; the M-parallel
    # GEMM grid and bf16 path pay off fully at batch sizes in the hundreds.
    x = jax.random.normal(keys[8], (2, 3, 32, 32), jnp.float32)

    fwd = jax.jit(alexnet_forward)
    out = fwd(x, params)
    jax.block_until_ready(out)
    assert out.shape == (2, 10), out.shape
    print("KERNEL_OK")
</pallas_src>

<mosaic_0001>
module attributes {stable_mosaic.version = 11 : i64} {
  func.func @_gemm_bias_kernel(%arg0: i32, %arg1: memref<208x384xbf16, #tpu.memory_space<vmem>>, %arg2: memref<384x128xbf16, #tpu.memory_space<vmem>>, %arg3: memref<1x128xf32, #tpu.memory_space<vmem>>, %arg4: memref<208x128xbf16, #tpu.memory_space<vmem>>) attributes {dimension_semantics = [#tpu.dimension_semantics<parallel>], iteration_bounds = array<i64: 1>, scalar_prefetch = 0 : i64, scratch_operands = 0 : i64, tpu.core_type = #tpu.core_type<tc>, window_params = [{transform_indices = @transform_0, window_bounds = array<i64: 208, 384>}, {pipeline_mode = #tpu.pipeline_mode<synchronous>, transform_indices = @transform_1, window_bounds = array<i64: 384, 128>}, {pipeline_mode = #tpu.pipeline_mode<synchronous>, transform_indices = @transform_2, window_bounds = array<i64: 1, 128>}, {transform_indices = @transform_3, window_bounds = array<i64: 208, 128>}]} {
    %c0 = arith.constant 0 : index
    %c0_0 = arith.constant 0 : index
    %0 = vector.load %arg1[%c0, %c0_0] : memref<208x384xbf16, #tpu.memory_space<vmem>>, vector<208x384xbf16>
    %c0_1 = arith.constant 0 : index
    %c0_2 = arith.constant 0 : index
    %1 = vector.load %arg2[%c0_1, %c0_2] : memref<384x128xbf16, #tpu.memory_space<vmem>>, vector<384x128xbf16>
    %cst = arith.constant dense<0.000000e+00> : vector<208x128xf32>
    %2 = tpu.matmul %0, %1, %cst {dimension_numbers = #tpu.dot_dimension_numbers<[1], [0], [0], [1], [0, 0, 1, 1], [], []>} : vector<208x384xbf16>, vector<384x128xbf16>, vector<208x128xf32> -> vector<208x128xf32>
    %c0_3 = arith.constant 0 : index
    %c0_4 = arith.constant 0 : index
    %3 = vector.load %arg3[%c0_3, %c0_4] : memref<1x128xf32, #tpu.memory_space<vmem>>, vector<1x128xf32>
    %4 = vector.broadcast %3 : vector<1x128xf32> to vector<208x128xf32>
    %5 = arith.addf %2, %4 : vector<208x128xf32>
    %cst_5 = arith.constant 0.000000e+00 : f32
    %6 = vector.broadcast %cst_5 : f32 to vector<208x128xf32>
    %7 = arith.maximumf %5, %6 : vector<208x128xf32>
    %8 = arith.truncf %7 : vector<208x128xf32> to vector<208x128xbf16>
    %c0_6 = arith.constant 0 : index
    %c0_7 = arith.constant 0 : index
    %9 = vector.load %arg4[%c0_6, %c0_7] : memref<208x128xbf16, #tpu.memory_space<vmem>>, vector<208x128xbf16>
    tpu.vector_store %arg4[%c0_6, %c0_7], %8 {strides = array<i32>} : memref<208x128xbf16, #tpu.memory_space<vmem>>, vector<208x128xbf16>,
    return
  }
  func.func @transform_0(%arg0: i32) -> (i32, i32) {
    %c0_i32 = arith.constant 0 : i32
    %c0_i32_0 = arith.constant 0 : i32
    return %arg0, %c0_i32 : i32, i32
  }
  func.func @transform_1(%arg0: i32) -> (i32, i32) {
    %c0_i32 = arith.constant 0 : i32
    %c0_i32_0 = arith.constant 0 : i32
    %c0_i32_1 = arith.constant 0 : i32
    return %c0_i32, %c0_i32_0 : i32, i32
  }
  func.func @transform_2(%arg0: i32) -> (i32, i32) {
    %c0_i32 = arith.constant 0 : i32
    %c0_i32_0 = arith.constant 0 : i32
    %c0_i32_1 = arith.constant 0 : i32
    return %c0_i32, %c0_i32_0 : i32, i32
  }
  func.func @transform_3(%arg0: i32) -> (i32, i32) {
    %c0_i32 = arith.constant 0 : i32
    %c0_i32_0 = arith.constant 0 : i32
    return %arg0, %c0_i32 : i32, i32
  }
}

module attributes {stable_mosaic.version = 11 : i64} {
  func.func @_avgpool_kernel(%arg0: i32, %arg1: memref<9x32x128xbf16, #tpu.memory_space<vmem>>, %arg2: memref<32x128xbf16, #tpu.memory_space<vmem>>) attributes {dimension_semantics = [#tpu.dimension_semantics<parallel>], iteration_bounds = array<i64: 1>, scalar_prefetch = 0 : i64, scratch_operands = 0 : i64, tpu.core_type = #tpu.core_type<tc>, window_params = [{transform_indices = @transform_0, window_bounds = array<i64: 9, 32, 128>}, {transform_indices = @transform_1, window_bounds = array<i64: 32, 128>}]} {
    %c0 = arith.constant 0 : index
    %c0_0 = arith.constant 0 : index
    %c0_1 = arith.constant 0 : index
    %0 = vector.load %arg1[%c0, %c0_0, %c0_1] : memref<9x32x128xbf16, #tpu.memory_space<vmem>>, vector<1x32x128xbf16>
    %1 = vector.shape_cast %0 : vector<1x32x128xbf16> to vector<32x128xbf16>
    %2 = arith.extf %1 : vector<32x128xbf16> to vector<32x128xf32>
    %c1 = arith.constant 1 : index
    %c0_2 = arith.constant 0 : index
    %c0_3 = arith.constant 0 : index
    %3 = vector.load %arg1[%c1, %c0_2, %c0_3] : memref<9x32x128xbf16, #tpu.memory_space<vmem>>, vector<1x32x128xbf16>
    %4 = vector.shape_cast %3 : vector<1x32x128xbf16> to vector<32x128xbf16>
    %5 = arith.extf %4 : vector<32x128xbf16> to vector<32x128xf32>
    %6 = arith.addf %2, %5 : vector<32x128xf32>
    %c2 = arith.constant 2 : index
    %c0_4 = arith.constant 0 : index
    %c0_5 = arith.constant 0 : index
    %7 = vector.load %arg1[%c2, %c0_4, %c0_5] : memref<9x32x128xbf16, #tpu.memory_space<vmem>>, vector<1x32x128xbf16>
    %8 = vector.shape_cast %7 : vector<1x32x128xbf16> to vector<32x128xbf16>
    %9 = arith.extf %8 : vector<32x128xbf16> to vector<32x128xf32>
    %10 = arith.addf %6, %9 : vector<32x128xf32>
    %c3 = arith.constant 3 : index
    %c0_6 = arith.constant 0 : index
    %c0_7 = arith.constant 0 : index
    %11 = vector.load %arg1[%c3, %c0_6, %c0_7] : memref<9x32x128xbf16, #tpu.memory_space<vmem>>, vector<1x32x128xbf16>
    %12 = vector.shape_cast %11 : vector<1x32x128xbf16> to vector<32x128xbf16>
    %13 = arith.extf %12 : vector<32x128xbf16> to vector<32x128xf32>
    %14 = arith.addf %10, %13 : vector<32x128xf32>
    %c4 = arith.constant 4 : index
    %c0_8 = arith.constant 0 : index
    %c0_9 = arith.constant 0 : index
    %15 = vector.load %arg1[%c4, %c0_8, %c0_9] : memref<9x32x128xbf16, #tpu.memory_space<vmem>>, vector<1x32x128xbf16>
    %16 = vector.shape_cast %15 : vector<1x32x128xbf16> to vector<32x128xbf16>
    %17 = arith.extf %16 : vector<32x128xbf16> to vector<32x128xf32>
    %18 = arith.addf %14, %17 : vector<32x128xf32>
    %c5 = arith.constant 5 : index
    %c0_10 = arith.constant 0 : index
    %c0_11 = arith.constant 0 : index
    %19 = vector.load %arg1[%c5, %c0_10, %c0_11] : memref<9x32x128xbf16, #tpu.memory_space<vmem>>, vector<1x32x128xbf16>
    %20 = vector.shape_cast %19 : vector<1x32x128xbf16> to vector<32x128xbf16>
    %21 = arith.extf %20 : vector<32x128xbf16> to vector<32x128xf32>
    %22 = arith.addf %18, %21 : vector<32x128xf32>
    %c6 = arith.constant 6 : index
    %c0_12 = arith.constant 0 : index
    %c0_13 = arith.constant 0 : index
    %23 = vector.load %arg1[%c6, %c0_12, %c0_13] : memref<9x32x128xbf16, #tpu.memory_space<vmem>>, vector<1x32x128xbf16>
    %24 = vector.shape_cast %23 : vector<1x32x128xbf16> to vector<32x128xbf16>
    %25 = arith.extf %24 : vector<32x128xbf16> to vector<32x128xf32>
    %26 = arith.addf %22, %25 : vector<32x128xf32>
    %c7 = arith.constant 7 : index
    %c0_14 = arith.constant 0 : index
    %c0_15 = arith.constant 0 : index
    %27 = vector.load %arg1[%c7, %c0_14, %c0_15] : memref<9x32x128xbf16, #tpu.memory_space<vmem>>, vector<1x32x128xbf16>
    %28 = vector.shape_cast %27 : vector<1x32x128xbf16> to vector<32x128xbf16>
    %29 = arith.extf %28 : vector<32x128xbf16> to vector<32x128xf32>
    %30 = arith.addf %26, %29 : vector<32x128xf32>
    %c8 = arith.constant 8 : index
    %c0_16 = arith.constant 0 : index
    %c0_17 = arith.constant 0 : index
    %31 = vector.load %arg1[%c8, %c0_16, %c0_17] : memref<9x32x128xbf16, #tpu.memory_space<vmem>>, vector<1x32x128xbf16>
    %32 = vector.shape_cast %31 : vector<1x32x128xbf16> to vector<32x128xbf16>
    %33 = arith.extf %32 : vector<32x128xbf16> to vector<32x128xf32>
    %34 = arith.addf %30, %33 : vector<32x128xf32>
    %cst = arith.constant 0.111111112 : f32
    %35 = vector.broadcast %cst : f32 to vector<32x128xf32>
    %36 = arith.mulf %34, %35 : vector<32x128xf32>
    %37 = arith.truncf %36 : vector<32x128xf32> to vector<32x128xbf16>
    %c0_18 = arith.constant 0 : index
    %c0_19 = arith.constant 0 : index
    %38 = vector.load %arg2[%c0_18, %c0_19] : memref<32x128xbf16, #tpu.memory_space<vmem>>, vector<32x128xbf16>
    tpu.vector_store %arg2[%c0_18, %c0_19], %37 {strides = array<i32>} : memref<32x128xbf16, #tpu.memory_space<vmem>>, vector<32x128xbf16>,
    return
  }
  func.func @transform_0(%arg0: i32) -> (i32, i32, i32) {
    %c0_i32 = arith.constant 0 : i32
    %c0_i32_0 = arith.constant 0 : i32
    %c0_i32_1 = arith.constant 0 : i32
    return %c0_i32, %arg0, %c0_i32_0 : i32, i32, i32
  }
  func.func @transform_1(%arg0: i32) -> (i32, i32) {
    %c0_i32 = arith.constant 0 : i32
    %c0_i32_0 = arith.constant 0 : i32
    return %arg0, %c0_i32 : i32, i32
  }
}

module attributes {stable_mosaic.version = 11 : i64} {
  func.func @_gemm_bias_kernel(%arg0: i32, %arg1: memref<16x3200xbf16, #tpu.memory_space<vmem>>, %arg2: memref<3200x256xbf16, #tpu.memory_space<vmem>>, %arg3: memref<1x256xf32, #tpu.memory_space<vmem>>, %arg4: memref<16x256xbf16, #tpu.memory_space<vmem>>) attributes {dimension_semantics = [#tpu.dimension_semantics<parallel>], iteration_bounds = array<i64: 1>, scalar_prefetch = 0 : i64, scratch_operands = 0 : i64, tpu.core_type = #tpu.core_type<tc>, window_params = [{transform_indices = @transform_0, window_bounds = array<i64: 16, 3200>}, {pipeline_mode = #tpu.pipeline_mode<synchronous>, transform_indices = @transform_1, window_bounds = array<i64: 3200, 256>}, {pipeline_mode = #tpu.pipeline_mode<synchronous>, transform_indices = @transform_2, window_bounds = array<i64: 1, 256>}, {transform_indices = @transform_3, window_bounds = array<i64: 16, 256>}]} {
    %c0 = arith.constant 0 : index
    %c0_0 = arith.constant 0 : index
    %0 = vector.load %arg1[%c0, %c0_0] : memref<16x3200xbf16, #tpu.memory_space<vmem>>, vector<16x3200xbf16>
    %c0_1 = arith.constant 0 : index
    %c0_2 = arith.constant 0 : index
    %1 = vector.load %arg2[%c0_1, %c0_2] : memref<3200x256xbf16, #tpu.memory_space<vmem>>, vector<3200x256xbf16>
    %cst = arith.constant dense<0.000000e+00> : vector<16x256xf32>
    %2 = tpu.matmul %0, %1, %cst {dimension_numbers = #tpu.dot_dimension_numbers<[1], [0], [0], [1], [0, 0, 1, 1], [], []>} : vector<16x3200xbf16>, vector<3200x256xbf16>, vector<16x256xf32> -> vector<16x256xf32>
    %c0_3 = arith.constant 0 : index
    %c0_4 = arith.constant 0 : index
    %3 = vector.load %arg3[%c0_3, %c0_4] : memref<1x256xf32, #tpu.memory_space<vmem>>, vector<1x256xf32>
    %4 = vector.broadcast %3 : vector<1x256xf32> to vector<16x256xf32>
    %5 = arith.addf %2, %4 : vector<16x256xf32>
    %cst_5 = arith.constant 0.000000e+00 : f32
    %6 = vector.broadcast %cst_5 : f32 to vector<16x256xf32>
    %7 = arith.maximumf %5, %6 : vector<16x256xf32>
    %8 = arith.truncf %7 : vector<16x256xf32> to vector<16x256xbf16>
    %c0_6 = arith.constant 0 : index
    %c0_7 = arith.constant 0 : index
    %9 = vector.load %arg4[%c0_6, %c0_7] : memref<16x256xbf16, #tpu.memory_space<vmem>>, vector<16x256xbf16>
    tpu.vector_store %arg4[%c0_6, %c0_7], %8 {strides = array<i32>} : memref<16x256xbf16, #tpu.memory_space<vmem>>, vector<16x256xbf16>,
    return
  }
  func.func @transform_0(%arg0: i32) -> (i32, i32) {
    %c0_i32 = arith.constant 0 : i32
    %c0_i32_0 = arith.constant 0 : i32
    return %arg0, %c0_i32 : i32, i32
  }
  func.func @transform_1(%arg0: i32) -> (i32, i32) {
    %c0_i32 = arith.constant 0 : i32
    %c0_i32_0 = arith.constant 0 : i32
    %c0_i32_1 = arith.constant 0 : i32
    return %c0_i32, %c0_i32_0 : i32, i32
  }
  func.func @transform_2(%arg0: i32) -> (i32, i32) {
    %c0_i32 = arith.constant 0 : i32
    %c0_i32_0 = arith.constant 0 : i32
    %c0_i32_1 = arith.constant 0 : i32
    return %c0_i32, %c0_i32_0 : i32, i32
  }
  func.func @transform_3(%arg0: i32) -> (i32, i32) {
    %c0_i32 = arith.constant 0 : i32
    %c0_i32_0 = arith.constant 0 : i32
    return %arg0, %c0_i32 : i32, i32
  }
}

module attributes {stable_mosaic.version = 11 : i64} {
  func.func @_avgpool_kernel(%arg0: i32, %arg1: memref<4x16x256xbf16, #tpu.memory_space<vmem>>, %arg2: memref<16x256xbf16, #tpu.memory_space<vmem>>) attributes {dimension_semantics = [#tpu.dimension_semantics<parallel>], iteration_bounds = array<i64: 1>, scalar_prefetch = 0 : i64, scratch_operands = 0 : i64, tpu.core_type = #tpu.core_type<tc>, window_params = [{transform_indices = @transform_0, window_bounds = array<i64: 4, 16, 256>}, {transform_indices = @transform_1, window_bounds = array<i64: 16, 256>}]} {
    %c0 = arith.constant 0 : index
    %c0_0 = arith.constant 0 : index
    %c0_1 = arith.constant 0 : index
    %0 = vector.load %arg1[%c0, %c0_0, %c0_1] : memref<4x16x256xbf16, #tpu.memory_space<vmem>>, vector<1x16x256xbf16>
    %1 = vector.shape_cast %0 : vector<1x16x256xbf16> to vector<16x256xbf16>
    %2 = arith.extf %1 : vector<16x256xbf16> to vector<16x256xf32>
    %c1 = arith.constant 1 : index
    %c0_2 = arith.constant 0 : index
    %c0_3 = arith.constant 0 : index
    %3 = vector.load %arg1[%c1, %c0_2, %c0_3] : memref<4x16x256xbf16, #tpu.memory_space<vmem>>, vector<1x16x256xbf16>
    %4 = vector.shape_cast %3 : vector<1x16x256xbf16> to vector<16x256xbf16>
    %5 = arith.extf %4 : vector<16x256xbf16> to vector<16x256xf32>
    %6 = arith.addf %2, %5 : vector<16x256xf32>
    %c2 = arith.constant 2 : index
    %c0_4 = arith.constant 0 : index
    %c0_5 = arith.constant 0 : index
    %7 = vector.load %arg1[%c2, %c0_4, %c0_5] : memref<4x16x256xbf16, #tpu.memory_space<vmem>>, vector<1x16x256xbf16>
    %8 = vector.shape_cast %7 : vector<1x16x256xbf16> to vector<16x256xbf16>
    %9 = arith.extf %8 : vector<16x256xbf16> to vector<16x256xf32>
    %10 = arith.addf %6, %9 : vector<16x256xf32>
    %c3 = arith.constant 3 : index
    %c0_6 = arith.constant 0 : index
    %c0_7 = arith.constant 0 : index
    %11 = vector.load %arg1[%c3, %c0_6, %c0_7] : memref<4x16x256xbf16, #tpu.memory_space<vmem>>, vector<1x16x256xbf16>
    %12 = vector.shape_cast %11 : vector<1x16x256xbf16> to vector<16x256xbf16>
    %13 = arith.extf %12 : vector<16x256xbf16> to vector<16x256xf32>
    %14 = arith.addf %10, %13 : vector<16x256xf32>
    %cst = arith.constant 2.500000e-01 : f32
    %15 = vector.broadcast %cst : f32 to vector<16x256xf32>
    %16 = arith.mulf %14, %15 : vector<16x256xf32>
    %17 = arith.truncf %16 : vector<16x256xf32> to vector<16x256xbf16>
    %c0_8 = arith.constant 0 : index
    %c0_9 = arith.constant 0 : index
    %18 = vector.load %arg2[%c0_8, %c0_9] : memref<16x256xbf16, #tpu.memory_space<vmem>>, vector<16x256xbf16>
    tpu.vector_store %arg2[%c0_8, %c0_9], %17 {strides = array<i32>} : memref<16x256xbf16, #tpu.memory_space<vmem>>, vector<16x256xbf16>,
    return
  }
  func.func @transform_0(%arg0: i32) -> (i32, i32, i32) {
    %c0_i32 = arith.constant 0 : i32
    %c0_i32_0 = arith.constant 0 : i32
    %c0_i32_1 = arith.constant 0 : i32
    return %c0_i32, %arg0, %c0_i32_0 : i32, i32, i32
  }
  func.func @transform_1(%arg0: i32) -> (i32, i32) {
    %c0_i32 = arith.constant 0 : i32
    %c0_i32_0 = arith.constant 0 : i32
    return %arg0, %c0_i32 : i32, i32
  }
}

module attributes {stable_mosaic.version = 11 : i64} {
  func.func @_tail_kernel(%arg0: i32, %arg1: memref<16x256xbf16, #tpu.memory_space<vmem>>, %arg2: memref<256x384xbf16, #tpu.memory_space<vmem>>, %arg3: memref<1x384xf32, #tpu.memory_space<vmem>>, %arg4: memref<384x384xbf16, #tpu.memory_space<vmem>>, %arg5: memref<1x384xf32, #tpu.memory_space<vmem>>, %arg6: memref<384x256xbf16, #tpu.memory_space<vmem>>, %arg7: memref<1x256xf32, #tpu.memory_space<vmem>>, %arg8: memref<256x256xbf16, #tpu.memory_space<vmem>>, %arg9: memref<1x256xf32, #tpu.memory_space<vmem>>, %arg10: memref<256x256xbf16, #tpu.memory_space<vmem>>, %arg11: memref<1x256xf32, #tpu.memory_space<vmem>>, %arg12: memref<256x128xbf16, #tpu.memory_space<vmem>>, %arg13: memref<1x128xf32, #tpu.memory_space<vmem>>, %arg14: memref<16x128xf32, #tpu.memory_space<vmem>>) attributes {dimension_semantics = [#tpu.dimension_semantics<parallel>], iteration_bounds = array<i64: 1>, scalar_prefetch = 0 : i64, scratch_operands = 0 : i64, tpu.core_type = #tpu.core_type<tc>, window_params = [{transform_indices = @transform_0, window_bounds = array<i64: 16, 256>}, {pipeline_mode = #tpu.pipeline_mode<synchronous>, transform_indices = @transform_1, window_bounds = array<i64: 256, 384>}, {pipeline_mode = #tpu.pipeline_mode<synchronous>, transform_indices = @transform_2, window_bounds = array<i64: 1, 384>}, {pipeline_mode = #tpu.pipeline_mode<synchronous>, transform_indices = @transform_3, window_bounds = array<i64: 384, 384>}, {pipeline_mode = #tpu.pipeline_mode<synchronous>, transform_indices = @transform_4, window_bounds = array<i64: 1, 384>}, {pipeline_mode = #tpu.pipeline_mode<synchronous>, transform_indices = @transform_5, window_bounds = array<i64: 384, 256>}, {pipeline_mode = #tpu.pipeline_mode<synchronous>, transform_indices = @transform_6, window_bounds = array<i64: 1, 256>}, {pipeline_mode = #tpu.pipeline_mode<synchronous>, transform_indices = @transform_7, window_bounds = array<i64: 256, 256>}, {pipeline_mode = #tpu.pipeline_mode<synchronous>, transform_indices = @transform_8, window_bounds = array<i64: 1, 256>}, {pipeline_mode = #tpu.pipeline_mode<synchronous>, transform_indices = @transform_9, window_bounds = array<i64: 256, 256>}, {pipeline_mode = #tpu.pipeline_mode<synchronous>, transform_indices = @transform_10, window_bounds = array<i64: 1, 256>}, {pipeline_mode = #tpu.pipeline_mode<synchronous>, transform_indices = @transform_11, window_bounds = array<i64: 256, 128>}, {pipeline_mode = #tpu.pipeline_mode<synchronous>, transform_indices = @transform_12, window_bounds = array<i64: 1, 128>}, {transform_indices = @transform_13, window_bounds = array<i64: 16, 128>}]} {
    %c0 = arith.constant 0 : index
    %c0_0 = arith.constant 0 : index
    %0 = vector.load %arg1[%c0, %c0_0] : memref<16x256xbf16, #tpu.memory_space<vmem>>, vector<16x256xbf16>
    %c0_1 = arith.constant 0 : index
    %c0_2 = arith.constant 0 : index
    %1 = vector.load %arg2[%c0_1, %c0_2] : memref<256x384xbf16, #tpu.memory_space<vmem>>, vector<256x384xbf16>
    %cst = arith.constant dense<0.000000e+00> : vector<16x384xf32>
    %2 = tpu.matmul %0, %1, %cst {dimension_numbers = #tpu.dot_dimension_numbers<[1], [0], [0], [1], [0, 0, 1, 1], [], []>} : vector<16x256xbf16>, vector<256x384xbf16>, vector<16x384xf32> -> vector<16x384xf32>
    %c0_3 = arith.constant 0 : index
    %c0_4 = arith.constant 0 : index
    %3 = vector.load %arg3[%c0_3, %c0_4] : memref<1x384xf32, #tpu.memory_space<vmem>>, vector<1x384xf32>
    %4 = vector.broadcast %3 : vector<1x384xf32> to vector<16x384xf32>
    %5 = arith.addf %2, %4 : vector<16x384xf32>
    %cst_5 = arith.constant 0.000000e+00 : f32
    %6 = vector.broadcast %cst_5 : f32 to vector<16x384xf32>
    %7 = arith.maximumf %5, %6 : vector<16x384xf32>
    %8 = arith.truncf %7 : vector<16x384xf32> to vector<16x384xbf16>
    %c0_6 = arith.constant 0 : index
    %c0_7 = arith.constant 0 : index
    %9 = vector.load %arg4[%c0_6, %c0_7] : memref<384x384xbf16, #tpu.memory_space<vmem>>, vector<384x384xbf16>
    %cst_8 = arith.constant dense<0.000000e+00> : vector<16x384xf32>
    %10 = tpu.matmul %8, %9, %cst_8 {dimension_numbers = #tpu.dot_dimension_numbers<[1], [0], [0], [1], [0, 0, 1, 1], [], []>} : vector<16x384xbf16>, vector<384x384xbf16>, vector<16x384xf32> -> vector<16x384xf32>
    %c0_9 = arith.constant 0 : index
    %c0_10 = arith.constant 0 : index
    %11 = vector.load %arg5[%c0_9, %c0_10] : memref<1x384xf32, #tpu.memory_space<vmem>>, vector<1x384xf32>
    %12 = vector.broadcast %11 : vector<1x384xf32> to vector<16x384xf32>
    %13 = arith.addf %10, %12 : vector<16x384xf32>
    %cst_11 = arith.constant 0.000000e+00 : f32
    %14 = vector.broadcast %cst_11 : f32 to vector<16x384xf32>
    %15 = arith.maximumf %13, %14 : vector<16x384xf32>
    %16 = arith.truncf %15 : vector<16x384xf32> to vector<16x384xbf16>
    %c0_12 = arith.constant 0 : index
    %c0_13 = arith.constant 0 : index
    %17 = vector.load %arg6[%c0_12, %c0_13] : memref<384x256xbf16, #tpu.memory_space<vmem>>, vector<384x256xbf16>
    %cst_14 = arith.constant dense<0.000000e+00> : vector<16x256xf32>
    %18 = tpu.matmul %16, %17, %cst_14 {dimension_numbers = #tpu.dot_dimension_numbers<[1], [0], [0], [1], [0, 0, 1, 1], [], []>} : vector<16x384xbf16>, vector<384x256xbf16>, vector<16x256xf32> -> vector<16x256xf32>
    %c0_15 = arith.constant 0 : index
    %c0_16 = arith.constant 0 : index
    %19 = vector.load %arg7[%c0_15, %c0_16] : memref<1x256xf32, #tpu.memory_space<vmem>>, vector<1x256xf32>
    %20 = vector.broadcast %19 : vector<1x256xf32> to vector<16x256xf32>
    %21 = arith.addf %18, %20 : vector<16x256xf32>
    %cst_17 = arith.constant 0.000000e+00 : f32
    %22 = vector.broadcast %cst_17 : f32 to vector<16x256xf32>
    %23 = arith.maximumf %21, %22 : vector<16x256xf32>
    %24 = arith.truncf %23 : vector<16x256xf32> to vector<16x256xbf16>
    %c0_18 = arith.constant 0 : index
    %c0_19 = arith.constant 0 : index
    %25 = vector.load %arg8[%c0_18, %c0_19] : memref<256x256xbf16, #tpu.memory_space<vmem>>, vector<256x256xbf16>
    %cst_20 = arith.constant dense<0.000000e+00> : vector<16x256xf32>
    %26 = tpu.matmul %24, %25, %cst_20 {dimension_numbers = #tpu.dot_dimension_numbers<[1], [0], [0], [1], [0, 0, 1, 1], [], []>} : vector<16x256xbf16>, vector<256x256xbf16>, vector<16x256xf32> -> vector<16x256xf32>
    %c0_21 = arith.constant 0 : index
    %c0_22 = arith.constant 0 : index
    %27 = vector.load %arg9[%c0_21, %c0_22] : memref<1x256xf32, #tpu.memory_space<vmem>>, vector<1x256xf32>
    %28 = vector.broadcast %27 : vector<1x256xf32> to vector<16x256xf32>
    %29 = arith.addf %26, %28 : vector<16x256xf32>
    %cst_23 = arith.constant 0.000000e+00 : f32
    %30 = vector.broadcast %cst_23 : f32 to vector<16x256xf32>
    %31 = arith.maximumf %29, %30 : vector<16x256xf32>
    %32 = arith.truncf %31 : vector<16x256xf32> to vector<16x256xbf16>
    %c0_24 = arith.constant 0 : index
    %c0_25 = arith.constant 0 : index
    %33 = vector.load %arg10[%c0_24, %c0_25] : memref<256x256xbf16, #tpu.memory_space<vmem>>, vector<256x256xbf16>
    %cst_26 = arith.constant dense<0.000000e+00> : vector<16x256xf32>
    %34 = tpu.matmul %32, %33, %cst_26 {dimension_numbers = #tpu.dot_dimension_numbers<[1], [0], [0], [1], [0, 0, 1, 1], [], []>} : vector<16x256xbf16>, vector<256x256xbf16>, vector<16x256xf32> -> vector<16x256xf32>
    %c0_27 = arith.constant 0 : index
    %c0_28 = arith.constant 0 : index
    %35 = vector.load %arg11[%c0_27, %c0_28] : memref<1x256xf32, #tpu.memory_space<vmem>>, vector<1x256xf32>
    %36 = vector.broadcast %35 : vector<1x256xf32> to vector<16x256xf32>
    %37 = arith.addf %34, %36 : vector<16x256xf32>
    %cst_29 = arith.constant 0.000000e+00 : f32
    %38 = vector.broadcast %cst_29 : f32 to vector<16x256xf32>
    %39 = arith.maximumf %37, %38 : vector<16x256xf32>
    %40 = arith.truncf %39 : vector<16x256xf32> to vector<16x256xbf16>
    %c0_30 = arith.constant 0 : index
    %c0_31 = arith.constant 0 : index
    %41 = vector.load %arg12[%c0_30, %c0_31] : memref<256x128xbf16, #tpu.memory_space<vmem>>, vector<256x128xbf16>
    %cst_32 = arith.constant dense<0.000000e+00> : vector<16x128xf32>
    %42 = tpu.matmul %40, %41, %cst_32 {dimension_numbers = #tpu.dot_dimension_numbers<[1], [0], [0], [1], [0, 0, 1, 1], [], []>} : vector<16x256xbf16>, vector<256x128xbf16>, vector<16x128xf32> -> vector<16x128xf32>
    %c0_33 = arith.constant 0 : index
    %c0_34 = arith.constant 0 : index
    %43 = vector.load %arg13[%c0_33, %c0_34] : memref<1x128xf32, #tpu.memory_space<vmem>>, vector<1x128xf32>
    %44 = vector.broadcast %43 : vector<1x128xf32> to vector<16x128xf32>
    %45 = arith.addf %42, %44 : vector<16x128xf32>
    %c0_35 = arith.constant 0 : index
    %c0_36 = arith.constant 0 : index
    %46 = vector.load %arg14[%c0_35, %c0_36] : memref<16x128xf32, #tpu.memory_space<vmem>>, vector<16x128xf32>
    tpu.vector_store %arg14[%c0_35, %c0_36], %45 {strides = array<i32>} : memref<16x128xf32, #tpu.memory_space<vmem>>, vector<16x128xf32>,
    return
  }
  func.func @transform_0(%arg0: i32) -> (i32, i32) {
    %c0_i32 = arith.constant 0 : i32
    %c0_i32_0 = arith.constant 0 : i32
    return %arg0, %c0_i32 : i32, i32
  }
  func.func @transform_1(%arg0: i32) -> (i32, i32) {
    %c0_i32 = arith.constant 0 : i32
    %c0_i32_0 = arith.constant 0 : i32
    %c0_i32_1 = arith.constant 0 : i32
    return %c0_i32, %c0_i32_0 : i32, i32
  }
  func.func @transform_2(%arg0: i32) -> (i32, i32) {
    %c0_i32 = arith.constant 0 : i32
    %c0_i32_0 = arith.constant 0 : i32
    %c0_i32_1 = arith.constant 0 : i32
    return %c0_i32, %c0_i32_0 : i32, i32
  }
  func.func @transform_3(%arg0: i32) -> (i32, i32) {
    %c0_i32 = arith.constant 0 : i32
    %c0_i32_0 = arith.constant 0 : i32
    %c0_i32_1 = arith.constant 0 : i32
    return %c0_i32, %c0_i32_0 : i32, i32
  }
  func.func @transform_4(%arg0: i32) -> (i32, i32) {
    %c0_i32 = arith.constant 0 : i32
    %c0_i32_0 = arith.constant 0 : i32
    %c0_i32_1 = arith.constant 0 : i32
    return %c0_i32, %c0_i32_0 : i32, i32
  }
  func.func @transform_5(%arg0: i32) -> (i32, i32) {
    %c0_i32 = arith.constant 0 : i32
    %c0_i32_0 = arith.constant 0 : i32
    %c0_i32_1 = arith.constant 0 : i32
    return %c0_i32, %c0_i32_0 : i32, i32
  }
  func.func @transform_6(%arg0: i32) -> (i32, i32) {
    %c0_i32 = arith.constant 0 : i32
    %c0_i32_0 = arith.constant 0 : i32
    %c0_i32_1 = arith.constant 0 : i32
    return %c0_i32, %c0_i32_0 : i32, i32
  }
  func.func @transform_7(%arg0: i32) -> (i32, i32) {
    %c0_i32 = arith.constant 0 : i32
    %c0_i32_0 = arith.constant 0 : i32
    %c0_i32_1 = arith.constant 0 : i32
    return %c0_i32, %c0_i32_0 : i32, i32
  }
  func.func @transform_8(%arg0: i32) -> (i32, i32) {
    %c0_i32 = arith.constant 0 : i32
    %c0_i32_0 = arith.constant 0 : i32
    %c0_i32_1 = arith.constant 0 : i32
    return %c0_i32, %c0_i32_0 : i32, i32
  }
  func.func @transform_9(%arg0: i32) -> (i32, i32) {
    %c0_i32 = arith.constant 0 : i32
    %c0_i32_0 = arith.constant 0 : i32
    %c0_i32_1 = arith.constant 0 : i32
    return %c0_i32, %c0_i32_0 : i32, i32
  }
  func.func @transform_10(%arg0: i32) -> (i32, i32) {
    %c0_i32 = arith.constant 0 : i32
    %c0_i32_0 = arith.constant 0 : i32
    %c0_i32_1 = arith.constant 0 : i32
    return %c0_i32, %c0_i32_0 : i32, i32
  }
  func.func @transform_11(%arg0: i32) -> (i32, i32) {
    %c0_i32 = arith.constant 0 : i32
    %c0_i32_0 = arith.constant 0 : i32
    %c0_i32_1 = arith.constant 0 : i32
    return %c0_i32, %c0_i32_0 : i32, i32
  }
  func.func @transform_12(%arg0: i32) -> (i32, i32) {
    %c0_i32 = arith.constant 0 : i32
    %c0_i32_0 = arith.constant 0 : i32
    %c0_i32_1 = arith.constant 0 : i32
    return %c0_i32, %c0_i32_0 : i32, i32
  }
  func.func @transform_13(%arg0: i32) -> (i32, i32) {
    %c0_i32 = arith.constant 0 : i32
    %c0_i32_0 = arith.constant 0 : i32
    return %arg0, %c0_i32 : i32, i32
  }
}

</mosaic_0001>

<bundles_post_ra>
// kernel: alexnet_forward.5
= control target key start
LH: loop header
LB: loop body
LE: loop exit
PB: predicated region body
PF: predicated region fallthrough
CT: control target
= control target key end

     0   :  { %s1657_s1 = inlined_call_operand.vmem [shape: bf16[384,128], index: 1, kind: input, shape index: {}]   ;;  %s1658_s2 = inlined_call_operand.vmem [shape: f32[1,128], index: 2, kind: input, shape index: {}]   ;;  %s1659_s0 = inlined_call_operand.vmem [shape: bf16[208,384], index: 0, kind: input, shape index: {}]   ;;  %s1660_s3 = inlined_call_operand.vmem [shape: bf16[208,128], index: 3, kind: output, shape index: {}]  }
   0x1   :  { %v1072_v0 = vld [vmem:[%s1657_s1 + $0x38] sm:$0xff]  ;;  %v1071_v3 = vld [vmem:[%s1657_s1 + $0x30] sm:$0xff]  ;;  %v1070_v6 = vld [vmem:[%s1657_s1 + $0x28] sm:$0xff] }
   0x2   :  { %v1217_v1 = vld [vmem:[%s1657_s1 + $0x78] sm:$0xff]  ;;  %470 = vmatpush.bf16.msra.mxu0 %v1072_v0  ;;  %1166 = vmatpush.bf16.msra.mxu3 %v1072_v0  ;;  %v1232_v4 = vld [vmem:[%s1657_s1 + $0x70] sm:$0xff]  ;;  %v1078_v7 = vld [vmem:[%s1657_s1 + $0x68] sm:$0xff] }
   0x3   :  { %v1222_v2 = vld [vmem:[%s1657_s1 + $0xb8] sm:$0xff]  ;;  %544 = vmatpush.bf16.msra.mxu1 %v1217_v1  ;;  %v1237_v5 = vld [vmem:[%s1657_s1 + $0xb0] sm:$0xff]  ;;  %v1250_v8 = vld [vmem:[%s1657_s1 + $0xa8] sm:$0xff] }
   0x4   :  { %618 = vmatpush.bf16.msra.mxu2 %v1222_v2  ;;  %v1069_v9 = vld [vmem:[%s1657_s1 + $0x20] sm:$0xff]  ;;  %v1068_v12 = vld [vmem:[%s1657_s1 + $0x18] sm:$0xff]  ;;  %v1067_v15 = vld [vmem:[%s1657_s1 + $0x10] sm:$0xff] }
   0x5   :  { %v1077_v10 = vld [vmem:[%s1657_s1 + $0x60] sm:$0xff]  ;;  %v1076_v13 = vld [vmem:[%s1657_s1 + $0x58] sm:$0xff]  ;;  %v1075_v16 = vld [vmem:[%s1657_s1 + $0x50] sm:$0xff] }
   0x6   :  { %471 = vmatpush.bf16.msra.mxu0 %v1071_v3  ;;  %1167 = vmatpush.bf16.msra.mxu3 %v1071_v3  ;;  %v1262_v11 = vld [vmem:[%s1657_s1 + $0xa0] sm:$0xff]  ;;  %v1274_v14 = vld [vmem:[%s1657_s1 + $0x98] sm:$0xff]  ;;  %v1286_v17 = vld [vmem:[%s1657_s1 + $0x90] sm:$0xff] }
   0x7   :  { %545 = vmatpush.bf16.msra.mxu1 %v1232_v4  ;;  %v1066_v18 = vld [vmem:[%s1657_s1 + $0x8] sm:$0xff]  ;;  %v1065_v21 = vld [vmem:[%s1657_s1] sm:$0xff]  ;;  %v896_v26 = vld [vmem:[%s1659_s0 + $0xf0] sm:$0xf] }
   0x8   :  { %619 = vmatpush.bf16.msra.mxu2 %v1237_v5  ;;  %v1074_v19 = vld [vmem:[%s1657_s1 + $0x48] sm:$0xff]  ;;  %v1073_v22 = vld [vmem:[%s1657_s1 + $0x40] sm:$0xff]  ;;  %v1057_v27 = vld [vmem:[%s1659_s0 + $0xf8] sm:$0xf0] }
   0x9   :  { %v1298_v20 = vld [vmem:[%s1657_s1 + $0x88] sm:$0xff]  ;;  %v1309_v23 = vld [vmem:[%s1657_s1 + $0x80] sm:$0xff]  ;;  %v778_v29 = vld [vmem:[%s1659_s0 + $0xc] sm:$0xf0]  ;;  %v897_v33 = vor.u32 %v1057_v27, %v896_v26 }
   0xa   :  { %472 = vmatpush.bf16.msra.mxu0 %v1070_v6  ;;  %1168 = vmatpush.bf16.msra.mxu3 %v1070_v6  ;;  %v776_v24 = vld [vmem:[%s1659_s0] sm:$0xf]  ;;  %v1027_v25 = vld [vmem:[%s1659_s0 + $0x8] sm:$0xf0]  ;;  %v1026_v28 = vld [vmem:[%s1659_s0 + $0x4] sm:$0xf] }
   0xb   :  { %546 = vmatpush.bf16.msra.mxu1 %v1078_v7  ;;  %v784_v30 = vld [vmem:[%s1659_s0 + $0x8] sm:$0xf]  ;;  %v1028_v31 = vld [vmem:[%s1659_s0 + $0x10] sm:$0xf0]  ;;  %v777_v32 = vor.u32 %v1027_v25, %v776_v24  ;;  %v781_v34 = vor.u32 %v1026_v28, %v778_v29  ;;  %v788_v36 = vld [vmem:[%s1659_s0 + $0x18] sm:$0xf] }
   0xc   :  { %620 = vmatpush.bf16.msra.mxu2 %v1250_v8  ;;  %v785_v35 = vor.u32 %v1028_v31, %v784_v30  ;;  %v1030_v37 = vld [vmem:[%s1659_s0 + $0x20] sm:$0xf0]  ;;  %v908_v38 = vld [vmem:[%s1659_s0 + $0x108] sm:$0xf]  ;;  %v1060_v39 = vld [vmem:[%s1659_s0 + $0x110] sm:$0xf0] }
   0xd   :  { %v1029_v40 = vld [vmem:[%s1659_s0 + $0x1c] sm:$0xf]  ;;  %v790_v41 = vld [vmem:[%s1659_s0 + $0x24] sm:$0xf0]  ;;  %v796_v42 = vld [vmem:[%s1659_s0 + $0x20] sm:$0xf]  ;;  %v789_v44 = vor.u32 %v1030_v37, %v788_v36  ;;  %v909_v45 = vor.u32 %v1060_v39, %v908_v38 }
   0xe   :  { %473 = vmatpush.bf16.msra.mxu0 %v1069_v9  ;;  %1169 = vmatpush.bf16.msra.mxu3 %v1069_v9  ;;  %v1031_v43 = vld [vmem:[%s1659_s0 + $0x28] sm:$0xf0]  ;;  %v793_v46 = vor.u32 %v1029_v40, %v790_v41  ;;  %v800_v48 = vld [vmem:[%s1659_s0 + $0x30] sm:$0xf]  ;;  %v1033_v49 = vld [vmem:[%s1659_s0 + $0x38] sm:$0xf0] }
   0xf   :  { %547 = vmatpush.bf16.msra.mxu1 %v1077_v10  ;;  %v797_v47 = vor.u32 %v1031_v43, %v796_v42  ;;  %v920_v50 = vld [vmem:[%s1659_s0 + $0x120] sm:$0xf]  ;;  %v1063_v51 = vld [vmem:[%s1659_s0 + $0x128] sm:$0xf0]  ;;  %v1032_v52 = vld [vmem:[%s1659_s0 + $0x34] sm:$0xf]  ;;  %v801_v56 = vor.u32 %v1033_v49, %v800_v48 }
  0x10   :  { %621 = vmatpush.bf16.msra.mxu2 %v1262_v11  ;;  %v802_v53 = vld [vmem:[%s1659_s0 + $0x3c] sm:$0xf0]  ;;  %v808_v54 = vld [vmem:[%s1659_s0 + $0x38] sm:$0xf]  ;;  %v1034_v55 = vld [vmem:[%s1659_s0 + $0x40] sm:$0xf0]  ;;  %v921_v57 = vor.u32 %v1063_v51, %v920_v50 }
  0x11   :  { %v805_v58 = vor.u32 %v1032_v52, %v802_v53  ;;  %v809_v59 = vor.u32 %v1034_v55, %v808_v54  ;;  %v812_v60 = vld [vmem:[%s1659_s0 + $0x48] sm:$0xf]  ;;  %v1036_v61 = vld [vmem:[%s1659_s0 + $0x50] sm:$0xf0]  ;;  %v1035_v62 = vld [vmem:[%s1659_s0 + $0x4c] sm:$0xf] }
  0x12   :  { %474 = vmatpush.bf16.msra.mxu0 %v1068_v12  ;;  %1170 = vmatpush.bf16.msra.mxu3 %v1068_v12  ;;  %v1056_v63 = vld [vmem:[%s1659_s0 + $0xf4] sm:$0xf]  ;;  %v898_v0 = vld [vmem:[%s1659_s0 + $0xfc] sm:$0xf0]  ;;  %v1037_v3 = vld [vmem:[%s1659_s0 + $0x58] sm:$0xf0] }
  0x13   :  { %548 = vmatpush.bf16.msra.mxu1 %v1076_v13  ;;  %v1039_v9 = vld [vmem:[%s1659_s0 + $0x68] sm:$0xf0]  ;;  %v910_v12 = vld [vmem:[%s1659_s0 + $0x114] sm:$0xf0]  ;;  %v922_v24 = vld [vmem:[%s1659_s0 + $0x12c] sm:$0xf0] }
  0x14   :  { %622 = vmatpush.bf16.msra.mxu2 %v1274_v14  ;;  %v838_v25 = vld [vmem:[%s1659_s0 + $0x84] sm:$0xf0]  ;;  %v844_v26 = vld [vmem:[%s1659_s0 + $0x80] sm:$0xf]  ;;  %v1043_v27 = vld [vmem:[%s1659_s0 + $0x88] sm:$0xf0] }
  0x15   :  { %v845_v31 = vor.u32 %v1043_v27, %v844_v26  ;;  %v1058_v36 = vld [vmem:[%s1659_s0 + $0x100] sm:$0xf0]  ;;  %v850_v37 = vld [vmem:[%s1659_s0 + $0x9c] sm:$0xf0]  ;;  %v856_v38 = vld [vmem:[%s1659_s0 + $0x98] sm:$0xf] }
  0x16   :  { %475 = vmatpush.bf16.msra.mxu0 %v1067_v15  ;;  %1171 = vmatpush.bf16.msra.mxu3 %v1067_v15  ;;  %v1040_v15 = vld [vmem:[%s1659_s0 + $0x70] sm:$0xf0]  ;;  %v1046_v39 = vld [vmem:[%s1659_s0 + $0xa0] sm:$0xf0]  ;;  %v1061_v48 = vld [vmem:[%s1659_s0 + $0x118] sm:$0xf0] }
  0x17   :  { %549 = vmatpush.bf16.msra.mxu1 %v1075_v16  ;;  %v857_v43 = vor.u32 %v1046_v39, %v856_v38  ;;  %v862_v49 = vld [vmem:[%s1659_s0 + $0xb4] sm:$0xf0]  ;;  %v868_v50 = vld [vmem:[%s1659_s0 + $0xb0] sm:$0xf]  ;;  %v1049_v51 = vld [vmem:[%s1659_s0 + $0xb8] sm:$0xf0] }
  0x18   :  { %623 = vmatpush.bf16.msra.mxu2 %v1286_v17  ;;  %v869_v55 = vor.u32 %v1049_v51, %v868_v50 }
  0x1a   :  { %476 = vmatpush.bf16.msra.mxu0 %v1066_v18  ;;  %1172 = vmatpush.bf16.msra.mxu3 %v1066_v18 }
  0x1b   :  { %550 = vmatpush.bf16.msra.mxu1 %v1074_v19 }
  0x1c   :  { %624 = vmatpush.bf16.msra.mxu2 %v1298_v20 }
  0x1e   :  { %477 = vmatpush.bf16.msra.mxu0 %v1065_v21  ;;  %1173 = vmatpush.bf16.msra.mxu3 %v1065_v21  ;;  %v1042_v21 = vld [vmem:[%s1659_s0 + $0x80] sm:$0xf0] }
  0x1f   :  { %551 = vmatpush.bf16.msra.mxu1 %v1073_v22 }
  0x20   :  { %625 = vmatpush.bf16.msra.mxu2 %v1309_v23 }
  0x21   :  { %478 = vmatmul.bf16.vlgmr.msra.gmra.mxu0 %v777_v32  ;;  %528 = vmatmul.bf16.vlgmr.msra.gmra.mxu3 %v897_v33  ;;  %v848_v32 = vld [vmem:[%s1659_s0 + $0x90] sm:$0xf]  ;;  %v1045_v33 = vld [vmem:[%s1659_s0 + $0x98] sm:$0xf0] }
  0x22   :  { %1174 = vmatpush.bf16.msrb.mxu3 %v1217_v1  ;;  %552 = vmatmul.bf16.vlgmr.msra.gmra.mxu1 %v781_v34  ;;  %v814_v1 = vld [vmem:[%s1659_s0 + $0x54] sm:$0xf0]  ;;  %v1044_v34 = vld [vmem:[%s1659_s0 + $0x94] sm:$0xf]  ;;  %v849_v40 = vor.u32 %v1045_v33, %v848_v32 }
  0x23   :  { %626 = vmatmul.bf16.vlgmr.msra.gmra.mxu2 %v785_v35  ;;  %v817_v6 = vor.u32 %v1035_v62, %v814_v1  ;;  %v904_v35 = vld [vmem:[%s1659_s0 + $0xf8] sm:$0xf]  ;;  %v853_v42 = vor.u32 %v1044_v34, %v850_v37  ;;  %v880_v62 = vld [vmem:[%s1659_s0 + $0xc8] sm:$0xf] }
  0x24   :  { %v905_v41 = vor.u32 %v1058_v36, %v904_v35 }
  0x26   :  { %1175 = vmatpush.bf16.msrb.mxu3 %v1232_v4  ;;  %v813_v4 = vor.u32 %v1036_v61, %v812_v60  ;;  %v1064_v60 = vld [vmem:[%s1659_s0 + $0x130] sm:$0xf0]  ;;  %v874_v61 = vld [vmem:[%s1659_s0 + $0xcc] sm:$0xf0] }
  0x2a   :  { %1176 = vmatpush.bf16.msrb.mxu3 %v1078_v7 }
  0x2e   :  { %1177 = vmatpush.bf16.msrb.mxu3 %v1077_v10  ;;  %v1038_v10 = vld [vmem:[%s1659_s0 + $0x64] sm:$0xf] }
  0x31   :  { %483 = vmatmul.bf16.gmra.mxu0 %v789_v44  ;;  %533 = vmatmul.bf16.gmra.mxu3 %v909_v45  ;;  %v860_v44 = vld [vmem:[%s1659_s0 + $0xa8] sm:$0xf]  ;;  %v1048_v45 = vld [vmem:[%s1659_s0 + $0xb0] sm:$0xf0] }
  0x32   :  { %1178 = vmatpush.bf16.msrb.mxu3 %v1076_v13  ;;  %557 = vmatmul.bf16.gmra.mxu1 %v793_v46  ;;  %v826_v13 = vld [vmem:[%s1659_s0 + $0x6c] sm:$0xf0]  ;;  %v1047_v46 = vld [vmem:[%s1659_s0 + $0xac] sm:$0xf]  ;;  %v861_v52 = vor.u32 %v1048_v45, %v860_v44 }
  0x33   :  { %631 = vmatmul.bf16.gmra.mxu2 %v797_v47  ;;  %v829_v18 = vor.u32 %v1038_v10, %v826_v13  ;;  %v916_v47 = vld [vmem:[%s1659_s0 + $0x110] sm:$0xf]  ;;  %v865_v54 = vor.u32 %v1047_v46, %v862_v49 }
  0x34   :  { %v917_v53 = vor.u32 %v1061_v48, %v916_v47 }
  0x36   :  { %1179 = vmatpush.bf16.msrb.mxu3 %v1075_v16 }
  0x3a   :  { %1180 = vmatpush.bf16.msrb.mxu3 %v1074_v19 }
  0x3e   :  { %1181 = vmatpush.bf16.msrb.mxu3 %v1073_v22  ;;  %v1041_v22 = vld [vmem:[%s1659_s0 + $0x7c] sm:$0xf] }
  0x3f   :  { %v841_v30 = vor.u32 %v1041_v22, %v838_v25 }
  0x41   :  { %488 = vmatmul.bf16.gmra.mxu0 %v801_v56  ;;  %538 = vmatmul.bf16.gmra.mxu3 %v921_v57  ;;  %v872_v56 = vld [vmem:[%s1659_s0 + $0xc0] sm:$0xf]  ;;  %v1051_v57 = vld [vmem:[%s1659_s0 + $0xc8] sm:$0xf0] }
  0x42   :  { %1182 = vmatpush.bf16.msra.mxu3 %v1222_v2  ;;  %562 = vmatmul.bf16.gmra.mxu1 %v805_v58  ;;  %v820_v2 = vld [vmem:[%s1659_s0 + $0x50] sm:$0xf]  ;;  %v1050_v58 = vld [vmem:[%s1659_s0 + $0xc4] sm:$0xf] }
  0x43   :  { %636 = vmatmul.bf16.gmra.mxu2 %v809_v59  ;;  %v821_v7 = vor.u32 %v1037_v3, %v820_v2  ;;  %v928_v59 = vld [vmem:[%s1659_s0 + $0x128] sm:$0xf]  ;;  %v877_v3 = vor.u32 %v1050_v58, %v874_v61 }
  0x44   :  { %v929_v1 = vor.u32 %v1064_v60, %v928_v59 }
  0x46   :  { %1183 = vmatpush.bf16.msra.mxu3 %v1237_v5  ;;  %v901_v5 = vor.u32 %v1056_v63, %v898_v0  ;;  %v1052_v63 = vld [vmem:[%s1659_s0 + $0xd0] sm:$0xf0]  ;;  %v873_v0 = vor.u32 %v1051_v57, %v872_v56 }
  0x4a   :  { %1184 = vmatpush.bf16.msra.mxu3 %v1250_v8  ;;  %v824_v8 = vld [vmem:[%s1659_s0 + $0x60] sm:$0xf] }
  0x4b   :  { %v825_v16 = vor.u32 %v1039_v9, %v824_v8 }
  0x4e   :  { %1185 = vmatpush.bf16.msra.mxu3 %v1262_v11  ;;  %v1059_v11 = vld [vmem:[%s1659_s0 + $0x10c] sm:$0xf] }
  0x51   :  { %493 = vmatmul.bf16.gmra.mxu0 %v813_v4  ;;  %602 = vmatmul.bf16.vlgmr.msrb.gmra.mxu3 %v901_v5  ;;  %v881_v4 = vor.u32 %v1052_v63, %v880_v62 }
  0x52   :  { %1186 = vmatpush.bf16.msra.mxu3 %v1274_v14  ;;  %567 = vmatmul.bf16.gmra.mxu1 %v817_v6  ;;  %v832_v14 = vld [vmem:[%s1659_s0 + $0x68] sm:$0xf]  ;;  %v1542_v6 = vld [vmem:[%s1658_s2] ss:$0 sm:$0xff] }
  0x53   :  { %641 = vmatmul.bf16.gmra.mxu2 %v821_v7  ;;  %v833_v19 = vor.u32 %v1040_v15, %v832_v14  ;;  %v884_v14 = vld [vmem:[%s1659_s0 + $0xd8] sm:$0xf]  ;;  %v1054_v15 = vld [vmem:[%s1659_s0 + $0xe0] sm:$0xf0] }
  0x56   :  { %1187 = vmatpush.bf16.msra.mxu3 %v1286_v17  ;;  %v913_v17 = vor.u32 %v1059_v11, %v910_v12 }
  0x5a   :  { %1188 = vmatpush.bf16.msra.mxu3 %v1298_v20  ;;  %v836_v20 = vld [vmem:[%s1659_s0 + $0x78] sm:$0xf] }
  0x5b   :  { %v837_v28 = vor.u32 %v1042_v21, %v836_v20 }
  0x5e   :  { %1189 = vmatpush.bf16.msra.mxu3 %v1309_v23  ;;  %v1062_v23 = vld [vmem:[%s1659_s0 + $0x124] sm:$0xf] }
  0x5f   :  { %v925_v29 = vor.u32 %v1062_v23, %v922_v24  ;;  %v885_v24 = vor.u32 %v1054_v15, %v884_v14 }
  0x61   :  { %498 = vmatmul.bf16.gmra.mxu0 %v825_v16  ;;  %607 = vmatmul.bf16.gmra.mxu3 %v913_v17  ;;  %v1053_v16 = vld [vmem:[%s1659_s0 + $0xdc] sm:$0xf]  ;;  %v886_v17 = vld [vmem:[%s1659_s0 + $0xe4] sm:$0xf0] }
  0x62   :  { %572 = vmatmul.bf16.gmra.mxu1 %v829_v18  ;;  %v892_v18 = vld [vmem:[%s1659_s0 + $0xe0] sm:$0xf]  ;;  %v889_v27 = vor.u32 %v1053_v16, %v886_v17 }
  0x63   :  { %646 = vmatmul.bf16.gmra.mxu2 %v833_v19  ;;  %v1055_v19 = vld [vmem:[%s1659_s0 + $0xe8] sm:$0xf0] }
  0x71   :  { %503 = vmatmul.bf16.gmra.mxu0 %v837_v28  ;;  %612 = vmatmul.bf16.gmra.mxu3 %v925_v29  ;;  %v893_v28 = vor.u32 %v1055_v19, %v892_v18 }
  0x72   :  { %577 = vmatmul.bf16.gmra.mxu1 %v841_v30 }
  0x73   :  { %651 = vmatmul.bf16.gmra.mxu2 %v845_v31 }
  0x81   :  { %508 = vmatmul.bf16.gmra.mxu0 %v849_v40  ;;  %676 = vmatmul.bf16.vlgmr.msra.gmra.mxu3 %v905_v41 }
  0x82   :  { %582 = vmatmul.bf16.gmra.mxu1 %v853_v42 }
  0x83   :  { %656 = vmatmul.bf16.gmra.mxu2 %v857_v43 }
  0x91   :  { %513 = vmatmul.bf16.gmra.mxu0 %v861_v52  ;;  %681 = vmatmul.bf16.gmra.mxu3 %v917_v53 }
  0x92   :  { %587 = vmatmul.bf16.gmra.mxu1 %v865_v54 }
  0x93   :  { %661 = vmatmul.bf16.gmra.mxu2 %v869_v55 }
  0x9e   :  { %v479_v2 = vpop.f32.mrf.mxu0 }
  0x9f   :  { %v553_v5 = vpop.f32.mrf.mxu1  ;;  %v480_v7 = vadd.f32 %v1542_v6, %v479_v2 }
  0xa1   :  { %518 = vmatmul.bf16.gmra.mxu0 %v873_v0  ;;  %686 = vmatmul.bf16.gmra.mxu3 %v929_v1  ;;  %v554_v12 = vadd.f32 %v553_v5, %v480_v7 }
  0xa2   :  { %592 = vmatmul.bf16.gmra.mxu1 %v877_v3 }
  0xa3   :  { %666 = vmatmul.bf16.gmra.mxu2 %v881_v4 }
  0xa4   :  { %v1545_v8 = vpop.f32.mrf.mxu3 }
  0xa6   :  { %v627_v9 = vpop.f32.mrf.mxu2  ;;  %v481_v10 = vpop.f32.mrf.mxu0 }
  0xa7   :  { %v555_v11 = vpop.f32.mrf.mxu1  ;;  %v482_v13 = vadd.f32 %v1542_v6, %v481_v10  ;;  %v628_v20 = vadd.f32 %v627_v9, %v554_v12 }
  0xa9   :  { %v556_v21 = vadd.f32 %v555_v11, %v482_v13  ;;  %v692_v30 = vmax.f32 %v628_v20, 0.0 }
  0xac   :  { %v1566_v22 = vpop.f32.mrf.mxu3 }
  0xae   :  { %v629_v23 = vpop.f32.mrf.mxu2  ;;  %v484_v26 = vpop.f32.mrf.mxu0 }
  0xaf   :  { %v630_v25 = vadd.f32 %v629_v23, %v556_v21  ;;  %v558_v29 = vpop.f32.mrf.mxu1  ;;  %v485_v33 = vadd.f32 %v1542_v6, %v484_v26 }
  0xb1   :  { %v693_v31 = vmax.f32 %v630_v25, 0.0  ;;  %523 = vmatmul.bf16.gmra.mxu0 %v885_v24  ;;  %v559_v38 = vadd.f32 %v558_v29, %v485_v33 }
  0xb2   :  { %597 = vmatmul.bf16.gmra.mxu1 %v889_v27 }
  0xb3   :  { %v1092_v32 = vpack.c.bf16 %v693_v31, %v692_v30  ;;  %671 = vmatmul.bf16.gmra.mxu2 %v893_v28 }
  0xb4   :  { %v1572_v34 = vpop.f32.mrf.mxu3 }
  0xb5   :  { %1093 = vst [vmem:[%s1660_s3] sm:$0xff] %v1092_v32  }
  0xb6   :  { %v632_v35 = vpop.f32.mrf.mxu2  ;;  %v486_v36 = vpop.f32.mrf.mxu0 }
  0xb7   :  { %v560_v37 = vpop.f32.mrf.mxu1  ;;  %v487_v39 = vadd.f32 %v1542_v6, %v486_v36  ;;  %v633_v40 = vadd.f32 %v632_v35, %v559_v38 }
  0xb9   :  { %v561_v41 = vadd.f32 %v560_v37, %v487_v39  ;;  %v694_v47 = vmax.f32 %v633_v40, 0.0 }
  0xbc   :  { %v1575_v42 = vpop.f32.mrf.mxu3 }
  0xbe   :  { %v634_v43 = vpop.f32.mrf.mxu2  ;;  %v489_v45 = vpop.f32.mrf.mxu0 }
  0xbf   :  { %v635_v44 = vadd.f32 %v634_v43, %v561_v41  ;;  %v563_v46 = vpop.f32.mrf.mxu1  ;;  %v490_v50 = vadd.f32 %v1542_v6, %v489_v45 }
  0xc1   :  { %v695_v48 = vmax.f32 %v635_v44, 0.0  ;;  %v564_v55 = vadd.f32 %v563_v46, %v490_v50 }
  0xc3   :  { %v1097_v49 = vpack.c.bf16 %v695_v48, %v694_v47 }
  0xc4   :  { %v1581_v51 = vpop.f32.mrf.mxu3 }
  0xc5   :  { %1154 = vst [vmem:[%s1660_s3 + $0x8] sm:$0xff] %v1097_v49  }
  0xc6   :  { %v637_v52 = vpop.f32.mrf.mxu2  ;;  %v491_v53 = vpop.f32.mrf.mxu0 }
  0xc7   :  { %v565_v54 = vpop.f32.mrf.mxu1  ;;  %v492_v56 = vadd.f32 %v1542_v6, %v491_v53  ;;  %v638_v57 = vadd.f32 %v637_v52, %v564_v55 }
  0xc9   :  { %v566_v58 = vadd.f32 %v565_v54, %v492_v56  ;;  %v696_v0 = vmax.f32 %v638_v57, 0.0 }
  0xcc   :  { %v1584_v59 = vpop.f32.mrf.mxu3 }
  0xce   :  { %v639_v60 = vpop.f32.mrf.mxu2  ;;  %v494_v62 = vpop.f32.mrf.mxu0 }
  0xcf   :  { %v640_v61 = vadd.f32 %v639_v60, %v566_v58  ;;  %v568_v63 = vpop.f32.mrf.mxu1  ;;  %v495_v3 = vadd.f32 %v1542_v6, %v494_v62 }
  0xd1   :  { %v697_v1 = vmax.f32 %v640_v61, 0.0  ;;  %v569_v10 = vadd.f32 %v568_v63, %v495_v3 }
  0xd3   :  { %v1102_v2 = vpack.c.bf16 %v697_v1, %v696_v0  ;;  %v530_v1 = vadd.f32 %v1542_v6, %v1545_v8 }
  0xd4   :  { %v603_v4 = vpop.f32.mrf.mxu3 }
  0xd5   :  { %1155 = vst [vmem:[%s1660_s3 + $0x10] sm:$0xff] %v1102_v2  }
  0xd6   :  { %v642_v5 = vpop.f32.mrf.mxu2  ;;  %v496_v7 = vpop.f32.mrf.mxu0 }
  0xd7   :  { %v570_v9 = vpop.f32.mrf.mxu1  ;;  %v497_v11 = vadd.f32 %v1542_v6, %v496_v7  ;;  %v643_v12 = vadd.f32 %v642_v5, %v569_v10  ;;  %v532_v7 = vadd.f32 %v1542_v6, %v1566_v22 }
  0xd9   :  { %v571_v13 = vadd.f32 %v570_v9, %v497_v11  ;;  %v698_v19 = vmax.f32 %v643_v12, 0.0  ;;  %v604_v9 = vadd.f32 %v603_v4, %v530_v1 }
  0xdc   :  { %v605_v14 = vpop.f32.mrf.mxu3 }
  0xdd   :  { %v606_v10 = vadd.f32 %v605_v14, %v532_v7 }
  0xde   :  { %v644_v15 = vpop.f32.mrf.mxu2  ;;  %v499_v17 = vpop.f32.mrf.mxu0 }
  0xdf   :  { %v645_v16 = vadd.f32 %v644_v15, %v571_v13  ;;  %v573_v18 = vpop.f32.mrf.mxu1  ;;  %v500_v23 = vadd.f32 %v1542_v6, %v499_v17 }
  0xe1   :  { %v699_v20 = vmax.f32 %v645_v16, 0.0  ;;  %v574_v28 = vadd.f32 %v573_v18, %v500_v23 }
  0xe3   :  { %v1107_v21 = vpack.c.bf16 %v699_v20, %v698_v19 }
  0xe4   :  { %v1595_v24 = vpop.f32.mrf.mxu3 }
  0xe5   :  { %1156 = vst [vmem:[%s1660_s3 + $0x18] sm:$0xff] %v1107_v21  }
  0xe6   :  { %v647_v25 = vpop.f32.mrf.mxu2  ;;  %v501_v26 = vpop.f32.mrf.mxu0 }
  0xe7   :  { %v575_v27 = vpop.f32.mrf.mxu1  ;;  %v502_v29 = vadd.f32 %v1542_v6, %v501_v26  ;;  %v648_v30 = vadd.f32 %v647_v25, %v574_v28 }
  0xe9   :  { %v576_v31 = vadd.f32 %v575_v27, %v502_v29  ;;  %v700_v38 = vmax.f32 %v648_v30, 0.0  ;;  %v535_v29 = vadd.f32 %v1542_v6, %v1572_v34 }
  0xec   :  { %v1598_v32 = vpop.f32.mrf.mxu3 }
  0xee   :  { %v649_v33 = vpop.f32.mrf.mxu2  ;;  %v504_v36 = vpop.f32.mrf.mxu0 }
  0xef   :  { %v650_v35 = vadd.f32 %v649_v33, %v576_v31  ;;  %v578_v37 = vpop.f32.mrf.mxu1  ;;  %v505_v41 = vadd.f32 %v1542_v6, %v504_v36  ;;  %v609_v36 = vadd.f32 %v1595_v24, %v535_v29 }
  0xf1   :  { %v701_v39 = vmax.f32 %v650_v35, 0.0  ;;  %v579_v47 = vadd.f32 %v578_v37, %v505_v41  ;;  %v537_v35 = vadd.f32 %v1542_v6, %v1575_v42 }
  0xf3   :  { %v1112_v40 = vpack.c.bf16 %v701_v39, %v700_v38  ;;  %v611_v37 = vadd.f32 %v1598_v32, %v537_v35 }
  0xf4   :  { %v1604_v43 = vpop.f32.mrf.mxu3 }
  0xf5   :  { %1157 = vst [vmem:[%s1660_s3 + $0x20] sm:$0xff] %v1112_v40  }
  0xf6   :  { %v652_v44 = vpop.f32.mrf.mxu2  ;;  %v506_v45 = vpop.f32.mrf.mxu0 }
  0xf7   :  { %v580_v46 = vpop.f32.mrf.mxu1  ;;  %v507_v48 = vadd.f32 %v1542_v6, %v506_v45  ;;  %v653_v49 = vadd.f32 %v652_v44, %v579_v47 }
  0xf9   :  { %v581_v50 = vadd.f32 %v580_v46, %v507_v48  ;;  %v702_v57 = vmax.f32 %v653_v49, 0.0 }
  0xfc   :  { %v1607_v52 = vpop.f32.mrf.mxu3 }
  0xfe   :  { %v654_v53 = vpop.f32.mrf.mxu2  ;;  %v509_v55 = vpop.f32.mrf.mxu0 }
  0xff   :  { %v655_v54 = vadd.f32 %v654_v53, %v581_v50  ;;  %v583_v56 = vpop.f32.mrf.mxu1  ;;  %v510_v61 = vadd.f32 %v1542_v6, %v509_v55 }
 0x101   :  { %v703_v58 = vmax.f32 %v655_v54, 0.0  ;;  %v584_v3 = vadd.f32 %v583_v56, %v510_v61 }
 0x103   :  { %v1117_v60 = vpack.c.bf16 %v703_v58, %v702_v57  ;;  %v540_v57 = vadd.f32 %v1542_v6, %v1581_v51 }
 0x104   :  { %v677_v62 = vpop.f32.mrf.mxu3 }
 0x105   :  { %1158 = vst [vmem:[%s1660_s3 + $0x28] sm:$0xff] %v1117_v60   ;;  %v678_v11 = vadd.f32 %v677_v62, %v604_v9  ;;  %v542_v62 = vadd.f32 %v1542_v6, %v1584_v59 }
 0x106   :  { %v657_v63 = vpop.f32.mrf.mxu2  ;;  %v511_v0 = vpop.f32.mrf.mxu0 }
 0x107   :  { %v585_v2 = vpop.f32.mrf.mxu1  ;;  %v512_v5 = vadd.f32 %v1542_v6, %v511_v0  ;;  %v658_v12 = vadd.f32 %v657_v63, %v584_v3  ;;  %v712_v20 = vmax.f32 %v678_v11, 0.0  ;;  %v614_v63 = vadd.f32 %v1604_v43, %v540_v57 }
 0x108   :  { %v616_v0 = vadd.f32 %v1607_v52, %v542_v62 }
 0x109   :  { %v586_v13 = vadd.f32 %v585_v2, %v512_v5  ;;  %v704_v23 = vmax.f32 %v658_v12, 0.0 }
 0x10c   :  { %v679_v15 = vpop.f32.mrf.mxu3 }
 0x10d   :  { %v680_v17 = vadd.f32 %v679_v15, %v606_v10 }
 0x10e   :  { %v659_v16 = vpop.f32.mrf.mxu2  ;;  %v514_v19 = vpop.f32.mrf.mxu0 }
 0x10f   :  { %v660_v18 = vadd.f32 %v659_v16, %v586_v13  ;;  %v713_v21 = vmax.f32 %v680_v17, 0.0  ;;  %v588_v8 = vpop.f32.mrf.mxu1  ;;  %v515_v22 = vadd.f32 %v1542_v6, %v514_v19 }
 0x111   :  { %v705_v25 = vmax.f32 %v660_v18, 0.0  ;;  %v1142_v26 = vpack.c.bf16 %v713_v21, %v712_v20  ;;  %v589_v31 = vadd.f32 %v588_v8, %v515_v22 }
 0x113   :  { %v1122_v27 = vpack.c.bf16 %v705_v25, %v704_v23  ;;  %1163 = vst [vmem:[%s1660_s3 + $0x50] sm:$0xff] %v1142_v26  }
 0x114   :  { %v682_v4 = vpop.f32.mrf.mxu3 }
 0x115   :  { %1159 = vst [vmem:[%s1660_s3 + $0x30] sm:$0xff] %v1122_v27   ;;  %v683_v38 = vadd.f32 %v682_v4, %v609_v36 }
 0x116   :  { %v662_v14 = vpop.f32.mrf.mxu2  ;;  %v516_v28 = vpop.f32.mrf.mxu0 }
 0x117   :  { %v590_v30 = vpop.f32.mrf.mxu1  ;;  %v517_v33 = vadd.f32 %v1542_v6, %v516_v28  ;;  %v663_v39 = vadd.f32 %v662_v14, %v589_v31  ;;  %v714_v34 = vmax.f32 %v683_v38, 0.0 }
 0x119   :  { %v591_v40 = vadd.f32 %v590_v30, %v517_v33  ;;  %v706_v50 = vmax.f32 %v663_v39, 0.0 }
 0x11c   :  { %v684_v41 = vpop.f32.mrf.mxu3 }
 0x11d   :  { %v685_v45 = vadd.f32 %v684_v41, %v611_v37 }
 0x11e   :  { %v664_v44 = vpop.f32.mrf.mxu2  ;;  %v519_v47 = vpop.f32.mrf.mxu0 }
 0x11f   :  { %v665_v46 = vadd.f32 %v664_v44, %v591_v40  ;;  %v715_v48 = vmax.f32 %v685_v45, 0.0  ;;  %v593_v49 = vpop.f32.mrf.mxu1  ;;  %v520_v42 = vadd.f32 %v1542_v6, %v519_v47 }
 0x121   :  { %v707_v53 = vmax.f32 %v665_v46, 0.0  ;;  %v1147_v54 = vpack.c.bf16 %v715_v48, %v714_v34  ;;  %v594_v60 = vadd.f32 %v593_v49, %v520_v42 }
 0x123   :  { %v1127_v55 = vpack.c.bf16 %v707_v53, %v706_v50  ;;  %1164 = vst [vmem:[%s1660_s3 + $0x58] sm:$0xff] %v1147_v54  }
 0x124   :  { %v687_v24 = vpop.f32.mrf.mxu3 }
 0x125   :  { %1160 = vst [vmem:[%s1660_s3 + $0x38] sm:$0xff] %v1127_v55   ;;  %v688_v1 = vadd.f32 %v687_v24, %v614_v63 }
 0x126   :  { %v667_v32 = vpop.f32.mrf.mxu2  ;;  %v521_v56 = vpop.f32.mrf.mxu0 }
 0x127   :  { %v595_v58 = vpop.f32.mrf.mxu1  ;;  %v522_v61 = vadd.f32 %v1542_v6, %v521_v56  ;;  %v668_v2 = vadd.f32 %v667_v32, %v594_v60  ;;  %v716_v51 = vmax.f32 %v688_v1, 0.0 }
 0x129   :  { %v596_v3 = vadd.f32 %v595_v58, %v522_v61  ;;  %v708_v13 = vmax.f32 %v668_v2, 0.0 }
 0x12c   :  { %v689_v5 = vpop.f32.mrf.mxu3 }
 0x12d   :  { %v690_v9 = vadd.f32 %v689_v5, %v616_v0 }
 0x12e   :  { %v669_v7 = vpop.f32.mrf.mxu2  ;;  %v524_v11 = vpop.f32.mrf.mxu0 }
 0x12f   :  { %v670_v10 = vadd.f32 %v669_v7, %v596_v3  ;;  %v717_v12 = vmax.f32 %v690_v9, 0.0  ;;  %v598_v17 = vpop.f32.mrf.mxu1  ;;  %v525_v59 = vadd.f32 %v1542_v6, %v524_v11 }
 0x131   :  { %v709_v15 = vmax.f32 %v670_v10, 0.0  ;;  %v1152_v16 = vpack.c.bf16 %v717_v12, %v716_v51  ;;  %v599_v19 = vadd.f32 %v598_v17, %v525_v59 }
 0x133   :  { %v1132_v18 = vpack.c.bf16 %v709_v15, %v708_v13  ;;  %1165 = vst [vmem:[%s1660_s3 + $0x60] sm:$0xff] %v1152_v16  }
 0x135   :  { %1161 = vst [vmem:[%s1660_s3 + $0x40] sm:$0xff] %v1132_v18  }
 0x136   :  { %v672_v43 = vpop.f32.mrf.mxu2  ;;  %v526_v52 = vpop.f32.mrf.mxu0 }
 0x137   :  { %v527_v20 = vadd.f32 %v1542_v6, %v526_v52  ;;  %v600_v21 = vpop.f32.mrf.mxu1  ;;  %v673_v8 = vadd.f32 %v672_v43, %v599_v19 }
 0x139   :  { %v601_v23 = vadd.f32 %v600_v21, %v527_v20  ;;  %v710_v27 = vmax.f32 %v673_v8, 0.0 }
 0x13e   :  { %v674_v25 = vpop.f32.mrf.mxu2 }
 0x13f   :  { %v675_v26 = vadd.f32 %v674_v25, %v601_v23 }
 0x141   :  { %v711_v22 = vmax.f32 %v675_v26, 0.0 }
 0x143   :  { %v1137_v4 = vpack.c.bf16 %v711_v22, %v710_v27 }
 0x145   :  { %1162 = vst [vmem:[%s1660_s3 + $0x48] sm:$0xff] %v1137_v4  }

// kernel: alexnet_forward.6
= control target key start
LH: loop header
LB: loop body
LE: loop exit
PB: predicated region body
PF: predicated region fallthrough
CT: control target
= control target key end

     0   :  { %s338_s0 = inlined_call_operand.vmem [shape: bf16[9,32,128], index: 0, kind: input, shape index: {}]   ;;  %s339_s1 = inlined_call_operand.vmem [shape: bf16[32,128], index: 1, kind: output, shape index: {}]  }
   0x1   :  { %v169_v0 = vld [vmem:[%s338_s0] sm:$0xff]   ;;  %v251_v1 = vld [vmem:[%s338_s0 + $0x10] sm:$0xff]   ;;  %v250_v17 = vld [vmem:[%s338_s0 + $0x8] sm:$0xff]  }
   0x2   :  { %v253_v2 = vld [vmem:[%s338_s0 + $0x20] sm:$0xff]   ;;  %v170_v3 = vunpack.c.l.bf16 %v169_v0  ;;  %v171_v4 = vunpack.c.h.bf16 %v169_v0  ;;  %v178_v5 = vunpack.c.l.bf16 %v251_v1  ;;  %v179_v6 = vunpack.c.h.bf16 %v251_v1  ;;  %v255_v7 = vld [vmem:[%s338_s0 + $0x30] sm:$0xff]   ;;  %v252_v20 = vld [vmem:[%s338_s0 + $0x18] sm:$0xff]  }
   0x3   :  { %v257_v8 = vld [vmem:[%s338_s0 + $0x40] sm:$0xff]   ;;  %v186_v9 = vunpack.c.l.bf16 %v253_v2  ;;  %v187_v10 = vunpack.c.h.bf16 %v253_v2  ;;  %v259_v11 = vld [vmem:[%s338_s0 + $0x50] sm:$0xff]   ;;  %v194_v14 = vunpack.c.l.bf16 %v255_v7  ;;  %v195_v15 = vunpack.c.h.bf16 %v255_v7  ;;  %v254_v25 = vld [vmem:[%s338_s0 + $0x28] sm:$0xff]  }
   0x4   :  { %v25_v12 = vadd.f32 %v178_v5, %v170_v3  ;;  %v26_v13 = vadd.f32 %v179_v6, %v171_v4  ;;  %v261_v16 = vld [vmem:[%s338_s0 + $0x60] sm:$0xff]   ;;  %v202_v18 = vunpack.c.l.bf16 %v257_v8  ;;  %v203_v19 = vunpack.c.h.bf16 %v257_v8  ;;  %v256_v26 = vld [vmem:[%s338_s0 + $0x38] sm:$0xff]   ;;  %v263_v33 = vld [vmem:[%s338_s0 + $0x70] sm:$0xff]  }
   0x5   :  { %v210_v23 = vunpack.c.l.bf16 %v259_v11  ;;  %v211_v24 = vunpack.c.h.bf16 %v259_v11  ;;  %v218_v27 = vunpack.c.l.bf16 %v261_v16  ;;  %v219_v28 = vunpack.c.h.bf16 %v261_v16  ;;  %v258_v36 = vld [vmem:[%s338_s0 + $0x48] sm:$0xff]   ;;  %v265_v43 = vld [vmem:[%s338_s0 + $0x80] sm:$0xff]   ;;  %v260_v46 = vld [vmem:[%s338_s0 + $0x58] sm:$0xff]  }
   0x6   :  { %v38_v21 = vadd.f32 %v186_v9, %v25_v12  ;;  %v39_v22 = vadd.f32 %v187_v10, %v26_v13  ;;  %v174_v29 = vunpack.c.l.bf16 %v250_v17  ;;  %v175_v30 = vunpack.c.h.bf16 %v250_v17  ;;  %v262_v55 = vld [vmem:[%s338_s0 + $0x68] sm:$0xff]   ;;  %v264_v0 = vld [vmem:[%s338_s0 + $0x78] sm:$0xff]  }
   0x7   :  { %v182_v34 = vunpack.c.l.bf16 %v252_v20  ;;  %v183_v35 = vunpack.c.h.bf16 %v252_v20  ;;  %v190_v37 = vunpack.c.l.bf16 %v254_v25  ;;  %v191_v38 = vunpack.c.h.bf16 %v254_v25  ;;  %v266_v7 = vld [vmem:[%s338_s0 + $0x88] sm:$0xff]  }
   0x8   :  { %v51_v31 = vadd.f32 %v194_v14, %v38_v21  ;;  %v52_v32 = vadd.f32 %v195_v15, %v39_v22  ;;  %v198_v39 = vunpack.c.l.bf16 %v256_v26  ;;  %v199_v40 = vunpack.c.h.bf16 %v256_v26 }
   0x9   :  { %v27_v44 = vadd.f32 %v182_v34, %v174_v29  ;;  %v28_v45 = vadd.f32 %v183_v35, %v175_v30  ;;  %v226_v47 = vunpack.c.l.bf16 %v263_v33  ;;  %v227_v48 = vunpack.c.h.bf16 %v263_v33 }
   0xa   :  { %v64_v41 = vadd.f32 %v202_v18, %v51_v31  ;;  %v65_v42 = vadd.f32 %v203_v19, %v52_v32  ;;  %v206_v49 = vunpack.c.l.bf16 %v258_v36  ;;  %v207_v50 = vunpack.c.h.bf16 %v258_v36 }
   0xb   :  { %v40_v53 = vadd.f32 %v190_v37, %v27_v44  ;;  %v41_v54 = vadd.f32 %v191_v38, %v28_v45  ;;  %v234_v56 = vunpack.c.l.bf16 %v265_v43  ;;  %v235_v57 = vunpack.c.h.bf16 %v265_v43 }
   0xc   :  { %v77_v51 = vadd.f32 %v210_v23, %v64_v41  ;;  %v78_v52 = vadd.f32 %v211_v24, %v65_v42  ;;  %v214_v58 = vunpack.c.l.bf16 %v260_v46  ;;  %v215_v59 = vunpack.c.h.bf16 %v260_v46 }
   0xd   :  { %v53_v62 = vadd.f32 %v198_v39, %v40_v53  ;;  %v54_v63 = vadd.f32 %v199_v40, %v41_v54  ;;  %v222_v1 = vunpack.c.l.bf16 %v262_v55  ;;  %v223_v2 = vunpack.c.h.bf16 %v262_v55 }
   0xe   :  { %v90_v60 = vadd.f32 %v218_v27, %v77_v51  ;;  %v91_v61 = vadd.f32 %v219_v28, %v78_v52  ;;  %v230_v8 = vunpack.c.l.bf16 %v264_v0  ;;  %v231_v9 = vunpack.c.h.bf16 %v264_v0 }
   0xf   :  { %v66_v5 = vadd.f32 %v206_v49, %v53_v62  ;;  %v67_v6 = vadd.f32 %v207_v50, %v54_v63  ;;  %v238_v14 = vunpack.c.l.bf16 %v266_v7  ;;  %v239_v15 = vunpack.c.h.bf16 %v266_v7 }
  0x10   :  { %v103_v3 = vadd.f32 %v226_v47, %v90_v60  ;;  %v104_v4 = vadd.f32 %v227_v48, %v91_v61 }
  0x11   :  { %v79_v12 = vadd.f32 %v214_v58, %v66_v5  ;;  %v80_v13 = vadd.f32 %v215_v59, %v67_v6 }
  0x12   :  { %v116_v10 = vadd.f32 %v234_v56, %v103_v3  ;;  %v117_v11 = vadd.f32 %v235_v57, %v104_v4 }
  0x13   :  { %v92_v18 = vadd.f32 %v222_v1, %v79_v12  ;;  %v93_v19 = vadd.f32 %v223_v2, %v80_v13 }
  0x14   :  { %v120_v16 = vmul.f32 0.11111111, %v116_v10  ;;  %v121_v17 = vmul.f32 0.11111111, %v117_v11 }
  0x15   :  { %v105_v21 = vadd.f32 %v230_v8, %v92_v18  ;;  %v106_v22 = vadd.f32 %v231_v9, %v93_v19 }
  0x16   :  { %v243_v20 = vpack.c.bf16 %v121_v17, %v120_v16 }
  0x17   :  { %v118_v23 = vadd.f32 %v238_v14, %v105_v21  ;;  %v119_v24 = vadd.f32 %v239_v15, %v106_v22 }
  0x18   :  { %244 = vst [vmem:[%s339_s1] sm:$0xff] %v243_v20  }
  0x19   :  { %v122_v25 = vmul.f32 0.11111111, %v118_v23  ;;  %v123_v26 = vmul.f32 0.11111111, %v119_v24 }
  0x1b   :  { %v248_v27 = vpack.c.bf16 %v123_v26, %v122_v25 }
  0x1d   :  { %267 = vst [vmem:[%s339_s1 + $0x8] sm:$0xff] %v248_v27  }

// kernel: alexnet_forward.8
= control target key start
LH: loop header
LB: loop body
LE: loop exit
PB: predicated region body
PF: predicated region fallthrough
CT: control target
= control target key end

     0   :  { %s105_s0 = inlined_call_operand.vmem [shape: bf16[4,16,256], index: 0, kind: input, shape index: {}]   ;;  %s106_s1 = inlined_call_operand.vmem [shape: bf16[16,256], index: 1, kind: output, shape index: {}]  }
   0x1   :  { %v8_v0 = vld [vmem:[%s105_s0] sm:$0xff]  ;;  %v59_v1 = vld [vmem:[%s105_s0 + $0x10] sm:$0xff]  ;;  %v9_v8 = vld [vmem:[%s105_s0 + $0x8] sm:$0xff] }
   0x2   :  { %v61_v2 = vld [vmem:[%s105_s0 + $0x20] sm:$0xff]  ;;  %v10_v3 = vunpack.c.l.bf16 %v8_v0  ;;  %v11_v4 = vunpack.c.h.bf16 %v8_v0  ;;  %v17_v5 = vunpack.c.l.bf16 %v59_v1  ;;  %v18_v6 = vunpack.c.h.bf16 %v59_v1  ;;  %v63_v7 = vld [vmem:[%s105_s0 + $0x30] sm:$0xff]  ;;  %v60_v9 = vld [vmem:[%s105_s0 + $0x18] sm:$0xff] }
   0x3   :  { %v28_v10 = vunpack.c.l.bf16 %v61_v2  ;;  %v29_v11 = vunpack.c.h.bf16 %v61_v2  ;;  %v39_v12 = vunpack.c.l.bf16 %v63_v7  ;;  %v40_v13 = vunpack.c.h.bf16 %v63_v7  ;;  %v62_v14 = vld [vmem:[%s105_s0 + $0x28] sm:$0xff]  ;;  %v64_v19 = vld [vmem:[%s105_s0 + $0x38] sm:$0xff] }
   0x4   :  { %v21_v15 = vadd.f32 %v17_v5, %v10_v3  ;;  %v22_v16 = vadd.f32 %v18_v6, %v11_v4  ;;  %v12_v17 = vunpack.c.l.bf16 %v9_v8  ;;  %v13_v18 = vunpack.c.h.bf16 %v9_v8 }
   0x5   :  { %v19_v20 = vunpack.c.l.bf16 %v60_v9  ;;  %v20_v21 = vunpack.c.h.bf16 %v60_v9  ;;  %v30_v22 = vunpack.c.l.bf16 %v62_v14  ;;  %v31_v23 = vunpack.c.h.bf16 %v62_v14 }
   0x6   :  { %v32_v24 = vadd.f32 %v28_v10, %v21_v15  ;;  %v33_v25 = vadd.f32 %v29_v11, %v22_v16  ;;  %v41_v28 = vunpack.c.l.bf16 %v64_v19  ;;  %v42_v29 = vunpack.c.h.bf16 %v64_v19 }
   0x7   :  { %v23_v26 = vadd.f32 %v19_v20, %v12_v17  ;;  %v24_v27 = vadd.f32 %v20_v21, %v13_v18 }
   0x8   :  { %v43_v30 = vadd.f32 %v39_v12, %v32_v24  ;;  %v44_v31 = vadd.f32 %v40_v13, %v33_v25 }
   0x9   :  { %v34_v32 = vadd.f32 %v30_v22, %v23_v26  ;;  %v35_v33 = vadd.f32 %v31_v23, %v24_v27 }
   0xa   :  { %v47_v34 = vmul.f32 0.25, %v43_v30  ;;  %v48_v35 = vmul.f32 0.25, %v44_v31 }
   0xb   :  { %v45_v36 = vadd.f32 %v41_v28, %v34_v32  ;;  %v46_v37 = vadd.f32 %v42_v29, %v35_v33 }
   0xc   :  { %v51_v38 = vpack.c.bf16 %v48_v35, %v47_v34 }
   0xd   :  { %v49_v39 = vmul.f32 0.25, %v45_v36  ;;  %v50_v40 = vmul.f32 0.25, %v46_v37 }
   0xe   :  { %53 = vst [vmem:[%s106_s1] sm:$0xff] %v51_v38 }
   0xf   :  { %v52_v41 = vpack.c.bf16 %v50_v40, %v49_v39 }
  0x11   :  { %54 = vst [vmem:[%s106_s1 + $0x8] sm:$0xff] %v52_v41 }

// kernel: alexnet_forward.7
= control target key start
LH: loop header
LB: loop body
LE: loop exit
PB: predicated region body
PF: predicated region fallthrough
CT: control target
= control target key end

     0   :  { %s8137_s1 = inlined_call_operand.vmem [shape: bf16[3200,256], index: 1, kind: input, shape index: {}]   ;;  %s8138_s0 = inlined_call_operand.vmem [shape: bf16[16,3200], index: 0, kind: input, shape index: {}]   ;;  %s8139_s2 = inlined_call_operand.vmem [shape: f32[1,256], index: 2, kind: input, shape index: {}]   ;;  %s8140_s3 = inlined_call_operand.vmem [shape: bf16[16,256], index: 3, kind: output, shape index: {}]  }
   0x1   :  { %v3442_v0 = vld [vmem:[%s8137_s1 + $0x70] sm:$0xf]  ;;  %v5024_v1 = vld [vmem:[%s8137_s1 + $0x74] sm:$0xf0]  ;;  %v3434_v11 = vld [vmem:[%s8137_s1 + $0x60] sm:$0xf] }
   0x2   :  { %v3506_v2 = vld [vmem:[%s8137_s1 + $0xf0] sm:$0xf]  ;;  %v3443_v3 = vor.u32 %v5024_v1, %v3442_v0  ;;  %v5040_v4 = vld [vmem:[%s8137_s1 + $0xf4] sm:$0xf0]  ;;  %v5022_v13 = vld [vmem:[%s8137_s1 + $0x64] sm:$0xf0] }
   0x3   :  { %v3570_v5 = vld [vmem:[%s8137_s1 + $0x170] sm:$0xf]  ;;  %v5056_v6 = vld [vmem:[%s8137_s1 + $0x174] sm:$0xf0]  ;;  %v3507_v7 = vor.u32 %v5040_v4, %v3506_v2  ;;  %v3498_v14 = vld [vmem:[%s8137_s1 + $0xe0] sm:$0xf]  ;;  %v3435_v16 = vor.u32 %v5022_v13, %v3434_v11 }
   0x4   :  { %v3571_v8 = vor.u32 %v5056_v6, %v3570_v5  ;;  %v3634_v9 = vld [vmem:[%s8137_s1 + $0x1f0] sm:$0xf]  ;;  %v5072_v10 = vld [vmem:[%s8137_s1 + $0x1f4] sm:$0xf0]  ;;  %2572 = vmatpush.bf16.msra.mxu0 %v3443_v3  ;;  %v5038_v15 = vld [vmem:[%s8137_s1 + $0xe4] sm:$0xf0] }
   0x5   :  { %v3635_v12 = vor.u32 %v5072_v10, %v3634_v9  ;;  %2586 = vmatpush.bf16.msra.mxu1 %v3507_v7  ;;  %v3499_v17 = vor.u32 %v5038_v15, %v3498_v14  ;;  %v3562_v18 = vld [vmem:[%s8137_s1 + $0x160] sm:$0xf]  ;;  %v5054_v19 = vld [vmem:[%s8137_s1 + $0x164] sm:$0xf0]  ;;  %v3426_v23 = vld [vmem:[%s8137_s1 + $0x50] sm:$0xf] }
   0x6   :  { %2600 = vmatpush.bf16.msra.mxu2 %v3571_v8  ;;  %v3626_v20 = vld [vmem:[%s8137_s1 + $0x1e0] sm:$0xf]  ;;  %v3563_v21 = vor.u32 %v5054_v19, %v3562_v18  ;;  %v5070_v22 = vld [vmem:[%s8137_s1 + $0x1e4] sm:$0xf0]  ;;  %v5020_v24 = vld [vmem:[%s8137_s1 + $0x54] sm:$0xf0] }
   0x7   :  { %2614 = vmatpush.bf16.msra.mxu3 %v3635_v12  ;;  %v3627_v25 = vor.u32 %v5070_v22, %v3626_v20  ;;  %v3490_v26 = vld [vmem:[%s8137_s1 + $0xd0] sm:$0xf]  ;;  %v5036_v27 = vld [vmem:[%s8137_s1 + $0xd4] sm:$0xf0]  ;;  %v3427_v29 = vor.u32 %v5020_v24, %v3426_v23  ;;  %v3418_v35 = vld [vmem:[%s8137_s1 + $0x40] sm:$0xf] }
   0x8   :  { %v3554_v28 = vld [vmem:[%s8137_s1 + $0x150] sm:$0xf]  ;;  %2573 = vmatpush.bf16.msra.mxu0 %v3435_v16  ;;  %v5052_v30 = vld [vmem:[%s8137_s1 + $0x154] sm:$0xf0]  ;;  %v3491_v33 = vor.u32 %v5036_v27, %v3490_v26  ;;  %v5018_v36 = vld [vmem:[%s8137_s1 + $0x44] sm:$0xf0] }
   0x9   :  { %v3618_v31 = vld [vmem:[%s8137_s1 + $0x1d0] sm:$0xf]  ;;  %v5068_v32 = vld [vmem:[%s8137_s1 + $0x1d4] sm:$0xf0]  ;;  %2587 = vmatpush.bf16.msra.mxu1 %v3499_v17  ;;  %v3555_v34 = vor.u32 %v5052_v30, %v3554_v28  ;;  %v3482_v37 = vld [vmem:[%s8137_s1 + $0xc0] sm:$0xf]  ;;  %v3419_v44 = vor.u32 %v5018_v36, %v3418_v35 }
   0xa   :  { %2601 = vmatpush.bf16.msra.mxu2 %v3563_v21  ;;  %v3619_v38 = vor.u32 %v5068_v32, %v3618_v31  ;;  %v5034_v39 = vld [vmem:[%s8137_s1 + $0xc4] sm:$0xf0]  ;;  %v3546_v40 = vld [vmem:[%s8137_s1 + $0x140] sm:$0xf]  ;;  %v3410_v47 = vld [vmem:[%s8137_s1 + $0x30] sm:$0xf] }
   0xb   :  { %2615 = vmatpush.bf16.msra.mxu3 %v3627_v25  ;;  %v5050_v41 = vld [vmem:[%s8137_s1 + $0x144] sm:$0xf0]  ;;  %v3610_v42 = vld [vmem:[%s8137_s1 + $0x1c0] sm:$0xf]  ;;  %v3483_v45 = vor.u32 %v5034_v39, %v3482_v37  ;;  %v5016_v48 = vld [vmem:[%s8137_s1 + $0x34] sm:$0xf0] }
   0xc   :  { %v5066_v43 = vld [vmem:[%s8137_s1 + $0x1c4] sm:$0xf0]  ;;  %2574 = vmatpush.bf16.msra.mxu0 %v3427_v29  ;;  %v3547_v46 = vor.u32 %v5050_v41, %v3546_v40  ;;  %v3474_v49 = vld [vmem:[%s8137_s1 + $0xb0] sm:$0xf]  ;;  %v5032_v51 = vld [vmem:[%s8137_s1 + $0xb4] sm:$0xf0]  ;;  %v3411_v56 = vor.u32 %v5016_v48, %v3410_v47 }
   0xd   :  { %2588 = vmatpush.bf16.msra.mxu1 %v3491_v33  ;;  %v3611_v50 = vor.u32 %v5066_v43, %v3610_v42  ;;  %v3538_v52 = vld [vmem:[%s8137_s1 + $0x130] sm:$0xf]  ;;  %v5048_v53 = vld [vmem:[%s8137_s1 + $0x134] sm:$0xf0]  ;;  %v3475_v57 = vor.u32 %v5032_v51, %v3474_v49  ;;  %v3402_v59 = vld [vmem:[%s8137_s1 + $0x20] sm:$0xf] }
   0xe   :  { %2602 = vmatpush.bf16.msra.mxu2 %v3555_v34  ;;  %v3602_v54 = vld [vmem:[%s8137_s1 + $0x1b0] sm:$0xf]  ;;  %v5064_v55 = vld [vmem:[%s8137_s1 + $0x1b4] sm:$0xf0]  ;;  %v3539_v58 = vor.u32 %v5048_v53, %v3538_v52  ;;  %v5014_v60 = vld [vmem:[%s8137_s1 + $0x24] sm:$0xf0] }
   0xf   :  { %2616 = vmatpush.bf16.msra.mxu3 %v3619_v38  ;;  %v3466_v61 = vld [vmem:[%s8137_s1 + $0xa0] sm:$0xf]  ;;  %v3603_v62 = vor.u32 %v5064_v55, %v3602_v54  ;;  %v5030_v63 = vld [vmem:[%s8137_s1 + $0xa4] sm:$0xf0]  ;;  %v3403_v4 = vor.u32 %v5014_v60, %v3402_v59  ;;  %v3394_v7 = vld [vmem:[%s8137_s1 + $0x10] sm:$0xf] }
  0x10   :  { %2575 = vmatpush.bf16.msra.mxu0 %v3419_v44  ;;  %v3530_v0 = vld [vmem:[%s8137_s1 + $0x120] sm:$0xf]  ;;  %v5046_v1 = vld [vmem:[%s8137_s1 + $0x124] sm:$0xf0]  ;;  %v3467_v5 = vor.u32 %v5030_v63, %v3466_v61  ;;  %v5012_v8 = vld [vmem:[%s8137_s1 + $0x14] sm:$0xf0] }
  0x11   :  { %2589 = vmatpush.bf16.msra.mxu1 %v3483_v45  ;;  %v3594_v2 = vld [vmem:[%s8137_s1 + $0x1a0] sm:$0xf]  ;;  %v5062_v3 = vld [vmem:[%s8137_s1 + $0x1a4] sm:$0xf0]  ;;  %v3531_v6 = vor.u32 %v5046_v1, %v3530_v0  ;;  %v3458_v9 = vld [vmem:[%s8137_s1 + $0x90] sm:$0xf]  ;;  %v3395_v16 = vor.u32 %v5012_v8, %v3394_v7 }
  0x12   :  { %2603 = vmatpush.bf16.msra.mxu2 %v3547_v46  ;;  %v3595_v10 = vor.u32 %v5062_v3, %v3594_v2  ;;  %v5028_v11 = vld [vmem:[%s8137_s1 + $0x94] sm:$0xf0]  ;;  %v3522_v12 = vld [vmem:[%s8137_s1 + $0x110] sm:$0xf]  ;;  %v3386_v17 = vld [vmem:[%s8137_s1] sm:$0xf] }
  0x13   :  { %2617 = vmatpush.bf16.msra.mxu3 %v3611_v50  ;;  %v5044_v13 = vld [vmem:[%s8137_s1 + $0x114] sm:$0xf0]  ;;  %v3586_v14 = vld [vmem:[%s8137_s1 + $0x190] sm:$0xf]  ;;  %v5010_v18 = vld [vmem:[%s8137_s1 + $0x4] sm:$0xf0]  ;;  %v3459_v19 = vor.u32 %v5028_v11, %v3458_v9 }
  0x14   :  { %2576 = vmatpush.bf16.msra.mxu0 %v3411_v56  ;;  %v5060_v15 = vld [vmem:[%s8137_s1 + $0x194] sm:$0xf0]  ;;  %v3523_v20 = vor.u32 %v5044_v13, %v3522_v12  ;;  %v3450_v21 = vld [vmem:[%s8137_s1 + $0x80] sm:$0xf]  ;;  %v5026_v22 = vld [vmem:[%s8137_s1 + $0x84] sm:$0xf0]  ;;  %v3387_v31 = vor.u32 %v5010_v18, %v3386_v17 }
  0x15   :  { %2590 = vmatpush.bf16.msra.mxu1 %v3475_v57  ;;  %v3514_v23 = vld [vmem:[%s8137_s1 + $0x100] sm:$0xf]  ;;  %v3587_v24 = vor.u32 %v5060_v15, %v3586_v14  ;;  %v5042_v25 = vld [vmem:[%s8137_s1 + $0x104] sm:$0xf0]  ;;  %v3698_v26 = vld [vmem:[%s8137_s1 + $0x270] sm:$0xf]  ;;  %v3451_v35 = vor.u32 %v5026_v22, %v3450_v21 }
  0x16   :  { %2604 = vmatpush.bf16.msra.mxu2 %v3539_v58  ;;  %v5088_v27 = vld [vmem:[%s8137_s1 + $0x274] sm:$0xf0]  ;;  %v3762_v28 = vld [vmem:[%s8137_s1 + $0x2f0] sm:$0xf]  ;;  %v3578_v33 = vld [vmem:[%s8137_s1 + $0x180] sm:$0xf]  ;;  %v3515_v36 = vor.u32 %v5042_v25, %v3514_v23 }
  0x17   :  { %2618 = vmatpush.bf16.msra.mxu3 %v3603_v62  ;;  %v5104_v29 = vld [vmem:[%s8137_s1 + $0x2f4] sm:$0xf0]  ;;  %v3826_v30 = vld [vmem:[%s8137_s1 + $0x370] sm:$0xf]  ;;  %v5058_v34 = vld [vmem:[%s8137_s1 + $0x184] sm:$0xf0]  ;;  %v3699_v39 = vor.u32 %v5088_v27, %v3698_v26 }
  0x18   :  { %2577 = vmatpush.bf16.msra.mxu0 %v3403_v4  ;;  %v5120_v32 = vld [vmem:[%s8137_s1 + $0x374] sm:$0xf0]  ;;  %v3890_v37 = vld [vmem:[%s8137_s1 + $0x3f0] sm:$0xf]  ;;  %v3763_v40 = vor.u32 %v5104_v29, %v3762_v28  ;;  %v3690_v41 = vld [vmem:[%s8137_s1 + $0x260] sm:$0xf]  ;;  %v3579_v44 = vor.u32 %v5058_v34, %v3578_v33 }
  0x19   :  { %2591 = vmatpush.bf16.msra.mxu1 %v3467_v5  ;;  %v5136_v38 = vld [vmem:[%s8137_s1 + $0x3f4] sm:$0xf0]  ;;  %v5086_v42 = vld [vmem:[%s8137_s1 + $0x264] sm:$0xf0]  ;;  %v3827_v43 = vor.u32 %v5120_v32, %v3826_v30  ;;  %v3754_v45 = vld [vmem:[%s8137_s1 + $0x2e0] sm:$0xf] }
  0x1a   :  { %2605 = vmatpush.bf16.msra.mxu2 %v3531_v6  ;;  %v5102_v46 = vld [vmem:[%s8137_s1 + $0x2e4] sm:$0xf0]  ;;  %v3818_v47 = vld [vmem:[%s8137_s1 + $0x360] sm:$0xf]  ;;  %v3891_v48 = vor.u32 %v5136_v38, %v3890_v37  ;;  %v3682_v52 = vld [vmem:[%s8137_s1 + $0x250] sm:$0xf]  ;;  %v3691_v56 = vor.u32 %v5086_v42, %v3690_v41 }
  0x1b   :  { %2619 = vmatpush.bf16.msra.mxu3 %v3595_v10  ;;  %v5118_v49 = vld [vmem:[%s8137_s1 + $0x364] sm:$0xf0]  ;;  %v3882_v50 = vld [vmem:[%s8137_s1 + $0x3e0] sm:$0xf]  ;;  %v4996_v54 = vld [vmem:[%s8138_s0 + $0x60] sm:$0xf0]  ;;  %v3755_v57 = vor.u32 %v5102_v46, %v3754_v45 }
  0x1c   :  { %2578 = vmatpush.bf16.msra.mxu0 %v3395_v16  ;;  %v5134_v51 = vld [vmem:[%s8137_s1 + $0x3e4] sm:$0xf0]  ;;  %v3286_v53 = vld [vmem:[%s8138_s0] sm:$0xf]  ;;  %v5084_v58 = vld [vmem:[%s8137_s1 + $0x254] sm:$0xf0]  ;;  %v3819_v62 = vor.u32 %v5118_v49, %v3818_v47 }
  0x1d   :  { %2592 = vmatpush.bf16.msra.mxu1 %v3459_v19  ;;  %v3294_v55 = vld [vmem:[%s8138_s0 + $0x8] sm:$0xf]  ;;  %v3746_v59 = vld [vmem:[%s8137_s1 + $0x2d0] sm:$0xf]  ;;  %v5688_v60 = vor.u32 %v4996_v54, %v3286_v53  ;;  %v4997_v61 = vld [vmem:[%s8138_s0 + $0x68] sm:$0xf0]  ;;  %v3883_v3 = vor.u32 %v5134_v51, %v3882_v50  ;;  %v3683_v11 = vor.u32 %v5084_v58, %v3682_v52 }
  0x1e   :  { %2606 = vmatpush.bf16.msra.mxu2 %v3523_v20  ;;  %v5100_v63 = vld [vmem:[%s8137_s1 + $0x2d4] sm:$0xf0]  ;;  %v3810_v0 = vld [vmem:[%s8137_s1 + $0x350] sm:$0xf]  ;;  %v5702_v2 = vor.u32 %v4997_v61, %v3294_v55  ;;  %v4984_v5 = vld [vmem:[%s8138_s0 + $0x4] sm:$0xf] }
  0x1f   :  { %2620 = vmatpush.bf16.msra.mxu3 %v3587_v24  ;;  %v5116_v1 = vld [vmem:[%s8137_s1 + $0x354] sm:$0xf0]  ;;  %v3874_v4 = vld [vmem:[%s8137_s1 + $0x3d0] sm:$0xf]  ;;  %v3288_v6 = vld [vmem:[%s8138_s0 + $0x64] sm:$0xf0]  ;;  %v3747_v12 = vor.u32 %v5100_v63, %v3746_v59 }
  0x20   :  { %2579 = vmatpush.bf16.msra.mxu0 %v3387_v31  ;;  %v5132_v7 = vld [vmem:[%s8137_s1 + $0x3d4] sm:$0xf0]  ;;  %v5718_v8 = vor.u32 %v4984_v5, %v3288_v6  ;;  %v4985_v9 = vld [vmem:[%s8138_s0 + $0xc] sm:$0xf]  ;;  %v3296_v10 = vld [vmem:[%s8138_s0 + $0x6c] sm:$0xf0]  ;;  %v3811_v15 = vor.u32 %v5116_v1, %v3810_v0 }
  0x21   :  { %2593 = vmatpush.bf16.msra.mxu1 %v3451_v35  ;;  %v3674_v13 = vld [vmem:[%s8137_s1 + $0x240] sm:$0xf]  ;;  %v5729_v14 = vor.u32 %v4985_v9, %v3296_v10  ;;  %v5082_v16 = vld [vmem:[%s8137_s1 + $0x244] sm:$0xf0]  ;;  %v3875_v19 = vor.u32 %v5132_v7, %v3874_v4  ;;  %v3666_v26 = vld [vmem:[%s8137_s1 + $0x230] sm:$0xf] }
  0x22   :  { %2607 = vmatpush.bf16.msra.mxu2 %v3515_v36  ;;  %v3738_v17 = vld [vmem:[%s8137_s1 + $0x2c0] sm:$0xf]  ;;  %v5098_v18 = vld [vmem:[%s8137_s1 + $0x2c4] sm:$0xf0]  ;;  %v3675_v24 = vor.u32 %v5082_v16, %v3674_v13  ;;  %v5080_v28 = vld [vmem:[%s8137_s1 + $0x234] sm:$0xf0] }
  0x23   :  { %2621 = vmatpush.bf16.msra.mxu3 %v3579_v44  ;;  %2580 = vmatmul.bf16.vlgmr.msra.gmra.mxu0 %v5688_v60  ;;  %v3802_v20 = vld [vmem:[%s8137_s1 + $0x340] sm:$0xf]  ;;  %v5114_v21 = vld [vmem:[%s8137_s1 + $0x344] sm:$0xf0]  ;;  %v3739_v25 = vor.u32 %v5098_v18, %v3738_v17  ;;  %v3730_v29 = vld [vmem:[%s8137_s1 + $0x2b0] sm:$0xf]  ;;  %v3667_v36 = vor.u32 %v5080_v28, %v3666_v26 }
  0x24   :  { %2628 = vmatpush.bf16.msrb.mxu0 %v3699_v39  ;;  %2594 = vmatmul.bf16.vlgmr.msra.gmra.mxu1 %v5718_v8  ;;  %v3866_v22 = vld [vmem:[%s8137_s1 + $0x3c0] sm:$0xf]  ;;  %v5130_v23 = vld [vmem:[%s8137_s1 + $0x3c4] sm:$0xf0]  ;;  %v3803_v27 = vor.u32 %v5114_v21, %v3802_v20  ;;  %v5096_v30 = vld [vmem:[%s8137_s1 + $0x2b4] sm:$0xf0] }
  0x25   :  { %2642 = vmatpush.bf16.msrb.mxu1 %v3763_v40  ;;  %2608 = vmatmul.bf16.vlgmr.msra.gmra.mxu2 %v5702_v2  ;;  %v3867_v31 = vor.u32 %v5130_v23, %v3866_v22  ;;  %v3794_v32 = vld [vmem:[%s8137_s1 + $0x330] sm:$0xf]  ;;  %v5112_v33 = vld [vmem:[%s8137_s1 + $0x334] sm:$0xf0]  ;;  %v3731_v37 = vor.u32 %v5096_v30, %v3730_v29  ;;  %v3658_v38 = vld [vmem:[%s8137_s1 + $0x220] sm:$0xf] }
  0x26   :  { %2656 = vmatpush.bf16.msrb.mxu2 %v3827_v43  ;;  %2622 = vmatmul.bf16.vlgmr.msra.gmra.mxu3 %v5729_v14  ;;  %v3858_v34 = vld [vmem:[%s8137_s1 + $0x3b0] sm:$0xf]  ;;  %v5128_v35 = vld [vmem:[%s8137_s1 + $0x3b4] sm:$0xf0]  ;;  %v3795_v39 = vor.u32 %v5112_v33, %v3794_v32  ;;  %v5078_v40 = vld [vmem:[%s8137_s1 + $0x224] sm:$0xf0] }
  0x27   :  { %2670 = vmatpush.bf16.msrb.mxu3 %v3891_v48  ;;  %v3722_v41 = vld [vmem:[%s8137_s1 + $0x2a0] sm:$0xf]  ;;  %v5094_v42 = vld [vmem:[%s8137_s1 + $0x2a4] sm:$0xf0]  ;;  %v3859_v43 = vor.u32 %v5128_v35, %v3858_v34  ;;  %v3659_v48 = vor.u32 %v5078_v40, %v3658_v38  ;;  %v3650_v50 = vld [vmem:[%s8137_s1 + $0x210] sm:$0xf] }
  0x28   :  { %2629 = vmatpush.bf16.msrb.mxu0 %v3691_v56  ;;  %v3786_v44 = vld [vmem:[%s8137_s1 + $0x320] sm:$0xf]  ;;  %v5110_v45 = vld [vmem:[%s8137_s1 + $0x324] sm:$0xf0]  ;;  %v3723_v49 = vor.u32 %v5094_v42, %v3722_v41  ;;  %v5076_v51 = vld [vmem:[%s8137_s1 + $0x214] sm:$0xf0] }
  0x29   :  { %2643 = vmatpush.bf16.msrb.mxu1 %v3755_v57  ;;  %v3850_v46 = vld [vmem:[%s8137_s1 + $0x3a0] sm:$0xf]  ;;  %v5126_v47 = vld [vmem:[%s8137_s1 + $0x3a4] sm:$0xf0]  ;;  %v3787_v52 = vor.u32 %v5110_v45, %v3786_v44  ;;  %v3714_v53 = vld [vmem:[%s8137_s1 + $0x290] sm:$0xf]  ;;  %v3651_v1 = vor.u32 %v5076_v51, %v3650_v50 }
  0x2a   :  { %2657 = vmatpush.bf16.msrb.mxu2 %v3819_v62  ;;  %v5092_v54 = vld [vmem:[%s8137_s1 + $0x294] sm:$0xf0]  ;;  %v3778_v55 = vld [vmem:[%s8137_s1 + $0x310] sm:$0xf]  ;;  %v3851_v56 = vor.u32 %v5126_v47, %v3850_v46  ;;  %v3642_v61 = vld [vmem:[%s8137_s1 + $0x200] sm:$0xf] }
  0x2b   :  { %2671 = vmatpush.bf16.msrb.mxu3 %v3883_v3  ;;  %v5108_v57 = vld [vmem:[%s8137_s1 + $0x314] sm:$0xf0]  ;;  %v3842_v58 = vld [vmem:[%s8137_s1 + $0x390] sm:$0xf]  ;;  %v5074_v62 = vld [vmem:[%s8137_s1 + $0x204] sm:$0xf0]  ;;  %v3715_v3 = vor.u32 %v5092_v54, %v3714_v53 }
  0x2c   :  { %2630 = vmatpush.bf16.msrb.mxu0 %v3683_v11  ;;  %v5124_v59 = vld [vmem:[%s8137_s1 + $0x394] sm:$0xf0]  ;;  %v3706_v63 = vld [vmem:[%s8137_s1 + $0x280] sm:$0xf]  ;;  %v5090_v0 = vld [vmem:[%s8137_s1 + $0x284] sm:$0xf0]  ;;  %v3779_v7 = vor.u32 %v5108_v57, %v3778_v55  ;;  %v3643_v20 = vor.u32 %v5074_v62, %v3642_v61 }
  0x2d   :  { %2644 = vmatpush.bf16.msrb.mxu1 %v3747_v12  ;;  %v3770_v4 = vld [vmem:[%s8137_s1 + $0x300] sm:$0xf]  ;;  %v5106_v5 = vld [vmem:[%s8137_s1 + $0x304] sm:$0xf0]  ;;  %v3954_v6 = vld [vmem:[%s8137_s1 + $0x470] sm:$0xf]  ;;  %v3843_v12 = vor.u32 %v5124_v59, %v3842_v58  ;;  %v3707_v21 = vor.u32 %v5090_v0, %v3706_v63 }
  0x2e   :  { %2658 = vmatpush.bf16.msrb.mxu2 %v3811_v15  ;;  %v5152_v9 = vld [vmem:[%s8137_s1 + $0x474] sm:$0xf0]  ;;  %v4018_v10 = vld [vmem:[%s8137_s1 + $0x4f0] sm:$0xf]  ;;  %v3834_v16 = vld [vmem:[%s8137_s1 + $0x380] sm:$0xf] }
  0x2f   :  { %2672 = vmatpush.bf16.msrb.mxu3 %v3875_v19  ;;  %v5168_v11 = vld [vmem:[%s8137_s1 + $0x4f4] sm:$0xf0]  ;;  %v4082_v13 = vld [vmem:[%s8137_s1 + $0x570] sm:$0xf]  ;;  %v5122_v17 = vld [vmem:[%s8137_s1 + $0x384] sm:$0xf0]  ;;  %v3955_v26 = vor.u32 %v5152_v9, %v3954_v6 }
  0x30   :  { %2631 = vmatpush.bf16.msrb.mxu0 %v3675_v24  ;;  %v5184_v15 = vld [vmem:[%s8137_s1 + $0x574] sm:$0xf0]  ;;  %v3302_v18 = vld [vmem:[%s8138_s0 + $0x10] sm:$0xf]  ;;  %v4998_v19 = vld [vmem:[%s8138_s0 + $0x70] sm:$0xf0]  ;;  %v4019_v30 = vor.u32 %v5168_v11, %v4018_v10  ;;  %v3835_v35 = vor.u32 %v5122_v17, %v3834_v16 }
  0x31   :  { %2645 = vmatpush.bf16.msrb.mxu1 %v3739_v25  ;;  %v3310_v22 = vld [vmem:[%s8138_s0 + $0x18] sm:$0xf]  ;;  %v4999_v23 = vld [vmem:[%s8138_s0 + $0x78] sm:$0xf0]  ;;  %v4146_v24 = vld [vmem:[%s8137_s1 + $0x5f0] sm:$0xf]  ;;  %v3771_v25 = vor.u32 %v5106_v5, %v3770_v4 }
  0x32   :  { %2659 = vmatpush.bf16.msrb.mxu2 %v3803_v27  ;;  %v5200_v27 = vld [vmem:[%s8137_s1 + $0x5f4] sm:$0xf0]  ;;  %v4986_v28 = vld [vmem:[%s8138_s0 + $0x14] sm:$0xf]  ;;  %v4987_v32 = vld [vmem:[%s8138_s0 + $0x1c] sm:$0xf]  ;;  %v5912_v40 = vor.u32 %v4999_v23, %v3310_v22 }
  0x33   :  { %2673 = vmatpush.bf16.msrb.mxu3 %v3867_v31  ;;  %v3304_v29 = vld [vmem:[%s8138_s0 + $0x74] sm:$0xf0]  ;;  %v4083_v31 = vor.u32 %v5184_v15, %v4082_v13  ;;  %v3946_v33 = vld [vmem:[%s8137_s1 + $0x460] sm:$0xf]  ;;  %v5150_v34 = vld [vmem:[%s8137_s1 + $0x464] sm:$0xf0]  ;;  %v4147_v41 = vor.u32 %v5200_v27, %v4146_v24 }
  0x34   :  { %2632 = vmatpush.bf16.msrb.mxu0 %v3667_v36  ;;  %v5901_v36 = vor.u32 %v4998_v19, %v3302_v18  ;;  %v4010_v38 = vld [vmem:[%s8137_s1 + $0x4e0] sm:$0xf]  ;;  %v5920_v44 = vor.u32 %v4986_v28, %v3304_v29  ;;  %v3947_v45 = vor.u32 %v5150_v34, %v3946_v33  ;;  %v5198_v47 = vld [vmem:[%s8137_s1 + $0x5e4] sm:$0xf0]  ;;  %v3938_v50 = vld [vmem:[%s8137_s1 + $0x450] sm:$0xf] }
  0x35   :  { %2646 = vmatpush.bf16.msrb.mxu1 %v3731_v37  ;;  %v3312_v37 = vld [vmem:[%s8138_s0 + $0x7c] sm:$0xf0]  ;;  %v5148_v51 = vld [vmem:[%s8137_s1 + $0x454] sm:$0xf0]  ;;  %v4002_v53 = vld [vmem:[%s8137_s1 + $0x4d0] sm:$0xf] }
  0x36   :  { %2660 = vmatpush.bf16.msrb.mxu2 %v3795_v39  ;;  %v5166_v39 = vld [vmem:[%s8137_s1 + $0x4e4] sm:$0xf0]  ;;  %v4074_v42 = vld [vmem:[%s8137_s1 + $0x560] sm:$0xf]  ;;  %v5164_v54 = vld [vmem:[%s8137_s1 + $0x4d4] sm:$0xf0]  ;;  %v3939_v58 = vor.u32 %v5148_v51, %v3938_v50 }
  0x37   :  { %2674 = vmatpush.bf16.msrb.mxu3 %v3859_v43  ;;  %v5182_v43 = vld [vmem:[%s8137_s1 + $0x564] sm:$0xf0]  ;;  %v4138_v46 = vld [vmem:[%s8137_s1 + $0x5e0] sm:$0xf]  ;;  %v5180_v57 = vld [vmem:[%s8137_s1 + $0x554] sm:$0xf0]  ;;  %v4003_v62 = vor.u32 %v5164_v54, %v4002_v53 }
  0x38   :  { %2633 = vmatpush.bf16.msrb.mxu0 %v3659_v48  ;;  %v5928_v48 = vor.u32 %v4987_v32, %v3312_v37  ;;  %v4139_v55 = vor.u32 %v5198_v47, %v4138_v46  ;;  %v4130_v59 = vld [vmem:[%s8137_s1 + $0x5d0] sm:$0xf]  ;;  %v5196_v61 = vld [vmem:[%s8137_s1 + $0x5d4] sm:$0xf0]  ;;  %v3930_v63 = vld [vmem:[%s8137_s1 + $0x440] sm:$0xf] }
  0x39   :  { %2647 = vmatpush.bf16.msrb.mxu1 %v3723_v49  ;;  %v4011_v49 = vor.u32 %v5166_v39, %v4010_v38  ;;  %v5146_v0 = vld [vmem:[%s8137_s1 + $0x444] sm:$0xf0]  ;;  %v4131_v5 = vor.u32 %v5196_v61, %v4130_v59  ;;  %v4058_v6 = vld [vmem:[%s8137_s1 + $0x540] sm:$0xf]  ;;  %v3922_v13 = vld [vmem:[%s8137_s1 + $0x430] sm:$0xf] }
  0x3a   :  { %2661 = vmatpush.bf16.msrb.mxu2 %v3787_v52  ;;  %v4075_v52 = vor.u32 %v5182_v43, %v4074_v42  ;;  %v5162_v4 = vld [vmem:[%s8137_s1 + $0x4c4] sm:$0xf0]  ;;  %v3931_v9 = vor.u32 %v5146_v0, %v3930_v63  ;;  %v4122_v10 = vld [vmem:[%s8137_s1 + $0x5c0] sm:$0xf]  ;;  %v5144_v15 = vld [vmem:[%s8137_s1 + $0x434] sm:$0xf0] }
  0x3b   :  { %2675 = vmatpush.bf16.msrb.mxu3 %v3851_v56  ;;  %v4066_v56 = vld [vmem:[%s8137_s1 + $0x550] sm:$0xf]  ;;  %v5194_v11 = vld [vmem:[%s8137_s1 + $0x5c4] sm:$0xf0]  ;;  %v5160_v18 = vld [vmem:[%s8137_s1 + $0x4b4] sm:$0xf0]  ;;  %v3923_v22 = vor.u32 %v5144_v15, %v3922_v13 }
  0x3c   :  { %2634 = vmatpush.bf16.msrb.mxu0 %v3651_v1  ;;  %v4067_v1 = vor.u32 %v5180_v57, %v4066_v56  ;;  %v3986_v17 = vld [vmem:[%s8137_s1 + $0x4b0] sm:$0xf]  ;;  %v4123_v19 = vor.u32 %v5194_v11, %v4122_v10  ;;  %v5192_v24 = vld [vmem:[%s8137_s1 + $0x5b4] sm:$0xf0]  ;;  %v5142_v27 = vld [vmem:[%s8137_s1 + $0x424] sm:$0xf0] }
  0x3d   :  { %2648 = vmatpush.bf16.msrb.mxu1 %v3715_v3  ;;  %v3994_v3 = vld [vmem:[%s8137_s1 + $0x4c0] sm:$0xf]  ;;  %v4114_v23 = vld [vmem:[%s8137_s1 + $0x5b0] sm:$0xf]  ;;  %v5174_v33 = vld [vmem:[%s8137_s1 + $0x524] sm:$0xf0] }
  0x3e   :  { %2662 = vmatpush.bf16.msrb.mxu2 %v3779_v7  ;;  %v5178_v7 = vld [vmem:[%s8137_s1 + $0x544] sm:$0xf0]  ;;  %v3978_v29 = vld [vmem:[%s8137_s1 + $0x4a0] sm:$0xf]  ;;  %v3906_v39 = vld [vmem:[%s8137_s1 + $0x410] sm:$0xf] }
  0x3f   :  { %2676 = vmatpush.bf16.msrb.mxu3 %v3843_v12  ;;  %v3995_v12 = vor.u32 %v5162_v4, %v3994_v3  ;;  %v4059_v16 = vor.u32 %v5178_v7, %v4058_v6  ;;  %v4042_v32 = vld [vmem:[%s8137_s1 + $0x520] sm:$0xf]  ;;  %v5190_v37 = vld [vmem:[%s8137_s1 + $0x5a4] sm:$0xf0]  ;;  %v3970_v42 = vld [vmem:[%s8137_s1 + $0x490] sm:$0xf] }
  0x40   :  { %2635 = vmatpush.bf16.msrb.mxu0 %v3643_v20  ;;  %v4050_v20 = vld [vmem:[%s8137_s1 + $0x530] sm:$0xf]  ;;  %v4043_v43 = vor.u32 %v5174_v33, %v4042_v32  ;;  %v5172_v47 = vld [vmem:[%s8137_s1 + $0x514] sm:$0xf0]  ;;  %v5138_v54 = vld [vmem:[%s8137_s1 + $0x404] sm:$0xf0] }
  0x41   :  { %2649 = vmatpush.bf16.msrb.mxu1 %v3707_v21  ;;  %v5176_v21 = vld [vmem:[%s8137_s1 + $0x534] sm:$0xf0]  ;;  %v4034_v46 = vld [vmem:[%s8137_s1 + $0x510] sm:$0xf]  ;;  %v5154_v56 = vld [vmem:[%s8137_s1 + $0x484] sm:$0xf0] }
  0x42   :  { %2663 = vmatpush.bf16.msrb.mxu2 %v3771_v25  ;;  %v3987_v25 = vor.u32 %v5160_v18, %v3986_v17  ;;  %v4051_v28 = vor.u32 %v5176_v21, %v4050_v20  ;;  %v4098_v50 = vld [vmem:[%s8137_s1 + $0x590] sm:$0xf]  ;;  %v5188_v51 = vld [vmem:[%s8137_s1 + $0x594] sm:$0xf0]  ;;  %v5170_v59 = vld [vmem:[%s8137_s1 + $0x504] sm:$0xf0]  ;;  %v4035_v0 = vor.u32 %v5172_v47, %v4034_v46 }
  0x43   :  { %2677 = vmatpush.bf16.msrb.mxu3 %v3835_v35  ;;  %2636 = vmatmul.bf16.vlgmr.msrb.gmra.mxu0 %v5901_v36  ;;  %v4106_v35 = vld [vmem:[%s8137_s1 + $0x5a0] sm:$0xf]  ;;  %v4210_v61 = vld [vmem:[%s8137_s1 + $0x670] sm:$0xf]  ;;  %v5248_v4 = vld [vmem:[%s8137_s1 + $0x774] sm:$0xf0] }
  0x44   :  { %2684 = vmatpush.bf16.msra.mxu0 %v3955_v26  ;;  %2650 = vmatmul.bf16.vlgmr.msrb.gmra.mxu1 %v5920_v44  ;;  %v3914_v26 = vld [vmem:[%s8137_s1 + $0x420] sm:$0xf]  ;;  %v4274_v63 = vld [vmem:[%s8137_s1 + $0x6f0] sm:$0xf]  ;;  %v5186_v7 = vld [vmem:[%s8137_s1 + $0x584] sm:$0xf0] }
  0x45   :  { %2698 = vmatpush.bf16.msra.mxu1 %v4019_v30  ;;  %2664 = vmatmul.bf16.vlgmr.msrb.gmra.mxu2 %v5912_v40  ;;  %v5158_v30 = vld [vmem:[%s8137_s1 + $0x4a4] sm:$0xf0]  ;;  %v3915_v34 = vor.u32 %v5142_v27, %v3914_v26  ;;  %v4338_v3 = vld [vmem:[%s8137_s1 + $0x770] sm:$0xf]  ;;  %v4090_v6 = vld [vmem:[%s8137_s1 + $0x580] sm:$0xf] }
  0x46   :  { %2712 = vmatpush.bf16.msra.mxu2 %v4083_v31  ;;  %2678 = vmatmul.bf16.vlgmr.msrb.gmra.mxu3 %v5928_v48  ;;  %v4115_v31 = vor.u32 %v5192_v24, %v4114_v23  ;;  %v3979_v38 = vor.u32 %v5158_v30, %v3978_v29  ;;  %v5000_v11 = vld [vmem:[%s8138_s0 + $0x80] sm:$0xf0]  ;;  %v5001_v13 = vld [vmem:[%s8138_s0 + $0x88] sm:$0xf0]  ;;  %v4402_v17 = vld [vmem:[%s8137_s1 + $0x7f0] sm:$0xf]  ;;  %v4091_v26 = vor.u32 %v5186_v7, %v4090_v6 }
  0x47   :  { %2726 = vmatpush.bf16.msra.mxu3 %v4147_v41  ;;  %v5140_v41 = vld [vmem:[%s8137_s1 + $0x414] sm:$0xf0]  ;;  %v4989_v23 = vld [vmem:[%s8138_s0 + $0x2c] sm:$0xf]  ;;  %v3328_v24 = vld [vmem:[%s8138_s0 + $0x8c] sm:$0xf0] }
  0x48   :  { %2685 = vmatpush.bf16.msra.mxu0 %v3947_v45  ;;  %v5156_v45 = vld [vmem:[%s8137_s1 + $0x494] sm:$0xf0]  ;;  %v3907_v53 = vor.u32 %v5140_v41, %v3906_v39  ;;  %v4202_v27 = vld [vmem:[%s8137_s1 + $0x660] sm:$0xf]  ;;  %v5230_v32 = vld [vmem:[%s8137_s1 + $0x6e4] sm:$0xf0]  ;;  %v6156_v41 = vor.u32 %v4989_v23, %v3328_v24 }
  0x49   :  { %2699 = vmatpush.bf16.msra.mxu1 %v4011_v49  ;;  %v4107_v49 = vor.u32 %v5190_v37, %v4106_v35  ;;  %v3971_v57 = vor.u32 %v5156_v45, %v3970_v42  ;;  %v5264_v18 = vld [vmem:[%s8137_s1 + $0x7f4] sm:$0xf0]  ;;  %v4266_v29 = vld [vmem:[%s8137_s1 + $0x6e0] sm:$0xf]  ;;  %v5262_v39 = vld [vmem:[%s8137_s1 + $0x7e4] sm:$0xf0] }
  0x4a   :  { %2713 = vmatpush.bf16.msra.mxu2 %v4075_v52  ;;  %v3898_v52 = vld [vmem:[%s8137_s1 + $0x400] sm:$0xf]  ;;  %v4194_v46 = vld [vmem:[%s8137_s1 + $0x650] sm:$0xf]  ;;  %v5212_v47 = vld [vmem:[%s8137_s1 + $0x654] sm:$0xf0] }
  0x4b   :  { %2727 = vmatpush.bf16.msra.mxu3 %v4139_v55  ;;  %v3962_v55 = vld [vmem:[%s8137_s1 + $0x480] sm:$0xf]  ;;  %v3899_v10 = vor.u32 %v5138_v54, %v3898_v52  ;;  %v4322_v52 = vld [vmem:[%s8137_s1 + $0x750] sm:$0xf]  ;;  %v5206_v24 = vld [vmem:[%s8137_s1 + $0x624] sm:$0xf0] }
  0x4c   :  { %2686 = vmatpush.bf16.msra.mxu0 %v3939_v58  ;;  %v4026_v58 = vld [vmem:[%s8137_s1 + $0x500] sm:$0xf]  ;;  %v3963_v15 = vor.u32 %v5154_v56, %v3962_v55  ;;  %v4386_v54 = vld [vmem:[%s8137_s1 + $0x7d0] sm:$0xf]  ;;  %v5260_v55 = vld [vmem:[%s8137_s1 + $0x7d4] sm:$0xf0]  ;;  %v4195_v56 = vor.u32 %v5212_v47, %v4194_v46 }
  0x4d   :  { %2700 = vmatpush.bf16.msra.mxu1 %v4003_v62  ;;  %v5216_v62 = vld [vmem:[%s8137_s1 + $0x674] sm:$0xf0]  ;;  %v4027_v20 = vor.u32 %v5170_v59, %v4026_v58  ;;  %v4330_v33 = vld [vmem:[%s8137_s1 + $0x760] sm:$0xf]  ;;  %v4290_v47 = vld [vmem:[%s8137_s1 + $0x710] sm:$0xf] }
  0x4e   :  { %2714 = vmatpush.bf16.msra.mxu2 %v4067_v1  ;;  %v5232_v1 = vld [vmem:[%s8137_s1 + $0x6f4] sm:$0xf0]  ;;  %v4186_v59 = vld [vmem:[%s8137_s1 + $0x640] sm:$0xf] }
  0x4f   :  { %2728 = vmatpush.bf16.msra.mxu3 %v4131_v5  ;;  %v4099_v5 = vor.u32 %v5188_v51, %v4098_v50  ;;  %v4275_v21 = vor.u32 %v5232_v1, %v4274_v63  ;;  %v5228_v51 = vld [vmem:[%s8137_s1 + $0x6d4] sm:$0xf0]  ;;  %v4387_v63 = vor.u32 %v5260_v55, %v4386_v54  ;;  %v4314_v1 = vld [vmem:[%s8137_s1 + $0x740] sm:$0xf] }
  0x50   :  { %2687 = vmatpush.bf16.msra.mxu0 %v3931_v9  ;;  %v3318_v9 = vld [vmem:[%s8138_s0 + $0x20] sm:$0xf] }
  0x51   :  { %2701 = vmatpush.bf16.msra.mxu1 %v3995_v12  ;;  %v3326_v12 = vld [vmem:[%s8138_s0 + $0x28] sm:$0xf]  ;;  %v6135_v30 = vor.u32 %v5000_v11, %v3318_v9  ;;  %v5208_v11 = vld [vmem:[%s8137_s1 + $0x634] sm:$0xf0]  ;;  %v4170_v23 = vld [vmem:[%s8137_s1 + $0x620] sm:$0xf] }
  0x52   :  { %2715 = vmatpush.bf16.msra.mxu2 %v4059_v16  ;;  %v4211_v16 = vor.u32 %v5216_v62, %v4210_v61  ;;  %v6146_v35 = vor.u32 %v5001_v13, %v3326_v12  ;;  %v5210_v61 = vld [vmem:[%s8137_s1 + $0x644] sm:$0xf0]  ;;  %v4250_v62 = vld [vmem:[%s8137_s1 + $0x6c0] sm:$0xf]  ;;  %v4242_v12 = vld [vmem:[%s8137_s1 + $0x6b0] sm:$0xf] }
  0x53   :  { %2729 = vmatpush.bf16.msra.mxu3 %v4123_v19  ;;  %v4988_v19 = vld [vmem:[%s8138_s0 + $0x24] sm:$0xf]  ;;  %v4187_v6 = vor.u32 %v5210_v61, %v4186_v59  ;;  %v4218_v55 = vld [vmem:[%s8137_s1 + $0x680] sm:$0xf] }
  0x54   :  { %2688 = vmatpush.bf16.msra.mxu0 %v3923_v22  ;;  %v3320_v22 = vld [vmem:[%s8138_s0 + $0x84] sm:$0xf0] }
  0x55   :  { %2702 = vmatpush.bf16.msra.mxu1 %v3987_v25  ;;  %v4339_v25 = vor.u32 %v5248_v4, %v4338_v3  ;;  %v6148_v37 = vor.u32 %v4988_v19, %v3320_v22  ;;  %v5242_v3 = vld [vmem:[%s8137_s1 + $0x744] sm:$0xf0]  ;;  %v4378_v4 = vld [vmem:[%s8137_s1 + $0x7c0] sm:$0xf]  ;;  %v5256_v19 = vld [vmem:[%s8137_s1 + $0x7b4] sm:$0xf0] }
  0x56   :  { %2716 = vmatpush.bf16.msra.mxu2 %v4051_v28  ;;  %v5214_v28 = vld [vmem:[%s8137_s1 + $0x664] sm:$0xf0]  ;;  %v4315_v9 = vor.u32 %v5242_v3, %v4314_v1  ;;  %v5296_v3 = vld [vmem:[%s8137_s1 + $0x8f4] sm:$0xf0] }
  0x57   :  { %2730 = vmatpush.bf16.msra.mxu3 %v4115_v31  ;;  %v4403_v31 = vor.u32 %v5264_v18, %v4402_v17  ;;  %v4203_v42 = vor.u32 %v5214_v28, %v4202_v27  ;;  %v5240_v17 = vld [vmem:[%s8137_s1 + $0x734] sm:$0xf0]  ;;  %v4370_v18 = vld [vmem:[%s8137_s1 + $0x7b0] sm:$0xf]  ;;  %v5222_v27 = vld [vmem:[%s8137_s1 + $0x6a4] sm:$0xf0] }
  0x58   :  { %2689 = vmatpush.bf16.msra.mxu0 %v3915_v34  ;;  %v5246_v34 = vld [vmem:[%s8137_s1 + $0x764] sm:$0xf0]  ;;  %v4298_v28 = vld [vmem:[%s8137_s1 + $0x720] sm:$0xf] }
  0x59   :  { %2703 = vmatpush.bf16.msra.mxu1 %v3979_v38  ;;  %v4394_v38 = vld [vmem:[%s8137_s1 + $0x7e0] sm:$0xf]  ;;  %v4331_v45 = vor.u32 %v5246_v34, %v4330_v33  ;;  %v4171_v33 = vor.u32 %v5206_v24, %v4170_v23  ;;  %v4162_v34 = vld [vmem:[%s8137_s1 + $0x610] sm:$0xf]  ;;  %v4991_v23 = vld [vmem:[%s8138_s0 + $0x3c] sm:$0xf] }
  0x5a   :  { %2717 = vmatpush.bf16.msra.mxu2 %v4043_v43  ;;  %v4267_v43 = vor.u32 %v5230_v32, %v4266_v29  ;;  %v4395_v50 = vor.u32 %v5262_v39, %v4394_v38  ;;  %v5238_v29 = vld [vmem:[%s8137_s1 + $0x724] sm:$0xf0]  ;;  %v3344_v24 = vld [vmem:[%s8138_s0 + $0x9c] sm:$0xf0] }
  0x5b   :  { %2731 = vmatpush.bf16.msra.mxu3 %v4107_v49  ;;  %v4258_v49 = vld [vmem:[%s8137_s1 + $0x6d0] sm:$0xf]  ;;  %v5254_v32 = vld [vmem:[%s8137_s1 + $0x7a4] sm:$0xf0]  ;;  %v4299_v39 = vor.u32 %v5238_v29, %v4298_v28  ;;  %v4522_v29 = vld [vmem:[%s8137_s1 + $0x8e0] sm:$0xf] }
  0x5c   :  { %2690 = vmatpush.bf16.msra.mxu0 %v3907_v53  ;;  %v5244_v53 = vld [vmem:[%s8137_s1 + $0x754] sm:$0xf0]  ;;  %v5278_v28 = vld [vmem:[%s8137_s1 + $0x864] sm:$0xf0] }
  0x5d   :  { %2704 = vmatpush.bf16.msra.mxu1 %v3971_v57  ;;  %v4259_v57 = vor.u32 %v5228_v51, %v4258_v49  ;;  %v4323_v58 = vor.u32 %v5244_v53, %v4322_v52  ;;  %v5236_v49 = vld [vmem:[%s8137_s1 + $0x714] sm:$0xf0]  ;;  %v4154_v52 = vld [vmem:[%s8137_s1 + $0x600] sm:$0xf]  ;;  %v5202_v53 = vld [vmem:[%s8137_s1 + $0x604] sm:$0xf0] }
  0x5e   :  { %2718 = vmatpush.bf16.msra.mxu2 %v4035_v0  ;;  %v5226_v0 = vld [vmem:[%s8137_s1 + $0x6c4] sm:$0xf0]  ;;  %v5252_v51 = vld [vmem:[%s8137_s1 + $0x794] sm:$0xf0]  ;;  %v4291_v61 = vor.u32 %v5236_v49, %v4290_v47 }
  0x5f   :  { %2732 = vmatpush.bf16.msra.mxu3 %v4099_v5  ;;  %v5258_v5 = vld [vmem:[%s8137_s1 + $0x7c4] sm:$0xf0]  ;;  %v4251_v7 = vor.u32 %v5226_v0, %v4250_v62  ;;  %v4466_v62 = vld [vmem:[%s8137_s1 + $0x870] sm:$0xf] }
  0x60   :  { %2691 = vmatpush.bf16.msra.mxu0 %v3899_v10  ;;  %v4178_v10 = vld [vmem:[%s8137_s1 + $0x630] sm:$0xf]  ;;  %v4379_v13 = vor.u32 %v5258_v5, %v4378_v4  ;;  %v5312_v5 = vld [vmem:[%s8137_s1 + $0x974] sm:$0xf0]  ;;  %v5326_v47 = vld [vmem:[%s8137_s1 + $0x9e4] sm:$0xf0] }
  0x61   :  { %2705 = vmatpush.bf16.msra.mxu1 %v3963_v15  ;;  %v5224_v15 = vld [vmem:[%s8137_s1 + $0x6b4] sm:$0xf0]  ;;  %v4530_v0 = vld [vmem:[%s8137_s1 + $0x8f0] sm:$0xf] }
  0x62   :  { %2719 = vmatpush.bf16.msra.mxu2 %v4027_v20  ;;  %v4179_v20 = vor.u32 %v5208_v11, %v4178_v10  ;;  %v4594_v4 = vld [vmem:[%s8137_s1 + $0x970] sm:$0xf]  ;;  %v4155_v10 = vor.u32 %v5202_v53, %v4154_v52  ;;  %v5002_v11 = vld [vmem:[%s8138_s0 + $0x90] sm:$0xf0]  ;;  %v5276_v52 = vld [vmem:[%s8137_s1 + $0x854] sm:$0xf0] }
  0x63   :  { %2733 = vmatpush.bf16.msra.mxu3 %v4091_v26  ;;  %2692 = vmatmul.bf16.vlgmr.msra.gmra.mxu0 %v6135_v30  ;;  %v4371_v26 = vor.u32 %v5256_v19, %v4370_v18  ;;  %v5328_v18 = vld [vmem:[%s8137_s1 + $0x9f4] sm:$0xf0]  ;;  %v4990_v19 = vld [vmem:[%s8138_s0 + $0x34] sm:$0xf]  ;;  %v4514_v53 = vld [vmem:[%s8137_s1 + $0x8d0] sm:$0xf] }
  0x64   :  { %2740 = vmatpush.bf16.msrb.mxu0 %v4211_v16  ;;  %2706 = vmatmul.bf16.vlgmr.msra.gmra.mxu1 %v6148_v37  ;;  %v4306_v16 = vld [vmem:[%s8137_s1 + $0x730] sm:$0xf] }
  0x65   :  { %2754 = vmatpush.bf16.msrb.mxu1 %v4275_v21  ;;  %2720 = vmatmul.bf16.vlgmr.msra.gmra.mxu2 %v6146_v35  ;;  %v4243_v21 = vor.u32 %v5224_v15, %v4242_v12  ;;  %v4307_v22 = vor.u32 %v5240_v17, %v4306_v16  ;;  %v3342_v12 = vld [vmem:[%s8138_s0 + $0x38] sm:$0xf]  ;;  %v4658_v17 = vld [vmem:[%s8137_s1 + $0x9f0] sm:$0xf] }
  0x66   :  { %2768 = vmatpush.bf16.msrb.mxu2 %v4339_v25  ;;  %2734 = vmatmul.bf16.vlgmr.msra.gmra.mxu3 %v6156_v41  ;;  %v4234_v25 = vld [vmem:[%s8137_s1 + $0x6a0] sm:$0xf] }
  0x67   :  { %2782 = vmatpush.bf16.msrb.mxu3 %v4403_v31  ;;  %v4362_v31 = vld [vmem:[%s8137_s1 + $0x7a0] sm:$0xf]  ;;  %v4235_v38 = vor.u32 %v5222_v27, %v4234_v25  ;;  %v4595_v25 = vor.u32 %v5312_v5, %v4594_v4  ;;  %v5290_v4 = vld [vmem:[%s8137_s1 + $0x8c4] sm:$0xf0] }
  0x68   :  { %2741 = vmatpush.bf16.msrb.mxu0 %v4203_v42  ;;  %v5204_v42 = vld [vmem:[%s8137_s1 + $0x614] sm:$0xf0]  ;;  %v4363_v46 = vor.u32 %v5254_v32, %v4362_v31  ;;  %v4458_v27 = vld [vmem:[%s8137_s1 + $0x860] sm:$0xf] }
  0x69   :  { %2755 = vmatpush.bf16.msrb.mxu1 %v4267_v43  ;;  %v4226_v43 = vld [vmem:[%s8137_s1 + $0x690] sm:$0xf]  ;;  %v4163_v54 = vor.u32 %v5204_v42, %v4162_v34  ;;  %v4586_v34 = vld [vmem:[%s8137_s1 + $0x960] sm:$0xf] }
  0x6a   :  { %2769 = vmatpush.bf16.msrb.mxu2 %v4331_v45  ;;  %v5220_v45 = vld [vmem:[%s8137_s1 + $0x694] sm:$0xf0]  ;;  %v4570_v5 = vld [vmem:[%s8137_s1 + $0x940] sm:$0xf] }
  0x6b   :  { %2783 = vmatpush.bf16.msrb.mxu3 %v4395_v50  ;;  %v4354_v50 = vld [vmem:[%s8137_s1 + $0x790] sm:$0xf]  ;;  %v4227_v59 = vor.u32 %v5220_v45, %v4226_v43  ;;  %v6378_v43 = vor.u32 %v4991_v23, %v3344_v24  ;;  %v4459_v45 = vor.u32 %v5278_v28, %v4458_v27  ;;  %v5320_v24 = vld [vmem:[%s8137_s1 + $0x9b4] sm:$0xf0]  ;;  %v4426_v27 = vld [vmem:[%s8137_s1 + $0x820] sm:$0xf] }
  0x6c   :  { %2742 = vmatpush.bf16.msrb.mxu0 %v4195_v56  ;;  %v5218_v56 = vld [vmem:[%s8137_s1 + $0x684] sm:$0xf0]  ;;  %v4355_v1 = vor.u32 %v5252_v51, %v4354_v50  ;;  %v4450_v51 = vld [vmem:[%s8137_s1 + $0x850] sm:$0xf] }
  0x6d   :  { %2756 = vmatpush.bf16.msrb.mxu1 %v4259_v57  ;;  %v4282_v57 = vld [vmem:[%s8137_s1 + $0x700] sm:$0xf]  ;;  %v4219_v15 = vor.u32 %v5218_v56, %v4218_v55  ;;  %v4578_v55 = vld [vmem:[%s8137_s1 + $0x950] sm:$0xf]  ;;  %v5308_v56 = vld [vmem:[%s8137_s1 + $0x954] sm:$0xf0] }
  0x6e   :  { %2770 = vmatpush.bf16.msrb.mxu2 %v4323_v58  ;;  %v5234_v58 = vld [vmem:[%s8137_s1 + $0x704] sm:$0xf0]  ;;  %v4626_v23 = vld [vmem:[%s8137_s1 + $0x9b0] sm:$0xf] }
  0x6f   :  { %2784 = vmatpush.bf16.msrb.mxu3 %v4387_v63  ;;  %v5280_v63 = vld [vmem:[%s8137_s1 + $0x874] sm:$0xf0]  ;;  %v4283_v16 = vor.u32 %v5234_v58, %v4282_v57  ;;  %v4451_v58 = vor.u32 %v5276_v52, %v4450_v51  ;;  %v5270_v28 = vld [vmem:[%s8137_s1 + $0x824] sm:$0xf0] }
  0x70   :  { %2743 = vmatpush.bf16.msrb.mxu0 %v4187_v6  ;;  %v4346_v6 = vld [vmem:[%s8137_s1 + $0x780] sm:$0xf]  ;;  %v5268_v52 = vld [vmem:[%s8137_s1 + $0x814] sm:$0xf0] }
  0x71   :  { %2757 = vmatpush.bf16.msrb.mxu1 %v4251_v7  ;;  %v5250_v7 = vld [vmem:[%s8137_s1 + $0x784] sm:$0xf0] }
  0x72   :  { %2771 = vmatpush.bf16.msrb.mxu2 %v4315_v9  ;;  %v3334_v9 = vld [vmem:[%s8138_s0 + $0x30] sm:$0xf] }
  0x73   :  { %2785 = vmatpush.bf16.msrb.mxu3 %v4379_v13  ;;  %v5003_v13 = vld [vmem:[%s8138_s0 + $0x98] sm:$0xf0]  ;;  %v6363_v31 = vor.u32 %v5002_v11, %v3334_v9  ;;  %v5322_v11 = vld [vmem:[%s8137_s1 + $0x9c4] sm:$0xf0] }
  0x74   :  { %2744 = vmatpush.bf16.msrb.mxu0 %v4179_v20  ;;  %v4467_v20 = vor.u32 %v5280_v63, %v4466_v62  ;;  %v6365_v32 = vor.u32 %v5003_v13, %v3342_v12  ;;  %v4579_v63 = vor.u32 %v5308_v56, %v4578_v55  ;;  %v4546_v55 = vld [vmem:[%s8137_s1 + $0x910] sm:$0xf]  ;;  %v5300_v56 = vld [vmem:[%s8137_s1 + $0x914] sm:$0xf0] }
  0x75   :  { %2758 = vmatpush.bf16.msrb.mxu1 %v4243_v21  ;;  %v4531_v21 = vor.u32 %v5296_v3, %v4530_v0  ;;  %v4442_v0 = vld [vmem:[%s8137_s1 + $0x840] sm:$0xf] }
  0x76   :  { %2772 = vmatpush.bf16.msrb.mxu2 %v4307_v22  ;;  %v3336_v22 = vld [vmem:[%s8138_s0 + $0x94] sm:$0xf0]  ;;  %v4506_v3 = vld [vmem:[%s8137_s1 + $0x8c0] sm:$0xf] }
  0x77   :  { %2786 = vmatpush.bf16.msrb.mxu3 %v4371_v26  ;;  %v4347_v26 = vor.u32 %v5250_v7, %v4346_v6  ;;  %v6376_v42 = vor.u32 %v4990_v19, %v3336_v22  ;;  %v5306_v6 = vld [vmem:[%s8137_s1 + $0x944] sm:$0xf0]  ;;  %v4507_v12 = vor.u32 %v5290_v4, %v4506_v3  ;;  %v4562_v19 = vld [vmem:[%s8137_s1 + $0x930] sm:$0xf]  ;;  %v4538_v3 = vld [vmem:[%s8137_s1 + $0x900] sm:$0xf] }
  0x78   :  { %2745 = vmatpush.bf16.msrb.mxu0 %v4171_v33  ;;  %v5294_v33 = vld [vmem:[%s8137_s1 + $0x8e4] sm:$0xf0]  ;;  %v4571_v13 = vor.u32 %v5306_v6, %v4570_v5  ;;  %v4547_v6 = vor.u32 %v5300_v56, %v4546_v55 }
  0x79   :  { %2759 = vmatpush.bf16.msrb.mxu1 %v4235_v38  ;;  %v5310_v38 = vld [vmem:[%s8137_s1 + $0x964] sm:$0xf0]  ;;  %v4523_v49 = vor.u32 %v5294_v33, %v4522_v29  ;;  %v4490_v29 = vld [vmem:[%s8137_s1 + $0x8a0] sm:$0xf] }
  0x7a   :  { %2773 = vmatpush.bf16.msrb.mxu2 %v4299_v39  ;;  %v4659_v39 = vor.u32 %v5328_v18, %v4658_v17  ;;  %v4587_v50 = vor.u32 %v5310_v38, %v4586_v34  ;;  %v4498_v17 = vld [vmem:[%s8137_s1 + $0x8b0] sm:$0xf]  ;;  %v5288_v18 = vld [vmem:[%s8137_s1 + $0x8b4] sm:$0xf0]  ;;  %v5286_v33 = vld [vmem:[%s8137_s1 + $0x8a4] sm:$0xf0] }
  0x7b   :  { %2787 = vmatpush.bf16.msrb.mxu3 %v4363_v46  ;;  %v4650_v46 = vld [vmem:[%s8137_s1 + $0x9e0] sm:$0xf]  ;;  %v5302_v38 = vld [vmem:[%s8137_s1 + $0x924] sm:$0xf0] }
  0x7c   :  { %2746 = vmatpush.bf16.msrb.mxu0 %v4163_v54  ;;  %v5292_v54 = vld [vmem:[%s8137_s1 + $0x8d4] sm:$0xf0]  ;;  %v4651_v57 = vor.u32 %v5326_v47, %v4650_v46  ;;  %v4554_v34 = vld [vmem:[%s8137_s1 + $0x920] sm:$0xf]  ;;  %v5318_v47 = vld [vmem:[%s8137_s1 + $0x9a4] sm:$0xf0] }
  0x7d   :  { %2760 = vmatpush.bf16.msrb.mxu1 %v4227_v59  ;;  %v4642_v59 = vld [vmem:[%s8137_s1 + $0x9d0] sm:$0xf]  ;;  %v4515_v62 = vor.u32 %v5292_v54, %v4514_v53  ;;  %v4618_v46 = vld [vmem:[%s8137_s1 + $0x9a0] sm:$0xf]  ;;  %v4555_v51 = vor.u32 %v5302_v38, %v4554_v34  ;;  %v5284_v54 = vld [vmem:[%s8137_s1 + $0x894] sm:$0xf0] }
  0x7e   :  { %2774 = vmatpush.bf16.msrb.mxu2 %v4291_v61  ;;  %v5324_v61 = vld [vmem:[%s8137_s1 + $0x9d4] sm:$0xf0]  ;;  %v4482_v53 = vld [vmem:[%s8137_s1 + $0x890] sm:$0xf]  ;;  %v5298_v4 = vld [vmem:[%s8137_s1 + $0x904] sm:$0xf0] }
  0x7f   :  { %2788 = vmatpush.bf16.msrb.mxu3 %v4355_v1  ;;  %v5274_v1 = vld [vmem:[%s8137_s1 + $0x844] sm:$0xf0]  ;;  %v4643_v7 = vor.u32 %v5324_v61, %v4642_v59  ;;  %v5316_v59 = vld [vmem:[%s8137_s1 + $0x994] sm:$0xf0]  ;;  %v4410_v61 = vld [vmem:[%s8137_s1 + $0x800] sm:$0xf]  ;;  %v4483_v5 = vor.u32 %v5284_v54, %v4482_v53 }
  0x80   :  { %2747 = vmatpush.bf16.msrb.mxu0 %v4155_v10  ;;  %v4443_v9 = vor.u32 %v5274_v1, %v4442_v0  ;;  %v4634_v10 = vld [vmem:[%s8137_s1 + $0x9c0] sm:$0xf]  ;;  %v5282_v1 = vld [vmem:[%s8137_s1 + $0x884] sm:$0xf0]  ;;  %v4993_v34 = vld [vmem:[%s8138_s0 + $0x4c] sm:$0xf] }
  0x81   :  { %2761 = vmatpush.bf16.msrb.mxu1 %v4219_v15  ;;  %v4434_v15 = vld [vmem:[%s8137_s1 + $0x830] sm:$0xf]  ;;  %v4474_v0 = vld [vmem:[%s8137_s1 + $0x880] sm:$0xf]  ;;  %v5374_v54 = vld [vmem:[%s8137_s1 + $0xb64] sm:$0xf0] }
  0x82   :  { %2775 = vmatpush.bf16.msrb.mxu2 %v4283_v16  ;;  %v5272_v16 = vld [vmem:[%s8137_s1 + $0x834] sm:$0xf0]  ;;  %v3360_v38 = vld [vmem:[%s8138_s0 + $0xac] sm:$0xf0]  ;;  %v4842_v53 = vld [vmem:[%s8137_s1 + $0xb60] sm:$0xf] }
  0x83   :  { %2789 = vmatpush.bf16.msrb.mxu3 %v4347_v26  ;;  %2748 = vmatmul.bf16.vlgmr.msrb.gmra.mxu0 %v6363_v31  ;;  %v4435_v22 = vor.u32 %v5272_v16, %v4434_v15  ;;  %v4602_v16 = vld [vmem:[%s8137_s1 + $0x980] sm:$0xf] }
  0x84   :  { %2796 = vmatpush.bf16.msra.mxu0 %v4467_v20  ;;  %2762 = vmatmul.bf16.vlgmr.msrb.gmra.mxu1 %v6376_v42  ;;  %v5304_v20 = vld [vmem:[%s8137_s1 + $0x934] sm:$0xf0] }
  0x85   :  { %2810 = vmatpush.bf16.msra.mxu1 %v4531_v21  ;;  %2776 = vmatmul.bf16.vlgmr.msrb.gmra.mxu2 %v6365_v32  ;;  %v4635_v21 = vor.u32 %v5322_v11, %v4634_v10  ;;  %v4563_v26 = vor.u32 %v5304_v20, %v4562_v19  ;;  %v4786_v10 = vld [vmem:[%s8137_s1 + $0xaf0] sm:$0xf]  ;;  %v5360_v11 = vld [vmem:[%s8137_s1 + $0xaf4] sm:$0xf0]  ;;  %v5004_v20 = vld [vmem:[%s8138_s0 + $0xa0] sm:$0xf0] }
  0x86   :  { %2824 = vmatpush.bf16.msra.mxu2 %v4595_v25  ;;  %2790 = vmatmul.bf16.vlgmr.msrb.gmra.mxu3 %v6378_v43  ;;  %v4499_v25 = vor.u32 %v5288_v18, %v4498_v17  ;;  %v5314_v17 = vld [vmem:[%s8137_s1 + $0x984] sm:$0xf0]  ;;  %v3350_v18 = vld [vmem:[%s8138_s0 + $0x40] sm:$0xf] }
  0x87   :  { %2838 = vmatpush.bf16.msra.mxu3 %v4659_v39  ;;  %v4627_v39 = vor.u32 %v5320_v24, %v4626_v23  ;;  %v4475_v23 = vor.u32 %v5282_v1, %v4474_v0  ;;  %v4539_v24 = vor.u32 %v5298_v4, %v4538_v3  ;;  %v4843_v0 = vor.u32 %v5374_v54, %v4842_v53  ;;  %v5340_v1 = vld [vmem:[%s8137_s1 + $0xa54] sm:$0xf0]  ;;  %v4770_v3 = vld [vmem:[%s8137_s1 + $0xad0] sm:$0xf] }
  0x88   :  { %2797 = vmatpush.bf16.msra.mxu0 %v4459_v45  ;;  %v4427_v45 = vor.u32 %v5270_v28, %v4426_v27  ;;  %v4992_v27 = vld [vmem:[%s8138_s0 + $0x44] sm:$0xf]  ;;  %v5356_v4 = vld [vmem:[%s8137_s1 + $0xad4] sm:$0xf0]  ;;  %v4882_v54 = vld [vmem:[%s8137_s1 + $0xbb0] sm:$0xf] }
  0x89   :  { %2811 = vmatpush.bf16.msra.mxu1 %v4523_v49  ;;  %v4418_v49 = vld [vmem:[%s8137_s1 + $0x810] sm:$0xf] }
  0x8a   :  { %2825 = vmatpush.bf16.msra.mxu2 %v4587_v50  ;;  %v4491_v50 = vor.u32 %v5286_v33, %v4490_v29  ;;  %v4787_v29 = vor.u32 %v5360_v11, %v4786_v10  ;;  %v3352_v33 = vld [vmem:[%s8138_s0 + $0xa4] sm:$0xf0]  ;;  %v4898_v11 = vld [vmem:[%s8137_s1 + $0xbd0] sm:$0xf] }
  0x8b   :  { %2839 = vmatpush.bf16.msra.mxu3 %v4651_v57  ;;  %v4610_v57 = vld [vmem:[%s8137_s1 + $0x990] sm:$0xf]  ;;  %v6604_v56 = vor.u32 %v4992_v27, %v3352_v33 }
  0x8c   :  { %2798 = vmatpush.bf16.msra.mxu0 %v4451_v58  ;;  %v4619_v58 = vor.u32 %v5318_v47, %v4618_v46  ;;  %v4611_v15 = vor.u32 %v5316_v59, %v4610_v57  ;;  %v4714_v46 = vld [vmem:[%s8137_s1 + $0xa60] sm:$0xf]  ;;  %v5342_v47 = vld [vmem:[%s8137_s1 + $0xa64] sm:$0xf0]  ;;  %v6606_v57 = vor.u32 %v4993_v34, %v3360_v38  ;;  %v4690_v33 = vld [vmem:[%s8137_s1 + $0xa30] sm:$0xf] }
  0x8d   :  { %2812 = vmatpush.bf16.msra.mxu1 %v4515_v62  ;;  %v5266_v62 = vld [vmem:[%s8137_s1 + $0x804] sm:$0xf0]  ;;  %v4906_v59 = vld [vmem:[%s8137_s1 + $0xbe0] sm:$0xf]  ;;  %v5336_v34 = vld [vmem:[%s8137_s1 + $0xa34] sm:$0xf0] }
  0x8e   :  { %2826 = vmatpush.bf16.msra.mxu2 %v4579_v63  ;;  %v4419_v63 = vor.u32 %v5268_v52, %v4418_v49  ;;  %v4411_v19 = vor.u32 %v5266_v62, %v4410_v61  ;;  %v4778_v49 = vld [vmem:[%s8137_s1 + $0xae0] sm:$0xf]  ;;  %v5358_v52 = vld [vmem:[%s8137_s1 + $0xae4] sm:$0xf0]  ;;  %v4706_v62 = vld [vmem:[%s8137_s1 + $0xa50] sm:$0xf]  ;;  %v4691_v53 = vor.u32 %v5336_v34, %v4690_v33 }
  0x8f   :  { %2840 = vmatpush.bf16.msra.mxu3 %v4643_v7  ;;  %v4722_v7 = vld [vmem:[%s8137_s1 + $0xa70] sm:$0xf]  ;;  %v5390_v61 = vld [vmem:[%s8137_s1 + $0xbe4] sm:$0xf0]  ;;  %v4707_v10 = vor.u32 %v5340_v1, %v4706_v62  ;;  %v4682_v62 = vld [vmem:[%s8137_s1 + $0xa20] sm:$0xf] }
  0x90   :  { %2799 = vmatpush.bf16.msra.mxu0 %v4443_v9  ;;  %v5344_v9 = vld [vmem:[%s8137_s1 + $0xa74] sm:$0xf0]  ;;  %v4754_v38 = vld [vmem:[%s8137_s1 + $0xab0] sm:$0xf]  ;;  %v5350_v1 = vld [vmem:[%s8137_s1 + $0xaa4] sm:$0xf0] }
  0x91   :  { %2813 = vmatpush.bf16.msra.mxu1 %v4507_v12  ;;  %v4850_v12 = vld [vmem:[%s8137_s1 + $0xb70] sm:$0xf]  ;;  %v4723_v28 = vor.u32 %v5344_v9, %v4722_v7  ;;  %v6637_v7 = vld [vmem:[%s8139_s2] sm:$0x3]  ;;  %v4907_v9 = vor.u32 %v5390_v61, %v4906_v59 }
  0x92   :  { %2827 = vmatpush.bf16.msra.mxu2 %v4571_v13  ;;  %v5376_v13 = vld [vmem:[%s8137_s1 + $0xb74] sm:$0xf0]  ;;  %v4730_v34 = vld [vmem:[%s8137_s1 + $0xa80] sm:$0xf] }
  0x93   :  { %2841 = vmatpush.bf16.msra.mxu3 %v4635_v21  ;;  %v3358_v21 = vld [vmem:[%s8138_s0 + $0x48] sm:$0xf] }
  0x94   :  { %2800 = vmatpush.bf16.msra.mxu0 %v4435_v22  ;;  %v5005_v22 = vld [vmem:[%s8138_s0 + $0xa8] sm:$0xf0] }
  0x95   :  { %2814 = vmatpush.bf16.msra.mxu1 %v4499_v25  ;;  %v4914_v25 = vld [vmem:[%s8137_s1 + $0xbf0] sm:$0xf] }
  0x96   :  { %2828 = vmatpush.bf16.msra.mxu2 %v4563_v26  ;;  %v5392_v26 = vld [vmem:[%s8137_s1 + $0xbf4] sm:$0xf0] }
  0x97   :  { %2842 = vmatpush.bf16.msra.mxu3 %v4627_v39  ;;  %v4851_v39 = vor.u32 %v5376_v13, %v4850_v12  ;;  %v4915_v55 = vor.u32 %v5392_v26, %v4914_v25  ;;  %v5388_v12 = vld [vmem:[%s8137_s1 + $0xbd4] sm:$0xf0]  ;;  %v4698_v13 = vld [vmem:[%s8137_s1 + $0xa40] sm:$0xf]  ;;  %v5386_v26 = vld [vmem:[%s8137_s1 + $0xbc4] sm:$0xf0] }
  0x98   :  { %2801 = vmatpush.bf16.msra.mxu0 %v4427_v45  ;;  %v4603_v45 = vor.u32 %v5314_v17, %v4602_v16  ;;  %v5338_v17 = vld [vmem:[%s8137_s1 + $0xa44] sm:$0xf0]  ;;  %v4890_v25 = vld [vmem:[%s8137_s1 + $0xbc0] sm:$0xf] }
  0x99   :  { %2815 = vmatpush.bf16.msra.mxu1 %v4491_v50  ;;  %v6591_v50 = vor.u32 %v5004_v20, %v3350_v18  ;;  %v4762_v18 = vld [vmem:[%s8137_s1 + $0xac0] sm:$0xf]  ;;  %v5354_v20 = vld [vmem:[%s8137_s1 + $0xac4] sm:$0xf0] }
  0x9a   :  { %2829 = vmatpush.bf16.msra.mxu2 %v4555_v51  ;;  %v6593_v51 = vor.u32 %v5005_v22, %v3358_v21  ;;  %v4826_v21 = vld [vmem:[%s8137_s1 + $0xb40] sm:$0xf]  ;;  %v5370_v22 = vld [vmem:[%s8137_s1 + $0xb44] sm:$0xf0] }
  0x9b   :  { %2843 = vmatpush.bf16.msra.mxu3 %v4619_v58  ;;  %v4715_v58 = vor.u32 %v5342_v47, %v4714_v46  ;;  %v4818_v46 = vld [vmem:[%s8137_s1 + $0xb30] sm:$0xf]  ;;  %v5368_v47 = vld [vmem:[%s8137_s1 + $0xb34] sm:$0xf0] }
  0x9c   :  { %2802 = vmatpush.bf16.msra.mxu0 %v4419_v63  ;;  %v4779_v63 = vor.u32 %v5358_v52, %v4778_v49  ;;  %v4891_v49 = vor.u32 %v5386_v26, %v4890_v25  ;;  %v4819_v61 = vor.u32 %v5368_v47, %v4818_v46  ;;  %v5380_v26 = vld [vmem:[%s8137_s1 + $0xb94] sm:$0xf0] }
  0x9d   :  { %2816 = vmatpush.bf16.msra.mxu1 %v4483_v5  ;;  %v4834_v5 = vld [vmem:[%s8137_s1 + $0xb50] sm:$0xf] }
  0x9e   :  { %2830 = vmatpush.bf16.msra.mxu2 %v4547_v6  ;;  %v5372_v6 = vld [vmem:[%s8137_s1 + $0xb54] sm:$0xf0] }
  0x9f   :  { %2844 = vmatpush.bf16.msra.mxu3 %v4611_v15  ;;  %v4771_v15 = vor.u32 %v5356_v4, %v4770_v3  ;;  %v4835_v16 = vor.u32 %v5372_v6, %v4834_v5  ;;  %v4810_v3 = vld [vmem:[%s8137_s1 + $0xb20] sm:$0xf]  ;;  %v5366_v4 = vld [vmem:[%s8137_s1 + $0xb24] sm:$0xf0] }
  0xa0   :  { %2803 = vmatpush.bf16.msra.mxu0 %v4411_v19  ;;  %v442_v19 = vperm.slane %v6637_v7, 0  ;;  %v2581_v27 = vpop.f32.mrf.mxu0 }
  0xa1   :  { %2817 = vmatpush.bf16.msra.mxu1 %v4475_v23  ;;  %v4899_v23 = vor.u32 %v5388_v12, %v4898_v11  ;;  %v2595_v52 = vpop.f32.mrf.mxu1  ;;  %v4674_v11 = vld [vmem:[%s8137_s1 + $0xa10] sm:$0xf] }
  0xa2   :  { %2831 = vmatpush.bf16.msra.mxu2 %v4539_v24  ;;  %v4699_v24 = vor.u32 %v5338_v17, %v4698_v13  ;;  %v5332_v17 = vld [vmem:[%s8137_s1 + $0xa14] sm:$0xf0] }
  0xa3   :  { %2845 = vmatpush.bf16.msra.mxu3 %v4603_v45  ;;  %2804 = vmatmul.bf16.vlgmr.msra.gmra.mxu0 %v6591_v50  ;;  %v5352_v45 = vld [vmem:[%s8137_s1 + $0xab4] sm:$0xf0]  ;;  %v4675_v33 = vor.u32 %v5332_v17, %v4674_v11 }
  0xa4   :  { %2852 = vmatpush.bf16.msrb.mxu0 %v4723_v28  ;;  %2818 = vmatmul.bf16.vlgmr.msra.gmra.mxu1 %v6604_v56  ;;  %v4763_v28 = vor.u32 %v5354_v20, %v4762_v18  ;;  %v4755_v59 = vor.u32 %v5352_v45, %v4754_v38  ;;  %v4738_v18 = vld [vmem:[%s8137_s1 + $0xa90] sm:$0xf]  ;;  %v5348_v20 = vld [vmem:[%s8137_s1 + $0xa94] sm:$0xf0]  ;;  %v5346_v38 = vld [vmem:[%s8137_s1 + $0xa84] sm:$0xf0] }
  0xa5   :  { %2866 = vmatpush.bf16.msrb.mxu1 %v4787_v29  ;;  %2832 = vmatmul.bf16.vlgmr.msra.gmra.mxu2 %v6593_v51  ;;  %v4827_v29 = vor.u32 %v5370_v22, %v4826_v21  ;;  %v4802_v22 = vld [vmem:[%s8137_s1 + $0xb10] sm:$0xf]  ;;  %v5362_v45 = vld [vmem:[%s8137_s1 + $0xb04] sm:$0xf0] }
  0xa6   :  { %2880 = vmatpush.bf16.msrb.mxu2 %v4851_v39  ;;  %2846 = vmatmul.bf16.vlgmr.msra.gmra.mxu3 %v6606_v57  ;;  %v2582_v39 = vadd.f32 %v2581_v27, %v442_v19  ;;  %v5330_v27 = vld [vmem:[%s8137_s1 + $0xa04] sm:$0xf0] }
  0xa7   :  { %2894 = vmatpush.bf16.msrb.mxu3 %v4915_v55  ;;  %v5384_v55 = vld [vmem:[%s8137_s1 + $0xbb4] sm:$0xf0] }
  0xa8   :  { %2853 = vmatpush.bf16.msrb.mxu0 %v4715_v58  ;;  %v2596_v58 = vadd.f32 %v2595_v52, %v2582_v39  ;;  %v4883_v5 = vor.u32 %v5384_v55, %v4882_v54  ;;  %v2609_v6 = vpop.f32.mrf.mxu2  ;;  %v2583_v13 = vpop.f32.mrf.mxu0  ;;  %v4794_v39 = vld [vmem:[%s8137_s1 + $0xb00] sm:$0xf]  ;;  %v5408_v54 = vld [vmem:[%s8137_s1 + $0xc74] sm:$0xf0]  ;;  %v5023_v55 = vld [vmem:[%s8137_s1 + $0x74] sm:$0xf] }
  0xa9   :  { %2867 = vmatpush.bf16.msrb.mxu1 %v4779_v63  ;;  %v5334_v63 = vld [vmem:[%s8137_s1 + $0xa24] sm:$0xf0]  ;;  %v2584_v21 = vadd.f32 %v2583_v13, %v442_v19  ;;  %v4666_v19 = vld [vmem:[%s8137_s1 + $0xa00] sm:$0xf]  ;;  %v4795_v11 = vor.u32 %v5362_v45, %v4794_v39  ;;  %v3572_v13 = vld [vmem:[%s8137_s1 + $0x178] sm:$0xf0] }
  0xaa   :  { %2881 = vmatpush.bf16.msrb.mxu2 %v4843_v0  ;;  %v4746_v0 = vld [vmem:[%s8137_s1 + $0xaa0] sm:$0xf]  ;;  %v4683_v7 = vor.u32 %v5334_v63, %v4682_v62  ;;  %v2610_v12 = vadd.f32 %v2609_v6, %v2596_v58  ;;  %v3444_v58 = vld [vmem:[%s8137_s1 + $0x78] sm:$0xf0]  ;;  %v3374_v6 = vld [vmem:[%s8138_s0 + $0x58] sm:$0xf] }
  0xab   :  { %2895 = vmatpush.bf16.msrb.mxu3 %v4907_v9  ;;  %v4874_v9 = vld [vmem:[%s8137_s1 + $0xba0] sm:$0xf]  ;;  %v3447_v17 = vor.u32 %v5023_v55, %v3444_v58  ;;  %v4962_v58 = vld [vmem:[%s8137_s1 + $0xc50] sm:$0xf] }
  0xac   :  { %2854 = vmatpush.bf16.msrb.mxu0 %v4707_v10  ;;  %v5382_v10 = vld [vmem:[%s8137_s1 + $0xba4] sm:$0xf0]  ;;  %v4858_v63 = vld [vmem:[%s8137_s1 + $0xb80] sm:$0xf] }
  0xad   :  { %2868 = vmatpush.bf16.msrb.mxu1 %v4771_v15  ;;  %v4747_v15 = vor.u32 %v5350_v1, %v4746_v0  ;;  %v4875_v25 = vor.u32 %v5382_v10, %v4874_v9  ;;  %v5378_v0 = vld [vmem:[%s8137_s1 + $0xb84] sm:$0xf0]  ;;  %v3366_v1 = vld [vmem:[%s8138_s0 + $0x50] sm:$0xf]  ;;  %v4731_v10 = vor.u32 %v5346_v38, %v4730_v34  ;;  %v3500_v34 = vld [vmem:[%s8137_s1 + $0xe8] sm:$0xf0] }
  0xae   :  { %2882 = vmatpush.bf16.msrb.mxu2 %v4835_v16  ;;  %v4811_v16 = vor.u32 %v5366_v4, %v4810_v3  ;;  %v4667_v4 = vor.u32 %v5330_v27, %v4666_v19 }
  0xaf   :  { %2896 = vmatpush.bf16.msrb.mxu3 %v4899_v23  ;;  %v5364_v23 = vld [vmem:[%s8137_s1 + $0xb14] sm:$0xf0] }
  0xb0   :  { %2855 = vmatpush.bf16.msrb.mxu0 %v4699_v24  ;;  %v4866_v24 = vld [vmem:[%s8137_s1 + $0xb90] sm:$0xf]  ;;  %v4803_v52 = vor.u32 %v5364_v23, %v4802_v22  ;;  %v2611_v3 = vpop.f32.mrf.mxu2  ;;  %v4859_v23 = vor.u32 %v5378_v0, %v4858_v63  ;;  %v5035_v63 = vld [vmem:[%s8137_s1 + $0xd4] sm:$0xf]  ;;  %v3492_v0 = vld [vmem:[%s8137_s1 + $0xd8] sm:$0xf0] }
  0xb1   :  { %2869 = vmatpush.bf16.msrb.mxu1 %v4763_v28  ;;  %v2623_v28 = vpop.f32.mrf.mxu3  ;;  %v4867_v62 = vor.u32 %v5380_v26, %v4866_v24  ;;  %v4970_v24 = vld [vmem:[%s8137_s1 + $0xc60] sm:$0xf]  ;;  %v5021_v26 = vld [vmem:[%s8137_s1 + $0x64] sm:$0xf] }
  0xb2   :  { %2883 = vmatpush.bf16.msrb.mxu2 %v4827_v29  ;;  %v2597_v29 = vpop.f32.mrf.mxu1  ;;  %v6762_v46 = vadd.f32 %v2623_v28, %v2610_v12  ;;  %v5055_v12 = vld [vmem:[%s8137_s1 + $0x174] sm:$0xf] }
  0xb3   :  { %2897 = vmatpush.bf16.msrb.mxu3 %v4891_v49  ;;  %v2598_v47 = vadd.f32 %v2597_v29, %v2584_v21  ;;  %v4739_v49 = vor.u32 %v5348_v20, %v4738_v18  ;;  %v3368_v18 = vld [vmem:[%s8138_s0 + $0xb4] sm:$0xf0]  ;;  %v4995_v20 = vld [vmem:[%s8138_s0 + $0x5c] sm:$0xf]  ;;  %v3376_v21 = vld [vmem:[%s8138_s0 + $0xbc] sm:$0xf0]  ;;  %v3575_v39 = vor.u32 %v5055_v12, %v3572_v13 }
  0xb4   :  { %2856 = vmatpush.bf16.msrb.mxu0 %v4691_v53  ;;  %v4978_v53 = vld [vmem:[%s8137_s1 + $0xc70] sm:$0xf]  ;;  %v3436_v29 = vld [vmem:[%s8137_s1 + $0x68] sm:$0xf0]  ;;  %v5033_v13 = vld [vmem:[%s8137_s1 + $0xc4] sm:$0xf] }
  0xb5   :  { %2870 = vmatpush.bf16.msrb.mxu1 %v4755_v59  ;;  %v5039_v59 = vld [vmem:[%s8137_s1 + $0xf4] sm:$0xf]  ;;  %v2612_v9 = vadd.f32 %v2611_v3, %v2598_v47  ;;  %v6844_v47 = vor.u32 %v4995_v20, %v3376_v21  ;;  %v3420_v12 = vld [vmem:[%s8137_s1 + $0x48] sm:$0xf0]  ;;  %v5049_v21 = vld [vmem:[%s8137_s1 + $0x144] sm:$0xf] }
  0xb6   :  { %2884 = vmatpush.bf16.msrb.mxu2 %v4819_v61  ;;  %v3508_v61 = vld [vmem:[%s8137_s1 + $0xf8] sm:$0xf0] }
  0xb7   :  { %2898 = vmatpush.bf16.msrb.mxu3 %v4883_v5  ;;  %v5006_v5 = vld [vmem:[%s8138_s0 + $0xb0] sm:$0xf0]  ;;  %v3511_v22 = vor.u32 %v5039_v59, %v3508_v61  ;;  %v5404_v59 = vld [vmem:[%s8137_s1 + $0xc54] sm:$0xf0] }
  0xb8   :  { %2857 = vmatpush.bf16.msrb.mxu0 %v4683_v7  ;;  %v5007_v7 = vld [vmem:[%s8138_s0 + $0xb8] sm:$0xf0]  ;;  %v6827_v27 = vor.u32 %v5006_v5, %v3366_v1  ;;  %v5019_v61 = vld [vmem:[%s8137_s1 + $0x54] sm:$0xf]  ;;  %v4963_v3 = vor.u32 %v5404_v59, %v4962_v58  ;;  %v4938_v59 = vld [vmem:[%s8137_s1 + $0xc20] sm:$0xf] }
  0xb9   :  { %2871 = vmatpush.bf16.msrb.mxu1 %v4747_v15  ;;  %v4994_v15 = vld [vmem:[%s8138_s0 + $0x54] sm:$0xf]  ;;  %v2625_v19 = vpop.f32.mrf.mxu3  ;;  %v6829_v28 = vor.u32 %v5007_v7, %v3374_v6  ;;  %v3556_v5 = vld [vmem:[%s8137_s1 + $0x158] sm:$0xf0]  ;;  %v3495_v7 = vor.u32 %v5035_v63, %v3492_v0  ;;  %v3404_v0 = vld [vmem:[%s8137_s1 + $0x28] sm:$0xf0] }
  0xba   :  { %2885 = vmatpush.bf16.msrb.mxu2 %v4811_v16  ;;  %v4979_v16 = vor.u32 %v5408_v54, %v4978_v53  ;;  %v6840_v38 = vadd.f32 %v2625_v19, %v2612_v9  ;;  %v6842_v45 = vor.u32 %v4994_v15, %v3368_v18  ;;  %v3564_v53 = vld [vmem:[%s8137_s1 + $0x168] sm:$0xf0]  ;;  %v3439_v54 = vor.u32 %v5021_v26, %v3436_v29  ;;  %v4954_v9 = vld [vmem:[%s8137_s1 + $0xc40] sm:$0xf]  ;;  %v4946_v26 = vld [vmem:[%s8137_s1 + $0xc30] sm:$0xf] }
  0xbb   :  { %2899 = vmatpush.bf16.msrb.mxu3 %v4875_v25  ;;  %v5406_v25 = vld [vmem:[%s8137_s1 + $0xc64] sm:$0xf0]  ;;  %v3484_v15 = vld [vmem:[%s8137_s1 + $0xc8] sm:$0xf0]  ;;  %v5015_v19 = vld [vmem:[%s8137_s1 + $0x34] sm:$0xf] }
  0xbc   :  { %2858 = vmatpush.bf16.msrb.mxu0 %v4675_v33  ;;  %v5037_v33 = vld [vmem:[%s8137_s1 + $0xe4] sm:$0xf] }
  0xbd   :  { %2872 = vmatpush.bf16.msrb.mxu1 %v4739_v49  ;;  %v4971_v49 = vor.u32 %v5406_v25, %v4970_v24  ;;  %v3503_v55 = vor.u32 %v5037_v33, %v3500_v34  ;;  %v3487_v24 = vor.u32 %v5033_v13, %v3484_v15  ;;  %v3412_v33 = vld [vmem:[%s8137_s1 + $0x38] sm:$0xf0]  ;;  %v5031_v34 = vld [vmem:[%s8137_s1 + $0xb4] sm:$0xf] }
  0xbe   :  { %2886 = vmatpush.bf16.msrb.mxu2 %v4803_v52  ;;  %v5053_v52 = vld [vmem:[%s8137_s1 + $0x164] sm:$0xf] }
  0xbf   :  { %2900 = vmatpush.bf16.msrb.mxu3 %v4867_v62  ;;  %v3428_v62 = vld [vmem:[%s8137_s1 + $0x58] sm:$0xf0]  ;;  %v3567_v1 = vor.u32 %v5053_v52, %v3564_v53  ;;  %v5047_v53 = vld [vmem:[%s8137_s1 + $0x134] sm:$0xf] }
  0xc0   :  { %2859 = vmatpush.bf16.msrb.mxu0 %v4667_v4  ;;  %v5051_v4 = vld [vmem:[%s8137_s1 + $0x154] sm:$0xf]  ;;  %v3431_v6 = vor.u32 %v5019_v61, %v3428_v62  ;;  %v5398_v61 = vld [vmem:[%s8137_s1 + $0xc24] sm:$0xf0]  ;;  %v5013_v62 = vld [vmem:[%s8137_s1 + $0x24] sm:$0xf] }
  0xc1   :  { %2873 = vmatpush.bf16.msrb.mxu1 %v4731_v10  ;;  %v5402_v10 = vld [vmem:[%s8137_s1 + $0xc44] sm:$0xf0]  ;;  %v2651_v25 = vpop.f32.mrf.mxu1  ;;  %v3407_v15 = vor.u32 %v5013_v62, %v3404_v0  ;;  %v3700_v0 = vld [vmem:[%s8137_s1 + $0x278] sm:$0xf0] }
  0xc2   :  { %2887 = vmatpush.bf16.msrb.mxu2 %v4795_v11  ;;  %v5017_v11 = vld [vmem:[%s8137_s1 + $0x44] sm:$0xf]  ;;  %v4955_v20 = vor.u32 %v5402_v10, %v4954_v9  ;;  %v4939_v10 = vor.u32 %v5398_v61, %v4938_v59  ;;  %v3636_v59 = vld [vmem:[%s8137_s1 + $0x1f8] sm:$0xf0]  ;;  %v5087_v61 = vld [vmem:[%s8137_s1 + $0x274] sm:$0xf] }
  0xc3   :  { %2901 = vmatpush.bf16.msrb.mxu3 %v4859_v23  ;;  %2860 = vmatmul.bf16.vlgmr.msrb.gmra.mxu0 %v6827_v27  ;;  %v3423_v23 = vor.u32 %v5017_v11, %v3420_v12  ;;  %v5045_v11 = vld [vmem:[%s8137_s1 + $0x124] sm:$0xf]  ;;  %v3532_v12 = vld [vmem:[%s8137_s1 + $0x128] sm:$0xf0] }
  0xc4   :  { %2908 = vmatpush.bf16.msra.mxu0 %v4979_v16  ;;  %2874 = vmatmul.bf16.vlgmr.msrb.gmra.mxu1 %v6842_v45  ;;  %v3559_v16 = vor.u32 %v5051_v4, %v3556_v5 }
  0xc5   :  { %2922 = vmatpush.bf16.msra.mxu1 %v3447_v17  ;;  %2888 = vmatmul.bf16.vlgmr.msrb.gmra.mxu2 %v6829_v28  ;;  %v2637_v17 = vpop.f32.mrf.mxu0 }
  0xc6   :  { %2936 = vmatpush.bf16.msra.mxu2 %v3511_v22  ;;  %2902 = vmatmul.bf16.vlgmr.msrb.gmra.mxu3 %v6844_v47  ;;  %v2638_v18 = vadd.f32 %v2637_v17, %v6762_v46  ;;  %v3548_v22 = vld [vmem:[%s8137_s1 + $0x148] sm:$0xf0]  ;;  %v5400_v46 = vld [vmem:[%s8137_s1 + $0xc34] sm:$0xf0] }
  0xc7   :  { %2950 = vmatpush.bf16.msra.mxu3 %v3575_v39  ;;  %v3476_v39 = vld [vmem:[%s8137_s1 + $0xb8] sm:$0xf0]  ;;  %v4947_v52 = vor.u32 %v5400_v46, %v4946_v26  ;;  %v5043_v26 = vld [vmem:[%s8137_s1 + $0x114] sm:$0xf] }
  0xc8   :  { %2909 = vmatpush.bf16.msra.mxu0 %v4971_v49  ;;  %v2652_v29 = vadd.f32 %v2651_v25, %v2638_v18  ;;  %v3551_v49 = vor.u32 %v5049_v21, %v3548_v22  ;;  %v3479_v58 = vor.u32 %v5031_v34, %v3476_v39  ;;  %v2665_v63 = vpop.f32.mrf.mxu2  ;;  %v5396_v18 = vld [vmem:[%s8137_s1 + $0xc14] sm:$0xf0]  ;;  %v3396_v22 = vld [vmem:[%s8137_s1 + $0x18] sm:$0xf0]  ;;  %v3535_v25 = vor.u32 %v5045_v11, %v3532_v12  ;;  %v5009_v34 = vld [vmem:[%s8137_s1 + $0x4] sm:$0xf] }
  0xc9   :  { %2923 = vmatpush.bf16.msra.mxu1 %v3439_v54  ;;  %v3540_v54 = vld [vmem:[%s8137_s1 + $0x138] sm:$0xf0]  ;;  %v2679_v9 = vpop.f32.mrf.mxu3  ;;  %v2653_v17 = vpop.f32.mrf.mxu1 }
  0xca   :  { %2937 = vmatpush.bf16.msra.mxu2 %v3503_v55  ;;  %v3415_v55 = vor.u32 %v5015_v19, %v3412_v33  ;;  %v2666_v4 = vadd.f32 %v2665_v63, %v2652_v29  ;;  %v3543_v5 = vor.u32 %v5047_v53, %v3540_v54  ;;  %v3524_v46 = vld [vmem:[%s8137_s1 + $0x118] sm:$0xf0]  ;;  %v4922_v29 = vld [vmem:[%s8137_s1 + $0xc00] sm:$0xf]  ;;  %v5394_v33 = vld [vmem:[%s8137_s1 + $0xc04] sm:$0xf0] }
  0xcb   :  { %2951 = vmatpush.bf16.msra.mxu3 %v3567_v1  ;;  %v5029_v1 = vld [vmem:[%s8137_s1 + $0xa4] sm:$0xf]  ;;  %v3452_v54 = vld [vmem:[%s8137_s1 + $0x88] sm:$0xf0]  ;;  %v3527_v63 = vor.u32 %v5043_v26, %v3524_v46 }
  0xcc   :  { %2910 = vmatpush.bf16.msra.mxu0 %v4963_v3  ;;  %v3468_v3 = vld [vmem:[%s8137_s1 + $0xa8] sm:$0xf0]  ;;  %v6954_v13 = vadd.f32 %v2679_v9, %v2666_v4  ;;  %v5025_v53 = vld [vmem:[%s8137_s1 + $0x84] sm:$0xf]  ;;  %v3382_v9 = vld [vmem:[%s8138_s0 + $0x60] sm:$0xf] }
  0xcd   :  { %2924 = vmatpush.bf16.msra.mxu1 %v3431_v6  ;;  %v2639_v6 = vpop.f32.mrf.mxu0  ;;  %v3455_v12 = vor.u32 %v5025_v53, %v3452_v54  ;;  %v3620_v54 = vld [vmem:[%s8137_s1 + $0x1d8] sm:$0xf0] }
  0xce   :  { %2938 = vmatpush.bf16.msra.mxu2 %v3495_v7  ;;  %v2640_v7 = vadd.f32 %v2639_v6, %v6840_v38  ;;  %v4930_v38 = vld [vmem:[%s8137_s1 + $0xc10] sm:$0xf]  ;;  %v5041_v6 = vld [vmem:[%s8137_s1 + $0x104] sm:$0xf] }
  0xcf   :  { %2952 = vmatpush.bf16.msra.mxu3 %v3559_v16  ;;  %v3471_v16 = vor.u32 %v5029_v1, %v3468_v3  ;;  %v4931_v19 = vor.u32 %v5396_v18, %v4930_v38  ;;  %v5103_v1 = vld [vmem:[%s8137_s1 + $0x2f4] sm:$0xf]  ;;  %v3764_v3 = vld [vmem:[%s8137_s1 + $0x2f8] sm:$0xf0]  ;;  %v3703_v18 = vor.u32 %v5087_v61, %v3700_v0 }
  0xd0   :  { %2911 = vmatpush.bf16.msra.mxu0 %v4955_v20  ;;  %v5011_v20 = vld [vmem:[%s8137_s1 + $0x14] sm:$0xf]  ;;  %v2654_v21 = vadd.f32 %v2653_v17, %v2640_v7  ;;  %v3516_v7 = vld [vmem:[%s8137_s1 + $0x108] sm:$0xf0]  ;;  %v3828_v17 = vld [vmem:[%s8137_s1 + $0x378] sm:$0xf0] }
  0xd1   :  { %2925 = vmatpush.bf16.msra.mxu1 %v3423_v23  ;;  %v5027_v23 = vld [vmem:[%s8137_s1 + $0x94] sm:$0xf]  ;;  %v3399_v39 = vor.u32 %v5011_v20, %v3396_v22  ;;  %v2681_v4 = vpop.f32.mrf.mxu3  ;;  %v5069_v20 = vld [vmem:[%s8137_s1 + $0x1e4] sm:$0xf]  ;;  %v3519_v22 = vor.u32 %v5041_v6, %v3516_v7  ;;  %v3812_v0 = vld [vmem:[%s8137_s1 + $0x358] sm:$0xf0] }
  0xd2   :  { %2939 = vmatpush.bf16.msra.mxu2 %v3487_v24  ;;  %v3460_v24 = vld [vmem:[%s8137_s1 + $0x98] sm:$0xf0]  ;;  %v5099_v61 = vld [vmem:[%s8137_s1 + $0x2d4] sm:$0xf]  ;;  %v3612_v6 = vld [vmem:[%s8137_s1 + $0x1c8] sm:$0xf0] }
  0xd3   :  { %2953 = vmatpush.bf16.msra.mxu3 %v3551_v49  ;;  %v3463_v49 = vor.u32 %v5027_v23, %v3460_v24  ;;  %v3628_v23 = vld [vmem:[%s8137_s1 + $0x1e8] sm:$0xf0]  ;;  %v5085_v24 = vld [vmem:[%s8137_s1 + $0x264] sm:$0xf] }
  0xd4   :  { %2912 = vmatpush.bf16.msra.mxu0 %v4947_v52  ;;  %v3388_v52 = vld [vmem:[%s8137_s1 + $0x8] sm:$0xf0] }
  0xd5   :  { %2926 = vmatpush.bf16.msra.mxu1 %v3415_v55  ;;  %v2667_v55 = vpop.f32.mrf.mxu2  ;;  %v3391_v11 = vor.u32 %v5009_v34, %v3388_v52  ;;  %v3820_v34 = vld [vmem:[%s8137_s1 + $0x368] sm:$0xf0]  ;;  %v5067_v52 = vld [vmem:[%s8137_s1 + $0x1d4] sm:$0xf] }
  0xd6   :  { %2940 = vmatpush.bf16.msra.mxu2 %v3479_v58  ;;  %v5071_v58 = vld [vmem:[%s8137_s1 + $0x1f4] sm:$0xf]  ;;  %v2668_v62 = vadd.f32 %v2667_v55, %v2654_v21  ;;  %v3767_v21 = vor.u32 %v5103_v1, %v3764_v3  ;;  %v3623_v1 = vor.u32 %v5067_v52, %v3620_v54  ;;  %v5077_v54 = vld [vmem:[%s8137_s1 + $0x224] sm:$0xf] }
  0xd7   :  { %2954 = vmatpush.bf16.msra.mxu3 %v3543_v5  ;;  %v4923_v5 = vor.u32 %v5394_v33, %v4922_v29  ;;  %v3639_v38 = vor.u32 %v5071_v58, %v3636_v59  ;;  %v3756_v29 = vld [vmem:[%s8137_s1 + $0x2e8] sm:$0xf0]  ;;  %v5117_v33 = vld [vmem:[%s8137_s1 + $0x364] sm:$0xf]  ;;  %v5083_v55 = vld [vmem:[%s8137_s1 + $0x254] sm:$0xf] }
  0xd8   :  { %2913 = vmatpush.bf16.msra.mxu0 %v4939_v10  ;;  %v7025_v10 = vadd.f32 %v2681_v4, %v2668_v62  ;;  %v3684_v58 = vld [vmem:[%s8137_s1 + $0x258] sm:$0xf0]  ;;  %v3823_v59 = vor.u32 %v5117_v33, %v3820_v34  ;;  %v5065_v4 = vld [vmem:[%s8137_s1 + $0x1c4] sm:$0xf] }
  0xd9   :  { %2927 = vmatpush.bf16.msra.mxu1 %v3407_v15  ;;  %v5008_v15 = vld [vmem:[%s8138_s0 + $0xc0] sm:$0xf0]  ;;  %v3748_v62 = vld [vmem:[%s8137_s1 + $0x2d8] sm:$0xf0]  ;;  %v3687_v3 = vor.u32 %v5083_v55, %v3684_v58  ;;  %v3660_v55 = vld [vmem:[%s8137_s1 + $0x228] sm:$0xf0] }
  0xda   :  { %2941 = vmatpush.bf16.msra.mxu2 %v3471_v16  ;;  %v5119_v16 = vld [vmem:[%s8137_s1 + $0x374] sm:$0xf]  ;;  %v7048_v26 = vor.u32 %v5008_v15, %v3382_v9  ;;  %v5097_v9 = vld [vmem:[%s8137_s1 + $0x2c4] sm:$0xf]  ;;  %v3796_v33 = vld [vmem:[%s8137_s1 + $0x338] sm:$0xf0] }
  0xdb   :  { %2955 = vmatpush.bf16.msra.mxu3 %v3535_v25  ;;  %v3692_v25 = vld [vmem:[%s8137_s1 + $0x268] sm:$0xf0]  ;;  %v3831_v46 = vor.u32 %v5119_v16, %v3828_v17  ;;  %v5113_v15 = vld [vmem:[%s8137_s1 + $0x344] sm:$0xf]  ;;  %v3615_v17 = vor.u32 %v5065_v4, %v3612_v6 }
  0xdc   :  { %2914 = vmatpush.bf16.msra.mxu0 %v4931_v19  ;;  %v5101_v19 = vld [vmem:[%s8137_s1 + $0x2e4] sm:$0xf]  ;;  %v3804_v16 = vld [vmem:[%s8137_s1 + $0x348] sm:$0xf0] }
  0xdd   :  { %2928 = vmatpush.bf16.msra.mxu1 %v3399_v39  ;;  %v3631_v39 = vor.u32 %v5069_v20, %v3628_v23  ;;  %v3759_v53 = vor.u32 %v5101_v19, %v3756_v29  ;;  %v5063_v20 = vld [vmem:[%s8137_s1 + $0x1b4] sm:$0xf]  ;;  %v3732_v19 = vld [vmem:[%s8137_s1 + $0x2b8] sm:$0xf0]  ;;  %v3788_v4 = vld [vmem:[%s8137_s1 + $0x328] sm:$0xf0] }
  0xde   :  { %2942 = vmatpush.bf16.msra.mxu2 %v3463_v49  ;;  %v3695_v49 = vor.u32 %v5085_v24, %v3692_v25  ;;  %v5079_v23 = vld [vmem:[%s8137_s1 + $0x234] sm:$0xf]  ;;  %v3807_v25 = vor.u32 %v5113_v15, %v3804_v16 }
  0xdf   :  { %2956 = vmatpush.bf16.msra.mxu3 %v3527_v63  ;;  %v5115_v63 = vld [vmem:[%s8137_s1 + $0x354] sm:$0xf] }
  0xe0   :  { %2915 = vmatpush.bf16.msra.mxu0 %v4923_v5  ;;  %v3751_v5 = vor.u32 %v5099_v61, %v3748_v62  ;;  %v3815_v7 = vor.u32 %v5115_v63, %v3812_v0  ;;  %v5111_v29 = vld [vmem:[%s8137_s1 + $0x334] sm:$0xf]  ;;  %v5093_v61 = vld [vmem:[%s8137_s1 + $0x2a4] sm:$0xf]  ;;  %v3724_v62 = vld [vmem:[%s8137_s1 + $0x2a8] sm:$0xf0] }
  0xe1   :  { %2929 = vmatpush.bf16.msra.mxu1 %v3391_v11  ;;  %v3740_v11 = vld [vmem:[%s8137_s1 + $0x2c8] sm:$0xf0]  ;;  %v5075_v15 = vld [vmem:[%s8137_s1 + $0x214] sm:$0xf] }
  0xe2   :  { %2943 = vmatpush.bf16.msra.mxu2 %v3455_v12  ;;  %v2693_v12 = vpop.f32.mrf.mxu0 }
  0xe3   :  { %2957 = vmatpush.bf16.msra.mxu3 %v3519_v22  ;;  %2916 = vmatmul.bf16.vlgmr.msra.gmra.mxu0 %v7048_v26  ;;  %v3604_v22 = vld [vmem:[%s8137_s1 + $0x1b8] sm:$0xf0] }
  0xe4   :  { %2964 = vmatpush.bf16.msrb.mxu0 %v3639_v38  ;;  %2930 = vmatmul.bf16.vlgmr.msra.gmra.mxu1 %v5688_v60  ;;  %v3676_v60 = vld [vmem:[%s8137_s1 + $0x248] sm:$0xf0]  ;;  %v3607_v34 = vor.u32 %v5063_v20, %v3604_v22  ;;  %v3780_v20 = vld [vmem:[%s8137_s1 + $0x318] sm:$0xf0] }
  0xe5   :  { %2978 = vmatpush.bf16.msrb.mxu1 %v3703_v18  ;;  %2944 = vmatmul.bf16.vlgmr.msra.gmra.mxu2 %v5718_v8  ;;  %v5081_v8 = vld [vmem:[%s8137_s1 + $0x244] sm:$0xf]  ;;  %v2707_v18 = vpop.f32.mrf.mxu1 }
  0xe6   :  { %2992 = vmatpush.bf16.msrb.mxu2 %v3767_v21  ;;  %2958 = vmatmul.bf16.vlgmr.msra.gmra.mxu3 %v5702_v2  ;;  %v2694_v2 = vadd.f32 %v2693_v12, %v6954_v13  ;;  %v3679_v38 = vor.u32 %v5081_v8, %v3676_v60  ;;  %v3743_v21 = vor.u32 %v5097_v9, %v3740_v11  ;;  %v3668_v13 = vld [vmem:[%s8137_s1 + $0x238] sm:$0xf0] }
  0xe7   :  { %3006 = vmatpush.bf16.msrb.mxu3 %v3831_v46  ;;  %v5095_v46 = vld [vmem:[%s8137_s1 + $0x2b4] sm:$0xf]  ;;  %v3663_v8 = vor.u32 %v5077_v54, %v3660_v55  ;;  %v3727_v11 = vor.u32 %v5093_v61, %v3724_v62  ;;  %v3588_v12 = vld [vmem:[%s8137_s1 + $0x198] sm:$0xf0] }
  0xe8   :  { %2965 = vmatpush.bf16.msrb.mxu0 %v3631_v39  ;;  %v2708_v24 = vadd.f32 %v2707_v18, %v2694_v2  ;;  %v3671_v39 = vor.u32 %v5079_v23, %v3668_v13  ;;  %v3735_v52 = vor.u32 %v5095_v46, %v3732_v19  ;;  %v2721_v58 = vpop.f32.mrf.mxu2  ;;  %v5107_v18 = vld [vmem:[%s8137_s1 + $0x314] sm:$0xf]  ;;  %v5057_v23 = vld [vmem:[%s8137_s1 + $0x184] sm:$0xf]  ;;  %v3580_v13 = vld [vmem:[%s8137_s1 + $0x188] sm:$0xf0] }
  0xe9   :  { %2979 = vmatpush.bf16.msrb.mxu1 %v3695_v49  ;;  %v5061_v49 = vld [vmem:[%s8137_s1 + $0x1a4] sm:$0xf]  ;;  %v3644_v46 = vld [vmem:[%s8137_s1 + $0x208] sm:$0xf0]  ;;  %v3956_v55 = vld [vmem:[%s8137_s1 + $0x478] sm:$0xf0]  ;;  %v3583_v61 = vor.u32 %v5057_v23, %v3580_v13 }
  0xea   :  { %2993 = vmatpush.bf16.msrb.mxu2 %v3759_v53  ;;  %v3596_v53 = vld [vmem:[%s8137_s1 + $0x1a8] sm:$0xf0]  ;;  %v2722_v63 = vadd.f32 %v2721_v58, %v2708_v24  ;;  %v2695_v0 = vpop.f32.mrf.mxu0  ;;  %v5073_v24 = vld [vmem:[%s8137_s1 + $0x204] sm:$0xf]  ;;  %v5167_v58 = vld [vmem:[%s8137_s1 + $0x4f4] sm:$0xf] }
  0xeb   :  { %3007 = vmatpush.bf16.msrb.mxu3 %v3823_v59  ;;  %v3799_v59 = vor.u32 %v5111_v29, %v3796_v33  ;;  %v3599_v6 = vor.u32 %v5061_v49, %v3596_v53  ;;  %v5089_v19 = vld [vmem:[%s8137_s1 + $0x284] sm:$0xf]  ;;  %v3708_v29 = vld [vmem:[%s8137_s1 + $0x288] sm:$0xf0]  ;;  %v3892_v49 = vld [vmem:[%s8137_s1 + $0x3f8] sm:$0xf0]  ;;  %v3647_v62 = vor.u32 %v5073_v24, %v3644_v46 }
  0xec   :  { %2966 = vmatpush.bf16.msrb.mxu0 %v3623_v1  ;;  %v2735_v1 = vpop.f32.mrf.mxu3  ;;  %v3876_v23 = vld [vmem:[%s8137_s1 + $0x3d8] sm:$0xf0]  ;;  %v5147_v24 = vld [vmem:[%s8137_s1 + $0x454] sm:$0xf] }
  0xed   :  { %2980 = vmatpush.bf16.msrb.mxu1 %v3687_v3  ;;  %v5109_v3 = vld [vmem:[%s8137_s1 + $0x324] sm:$0xf]  ;;  %v2709_v60 = vpop.f32.mrf.mxu1  ;;  %v7167_v9 = vadd.f32 %v2735_v1, %v2722_v63 }
  0xee   :  { %2994 = vmatpush.bf16.msrb.mxu2 %v3751_v5  ;;  %v2696_v5 = vadd.f32 %v2695_v0, %v7025_v10  ;;  %v3652_v10 = vld [vmem:[%s8137_s1 + $0x218] sm:$0xf0]  ;;  %v3791_v2 = vor.u32 %v5109_v3, %v3788_v4  ;;  %v5105_v63 = vld [vmem:[%s8137_s1 + $0x304] sm:$0xf]  ;;  %v3772_v0 = vld [vmem:[%s8137_s1 + $0x308] sm:$0xf0]  ;;  %v3711_v3 = vor.u32 %v5089_v19, %v3708_v29 }
  0xef   :  { %3008 = vmatpush.bf16.msrb.mxu3 %v3815_v7  ;;  %v5059_v7 = vld [vmem:[%s8137_s1 + $0x194] sm:$0xf]  ;;  %v3655_v22 = vor.u32 %v5075_v15, %v3652_v10  ;;  %v5149_v15 = vld [vmem:[%s8137_s1 + $0x464] sm:$0xf]  ;;  %v3948_v10 = vld [vmem:[%s8137_s1 + $0x468] sm:$0xf0] }
  0xf0   :  { %2967 = vmatpush.bf16.msrb.mxu0 %v3615_v17  ;;  %v2710_v16 = vadd.f32 %v2709_v60, %v2696_v5  ;;  %v5091_v17 = vld [vmem:[%s8137_s1 + $0x294] sm:$0xf]  ;;  %v2723_v33 = vpop.f32.mrf.mxu2 }
  0xf1   :  { %2981 = vmatpush.bf16.msrb.mxu1 %v3679_v38  ;;  %v3716_v38 = vld [vmem:[%s8137_s1 + $0x298] sm:$0xf0]  ;;  %v5183_v5 = vld [vmem:[%s8137_s1 + $0x574] sm:$0xf] }
  0xf2   :  { %2995 = vmatpush.bf16.msrb.mxu2 %v3743_v21  ;;  %v3591_v21 = vor.u32 %v5059_v7, %v3588_v12  ;;  %v2724_v53 = vadd.f32 %v2723_v33, %v2710_v16  ;;  %v5133_v7 = vld [vmem:[%s8137_s1 + $0x3e4] sm:$0xf]  ;;  %v3775_v12 = vor.u32 %v5105_v63, %v3772_v0  ;;  %v5163_v19 = vld [vmem:[%s8137_s1 + $0x4d4] sm:$0xf] }
  0xf3   :  { %3009 = vmatpush.bf16.msrb.mxu3 %v3807_v25  ;;  %v3719_v25 = vor.u32 %v5091_v17, %v3716_v38  ;;  %v4012_v17 = vld [vmem:[%s8137_s1 + $0x4e8] sm:$0xf0]  ;;  %v5179_v33 = vld [vmem:[%s8137_s1 + $0x554] sm:$0xf] }
  0xf4   :  { %2968 = vmatpush.bf16.msrb.mxu0 %v3607_v34  ;;  %v3783_v34 = vor.u32 %v5107_v18, %v3780_v20  ;;  %v2737_v54 = vpop.f32.mrf.mxu3  ;;  %v5181_v18 = vld [vmem:[%s8137_s1 + $0x564] sm:$0xf]  ;;  %v4076_v20 = vld [vmem:[%s8137_s1 + $0x568] sm:$0xf0] }
  0xf5   :  { %2982 = vmatpush.bf16.msrb.mxu1 %v3671_v39  ;;  %v5135_v39 = vld [vmem:[%s8137_s1 + $0x3f4] sm:$0xf]  ;;  %v7232_v1 = vadd.f32 %v2737_v54, %v2724_v53  ;;  %v4079_v46 = vor.u32 %v5181_v18, %v4076_v20  ;;  %v5161_v54 = vld [vmem:[%s8137_s1 + $0x4c4] sm:$0xf] }
  0xf6   :  { %2996 = vmatpush.bf16.msrb.mxu2 %v3735_v52  ;;  %v5151_v52 = vld [vmem:[%s8137_s1 + $0x474] sm:$0xf]  ;;  %v3895_v4 = vor.u32 %v5135_v39, %v3892_v49  ;;  %v5129_v39 = vld [vmem:[%s8137_s1 + $0x3c4] sm:$0xf] }
  0xf7   :  { %3010 = vmatpush.bf16.msrb.mxu3 %v3799_v59  ;;  %v4020_v59 = vld [vmem:[%s8137_s1 + $0x4f8] sm:$0xf0] }
  0xf8   :  { %2969 = vmatpush.bf16.msrb.mxu0 %v3599_v6  ;;  %v4084_v6 = vld [vmem:[%s8137_s1 + $0x578] sm:$0xf0]  ;;  %v4023_v60 = vor.u32 %v5167_v58, %v4020_v59 }
  0xf9   :  { %2983 = vmatpush.bf16.msrb.mxu1 %v3663_v8  ;;  %v3959_v8 = vor.u32 %v5151_v52, %v3956_v55  ;;  %v4087_v16 = vor.u32 %v5183_v5, %v4084_v6  ;;  %v5145_v52 = vld [vmem:[%s8137_s1 + $0x444] sm:$0xf]  ;;  %v3996_v55 = vld [vmem:[%s8137_s1 + $0x4c8] sm:$0xf0]  ;;  %v3860_v5 = vld [vmem:[%s8137_s1 + $0x3b8] sm:$0xf0] }
  0xfa   :  { %2997 = vmatpush.bf16.msrb.mxu2 %v3727_v11  ;;  %v3884_v11 = vld [vmem:[%s8137_s1 + $0x3e8] sm:$0xf0]  ;;  %v3999_v6 = vor.u32 %v5161_v54, %v3996_v55 }
  0xfb   :  { %3011 = vmatpush.bf16.msrb.mxu3 %v3791_v2  ;;  %v5165_v2 = vld [vmem:[%s8137_s1 + $0x4e4] sm:$0xf]  ;;  %v3887_v38 = vor.u32 %v5133_v7, %v3884_v11  ;;  %v5159_v11 = vld [vmem:[%s8137_s1 + $0x4b4] sm:$0xf] }
  0xfc   :  { %2970 = vmatpush.bf16.msrb.mxu0 %v3591_v21  ;;  %v3951_v21 = vor.u32 %v5149_v15, %v3948_v10  ;;  %v4015_v13 = vor.u32 %v5165_v2, %v4012_v17  ;;  %v5175_v10 = vld [vmem:[%s8137_s1 + $0x534] sm:$0xf]  ;;  %v5125_v17 = vld [vmem:[%s8137_s1 + $0x3a4] sm:$0xf] }
  0xfd   :  { %2984 = vmatpush.bf16.msrb.mxu1 %v3655_v22  ;;  %v5131_v22 = vld [vmem:[%s8137_s1 + $0x3d4] sm:$0xf] }
  0xfe   :  { %2998 = vmatpush.bf16.msrb.mxu2 %v3719_v25  ;;  %v3940_v25 = vld [vmem:[%s8137_s1 + $0x458] sm:$0xf0]  ;;  %v3879_v29 = vor.u32 %v5131_v22, %v3876_v23  ;;  %v3916_v22 = vld [vmem:[%s8137_s1 + $0x428] sm:$0xf0] }
  0xff   :  { %3012 = vmatpush.bf16.msrb.mxu3 %v3783_v34  ;;  %v3943_v34 = vor.u32 %v5147_v24, %v3940_v25  ;;  %v5157_v24 = vld [vmem:[%s8137_s1 + $0x4a4] sm:$0xf]  ;;  %v3980_v25 = vld [vmem:[%s8137_s1 + $0x4a8] sm:$0xf0] }
 0x100   :  { %2971 = vmatpush.bf16.msrb.mxu0 %v3583_v61  ;;  %v2749_v58 = vpop.f32.mrf.mxu0  ;;  %v5177_v61 = vld [vmem:[%s8137_s1 + $0x544] sm:$0xf] }
 0x101   :  { %2985 = vmatpush.bf16.msrb.mxu1 %v3647_v62  ;;  %v4060_v62 = vld [vmem:[%s8137_s1 + $0x548] sm:$0xf0]  ;;  %v2750_v63 = vadd.f32 %v2749_v58, %v7167_v9  ;;  %v3924_v9 = vld [vmem:[%s8137_s1 + $0x438] sm:$0xf0]  ;;  %v5155_v58 = vld [vmem:[%s8137_s1 + $0x494] sm:$0xf] }
 0x102   :  { %2999 = vmatpush.bf16.msrb.mxu2 %v3711_v3  ;;  %v2763_v3 = vpop.f32.mrf.mxu1  ;;  %v4063_v7 = vor.u32 %v5177_v61, %v4060_v62  ;;  %v5171_v61 = vld [vmem:[%s8137_s1 + $0x514] sm:$0xf] }
 0x103   :  { %3013 = vmatpush.bf16.msrb.mxu3 %v3775_v12  ;;  %2972 = vmatmul.bf16.vlgmr.msrb.gmra.mxu0 %v5729_v14  ;;  %v4004_v14 = vld [vmem:[%s8137_s1 + $0x4d8] sm:$0xf0] }
 0x104   :  { %3020 = vmatpush.bf16.msra.mxu0 %v3895_v4  ;;  %2986 = vmatmul.bf16.vlgmr.msrb.gmra.mxu1 %v5901_v36  ;;  %v3868_v36 = vld [vmem:[%s8137_s1 + $0x3c8] sm:$0xf0]  ;;  %v4007_v49 = vor.u32 %v5163_v19, %v4004_v14  ;;  %v5127_v4 = vld [vmem:[%s8137_s1 + $0x3b4] sm:$0xf]  ;;  %v3988_v12 = vld [vmem:[%s8137_s1 + $0x4b8] sm:$0xf0] }
 0x105   :  { %3034 = vmatpush.bf16.msra.mxu1 %v3959_v8  ;;  %3000 = vmatmul.bf16.vlgmr.msrb.gmra.mxu2 %v5920_v44  ;;  %v4068_v44 = vld [vmem:[%s8137_s1 + $0x558] sm:$0xf0]  ;;  %v3871_v59 = vor.u32 %v5129_v39, %v3868_v36  ;;  %v5143_v8 = vld [vmem:[%s8137_s1 + $0x434] sm:$0xf]  ;;  %v3863_v15 = vor.u32 %v5127_v4, %v3860_v5  ;;  %v3991_v18 = vor.u32 %v5159_v11, %v3988_v12  ;;  %v5137_v5 = vld [vmem:[%s8137_s1 + $0x404] sm:$0xf] }
 0x106   :  { %3048 = vmatpush.bf16.msra.mxu2 %v4023_v60  ;;  %3014 = vmatmul.bf16.vlgmr.msrb.gmra.mxu3 %v5912_v40  ;;  %v3932_v40 = vld [vmem:[%s8137_s1 + $0x448] sm:$0xf0]  ;;  %v4071_v53 = vor.u32 %v5179_v33, %v4068_v44  ;;  %v2764_v60 = vadd.f32 %v2763_v3, %v2750_v63  ;;  %v3927_v2 = vor.u32 %v5143_v8, %v3924_v9  ;;  %v4036_v63 = vld [vmem:[%s8137_s1 + $0x518] sm:$0xf0]  ;;  %v5153_v8 = vld [vmem:[%s8137_s1 + $0x484] sm:$0xf] }
 0x107   :  { %3062 = vmatpush.bf16.msra.mxu3 %v4087_v16  ;;  %v3935_v0 = vor.u32 %v5145_v52, %v3932_v40  ;;  %v4052_v16 = vld [vmem:[%s8137_s1 + $0x538] sm:$0xf0]  ;;  %v4044_v33 = vld [vmem:[%s8137_s1 + $0x528] sm:$0xf0]  ;;  %v3983_v40 = vor.u32 %v5157_v24, %v3980_v25  ;;  %v5199_v11 = vld [vmem:[%s8137_s1 + $0x5f4] sm:$0xf] }
 0x108   :  { %3021 = vmatpush.bf16.msra.mxu0 %v3887_v38  ;;  %v3852_v38 = vld [vmem:[%s8137_s1 + $0x3a8] sm:$0xf0]  ;;  %v2777_v20 = vpop.f32.mrf.mxu2  ;;  %v3844_v52 = vld [vmem:[%s8137_s1 + $0x398] sm:$0xf0]  ;;  %v5247_v25 = vld [vmem:[%s8137_s1 + $0x774] sm:$0xf] }
 0x109   :  { %3035 = vmatpush.bf16.msra.mxu1 %v3951_v21  ;;  %v5141_v21 = vld [vmem:[%s8137_s1 + $0x424] sm:$0xf]  ;;  %v2778_v23 = vadd.f32 %v2777_v20, %v2764_v60  ;;  %v2791_v19 = vpop.f32.mrf.mxu3  ;;  %v3855_v14 = vor.u32 %v5125_v17, %v3852_v38  ;;  %v3836_v3 = vld [vmem:[%s8137_s1 + $0x388] sm:$0xf0]  ;;  %v4148_v12 = vld [vmem:[%s8137_s1 + $0x5f8] sm:$0xf0] }
 0x10a   :  { %3049 = vmatpush.bf16.msra.mxu2 %v4015_v13  ;;  %v4055_v13 = vor.u32 %v5175_v10, %v4052_v16  ;;  %v3919_v39 = vor.u32 %v5141_v21, %v3916_v22  ;;  %v2765_v36 = vpop.f32.mrf.mxu1  ;;  %v4039_v10 = vor.u32 %v5171_v61, %v4036_v63  ;;  %v5215_v16 = vld [vmem:[%s8137_s1 + $0x674] sm:$0xf]  ;;  %v4276_v20 = vld [vmem:[%s8137_s1 + $0x6f8] sm:$0xf0]  ;;  %v5169_v21 = vld [vmem:[%s8137_s1 + $0x504] sm:$0xf]  ;;  %v4151_v24 = vor.u32 %v5199_v11, %v4148_v12 }
 0x10b   :  { %3063 = vmatpush.bf16.msra.mxu3 %v4079_v46  ;;  %v2751_v46 = vpop.f32.mrf.mxu0  ;;  %v5231_v17 = vld [vmem:[%s8137_s1 + $0x6f4] sm:$0xf]  ;;  %v4028_v22 = vld [vmem:[%s8137_s1 + $0x508] sm:$0xf0]  ;;  %v5225_v12 = vld [vmem:[%s8137_s1 + $0x6c4] sm:$0xf] }
 0x10c   :  { %3022 = vmatpush.bf16.msra.mxu0 %v3879_v29  ;;  %v5173_v29 = vld [vmem:[%s8137_s1 + $0x524] sm:$0xf]  ;;  %v2752_v44 = vadd.f32 %v2751_v46, %v7232_v1  ;;  %v3908_v1 = vld [vmem:[%s8137_s1 + $0x418] sm:$0xf0]  ;;  %v5195_v61 = vld [vmem:[%s8137_s1 + $0x5d4] sm:$0xf] }
 0x10d   :  { %3036 = vmatpush.bf16.msra.mxu1 %v3943_v34  ;;  %v7366_v34 = vadd.f32 %v2791_v19, %v2778_v23  ;;  %v4047_v55 = vor.u32 %v5173_v29, %v4044_v33  ;;  %v4340_v46 = vld [vmem:[%s8137_s1 + $0x778] sm:$0xf0]  ;;  %v4279_v29 = vor.u32 %v5231_v17, %v4276_v20  ;;  %v4031_v33 = vor.u32 %v5169_v21, %v4028_v22  ;;  %v5211_v63 = vld [vmem:[%s8137_s1 + $0x654] sm:$0xf]  ;;  %v4188_v11 = vld [vmem:[%s8137_s1 + $0x648] sm:$0xf0] }
 0x10e   :  { %3050 = vmatpush.bf16.msra.mxu2 %v4007_v49  ;;  %v5123_v49 = vld [vmem:[%s8137_s1 + $0x394] sm:$0xf]  ;;  %v2766_v54 = vadd.f32 %v2765_v36, %v2752_v44  ;;  %v5197_v44 = vld [vmem:[%s8137_s1 + $0x5e4] sm:$0xf] }
 0x10f   :  { %3064 = vmatpush.bf16.msra.mxu3 %v4071_v53  ;;  %v5139_v53 = vld [vmem:[%s8137_s1 + $0x414] sm:$0xf]  ;;  %v3847_v62 = vor.u32 %v5123_v49, %v3844_v52  ;;  %v5213_v36 = vld [vmem:[%s8137_s1 + $0x664] sm:$0xf]  ;;  %v4343_v49 = vor.u32 %v5247_v25, %v4340_v46  ;;  %v4204_v52 = vld [vmem:[%s8137_s1 + $0x668] sm:$0xf0] }
 0x110   :  { %3023 = vmatpush.bf16.msra.mxu0 %v3871_v59  ;;  %v3972_v59 = vld [vmem:[%s8137_s1 + $0x498] sm:$0xf0]  ;;  %v3911_v4 = vor.u32 %v5139_v53, %v3908_v1  ;;  %v2779_v60 = vpop.f32.mrf.mxu2  ;;  %v4268_v53 = vld [vmem:[%s8137_s1 + $0x6e8] sm:$0xf0]  ;;  %v5245_v1 = vld [vmem:[%s8137_s1 + $0x764] sm:$0xf] }
 0x111   :  { %3037 = vmatpush.bf16.msra.mxu1 %v3935_v0  ;;  %v5121_v0 = vld [vmem:[%s8137_s1 + $0x384] sm:$0xf]  ;;  %v3975_v9 = vor.u32 %v5155_v58, %v3972_v59  ;;  %v2793_v38 = vpop.f32.mrf.mxu3  ;;  %v4207_v58 = vor.u32 %v5213_v36, %v4204_v52  ;;  %v5191_v22 = vld [vmem:[%s8137_s1 + $0x5b4] sm:$0xf]  ;;  %v4108_v52 = vld [vmem:[%s8137_s1 + $0x5a8] sm:$0xf0] }
 0x112   :  { %3051 = vmatpush.bf16.msra.mxu2 %v3999_v6  ;;  %v3900_v6 = vld [vmem:[%s8137_s1 + $0x408] sm:$0xf0]  ;;  %v5223_v46 = vld [vmem:[%s8137_s1 + $0x6b4] sm:$0xf] }
 0x113   :  { %3065 = vmatpush.bf16.msra.mxu3 %v4063_v7  ;;  %v3964_v7 = vld [vmem:[%s8137_s1 + $0x488] sm:$0xf0] }
 0x114   :  { %3024 = vmatpush.bf16.msra.mxu0 %v3863_v15  ;;  %v2780_v15 = vadd.f32 %v2779_v60, %v2766_v54  ;;  %v3967_v19 = vor.u32 %v5153_v8, %v3964_v7  ;;  %v4332_v54 = vld [vmem:[%s8137_s1 + $0x768] sm:$0xf0]  ;;  %v5209_v7 = vld [vmem:[%s8137_s1 + $0x644] sm:$0xf] }
 0x115   :  { %3038 = vmatpush.bf16.msra.mxu1 %v3927_v2  ;;  %v4212_v2 = vld [vmem:[%s8137_s1 + $0x678] sm:$0xf0] }
 0x116   :  { %3052 = vmatpush.bf16.msra.mxu2 %v3991_v18  ;;  %v3839_v18 = vor.u32 %v5121_v0, %v3836_v3  ;;  %v7434_v23 = vadd.f32 %v2793_v38, %v2780_v15  ;;  %v4335_v0 = vor.u32 %v5245_v1, %v4332_v54  ;;  %v4196_v3 = vld [vmem:[%s8137_s1 + $0x658] sm:$0xf0]  ;;  %v4252_v15 = vld [vmem:[%s8137_s1 + $0x6c8] sm:$0xf0] }
 0x117   :  { %3066 = vmatpush.bf16.msra.mxu3 %v4055_v13  ;;  %v3903_v13 = vor.u32 %v5137_v5, %v3900_v6  ;;  %v4260_v5 = vld [vmem:[%s8137_s1 + $0x6d8] sm:$0xf0]  ;;  %v4255_v20 = vor.u32 %v5225_v12, %v4252_v15  ;;  %v5235_v12 = vld [vmem:[%s8137_s1 + $0x714] sm:$0xf] }
 0x118   :  { %3025 = vmatpush.bf16.msra.mxu0 %v3855_v14  ;;  %v4215_v14 = vor.u32 %v5215_v16, %v4212_v2  ;;  %v4324_v6 = vld [vmem:[%s8137_s1 + $0x758] sm:$0xf0]  ;;  %v4316_v16 = vld [vmem:[%s8137_s1 + $0x748] sm:$0xf0] }
 0x119   :  { %3039 = vmatpush.bf16.msra.mxu1 %v3919_v39  ;;  %v4140_v39 = vld [vmem:[%s8137_s1 + $0x5e8] sm:$0xf0]  ;;  %v4292_v15 = vld [vmem:[%s8137_s1 + $0x718] sm:$0xf0] }
 0x11a   :  { %3053 = vmatpush.bf16.msra.mxu2 %v3983_v40  ;;  %v5229_v40 = vld [vmem:[%s8137_s1 + $0x6e4] sm:$0xf] }
 0x11b   :  { %3067 = vmatpush.bf16.msra.mxu3 %v4047_v55  ;;  %v4143_v55 = vor.u32 %v5197_v44, %v4140_v39  ;;  %v4271_v59 = vor.u32 %v5229_v40, %v4268_v53  ;;  %v5189_v39 = vld [vmem:[%s8137_s1 + $0x5a4] sm:$0xf]  ;;  %v4172_v53 = vld [vmem:[%s8137_s1 + $0x628] sm:$0xf0] }
 0x11c   :  { %3026 = vmatpush.bf16.msra.mxu0 %v3847_v62  ;;  %v4132_v62 = vld [vmem:[%s8137_s1 + $0x5d8] sm:$0xf0]  ;;  %v5205_v40 = vld [vmem:[%s8137_s1 + $0x624] sm:$0xf] }
 0x11d   :  { %3040 = vmatpush.bf16.msra.mxu1 %v3911_v4  ;;  %v5227_v4 = vld [vmem:[%s8137_s1 + $0x6d4] sm:$0xf]  ;;  %v4135_v8 = vor.u32 %v5195_v61, %v4132_v62  ;;  %v5237_v61 = vld [vmem:[%s8137_s1 + $0x724] sm:$0xf]  ;;  %v4300_v62 = vld [vmem:[%s8137_s1 + $0x728] sm:$0xf0] }
 0x11e   :  { %3054 = vmatpush.bf16.msra.mxu2 %v3975_v9  ;;  %v4199_v9 = vor.u32 %v5211_v63, %v4196_v3  ;;  %v4263_v60 = vor.u32 %v5227_v4, %v4260_v5  ;;  %v4111_v3 = vor.u32 %v5189_v39, %v4108_v52  ;;  %v4175_v4 = vor.u32 %v5205_v40, %v4172_v53  ;;  %v4532_v39 = vld [vmem:[%s8137_s1 + $0x8f8] sm:$0xf0] }
 0x11f   :  { %3068 = vmatpush.bf16.msra.mxu3 %v4039_v10  ;;  %v5241_v10 = vld [vmem:[%s8137_s1 + $0x744] sm:$0xf] }
 0x120   :  { %3027 = vmatpush.bf16.msra.mxu0 %v3839_v18  ;;  %v2805_v2 = vpop.f32.mrf.mxu0  ;;  %v4191_v18 = vor.u32 %v5209_v7, %v4188_v11  ;;  %v4319_v25 = vor.u32 %v5241_v10, %v4316_v16  ;;  %v5219_v7 = vld [vmem:[%s8137_s1 + $0x694] sm:$0xf]  ;;  %v5185_v16 = vld [vmem:[%s8137_s1 + $0x584] sm:$0xf] }
 0x121   :  { %3041 = vmatpush.bf16.msra.mxu1 %v3903_v13  ;;  %v2806_v38 = vadd.f32 %v2805_v2, %v7366_v34  ;;  %v2819_v21 = vpop.f32.mrf.mxu1  ;;  %v4116_v13 = vld [vmem:[%s8137_s1 + $0x5b8] sm:$0xf0]  ;;  %v4092_v2 = vld [vmem:[%s8137_s1 + $0x588] sm:$0xf0] }
 0x122   :  { %3055 = vmatpush.bf16.msra.mxu2 %v3967_v19  ;;  %v4180_v34 = vld [vmem:[%s8137_s1 + $0x638] sm:$0xf0]  ;;  %v4119_v44 = vor.u32 %v5191_v22, %v4116_v13  ;;  %v4295_v13 = vor.u32 %v5235_v12, %v4292_v15  ;;  %v5291_v12 = vld [vmem:[%s8137_s1 + $0x8d4] sm:$0xf] }
 0x123   :  { %3069 = vmatpush.bf16.msra.mxu3 %v4031_v33  ;;  %3028 = vmatmul.bf16.vlgmr.msra.gmra.mxu0 %v5928_v48  ;;  %v5243_v48 = vld [vmem:[%s8137_s1 + $0x754] sm:$0xf]  ;;  %v4244_v19 = vld [vmem:[%s8137_s1 + $0x6b8] sm:$0xf0] }
 0x124   :  { %3076 = vmatpush.bf16.msrb.mxu0 %v4151_v24  ;;  %3042 = vmatmul.bf16.vlgmr.msra.gmra.mxu1 %v6135_v30  ;;  %v5193_v30 = vld [vmem:[%s8137_s1 + $0x5c4] sm:$0xf]  ;;  %v5207_v24 = vld [vmem:[%s8137_s1 + $0x634] sm:$0xf]  ;;  %v4308_v33 = vld [vmem:[%s8137_s1 + $0x738] sm:$0xf0] }
 0x125   :  { %3090 = vmatpush.bf16.msrb.mxu1 %v4215_v14  ;;  %3056 = vmatmul.bf16.vlgmr.msra.gmra.mxu2 %v6148_v37  ;;  %v4124_v37 = vld [vmem:[%s8137_s1 + $0x5c8] sm:$0xf0]  ;;  %v2820_v14 = vadd.f32 %v2819_v21, %v2806_v38  ;;  %v4183_v36 = vor.u32 %v5207_v24, %v4180_v34  ;;  %v5217_v21 = vld [vmem:[%s8137_s1 + $0x684] sm:$0xf]  ;;  %v4404_v34 = vld [vmem:[%s8137_s1 + $0x7f8] sm:$0xf0] }
 0x126   :  { %3104 = vmatpush.bf16.msrb.mxu2 %v4279_v29  ;;  %3070 = vmatmul.bf16.vlgmr.msra.gmra.mxu3 %v6146_v35  ;;  %v4327_v35 = vor.u32 %v5243_v48, %v4324_v6  ;;  %v4127_v17 = vor.u32 %v5193_v30, %v4124_v37  ;;  %v5239_v29 = vld [vmem:[%s8137_s1 + $0x734] sm:$0xf]  ;;  %v4303_v37 = vor.u32 %v5237_v61, %v4300_v62  ;;  %v4220_v24 = vld [vmem:[%s8137_s1 + $0x688] sm:$0xf0]  ;;  %v5261_v62 = vld [vmem:[%s8137_s1 + $0x7e4] sm:$0xf] }
 0x127   :  { %3118 = vmatpush.bf16.msrb.mxu3 %v4343_v49  ;;  %v4247_v49 = vor.u32 %v5223_v46, %v4244_v19  ;;  %v4311_v54 = vor.u32 %v5239_v29, %v4308_v33  ;;  %v5203_v30 = vld [vmem:[%s8137_s1 + $0x614] sm:$0xf]  ;;  %v4223_v53 = vor.u32 %v5217_v21, %v4220_v24  ;;  %v4516_v15 = vld [vmem:[%s8137_s1 + $0x8d8] sm:$0xf0]  ;;  %v4508_v21 = vld [vmem:[%s8137_s1 + $0x8c8] sm:$0xf0] }
 0x128   :  { %3077 = vmatpush.bf16.msrb.mxu0 %v4143_v55  ;;  %v2833_v1 = vpop.f32.mrf.mxu2  ;;  %v5221_v55 = vld [vmem:[%s8137_s1 + $0x6a4] sm:$0xf]  ;;  %v2807_v63 = vpop.f32.mrf.mxu0  ;;  %v5279_v19 = vld [vmem:[%s8137_s1 + $0x874] sm:$0xf] }
 0x129   :  { %3091 = vmatpush.bf16.msrb.mxu1 %v4207_v58  ;;  %v4236_v58 = vld [vmem:[%s8137_s1 + $0x6a8] sm:$0xf0]  ;;  %v2808_v5 = vadd.f32 %v2807_v63, %v7434_v23  ;;  %v4164_v23 = vld [vmem:[%s8137_s1 + $0x618] sm:$0xf0]  ;;  %v5295_v29 = vld [vmem:[%s8137_s1 + $0x8f4] sm:$0xf] }
 0x12a   :  { %3105 = vmatpush.bf16.msrb.mxu2 %v4271_v59  ;;  %v2834_v59 = vadd.f32 %v2833_v1, %v2820_v14  ;;  %v4239_v6 = vor.u32 %v5221_v55, %v4236_v58  ;;  %v4468_v14 = vld [vmem:[%s8137_s1 + $0x878] sm:$0xf0]  ;;  %v5311_v55 = vld [vmem:[%s8137_s1 + $0x974] sm:$0xf]  ;;  %v4396_v63 = vld [vmem:[%s8137_s1 + $0x7e8] sm:$0xf0] }
 0x12b   :  { %3119 = vmatpush.bf16.msrb.mxu3 %v4335_v0  ;;  %v2847_v0 = vpop.f32.mrf.mxu3  ;;  %v4596_v58 = vld [vmem:[%s8137_s1 + $0x978] sm:$0xf0] }
 0x12c   :  { %3078 = vmatpush.bf16.msrb.mxu0 %v4135_v8  ;;  %v7568_v48 = vadd.f32 %v2847_v0, %v2834_v59  ;;  %v2821_v8 = vpop.f32.mrf.mxu1  ;;  %v4535_v59 = vor.u32 %v5295_v29, %v4532_v39  ;;  %v5277_v0 = vld [vmem:[%s8137_s1 + $0x864] sm:$0xf]  ;;  %v5271_v39 = vld [vmem:[%s8137_s1 + $0x834] sm:$0xf] }
 0x12d   :  { %3092 = vmatpush.bf16.msrb.mxu1 %v4199_v9  ;;  %v5187_v9 = vld [vmem:[%s8137_s1 + $0x594] sm:$0xf]  ;;  %v2822_v11 = vadd.f32 %v2821_v8, %v2808_v5  ;;  %v4524_v5 = vld [vmem:[%s8137_s1 + $0x8e8] sm:$0xf0]  ;;  %v4399_v8 = vor.u32 %v5261_v62, %v4396_v63  ;;  %v5269_v63 = vld [vmem:[%s8137_s1 + $0x824] sm:$0xf] }
 0x12e   :  { %3106 = vmatpush.bf16.msrb.mxu2 %v4263_v60  ;;  %v4100_v60 = vld [vmem:[%s8137_s1 + $0x598] sm:$0xf0]  ;;  %v4364_v62 = vld [vmem:[%s8137_s1 + $0x7a8] sm:$0xf0] }
 0x12f   :  { %3120 = vmatpush.bf16.msrb.mxu3 %v4327_v35  ;;  %v4228_v35 = vld [vmem:[%s8137_s1 + $0x698] sm:$0xf0]  ;;  %v4103_v10 = vor.u32 %v5187_v9, %v4100_v60  ;;  %v5309_v9 = vld [vmem:[%s8137_s1 + $0x964] sm:$0xf]  ;;  %v4588_v60 = vld [vmem:[%s8137_s1 + $0x968] sm:$0xf0] }
 0x130   :  { %3079 = vmatpush.bf16.msrb.mxu0 %v4127_v17  ;;  %v4167_v17 = vor.u32 %v5203_v30, %v4164_v23  ;;  %v4231_v38 = vor.u32 %v5219_v7, %v4228_v35  ;;  %v2835_v22 = vpop.f32.mrf.mxu2  ;;  %v5259_v23 = vld [vmem:[%s8137_s1 + $0x7d4] sm:$0xf]  ;;  %v4388_v7 = vld [vmem:[%s8137_s1 + $0x7d8] sm:$0xf0] }
 0x131   :  { %3093 = vmatpush.bf16.msrb.mxu1 %v4191_v18  ;;  %v5201_v18 = vld [vmem:[%s8137_s1 + $0x604] sm:$0xf]  ;;  %v2836_v46 = vadd.f32 %v2835_v22, %v2822_v11  ;;  %v5275_v35 = vld [vmem:[%s8137_s1 + $0x854] sm:$0xf]  ;;  %v4452_v11 = vld [vmem:[%s8137_s1 + $0x858] sm:$0xf0] }
 0x132   :  { %3107 = vmatpush.bf16.msrb.mxu2 %v4255_v20  ;;  %v4156_v20 = vld [vmem:[%s8137_s1 + $0x608] sm:$0xf0] }
 0x133   :  { %3121 = vmatpush.bf16.msrb.mxu3 %v4319_v25  ;;  %v5263_v25 = vld [vmem:[%s8137_s1 + $0x7f4] sm:$0xf]  ;;  %v2849_v33 = vpop.f32.mrf.mxu3  ;;  %v4159_v40 = vor.u32 %v5201_v18, %v4156_v20  ;;  %v4444_v18 = vld [vmem:[%s8137_s1 + $0x848] sm:$0xf0]  ;;  %v5289_v20 = vld [vmem:[%s8137_s1 + $0x8c4] sm:$0xf] }
 0x134   :  { %3080 = vmatpush.bf16.msrb.mxu0 %v4119_v44  ;;  %v4095_v44 = vor.u32 %v5185_v16, %v4092_v2  ;;  %v7636_v52 = vadd.f32 %v2849_v33, %v2836_v46  ;;  %v4407_v1 = vor.u32 %v5263_v25, %v4404_v34  ;;  %v4580_v16 = vld [vmem:[%s8137_s1 + $0x958] sm:$0xf0]  ;;  %v4455_v2 = vor.u32 %v5275_v35, %v4452_v11  ;;  %v5305_v25 = vld [vmem:[%s8137_s1 + $0x944] sm:$0xf]  ;;  %v4572_v34 = vld [vmem:[%s8137_s1 + $0x948] sm:$0xf0] }
 0x135   :  { %3094 = vmatpush.bf16.msrb.mxu1 %v4183_v36  ;;  %v5233_v36 = vld [vmem:[%s8137_s1 + $0x704] sm:$0xf]  ;;  %v5255_v33 = vld [vmem:[%s8137_s1 + $0x7b4] sm:$0xf] }
 0x136   :  { %3108 = vmatpush.bf16.msrb.mxu2 %v4247_v49  ;;  %v4284_v49 = vld [vmem:[%s8137_s1 + $0x708] sm:$0xf0] }
 0x137   :  { %3122 = vmatpush.bf16.msrb.mxu3 %v4311_v54  ;;  %v4471_v54 = vor.u32 %v5279_v19, %v4468_v14  ;;  %v4287_v61 = vor.u32 %v5233_v36, %v4284_v49  ;;  %v4511_v14 = vor.u32 %v5289_v20, %v4508_v21  ;;  %v4436_v36 = vld [vmem:[%s8137_s1 + $0x838] sm:$0xf0]  ;;  %v5249_v20 = vld [vmem:[%s8137_s1 + $0x784] sm:$0xf]  ;;  %v4348_v21 = vld [vmem:[%s8137_s1 + $0x788] sm:$0xf0] }
 0x138   :  { %3081 = vmatpush.bf16.msrb.mxu0 %v4111_v3  ;;  %v4460_v3 = vld [vmem:[%s8137_s1 + $0x868] sm:$0xf0]  ;;  %v4500_v49 = vld [vmem:[%s8137_s1 + $0x8b8] sm:$0xf0] }
 0x139   :  { %3095 = vmatpush.bf16.msrb.mxu1 %v4175_v4  ;;  %v5293_v4 = vld [vmem:[%s8137_s1 + $0x8e4] sm:$0xf]  ;;  %v4463_v30 = vor.u32 %v5277_v0, %v4460_v3  ;;  %v4428_v0 = vld [vmem:[%s8137_s1 + $0x828] sm:$0xf0] }
 0x13a   :  { %3109 = vmatpush.bf16.msrb.mxu2 %v4239_v6  ;;  %v4599_v6 = vor.u32 %v5311_v55, %v4596_v58  ;;  %v4564_v55 = vld [vmem:[%s8137_s1 + $0x938] sm:$0xf0]  ;;  %v5253_v58 = vld [vmem:[%s8137_s1 + $0x7a4] sm:$0xf] }
 0x13b   :  { %3123 = vmatpush.bf16.msrb.mxu3 %v4303_v37  ;;  %v4527_v37 = vor.u32 %v5293_v4, %v4524_v5  ;;  %v5285_v4 = vld [vmem:[%s8137_s1 + $0x8a4] sm:$0xf]  ;;  %v4492_v5 = vld [vmem:[%s8137_s1 + $0x8a8] sm:$0xf0] }
 0x13c   :  { %3082 = vmatpush.bf16.msrb.mxu0 %v4103_v10  ;;  %v4591_v10 = vor.u32 %v5309_v9, %v4588_v60 }
 0x13d   :  { %3096 = vmatpush.bf16.msrb.mxu1 %v4167_v17  ;;  %v4519_v17 = vor.u32 %v5291_v12, %v4516_v15  ;;  %v4495_v12 = vor.u32 %v5285_v4, %v4492_v5  ;;  %v5325_v5 = vld [vmem:[%s8137_s1 + $0x9e4] sm:$0xf] }
 0x13e   :  { %3110 = vmatpush.bf16.msrb.mxu2 %v4231_v38  ;;  %v5273_v38 = vld [vmem:[%s8137_s1 + $0x844] sm:$0xf] }
 0x13f   :  { %3124 = vmatpush.bf16.msrb.mxu3 %v4295_v13  ;;  %v4447_v19 = vor.u32 %v5273_v38, %v4444_v18  ;;  %v4548_v18 = vld [vmem:[%s8137_s1 + $0x918] sm:$0xf0] }
 0x140   :  { %3083 = vmatpush.bf16.msrb.mxu0 %v4095_v44  ;;  %v2861_v13 = vpop.f32.mrf.mxu0  ;;  %v4372_v44 = vld [vmem:[%s8137_s1 + $0x7b8] sm:$0xf0] }
 0x141   :  { %3097 = vmatpush.bf16.msrb.mxu1 %v4159_v40  ;;  %v2862_v46 = vadd.f32 %v2861_v13, %v7568_v48  ;;  %v2875_v29 = vpop.f32.mrf.mxu1  ;;  %v5287_v48 = vld [vmem:[%s8137_s1 + $0x8b4] sm:$0xf] }
 0x142   :  { %3111 = vmatpush.bf16.msrb.mxu2 %v4223_v53  ;;  %v4575_v53 = vor.u32 %v5305_v25, %v4572_v34  ;;  %v4412_v25 = vld [vmem:[%s8137_s1 + $0x808] sm:$0xf0]  ;;  %v5281_v34 = vld [vmem:[%s8137_s1 + $0x884] sm:$0xf] }
 0x143   :  { %3125 = vmatpush.bf16.msrb.mxu3 %v4287_v61  ;;  %3084 = vmatmul.bf16.vlgmr.msrb.gmra.mxu0 %v6156_v41  ;;  %v4391_v41 = vor.u32 %v5259_v23, %v4388_v7  ;;  %v2876_v40 = vadd.f32 %v2875_v29, %v2862_v46  ;;  %v4503_v61 = vor.u32 %v5287_v48, %v4500_v49  ;;  %v5301_v23 = vld [vmem:[%s8137_s1 + $0x924] sm:$0xf]  ;;  %v4556_v7 = vld [vmem:[%s8137_s1 + $0x928] sm:$0xf0]  ;;  %v4660_v29 = vld [vmem:[%s8137_s1 + $0x9f8] sm:$0xf0] }
 0x144   :  { %3132 = vmatpush.bf16.msra.mxu0 %v4407_v1  ;;  %3098 = vmatmul.bf16.vlgmr.msrb.gmra.mxu1 %v6363_v31  ;;  %v5257_v31 = vld [vmem:[%s8137_s1 + $0x7c4] sm:$0xf]  ;;  %v4375_v1 = vor.u32 %v5255_v33, %v4372_v44  ;;  %v5359_v48 = vld [vmem:[%s8137_s1 + $0xaf4] sm:$0xf] }
 0x145   :  { %3146 = vmatpush.bf16.msra.mxu1 %v4471_v54  ;;  %3112 = vmatmul.bf16.vlgmr.msrb.gmra.mxu2 %v6376_v42  ;;  %v5307_v42 = vld [vmem:[%s8137_s1 + $0x954] sm:$0xf] }
 0x146   :  { %3160 = vmatpush.bf16.msra.mxu2 %v4535_v59  ;;  %3126 = vmatmul.bf16.vlgmr.msrb.gmra.mxu3 %v6365_v32  ;;  %v4380_v32 = vld [vmem:[%s8137_s1 + $0x7c8] sm:$0xf0]  ;;  %v4583_v22 = vor.u32 %v5307_v42, %v4580_v16  ;;  %v5303_v54 = vld [vmem:[%s8137_s1 + $0x934] sm:$0xf]  ;;  %v4439_v59 = vor.u32 %v5271_v39, %v4436_v36  ;;  %v4724_v36 = vld [vmem:[%s8137_s1 + $0xa78] sm:$0xf0] }
 0x147   :  { %3174 = vmatpush.bf16.msra.mxu3 %v4599_v6  ;;  %v4383_v24 = vor.u32 %v5257_v31, %v4380_v32  ;;  %v5267_v42 = vld [vmem:[%s8137_s1 + $0x814] sm:$0xf]  ;;  %v4559_v31 = vor.u32 %v5301_v23, %v4556_v7  ;;  %v5373_v7 = vld [vmem:[%s8137_s1 + $0xb64] sm:$0xf] }
 0x148   :  { %3133 = vmatpush.bf16.msra.mxu0 %v4399_v8  ;;  %v2889_v3 = vpop.f32.mrf.mxu2  ;;  %v4567_v8 = vor.u32 %v5303_v54, %v4564_v55  ;;  %v2863_v9 = vpop.f32.mrf.mxu0  ;;  %v5283_v16 = vld [vmem:[%s8137_s1 + $0x894] sm:$0xf]  ;;  %v4540_v54 = vld [vmem:[%s8137_s1 + $0x908] sm:$0xf0] }
 0x149   :  { %3147 = vmatpush.bf16.msra.mxu1 %v4463_v30  ;;  %v2890_v6 = vadd.f32 %v2889_v3, %v2876_v40  ;;  %v2903_v60 = vpop.f32.mrf.mxu3  ;;  %v4367_v30 = vor.u32 %v5253_v58, %v4364_v62  ;;  %v2864_v35 = vadd.f32 %v2863_v9, %v7636_v52  ;;  %v2877_v15 = vpop.f32.mrf.mxu1  ;;  %v4420_v52 = vld [vmem:[%s8137_s1 + $0x818] sm:$0xf0]  ;;  %v5299_v32 = vld [vmem:[%s8137_s1 + $0x914] sm:$0xf]  ;;  %v4351_v40 = vor.u32 %v5249_v20, %v4348_v21  ;;  %v4716_v9 = vld [vmem:[%s8137_s1 + $0xa68] sm:$0xf0] }
 0x14a   :  { %3161 = vmatpush.bf16.msra.mxu2 %v4527_v37  ;;  %v4431_v37 = vor.u32 %v5269_v63, %v4428_v0  ;;  %v4551_v44 = vor.u32 %v5299_v32, %v4548_v18  ;;  %v5343_v39 = vld [vmem:[%s8137_s1 + $0xa74] sm:$0xf]  ;;  %v4852_v0 = vld [vmem:[%s8137_s1 + $0xb78] sm:$0xf0]  ;;  %v5337_v18 = vld [vmem:[%s8137_s1 + $0xa44] sm:$0xf] }
 0x14b   :  { %3175 = vmatpush.bf16.msra.mxu3 %v4591_v10  ;;  %v7770_v11 = vadd.f32 %v2903_v60, %v2890_v6  ;;  %v5251_v10 = vld [vmem:[%s8137_s1 + $0x794] sm:$0xf]  ;;  %v4727_v62 = vor.u32 %v5343_v39, %v4724_v36  ;;  %v4652_v6 = vld [vmem:[%s8137_s1 + $0x9e8] sm:$0xf0]  ;;  %v5357_v60 = vld [vmem:[%s8137_s1 + $0xae4] sm:$0xf] }
 0x14c   :  { %3134 = vmatpush.bf16.msra.mxu0 %v4391_v41  ;;  %v4356_v41 = vld [vmem:[%s8137_s1 + $0x798] sm:$0xf0]  ;;  %v5375_v63 = vld [vmem:[%s8137_s1 + $0xb74] sm:$0xf]  ;;  %v4655_v23 = vor.u32 %v5325_v5, %v4652_v6  ;;  %v4700_v20 = vld [vmem:[%s8137_s1 + $0xa48] sm:$0xf0] }
 0x14d   :  { %3148 = vmatpush.bf16.msra.mxu1 %v4455_v2  ;;  %v4484_v2 = vld [vmem:[%s8137_s1 + $0x898] sm:$0xf0]  ;;  %v4359_v38 = vor.u32 %v5251_v10, %v4356_v41  ;;  %v5323_v10 = vld [vmem:[%s8137_s1 + $0x9d4] sm:$0xf]  ;;  %v5353_v21 = vld [vmem:[%s8137_s1 + $0xac4] sm:$0xf] }
 0x14e   :  { %3162 = vmatpush.bf16.msra.mxu2 %v4519_v17  ;;  %v2878_v17 = vadd.f32 %v2877_v15, %v2864_v35  ;;  %v4487_v13 = vor.u32 %v5283_v16, %v4484_v2  ;;  %v4844_v35 = vld [vmem:[%s8137_s1 + $0xb68] sm:$0xf0]  ;;  %v4644_v41 = vld [vmem:[%s8137_s1 + $0x9d8] sm:$0xf0]  ;;  %v5355_v16 = vld [vmem:[%s8137_s1 + $0xad4] sm:$0xf] }
 0x14f   :  { %3176 = vmatpush.bf16.msra.mxu3 %v4583_v22  ;;  %v4423_v22 = vor.u32 %v5267_v42, %v4420_v52  ;;  %v5339_v42 = vld [vmem:[%s8137_s1 + $0xa54] sm:$0xf]  ;;  %v4708_v52 = vld [vmem:[%s8137_s1 + $0xa58] sm:$0xf0] }
 0x150   :  { %3135 = vmatpush.bf16.msra.mxu0 %v4383_v24  ;;  %v5265_v24 = vld [vmem:[%s8137_s1 + $0x804] sm:$0xf]  ;;  %v2891_v46 = vpop.f32.mrf.mxu2  ;;  %v4772_v2 = vld [vmem:[%s8137_s1 + $0xad8] sm:$0xf0]  ;;  %v4711_v32 = vor.u32 %v5339_v42, %v4708_v52  ;;  %v5335_v39 = vld [vmem:[%s8137_s1 + $0xa34] sm:$0xf] }
 0x151   :  { %3149 = vmatpush.bf16.msra.mxu1 %v4447_v19  ;;  %v4476_v19 = vld [vmem:[%s8137_s1 + $0x888] sm:$0xf0]  ;;  %v2892_v33 = vadd.f32 %v2891_v46, %v2878_v17  ;;  %v2905_v49 = vpop.f32.mrf.mxu3  ;;  %v4415_v58 = vor.u32 %v5265_v24, %v4412_v25  ;;  %v4847_v17 = vor.u32 %v5373_v7, %v4844_v35  ;;  %v4692_v36 = vld [vmem:[%s8137_s1 + $0xa38] sm:$0xf0]  ;;  %v5331_v35 = vld [vmem:[%s8137_s1 + $0xa14] sm:$0xf] }
 0x152   :  { %3163 = vmatpush.bf16.msra.mxu2 %v4511_v14  ;;  %v5327_v14 = vld [vmem:[%s8137_s1 + $0x9f4] sm:$0xf]  ;;  %v4828_v46 = vld [vmem:[%s8137_s1 + $0xb48] sm:$0xf0]  ;;  %v4612_v7 = vld [vmem:[%s8137_s1 + $0x998] sm:$0xf0] }
 0x153   :  { %3177 = vmatpush.bf16.msra.mxu3 %v4575_v53  ;;  %v4788_v53 = vld [vmem:[%s8137_s1 + $0xaf8] sm:$0xf0]  ;;  %v7838_v55 = vadd.f32 %v2905_v49, %v2892_v33  ;;  %v5319_v33 = vld [vmem:[%s8137_s1 + $0x9b4] sm:$0xf] }
 0x154   :  { %3136 = vmatpush.bf16.msra.mxu0 %v4375_v1  ;;  %v5297_v1 = vld [vmem:[%s8137_s1 + $0x904] sm:$0xf]  ;;  %v4791_v3 = vor.u32 %v5359_v48, %v4788_v53  ;;  %v4756_v48 = vld [vmem:[%s8137_s1 + $0xab8] sm:$0xf0]  ;;  %v5367_v53 = vld [vmem:[%s8137_s1 + $0xb34] sm:$0xf] }
 0x155   :  { %3150 = vmatpush.bf16.msra.mxu1 %v4439_v59  ;;  %v4479_v59 = vor.u32 %v5281_v34, %v4476_v19  ;;  %v4543_v4 = vor.u32 %v5297_v1, %v4540_v54  ;;  %v5369_v34 = vld [vmem:[%s8137_s1 + $0xb44] sm:$0xf]  ;;  %v4820_v1 = vld [vmem:[%s8137_s1 + $0xb38] sm:$0xf0]  ;;  %v4695_v54 = vor.u32 %v5335_v39, %v4692_v36  ;;  %v5363_v42 = vld [vmem:[%s8137_s1 + $0xb14] sm:$0xf] }
 0x156   :  { %3164 = vmatpush.bf16.msra.mxu2 %v4503_v61  ;;  %v4663_v61 = vor.u32 %v5327_v14, %v4660_v29  ;;  %v4703_v14 = vor.u32 %v5337_v18, %v4700_v20  ;;  %v4831_v49 = vor.u32 %v5369_v34, %v4828_v46  ;;  %v4804_v52 = vld [vmem:[%s8137_s1 + $0xb18] sm:$0xf0]  ;;  %v5407_v20 = vld [vmem:[%s8137_s1 + $0xc74] sm:$0xf]  ;;  %v5405_v39 = vld [vmem:[%s8137_s1 + $0xc64] sm:$0xf] }
 0x157   :  { %3178 = vmatpush.bf16.msra.mxu3 %v4567_v8  ;;  %v5341_v8 = vld [vmem:[%s8137_s1 + $0xa64] sm:$0xf]  ;;  %v4916_v18 = vld [vmem:[%s8137_s1 + $0xbf8] sm:$0xf0]  ;;  %v4972_v36 = vld [vmem:[%s8137_s1 + $0xc68] sm:$0xf0] }
 0x158   :  { %3137 = vmatpush.bf16.msra.mxu0 %v4367_v30  ;;  %v4780_v30 = vld [vmem:[%s8137_s1 + $0xae8] sm:$0xf0] }
 0x159   :  { %3151 = vmatpush.bf16.msra.mxu1 %v4431_v37  ;;  %v4855_v37 = vor.u32 %v5375_v63, %v4852_v0  ;;  %v4783_v15 = vor.u32 %v5357_v60, %v4780_v30  ;;  %v4684_v63 = vld [vmem:[%s8137_s1 + $0xa28] sm:$0xf0]  ;;  %v5349_v0 = vld [vmem:[%s8137_s1 + $0xaa4] sm:$0xf] }
 0x15a   :  { %3165 = vmatpush.bf16.msra.mxu2 %v4495_v12  ;;  %v4719_v12 = vor.u32 %v5341_v8, %v4716_v9  ;;  %v5365_v8 = vld [vmem:[%s8137_s1 + $0xb24] sm:$0xf]  ;;  %v4812_v9 = vld [vmem:[%s8137_s1 + $0xb28] sm:$0xf0] }
 0x15b   :  { %3179 = vmatpush.bf16.msra.mxu3 %v4559_v31  ;;  %v4836_v31 = vld [vmem:[%s8137_s1 + $0xb58] sm:$0xf0] }
 0x15c   :  { %3138 = vmatpush.bf16.msra.mxu0 %v4359_v38  ;;  %v4775_v38 = vor.u32 %v5355_v16, %v4772_v2  ;;  %v5313_v16 = vld [vmem:[%s8137_s1 + $0x984] sm:$0xf] }
 0x15d   :  { %3152 = vmatpush.bf16.msra.mxu1 %v4423_v22  ;;  %v4764_v22 = vld [vmem:[%s8137_s1 + $0xac8] sm:$0xf0] }
 0x15e   :  { %3166 = vmatpush.bf16.msra.mxu2 %v4487_v13  ;;  %v4767_v29 = vor.u32 %v5353_v21, %v4764_v22  ;;  %v4980_v21 = vld [vmem:[%s8137_s1 + $0xc78] sm:$0xf0] }
 0x15f   :  { %3180 = vmatpush.bf16.msra.mxu3 %v4551_v44  ;;  %v4628_v44 = vld [vmem:[%s8137_s1 + $0x9b8] sm:$0xf0] }
 0x160   :  { %3139 = vmatpush.bf16.msra.mxu0 %v4351_v40  ;;  %v2917_v24 = vpop.f32.mrf.mxu0  ;;  %v4631_v40 = vor.u32 %v5319_v33, %v4628_v44  ;;  %v5389_v33 = vld [vmem:[%s8137_s1 + $0xbe4] sm:$0xf]  ;;  %v4908_v44 = vld [vmem:[%s8137_s1 + $0xbe8] sm:$0xf0] }
 0x161   :  { %3153 = vmatpush.bf16.msra.mxu1 %v4415_v58  ;;  %v7923_v19 = vadd.f32 %v2917_v24, %v7770_v11  ;;  %v5351_v11 = vld [vmem:[%s8137_s1 + $0xab4] sm:$0xf]  ;;  %v4796_v24 = vld [vmem:[%s8137_s1 + $0xb08] sm:$0xf0] }
 0x162   :  { %3167 = vmatpush.bf16.msra.mxu2 %v4479_v59  ;;  %v4759_v58 = vor.u32 %v5351_v11, %v4756_v48  ;;  %v5317_v59 = vld [vmem:[%s8137_s1 + $0x9a4] sm:$0xf]  ;;  %v4911_v11 = vor.u32 %v5389_v33, %v4908_v44  ;;  %v4975_v48 = vor.u32 %v5405_v39, %v4972_v36 }
 0x163   :  { %3181 = vmatpush.bf16.msra.mxu3 %v4543_v4  ;;  %3140 = vmatmul.bf16.vlgmr.msra.gmra.mxu0 %v6378_v43  ;;  %v4647_v43 = vor.u32 %v5323_v10, %v4644_v41  ;;  %v4823_v4 = vor.u32 %v5367_v53, %v4820_v1  ;;  %v4815_v10 = vor.u32 %v5365_v8, %v4812_v9  ;;  %v5403_v53 = vld [vmem:[%s8137_s1 + $0xc54] sm:$0xf]  ;;  %v4876_v8 = vld [vmem:[%s8137_s1 + $0xba8] sm:$0xf0]  ;;  %v5397_v9 = vld [vmem:[%s8137_s1 + $0xc24] sm:$0xf] }
 0x164   :  { %3188 = vmatpush.bf16.msrb.mxu0 %v4663_v61  ;;  %3154 = vmatmul.bf16.vlgmr.msra.gmra.mxu1 %v6591_v50  ;;  %v5321_v50 = vld [vmem:[%s8137_s1 + $0x9c4] sm:$0xf]  ;;  %v4620_v61 = vld [vmem:[%s8137_s1 + $0x9a8] sm:$0xf0] }
 0x165   :  { %3202 = vmatpush.bf16.msrb.mxu1 %v4727_v62  ;;  %3168 = vmatmul.bf16.vlgmr.msra.gmra.mxu2 %v6604_v56  ;;  %v5371_v56 = vld [vmem:[%s8137_s1 + $0xb54] sm:$0xf]  ;;  %v5333_v62 = vld [vmem:[%s8137_s1 + $0xa24] sm:$0xf]  ;;  %v4623_v6 = vor.u32 %v5317_v59, %v4620_v61 }
 0x166   :  { %3216 = vmatpush.bf16.msrb.mxu2 %v4791_v3  ;;  %3182 = vmatmul.bf16.vlgmr.msra.gmra.mxu3 %v6593_v51  ;;  %v4636_v51 = vld [vmem:[%s8137_s1 + $0x9c8] sm:$0xf0]  ;;  %v4839_v13 = vor.u32 %v5371_v56, %v4836_v31  ;;  %v4687_v30 = vor.u32 %v5333_v62, %v4684_v63  ;;  %v5329_v56 = vld [vmem:[%s8137_s1 + $0xa04] sm:$0xf]  ;;  %v5383_v62 = vld [vmem:[%s8137_s1 + $0xbb4] sm:$0xf] }
 0x167   :  { %3230 = vmatpush.bf16.msrb.mxu3 %v4855_v37  ;;  %v4639_v25 = vor.u32 %v5321_v50, %v4636_v51  ;;  %v4748_v3 = vld [vmem:[%s8137_s1 + $0xaa8] sm:$0xf0]  ;;  %v5391_v50 = vld [vmem:[%s8137_s1 + $0xbf4] sm:$0xf]  ;;  %v4807_v51 = vor.u32 %v5363_v42, %v4804_v52  ;;  %v4884_v63 = vld [vmem:[%s8137_s1 + $0xbb8] sm:$0xf0] }
 0x168   :  { %3189 = vmatpush.bf16.msrb.mxu0 %v4655_v23  ;;  %v2919_v5 = vpop.f32.mrf.mxu0  ;;  %v4751_v37 = vor.u32 %v5349_v0, %v4748_v3  ;;  %v5315_v23 = vld [vmem:[%s8137_s1 + $0x994] sm:$0xf]  ;;  %v4668_v31 = vld [vmem:[%s8137_s1 + $0xa08] sm:$0xf0]  ;;  %v4919_v46 = vor.u32 %v5391_v50, %v4916_v18  ;;  %v4948_v3 = vld [vmem:[%s8137_s1 + $0xc38] sm:$0xf0] }
 0x169   :  { %3203 = vmatpush.bf16.msrb.mxu1 %v4719_v12  ;;  %v7974_v60 = vadd.f32 %v2919_v5, %v7838_v55  ;;  %v4676_v12 = vld [vmem:[%s8137_s1 + $0xa18] sm:$0xf0]  ;;  %v5347_v55 = vld [vmem:[%s8137_s1 + $0xa94] sm:$0xf]  ;;  %v4615_v41 = vor.u32 %v5315_v23, %v4612_v7  ;;  %v4860_v42 = vld [vmem:[%s8137_s1 + $0xb88] sm:$0xf0] }
 0x16a   :  { %3217 = vmatpush.bf16.msrb.mxu2 %v4783_v15  ;;  %v4740_v15 = vld [vmem:[%s8137_s1 + $0xa98] sm:$0xf0]  ;;  %v4679_v2 = vor.u32 %v5331_v35, %v4676_v12  ;;  %v5399_v0 = vld [vmem:[%s8137_s1 + $0xc34] sm:$0xf]  ;;  %v5393_v52 = vld [vmem:[%s8137_s1 + $0xc04] sm:$0xf] }
 0x16b   :  { %3231 = vmatpush.bf16.msrb.mxu3 %v4847_v17  ;;  %v4743_v17 = vor.u32 %v5347_v55, %v4740_v15  ;;  %v4951_v5 = vor.u32 %v5399_v0, %v4948_v3  ;;  %v5379_v7 = vld [vmem:[%s8137_s1 + $0xb94] sm:$0xf]  ;;  %v4868_v35 = vld [vmem:[%s8137_s1 + $0xb98] sm:$0xf0] }
 0x16c   :  { %3190 = vmatpush.bf16.msrb.mxu0 %v4647_v43  ;;  %v4604_v43 = vld [vmem:[%s8137_s1 + $0x988] sm:$0xf0]  ;;  %v5395_v12 = vld [vmem:[%s8137_s1 + $0xc14] sm:$0xf]  ;;  %v4932_v55 = vld [vmem:[%s8137_s1 + $0xc18] sm:$0xf0]  ;;  %v4871_v15 = vor.u32 %v5379_v7, %v4868_v35 }
 0x16d   :  { %3204 = vmatpush.bf16.msrb.mxu1 %v4711_v32  ;;  %v5345_v32 = vld [vmem:[%s8137_s1 + $0xa84] sm:$0xf]  ;;  %v4607_v22 = vor.u32 %v5313_v16, %v4604_v43  ;;  %v4924_v16 = vld [vmem:[%s8137_s1 + $0xc08] sm:$0xf0]  ;;  %v2931_v43 = vpop.f32.mrf.mxu1 }
 0x16e   :  { %3218 = vmatpush.bf16.msrb.mxu2 %v4775_v38  ;;  %v4732_v38 = vld [vmem:[%s8137_s1 + $0xa88] sm:$0xf0] }
 0x16f   :  { %3232 = vmatpush.bf16.msrb.mxu3 %v4839_v13  ;;  %v5361_v13 = vld [vmem:[%s8137_s1 + $0xb04] sm:$0xf]  ;;  %v4735_v34 = vor.u32 %v5345_v32, %v4732_v38  ;;  %v2959_v32 = vpop.f32.mrf.mxu3 }
 0x170   :  { %3191 = vmatpush.bf16.msrb.mxu0 %v4639_v25  ;;  %v4671_v25 = vor.u32 %v5329_v56, %v4668_v31  ;;  %v2945_v56 = vpop.f32.mrf.mxu2 }
 0x171   :  { %3205 = vmatpush.bf16.msrb.mxu1 %v4703_v14  ;;  %v4983_v14 = vor.u32 %v5407_v20, %v4980_v21 }
 0x172   :  { %3219 = vmatpush.bf16.msrb.mxu2 %v4767_v29  ;;  %v4799_v29 = vor.u32 %v5361_v13, %v4796_v24  ;;  %v5409_v24 = vld [vmem:[%s8139_s2] sm:$0x3] }
 0x173   :  { %3233 = vmatpush.bf16.msrb.mxu3 %v4831_v49  ;;  %v5387_v49 = vld [vmem:[%s8137_s1 + $0xbd4] sm:$0xf] }
 0x174   :  { %3192 = vmatpush.bf16.msrb.mxu0 %v4631_v40  ;;  %v4900_v40 = vld [vmem:[%s8137_s1 + $0xbd8] sm:$0xf0] }
 0x175   :  { %3206 = vmatpush.bf16.msrb.mxu1 %v4695_v54  ;;  %v4903_v1 = vor.u32 %v5387_v49, %v4900_v40  ;;  %v2933_v31 = vpop.f32.mrf.mxu1 }
 0x176   :  { %3220 = vmatpush.bf16.msrb.mxu2 %v4759_v58  ;;  %v5401_v58 = vld [vmem:[%s8137_s1 + $0xc44] sm:$0xf] }
 0x177   :  { %3234 = vmatpush.bf16.msrb.mxu3 %v4823_v4  ;;  %v4887_v4 = vor.u32 %v5383_v62, %v4884_v63  ;;  %v2961_v18 = vpop.f32.mrf.mxu3 }
 0x178   :  { %3193 = vmatpush.bf16.msrb.mxu0 %v4623_v6  ;;  %v5381_v6 = vld [vmem:[%s8137_s1 + $0xba4] sm:$0xf]  ;;  %v2947_v38 = vpop.f32.mrf.mxu2 }
 0x179   :  { %3207 = vmatpush.bf16.msrb.mxu1 %v4687_v30  ;;  %v4940_v30 = vld [vmem:[%s8137_s1 + $0xc28] sm:$0xf0] }
 0x17a   :  { %3221 = vmatpush.bf16.msrb.mxu2 %v4751_v37  ;;  %v4879_v37 = vor.u32 %v5381_v6, %v4876_v8  ;;  %v4943_v23 = vor.u32 %v5397_v9, %v4940_v30 }
 0x17b   :  { %3235 = vmatpush.bf16.msrb.mxu3 %v4815_v10  ;;  %v4935_v10 = vor.u32 %v5395_v12, %v4932_v55 }
 0x17c   :  { %3194 = vmatpush.bf16.msrb.mxu0 %v4615_v41  ;;  %v5377_v41 = vld [vmem:[%s8137_s1 + $0xb84] sm:$0xf] }
 0x17d   :  { %3208 = vmatpush.bf16.msrb.mxu1 %v4679_v2  ;;  %v4863_v2 = vor.u32 %v5377_v41, %v4860_v42 }
 0x17e   :  { %3222 = vmatpush.bf16.msrb.mxu2 %v4743_v17  ;;  %v4927_v17 = vor.u32 %v5393_v52, %v4924_v16 }
 0x17f   :  { %3236 = vmatpush.bf16.msrb.mxu3 %v4807_v51 }
 0x180   :  { %3195 = vmatpush.bf16.msrb.mxu0 %v4607_v22  ;;  %v2973_v50 = vpop.f32.mrf.mxu0 }
 0x181   :  { %3209 = vmatpush.bf16.msrb.mxu1 %v4671_v25  ;;  %v2987_v51 = vpop.f32.mrf.mxu1  ;;  %v443_v25 = vperm.slane %v5409_v24, 1 }
 0x182   :  { %3223 = vmatpush.bf16.msrb.mxu2 %v4735_v34 }
 0x183   :  { %3237 = vmatpush.bf16.msrb.mxu3 %v4799_v29  ;;  %3196 = vmatmul.bf16.vlgmr.msrb.gmra.mxu0 %v6606_v57  ;;  %v4964_v57 = vld [vmem:[%s8137_s1 + $0xc58] sm:$0xf0]  ;;  %v2934_v36 = vadd.f32 %v2933_v31, %v443_v25 }
 0x184   :  { %3244 = vmatpush.bf16.msra.mxu0 %v4919_v46  ;;  %3210 = vmatmul.bf16.vlgmr.msrb.gmra.mxu1 %v6827_v27  ;;  %v4967_v54 = vor.u32 %v5403_v53, %v4964_v57  ;;  %v4892_v27 = vld [vmem:[%s8137_s1 + $0xbc8] sm:$0xf0] }
 0x185   :  { %3258 = vmatpush.bf16.msra.mxu1 %v4983_v14  ;;  %3224 = vmatmul.bf16.vlgmr.msrb.gmra.mxu2 %v6842_v45  ;;  %v5385_v45 = vld [vmem:[%s8137_s1 + $0xbc4] sm:$0xf]  ;;  %v2948_v40 = vadd.f32 %v2947_v38, %v2934_v36 }
 0x186   :  { %3238 = vmatmul.bf16.vlgmr.msrb.gmra.mxu3 %v6829_v28  ;;  %v4956_v28 = vld [vmem:[%s8137_s1 + $0xc48] sm:$0xf0]  ;;  %v4895_v59 = vor.u32 %v5385_v45, %v4892_v27 }
 0x187   :  { %v4959_v61 = vor.u32 %v5401_v58, %v4956_v28 }
 0x188   :  { %3245 = vmatpush.bf16.msra.mxu0 %v4911_v11  ;;  %v3001_v20 = vpop.f32.mrf.mxu2  ;;  %v2975_v21 = vpop.f32.mrf.mxu0 }
 0x189   :  { %3259 = vmatpush.bf16.msra.mxu1 %v4975_v48  ;;  %v2989_v22 = vpop.f32.mrf.mxu1  ;;  %v3015_v13 = vpop.f32.mrf.mxu3 }
 0x18c   :  { %3246 = vmatpush.bf16.msra.mxu0 %v4903_v1 }
 0x18d   :  { %3260 = vmatpush.bf16.msra.mxu1 %v4967_v54  ;;  %v2962_v54 = vadd.f32 %v2961_v18, %v2948_v40 }
 0x18f   :  { %v2976_v58 = vadd.f32 %v2975_v21, %v2962_v54 }
 0x190   :  { %3247 = vmatpush.bf16.msra.mxu0 %v4895_v59  ;;  %v3003_v34 = vpop.f32.mrf.mxu2 }
 0x191   :  { %3261 = vmatpush.bf16.msra.mxu1 %v4959_v61  ;;  %v3017_v29 = vpop.f32.mrf.mxu3  ;;  %v2990_v61 = vadd.f32 %v2989_v22, %v2976_v58 }
 0x193   :  { %v3004_v0 = vadd.f32 %v3003_v34, %v2990_v61 }
 0x194   :  { %3248 = vmatpush.bf16.msra.mxu0 %v4887_v4 }
 0x195   :  { %3262 = vmatpush.bf16.msra.mxu1 %v4951_v5  ;;  %v3018_v8 = vadd.f32 %v3017_v29, %v3004_v0 }
 0x198   :  { %3249 = vmatpush.bf16.msra.mxu0 %v4879_v37 }
 0x199   :  { %3263 = vmatpush.bf16.msra.mxu1 %v4943_v23 }
 0x19c   :  { %3250 = vmatpush.bf16.msra.mxu0 %v4871_v15 }
 0x19d   :  { %3264 = vmatpush.bf16.msra.mxu1 %v4935_v10 }
 0x1a0   :  { %3251 = vmatpush.bf16.msra.mxu0 %v4863_v2 }
 0x1a1   :  { %3265 = vmatpush.bf16.msra.mxu1 %v4927_v17  ;;  %v3043_v46 = vpop.f32.mrf.mxu1 }
 0x1a3   :  { %3252 = vmatmul.bf16.vlgmr.msra.gmra.mxu0 %v6844_v47  ;;  %v2932_v47 = vadd.f32 %v2931_v43, %v443_v25 }
 0x1a4   :  { %3266 = vmatmul.bf16.vlgmr.msra.gmra.mxu1 %v7048_v26  ;;  %v3029_v26 = vpop.f32.mrf.mxu0 }
 0x1a5   :  { %v2946_v14 = vadd.f32 %v2945_v56, %v2932_v47 }
 0x1a7   :  { %v2960_v33 = vadd.f32 %v2959_v32, %v2946_v14 }
 0x1a8   :  { %v3057_v44 = vpop.f32.mrf.mxu2 }
 0x1a9   :  { %v2974_v11 = vadd.f32 %v2973_v50, %v2960_v33  ;;  %v3045_v48 = vpop.f32.mrf.mxu1  ;;  %v3071_v49 = vpop.f32.mrf.mxu3 }
 0x1ab   :  { %v2988_v53 = vadd.f32 %v2987_v51, %v2974_v11 }
 0x1ac   :  { %v3031_v39 = vpop.f32.mrf.mxu0 }
 0x1ad   :  { %v3002_v45 = vadd.f32 %v3001_v20, %v2988_v53  ;;  %v3032_v30 = vadd.f32 %v3031_v39, %v3018_v8 }
 0x1af   :  { %v3016_v59 = vadd.f32 %v3015_v13, %v3002_v45  ;;  %v3046_v35 = vadd.f32 %v3045_v48, %v3032_v30 }
 0x1b0   :  { %v3059_v57 = vpop.f32.mrf.mxu2 }
 0x1b1   :  { %v3073_v28 = vpop.f32.mrf.mxu3  ;;  %v3030_v62 = vadd.f32 %v3029_v26, %v3016_v59  ;;  %v3060_v15 = vadd.f32 %v3059_v57, %v3046_v35 }
 0x1b3   :  { %v3044_v4 = vadd.f32 %v3043_v46, %v3030_v62  ;;  %v3074_v42 = vadd.f32 %v3073_v28, %v3060_v15  ;;  %v3272_v28 = vmax.f32 %v7923_v19, 0.0 }
 0x1b5   :  { %v3058_v9 = vadd.f32 %v3057_v44, %v3044_v4 }
 0x1b7   :  { %v3072_v37 = vadd.f32 %v3071_v49, %v3058_v9 }
 0x1c0   :  { %v3085_v1 = vpop.f32.mrf.mxu0 }
 0x1c1   :  { %v3099_v27 = vpop.f32.mrf.mxu1  ;;  %v3086_v12 = vadd.f32 %v3085_v1, %v3072_v37 }
 0x1c3   :  { %v3100_v41 = vadd.f32 %v3099_v27, %v3086_v12 }
 0x1c8   :  { %v3113_v63 = vpop.f32.mrf.mxu2  ;;  %v3087_v3 = vpop.f32.mrf.mxu0 }
 0x1c9   :  { %v3101_v5 = vpop.f32.mrf.mxu1  ;;  %v3127_v6 = vpop.f32.mrf.mxu3  ;;  %v3114_v52 = vadd.f32 %v3113_v63, %v3100_v41  ;;  %v3088_v2 = vadd.f32 %v3087_v3, %v3074_v42 }
 0x1cb   :  { %v3128_v43 = vadd.f32 %v3127_v6, %v3114_v52  ;;  %v3102_v32 = vadd.f32 %v3101_v5, %v3088_v2  ;;  %v3274_v5 = vmax.f32 %v7974_v60, 0.0 }
 0x1d0   :  { %v3115_v23 = vpop.f32.mrf.mxu2 }
 0x1d1   :  { %v3129_v10 = vpop.f32.mrf.mxu3  ;;  %v3116_v50 = vadd.f32 %v3115_v23, %v3102_v32 }
 0x1d3   :  { %v3130_v21 = vadd.f32 %v3129_v10, %v3116_v50 }
 0x1e0   :  { %v3141_v7 = vpop.f32.mrf.mxu0 }
 0x1e1   :  { %v3155_v55 = vpop.f32.mrf.mxu1  ;;  %v3142_v38 = vadd.f32 %v3141_v7, %v3128_v43 }
 0x1e3   :  { %v3156_v51 = vadd.f32 %v3155_v55, %v3142_v38 }
 0x1e8   :  { %v3169_v16 = vpop.f32.mrf.mxu2  ;;  %v3143_v17 = vpop.f32.mrf.mxu0 }
 0x1e9   :  { %v3157_v56 = vpop.f32.mrf.mxu1  ;;  %v3183_v31 = vpop.f32.mrf.mxu3  ;;  %v3170_v22 = vadd.f32 %v3169_v16, %v3156_v51  ;;  %v3144_v24 = vadd.f32 %v3143_v17, %v3130_v21 }
 0x1eb   :  { %v3184_v47 = vadd.f32 %v3183_v31, %v3170_v22  ;;  %v3158_v34 = vadd.f32 %v3157_v56, %v3144_v24 }
 0x1f0   :  { %v3171_v18 = vpop.f32.mrf.mxu2 }
 0x1f1   :  { %v3185_v25 = vpop.f32.mrf.mxu3  ;;  %v3172_v14 = vadd.f32 %v3171_v18, %v3158_v34 }
 0x1f3   :  { %v3186_v36 = vadd.f32 %v3185_v25, %v3172_v14 }
 0x200   :  { %v3197_v20 = vpop.f32.mrf.mxu0 }
 0x201   :  { %v3211_v13 = vpop.f32.mrf.mxu1  ;;  %v3198_v26 = vadd.f32 %v3197_v20, %v3184_v47 }
 0x203   :  { %v3212_v33 = vadd.f32 %v3211_v13, %v3198_v26 }
 0x208   :  { %v3225_v46 = vpop.f32.mrf.mxu2  ;;  %v3199_v29 = vpop.f32.mrf.mxu0 }
 0x209   :  { %v3213_v44 = vpop.f32.mrf.mxu1  ;;  %v3239_v39 = vpop.f32.mrf.mxu3  ;;  %v3226_v11 = vadd.f32 %v3225_v46, %v3212_v33  ;;  %v3200_v48 = vadd.f32 %v3199_v29, %v3186_v36 }
 0x20b   :  { %v3240_v49 = vadd.f32 %v3239_v39, %v3226_v11  ;;  %v3214_v57 = vadd.f32 %v3213_v44, %v3200_v48 }
 0x210   :  { %v3227_v40 = vpop.f32.mrf.mxu2 }
 0x211   :  { %v3228_v45 = vadd.f32 %v3227_v40, %v3214_v57  ;;  %v3241_v58 = vpop.f32.mrf.mxu3 }
 0x213   :  { %v3242_v61 = vadd.f32 %v3241_v58, %v3228_v45 }
 0x220   :  { %v3253_v53 = vpop.f32.mrf.mxu0 }
 0x221   :  { %v3254_v1 = vadd.f32 %v3253_v53, %v3240_v49  ;;  %v3267_v54 = vpop.f32.mrf.mxu1 }
 0x223   :  { %v3268_v27 = vadd.f32 %v3267_v54, %v3254_v1 }
 0x225   :  { %v3273_v59 = vmax.f32 %v3268_v27, 0.0 }
 0x227   :  { %v3276_v62 = vpack.c.bf16 %v3273_v59, %v3272_v28 }
 0x228   :  { %v3255_v63 = vpop.f32.mrf.mxu0 }
 0x229   :  { %3278 = vst [vmem:[%s8140_s3] sm:$0xff] %v3276_v62  ;;  %v3256_v0 = vadd.f32 %v3255_v63, %v3242_v61  ;;  %v3269_v3 = vpop.f32.mrf.mxu1 }
 0x22b   :  { %v3270_v4 = vadd.f32 %v3269_v3, %v3256_v0 }
 0x22d   :  { %v3275_v6 = vmax.f32 %v3270_v4, 0.0 }
 0x22f   :  { %v3277_v8 = vpack.c.bf16 %v3275_v6, %v3274_v5 }
 0x231   :  { %3279 = vst [vmem:[%s8140_s3 + $0x8] sm:$0xff] %v3277_v8 }

// kernel: alexnet_forward.9
= control target key start
LH: loop header
LB: loop body
LE: loop exit
PB: predicated region body
PF: predicated region fallthrough
CT: control target
= control target key end

     0   :  { %s4995_s1 = inlined_call_operand.vmem [shape: bf16[256,384], index: 1, kind: input, shape index: {}]   ;;  %s4996_s0 = inlined_call_operand.vmem [shape: bf16[16,256], index: 0, kind: input, shape index: {}]   ;;  %s4997_s3 = inlined_call_operand.vmem [shape: bf16[384,384], index: 3, kind: input, shape index: {}]   ;;  %s4998_s2 = inlined_call_operand.vmem [shape: f32[1,384], index: 2, kind: input, shape index: {}]   ;;  %s4999_s5 = inlined_call_operand.vmem [shape: bf16[384,256], index: 5, kind: input, shape index: {}]   ;;  %s5000_s4 = inlined_call_operand.vmem [shape: f32[1,384], index: 4, kind: input, shape index: {}]   ;;  %s5001_s7 = inlined_call_operand.vmem [shape: bf16[256,256], index: 7, kind: input, shape index: {}]   ;;  %s5002_s9 = inlined_call_operand.vmem [shape: bf16[256,256], index: 9, kind: input, shape index: {}]   ;;  %s5003_s6 = inlined_call_operand.vmem [shape: f32[1,256], index: 6, kind: input, shape index: {}]   ;;  %s5004_s11 = inlined_call_operand.vmem [shape: bf16[256,128], index: 11, kind: input, shape index: {}]   ;;  %s5005_s8 = inlined_call_operand.vmem [shape: f32[1,256], index: 8, kind: input, shape index: {}]   ;;  %s5006_s12 = inlined_call_operand.vmem [shape: f32[1,128], index: 12, kind: input, shape index: {}]   ;;  %s5007_s10 = inlined_call_operand.vmem [shape: f32[1,256], index: 10, kind: input, shape index: {}]   ;;  %s5008_s13 = inlined_call_operand.vmem [shape: f32[16,128], index: 13, kind: output, shape index: {}]  }
   0x1   :  { %v2264_v0 = vld [vmem:[%s4995_s1 + $0xa8] sm:$0xf]  ;;  %v3194_v1 = vld [vmem:[%s4995_s1 + $0xb0] sm:$0xf0]  ;;  %v3193_v5 = vld [vmem:[%s4995_s1 + $0xac] sm:$0xf] }
   0x2   :  { %v2360_v2 = vld [vmem:[%s4995_s1 + $0x168] sm:$0xf]  ;;  %v2265_v3 = vor.u32 %v3194_v1, %v2264_v0  ;;  %v3218_v4 = vld [vmem:[%s4995_s1 + $0x170] sm:$0xf0]  ;;  %v2266_v6 = vld [vmem:[%s4995_s1 + $0xb4] sm:$0xf0] }
   0x3   :  { %v2361_v7 = vor.u32 %v3218_v4, %v2360_v2  ;;  %v2269_v8 = vor.u32 %v3193_v5, %v2266_v6  ;;  %v3217_v9 = vld [vmem:[%s4995_s1 + $0x16c] sm:$0xf]  ;;  %v2362_v10 = vld [vmem:[%s4995_s1 + $0x174] sm:$0xf0]  ;;  %v2252_v11 = vld [vmem:[%s4995_s1 + $0x90] sm:$0xf] }
   0x4   :  { %384 = vmatpush.bf16.msra.mxu0 %v2265_v3  ;;  %v2365_v12 = vor.u32 %v3217_v9, %v2362_v10  ;;  %v3191_v13 = vld [vmem:[%s4995_s1 + $0x98] sm:$0xf0]  ;;  %v2348_v14 = vld [vmem:[%s4995_s1 + $0x150] sm:$0xf]  ;;  %v3190_v18 = vld [vmem:[%s4995_s1 + $0x94] sm:$0xf] }
   0x5   :  { %v3215_v15 = vld [vmem:[%s4995_s1 + $0x158] sm:$0xf0]  ;;  %398 = vmatpush.bf16.msra.mxu1 %v2361_v7  ;;  %412 = vmatpush.bf16.msra.mxu2 %v2269_v8  ;;  %v2253_v16 = vor.u32 %v3191_v13, %v2252_v11  ;;  %v2254_v19 = vld [vmem:[%s4995_s1 + $0x9c] sm:$0xf0]  ;;  %v3214_v20 = vld [vmem:[%s4995_s1 + $0x154] sm:$0xf] }
   0x6   :  { %v2349_v17 = vor.u32 %v3215_v15, %v2348_v14  ;;  %426 = vmatpush.bf16.msra.mxu3 %v2365_v12  ;;  %v2257_v21 = vor.u32 %v3190_v18, %v2254_v19  ;;  %v2350_v22 = vld [vmem:[%s4995_s1 + $0x15c] sm:$0xf0]  ;;  %v2240_v23 = vld [vmem:[%s4995_s1 + $0x78] sm:$0xf]  ;;  %v3188_v24 = vld [vmem:[%s4995_s1 + $0x80] sm:$0xf0] }
   0x7   :  { %v2353_v25 = vor.u32 %v3214_v20, %v2350_v22  ;;  %v2336_v26 = vld [vmem:[%s4995_s1 + $0x138] sm:$0xf]  ;;  %v3212_v27 = vld [vmem:[%s4995_s1 + $0x140] sm:$0xf0]  ;;  %v3187_v28 = vld [vmem:[%s4995_s1 + $0x7c] sm:$0xf]  ;;  %v2241_v29 = vor.u32 %v3188_v24, %v2240_v23 }
   0x8   :  { %385 = vmatpush.bf16.msra.mxu0 %v2253_v16  ;;  %v2242_v30 = vld [vmem:[%s4995_s1 + $0x84] sm:$0xf0]  ;;  %v3211_v31 = vld [vmem:[%s4995_s1 + $0x13c] sm:$0xf]  ;;  %v2337_v33 = vor.u32 %v3212_v27, %v2336_v26  ;;  %v2228_v35 = vld [vmem:[%s4995_s1 + $0x60] sm:$0xf] }
   0x9   :  { %v2338_v32 = vld [vmem:[%s4995_s1 + $0x144] sm:$0xf0]  ;;  %399 = vmatpush.bf16.msra.mxu1 %v2349_v17  ;;  %413 = vmatpush.bf16.msra.mxu2 %v2257_v21  ;;  %v2245_v34 = vor.u32 %v3187_v28, %v2242_v30  ;;  %v3185_v36 = vld [vmem:[%s4995_s1 + $0x68] sm:$0xf0]  ;;  %v2324_v37 = vld [vmem:[%s4995_s1 + $0x120] sm:$0xf] }
   0xa   :  { %427 = vmatpush.bf16.msra.mxu3 %v2353_v25  ;;  %v2341_v38 = vor.u32 %v3211_v31, %v2338_v32  ;;  %v3209_v39 = vld [vmem:[%s4995_s1 + $0x128] sm:$0xf0]  ;;  %v3184_v40 = vld [vmem:[%s4995_s1 + $0x64] sm:$0xf]  ;;  %v2230_v41 = vld [vmem:[%s4995_s1 + $0x6c] sm:$0xf0]  ;;  %v2229_v44 = vor.u32 %v3185_v36, %v2228_v35 }
   0xb   :  { %v3208_v42 = vld [vmem:[%s4995_s1 + $0x124] sm:$0xf]  ;;  %v2326_v43 = vld [vmem:[%s4995_s1 + $0x12c] sm:$0xf0]  ;;  %v2325_v45 = vor.u32 %v3209_v39, %v2324_v37  ;;  %v2233_v46 = vor.u32 %v3184_v40, %v2230_v41  ;;  %v2216_v47 = vld [vmem:[%s4995_s1 + $0x48] sm:$0xf] }
   0xc   :  { %386 = vmatpush.bf16.msra.mxu0 %v2241_v29  ;;  %v3182_v48 = vld [vmem:[%s4995_s1 + $0x50] sm:$0xf0]  ;;  %v2312_v49 = vld [vmem:[%s4995_s1 + $0x108] sm:$0xf]  ;;  %v2329_v50 = vor.u32 %v3208_v42, %v2326_v43  ;;  %v3181_v52 = vld [vmem:[%s4995_s1 + $0x4c] sm:$0xf] }
   0xd   :  { %400 = vmatpush.bf16.msra.mxu1 %v2337_v33  ;;  %414 = vmatpush.bf16.msra.mxu2 %v2245_v34  ;;  %v3206_v51 = vld [vmem:[%s4995_s1 + $0x110] sm:$0xf0]  ;;  %v2218_v53 = vld [vmem:[%s4995_s1 + $0x54] sm:$0xf0]  ;;  %v3205_v54 = vld [vmem:[%s4995_s1 + $0x10c] sm:$0xf]  ;;  %v2217_v56 = vor.u32 %v3182_v48, %v2216_v47 }
   0xe   :  { %428 = vmatpush.bf16.msra.mxu3 %v2341_v38  ;;  %v2314_v55 = vld [vmem:[%s4995_s1 + $0x114] sm:$0xf0]  ;;  %v2313_v57 = vor.u32 %v3206_v51, %v2312_v49  ;;  %v2221_v58 = vor.u32 %v3181_v52, %v2218_v53  ;;  %v2204_v59 = vld [vmem:[%s4995_s1 + $0x30] sm:$0xf]  ;;  %v3179_v60 = vld [vmem:[%s4995_s1 + $0x38] sm:$0xf0] }
   0xf   :  { %v2300_v61 = vld [vmem:[%s4995_s1 + $0xf0] sm:$0xf]  ;;  %v2317_v62 = vor.u32 %v3205_v54, %v2314_v55  ;;  %v3203_v63 = vld [vmem:[%s4995_s1 + $0xf8] sm:$0xf0]  ;;  %v3178_v0 = vld [vmem:[%s4995_s1 + $0x34] sm:$0xf]  ;;  %v2205_v4 = vor.u32 %v3179_v60, %v2204_v59 }
  0x10   :  { %387 = vmatpush.bf16.msra.mxu0 %v2229_v44  ;;  %v2206_v1 = vld [vmem:[%s4995_s1 + $0x3c] sm:$0xf0]  ;;  %v3202_v2 = vld [vmem:[%s4995_s1 + $0xf4] sm:$0xf]  ;;  %v2301_v5 = vor.u32 %v3203_v63, %v2300_v61  ;;  %v2192_v7 = vld [vmem:[%s4995_s1 + $0x18] sm:$0xf] }
  0x11   :  { %401 = vmatpush.bf16.msra.mxu1 %v2325_v45  ;;  %415 = vmatpush.bf16.msra.mxu2 %v2233_v46  ;;  %v2302_v3 = vld [vmem:[%s4995_s1 + $0xfc] sm:$0xf0]  ;;  %v2209_v6 = vor.u32 %v3178_v0, %v2206_v1  ;;  %v3176_v8 = vld [vmem:[%s4995_s1 + $0x20] sm:$0xf0]  ;;  %v2288_v9 = vld [vmem:[%s4995_s1 + $0xd8] sm:$0xf] }
  0x12   :  { %429 = vmatpush.bf16.msra.mxu3 %v2329_v50  ;;  %v2305_v10 = vor.u32 %v3202_v2, %v2302_v3  ;;  %v3200_v11 = vld [vmem:[%s4995_s1 + $0xe0] sm:$0xf0]  ;;  %v3175_v12 = vld [vmem:[%s4995_s1 + $0x1c] sm:$0xf]  ;;  %v2194_v13 = vld [vmem:[%s4995_s1 + $0x24] sm:$0xf0]  ;;  %v2193_v16 = vor.u32 %v3176_v8, %v2192_v7 }
  0x13   :  { %v3199_v14 = vld [vmem:[%s4995_s1 + $0xdc] sm:$0xf]  ;;  %v2290_v15 = vld [vmem:[%s4995_s1 + $0xe4] sm:$0xf0]  ;;  %v2180_v17 = vld [vmem:[%s4995_s1] sm:$0xf]  ;;  %v2289_v19 = vor.u32 %v3200_v11, %v2288_v9  ;;  %v2197_v20 = vor.u32 %v3175_v12, %v2194_v13 }
  0x14   :  { %388 = vmatpush.bf16.msra.mxu0 %v2217_v56  ;;  %v3173_v18 = vld [vmem:[%s4995_s1 + $0x8] sm:$0xf0]  ;;  %v2276_v21 = vld [vmem:[%s4995_s1 + $0xc0] sm:$0xf]  ;;  %v3172_v23 = vld [vmem:[%s4995_s1 + $0x4] sm:$0xf]  ;;  %v2293_v24 = vor.u32 %v3199_v14, %v2290_v15 }
  0x15   :  { %402 = vmatpush.bf16.msra.mxu1 %v2313_v57  ;;  %416 = vmatpush.bf16.msra.mxu2 %v2221_v58  ;;  %v3197_v22 = vld [vmem:[%s4995_s1 + $0xc8] sm:$0xf0]  ;;  %v2182_v25 = vld [vmem:[%s4995_s1 + $0xc] sm:$0xf0]  ;;  %v3195_v27 = vld [vmem:[%s4995_s1 + $0xb8] sm:$0xf0]  ;;  %v2181_v31 = vor.u32 %v3173_v18, %v2180_v17 }
  0x16   :  { %430 = vmatpush.bf16.msra.mxu3 %v2317_v62  ;;  %v2272_v26 = vld [vmem:[%s4995_s1 + $0xb0] sm:$0xf]  ;;  %v3219_v29 = vld [vmem:[%s4995_s1 + $0x178] sm:$0xf0]  ;;  %v3196_v30 = vld [vmem:[%s4995_s1 + $0xc4] sm:$0xf]  ;;  %v2277_v35 = vor.u32 %v3197_v22, %v2276_v21  ;;  %v2185_v36 = vor.u32 %v3172_v23, %v2182_v25 }
  0x17   :  { %v2368_v28 = vld [vmem:[%s4995_s1 + $0x170] sm:$0xf]  ;;  %v2172_v33 = vld [vmem:[%s4996_s0] sm:$0xf]  ;;  %v3171_v34 = vld [vmem:[%s4996_s0 + $0x4] sm:$0xf0]  ;;  %v2273_v39 = vor.u32 %v3195_v27, %v2272_v26 }
  0x18   :  { %389 = vmatpush.bf16.msra.mxu0 %v2205_v4  ;;  %v2278_v32 = vld [vmem:[%s4995_s1 + $0xcc] sm:$0xf0]  ;;  %v3170_v37 = vld [vmem:[%s4996_s0 + $0x4] sm:$0xf]  ;;  %v2174_v38 = vld [vmem:[%s4996_s0 + $0x8] sm:$0xf0]  ;;  %v2369_v40 = vor.u32 %v3219_v29, %v2368_v28  ;;  %v3707_v42 = vor.u32 %v3171_v34, %v2172_v33 }
  0x19   :  { %403 = vmatpush.bf16.msra.mxu1 %v2301_v5  ;;  %417 = vmatpush.bf16.msra.mxu2 %v2209_v6  ;;  %v2281_v41 = vor.u32 %v3196_v30, %v2278_v32  ;;  %v2260_v43 = vld [vmem:[%s4995_s1 + $0x98] sm:$0xf]  ;;  %v3192_v44 = vld [vmem:[%s4995_s1 + $0xa0] sm:$0xf0]  ;;  %v3715_v45 = vor.u32 %v3170_v37, %v2174_v38  ;;  %v2248_v49 = vld [vmem:[%s4995_s1 + $0x80] sm:$0xf] }
  0x1a   :  { %431 = vmatpush.bf16.msra.mxu3 %v2305_v10  ;;  %v2356_v46 = vld [vmem:[%s4995_s1 + $0x158] sm:$0xf]  ;;  %v3216_v47 = vld [vmem:[%s4995_s1 + $0x160] sm:$0xf0]  ;;  %v2261_v48 = vor.u32 %v3192_v44, %v2260_v43  ;;  %v2456_v50 = vld [vmem:[%s4997_s3 + $0xa8] sm:$0xf] }
  0x1b   :  { %v3242_v51 = vld [vmem:[%s4997_s3 + $0xb0] sm:$0xf0]  ;;  %v2357_v52 = vor.u32 %v3216_v47, %v2356_v46  ;;  %v3189_v53 = vld [vmem:[%s4995_s1 + $0x88] sm:$0xf0]  ;;  %v2444_v55 = vld [vmem:[%s4997_s3 + $0x90] sm:$0xf] }
  0x1c   :  { %390 = vmatpush.bf16.msra.mxu0 %v2193_v16  ;;  %v2457_v54 = vor.u32 %v3242_v51, %v2456_v50  ;;  %v3239_v56 = vld [vmem:[%s4997_s3 + $0x98] sm:$0xf0]  ;;  %v2344_v57 = vld [vmem:[%s4995_s1 + $0x140] sm:$0xf]  ;;  %v3213_v58 = vld [vmem:[%s4995_s1 + $0x148] sm:$0xf0]  ;;  %v2249_v60 = vor.u32 %v3189_v53, %v2248_v49 }
  0x1d   :  { %404 = vmatpush.bf16.msra.mxu1 %v2289_v19  ;;  %418 = vmatpush.bf16.msra.mxu2 %v2197_v20  ;;  %v2445_v59 = vor.u32 %v3239_v56, %v2444_v55  ;;  %v2432_v61 = vld [vmem:[%s4997_s3 + $0x78] sm:$0xf]  ;;  %v3236_v62 = vld [vmem:[%s4997_s3 + $0x80] sm:$0xf0]  ;;  %v2345_v63 = vor.u32 %v3213_v58, %v2344_v57  ;;  %v2236_v0 = vld [vmem:[%s4995_s1 + $0x68] sm:$0xf] }
  0x1e   :  { %432 = vmatpush.bf16.msra.mxu3 %v2293_v24  ;;  %v3186_v1 = vld [vmem:[%s4995_s1 + $0x70] sm:$0xf0]  ;;  %v2332_v2 = vld [vmem:[%s4995_s1 + $0x128] sm:$0xf]  ;;  %v2433_v4 = vor.u32 %v3236_v62, %v2432_v61  ;;  %v2420_v6 = vld [vmem:[%s4997_s3 + $0x60] sm:$0xf] }
  0x1f   :  { %v3210_v3 = vld [vmem:[%s4995_s1 + $0x130] sm:$0xf0]  ;;  %v2237_v5 = vor.u32 %v3186_v1, %v2236_v0  ;;  %v3233_v7 = vld [vmem:[%s4997_s3 + $0x68] sm:$0xf0]  ;;  %v2224_v9 = vld [vmem:[%s4995_s1 + $0x50] sm:$0xf] }
  0x20   :  { %391 = vmatpush.bf16.msra.mxu0 %v2181_v31  ;;  %v2333_v8 = vor.u32 %v3210_v3, %v2332_v2  ;;  %v3183_v10 = vld [vmem:[%s4995_s1 + $0x58] sm:$0xf0]  ;;  %v2320_v11 = vld [vmem:[%s4995_s1 + $0x110] sm:$0xf]  ;;  %v2552_v13 = vld [vmem:[%s4997_s3 + $0x168] sm:$0xf]  ;;  %v2421_v15 = vor.u32 %v3233_v7, %v2420_v6 }
  0x21   :  { %405 = vmatpush.bf16.msra.mxu1 %v2277_v35  ;;  %419 = vmatpush.bf16.msra.mxu2 %v2185_v36  ;;  %v3207_v12 = vld [vmem:[%s4995_s1 + $0x118] sm:$0xf0]  ;;  %v3266_v14 = vld [vmem:[%s4997_s3 + $0x170] sm:$0xf0]  ;;  %v2225_v17 = vor.u32 %v3183_v10, %v2224_v9  ;;  %v2408_v18 = vld [vmem:[%s4997_s3 + $0x48] sm:$0xf] }
  0x22   :  { %433 = vmatpush.bf16.msra.mxu3 %v2281_v41  ;;  %v2553_v16 = vor.u32 %v3266_v14, %v2552_v13  ;;  %v3230_v19 = vld [vmem:[%s4997_s3 + $0x50] sm:$0xf0]  ;;  %v2321_v20 = vor.u32 %v3207_v12, %v2320_v11  ;;  %v2212_v21 = vld [vmem:[%s4995_s1 + $0x38] sm:$0xf]  ;;  %v3180_v22 = vld [vmem:[%s4995_s1 + $0x40] sm:$0xf0] }
  0x23   :  { %392 = vmatmul.bf16.vlgmr.msra.gmra.mxu0 %v3707_v42  ;;  %v2308_v23 = vld [vmem:[%s4995_s1 + $0xf8] sm:$0xf]  ;;  %v3204_v24 = vld [vmem:[%s4995_s1 + $0x100] sm:$0xf0]  ;;  %v2540_v25 = vld [vmem:[%s4997_s3 + $0x150] sm:$0xf]  ;;  %v2409_v26 = vor.u32 %v3230_v19, %v2408_v18  ;;  %v2213_v28 = vor.u32 %v3180_v22, %v2212_v21 }
  0x24   :  { %440 = vmatpush.bf16.msrb.mxu0 %v2273_v39  ;;  %420 = vmatmul.bf16.vlgmr.msra.gmra.mxu2 %v3707_v42  ;;  %v3263_v27 = vld [vmem:[%s4997_s3 + $0x158] sm:$0xf0]  ;;  %v2396_v29 = vld [vmem:[%s4997_s3 + $0x30] sm:$0xf]  ;;  %v2309_v32 = vor.u32 %v3204_v24, %v2308_v23  ;;  %v2200_v33 = vld [vmem:[%s4995_s1 + $0x20] sm:$0xf] }
  0x25   :  { %454 = vmatpush.bf16.msrb.mxu1 %v2369_v40  ;;  %965 = vmatpush.bf16.msrb.mxu2 %v2457_v54  ;;  %v3227_v30 = vld [vmem:[%s4997_s3 + $0x38] sm:$0xf0]  ;;  %v2541_v31 = vor.u32 %v3263_v27, %v2540_v25  ;;  %v3177_v34 = vld [vmem:[%s4995_s1 + $0x28] sm:$0xf0]  ;;  %v2296_v35 = vld [vmem:[%s4995_s1 + $0xe0] sm:$0xf] }
  0x26   :  { %406 = vmatmul.bf16.vlgmr.msra.gmra.mxu1 %v3715_v45  ;;  %434 = vmatmul.bf16.vlgmr.msra.gmra.mxu3 %v3715_v45  ;;  %v3201_v36 = vld [vmem:[%s4995_s1 + $0xe8] sm:$0xf0]  ;;  %v2528_v37 = vld [vmem:[%s4997_s3 + $0x138] sm:$0xf]  ;;  %v2397_v38 = vor.u32 %v3227_v30, %v2396_v29  ;;  %v3260_v39 = vld [vmem:[%s4997_s3 + $0x140] sm:$0xf0]  ;;  %v2201_v40 = vor.u32 %v3177_v34, %v2200_v33 }
  0x27   :  { %979 = vmatpush.bf16.msrb.mxu3 %v2553_v16  ;;  %v2384_v41 = vld [vmem:[%s4997_s3 + $0x18] sm:$0xf]  ;;  %v3224_v43 = vld [vmem:[%s4997_s3 + $0x20] sm:$0xf0]  ;;  %v2529_v44 = vor.u32 %v3260_v39, %v2528_v37  ;;  %v2297_v46 = vor.u32 %v3201_v36, %v2296_v35  ;;  %v2188_v47 = vld [vmem:[%s4995_s1 + $0x8] sm:$0xf] }
  0x28   :  { %441 = vmatpush.bf16.msrb.mxu0 %v2261_v48  ;;  %v3174_v48 = vld [vmem:[%s4995_s1 + $0x10] sm:$0xf0]  ;;  %v2284_v49 = vld [vmem:[%s4995_s1 + $0xc8] sm:$0xf]  ;;  %v2516_v51 = vld [vmem:[%s4997_s3 + $0x120] sm:$0xf]  ;;  %v2385_v54 = vor.u32 %v3224_v43, %v2384_v41 }
  0x29   :  { %455 = vmatpush.bf16.msrb.mxu1 %v2357_v52  ;;  %966 = vmatpush.bf16.msrb.mxu2 %v2445_v59  ;;  %v3198_v50 = vld [vmem:[%s4995_s1 + $0xd0] sm:$0xf0]  ;;  %v3241_v52 = vld [vmem:[%s4997_s3 + $0xac] sm:$0xf]  ;;  %v2458_v53 = vld [vmem:[%s4997_s3 + $0xb4] sm:$0xf0]  ;;  %v2189_v56 = vor.u32 %v3174_v48, %v2188_v47 }
  0x2a   :  { %v3257_v55 = vld [vmem:[%s4997_s3 + $0x128] sm:$0xf0]  ;;  %v2372_v57 = vld [vmem:[%s4997_s3] sm:$0xf]  ;;  %v2554_v62 = vld [vmem:[%s4997_s3 + $0x174] sm:$0xf0] }
  0x2b   :  { %980 = vmatpush.bf16.msrb.mxu3 %v2541_v31  ;;  %v3221_v58 = vld [vmem:[%s4997_s3 + $0x8] sm:$0xf0]  ;;  %v2517_v59 = vor.u32 %v3257_v55, %v2516_v51  ;;  %v3238_v0 = vld [vmem:[%s4997_s3 + $0x94] sm:$0xf]  ;;  %v2446_v1 = vld [vmem:[%s4997_s3 + $0x9c] sm:$0xf0] }
  0x2c   :  { %442 = vmatpush.bf16.msrb.mxu0 %v2249_v60  ;;  %v2285_v60 = vor.u32 %v3198_v50, %v2284_v49  ;;  %v3265_v61 = vld [vmem:[%s4997_s3 + $0x16c] sm:$0xf]  ;;  %v2373_v2 = vor.u32 %v3221_v58, %v2372_v57  ;;  %v2449_v6 = vor.u32 %v3238_v0, %v2446_v1  ;;  %v3235_v7 = vld [vmem:[%s4997_s3 + $0x7c] sm:$0xf]  ;;  %v3232_v12 = vld [vmem:[%s4997_s3 + $0x64] sm:$0xf] }
  0x2d   :  { %456 = vmatpush.bf16.msrb.mxu1 %v2345_v63  ;;  %967 = vmatpush.bf16.msrb.mxu2 %v2433_v4  ;;  %v2461_v63 = vor.u32 %v3241_v52, %v2458_v53  ;;  %v2557_v3 = vor.u32 %v3265_v61, %v2554_v62  ;;  %v3262_v4 = vld [vmem:[%s4997_s3 + $0x154] sm:$0xf]  ;;  %v3259_v10 = vld [vmem:[%s4997_s3 + $0x13c] sm:$0xf]  ;;  %v2410_v16 = vld [vmem:[%s4997_s3 + $0x54] sm:$0xf0] }
  0x2e   :  { %v3226_v18 = vld [vmem:[%s4997_s3 + $0x34] sm:$0xf]  ;;  %v2398_v19 = vld [vmem:[%s4997_s3 + $0x3c] sm:$0xf0]  ;;  %v3223_v21 = vld [vmem:[%s4997_s3 + $0x1c] sm:$0xf] }
  0x2f   :  { %981 = vmatpush.bf16.msrb.mxu3 %v2529_v44  ;;  %v2386_v22 = vld [vmem:[%s4997_s3 + $0x24] sm:$0xf0]  ;;  %v3220_v24 = vld [vmem:[%s4997_s3 + $0x4] sm:$0xf]  ;;  %v2374_v25 = vld [vmem:[%s4997_s3 + $0xc] sm:$0xf0] }
  0x30   :  { %443 = vmatpush.bf16.msrb.mxu0 %v2237_v5  ;;  %v2542_v5 = vld [vmem:[%s4997_s3 + $0x15c] sm:$0xf0]  ;;  %v2389_v23 = vor.u32 %v3223_v21, %v2386_v22  ;;  %v2377_v27 = vor.u32 %v3220_v24, %v2374_v25  ;;  %v2504_v29 = vld [vmem:[%s4997_s3 + $0x108] sm:$0xf]  ;;  %v3254_v30 = vld [vmem:[%s4997_s3 + $0x110] sm:$0xf0] }
  0x31   :  { %457 = vmatpush.bf16.msrb.mxu1 %v2333_v8  ;;  %968 = vmatpush.bf16.msrb.mxu2 %v2421_v15  ;;  %v2434_v8 = vld [vmem:[%s4997_s3 + $0x84] sm:$0xf0]  ;;  %v2545_v9 = vor.u32 %v3262_v4, %v2542_v5  ;;  %v3229_v15 = vld [vmem:[%s4997_s3 + $0x4c] sm:$0xf]  ;;  %v3290_v34 = vld [vmem:[%s4997_s3 + $0x230] sm:$0xf0] }
  0x32   :  { %v2437_v11 = vor.u32 %v3235_v7, %v2434_v8  ;;  %v2648_v33 = vld [vmem:[%s4997_s3 + $0x228] sm:$0xf]  ;;  %v2560_v35 = vld [vmem:[%s4997_s3 + $0x170] sm:$0xf]  ;;  %v3267_v37 = vld [vmem:[%s4997_s3 + $0x178] sm:$0xf0] }
  0x33   :  { %982 = vmatpush.bf16.msrb.mxu3 %v2517_v59  ;;  %v2649_v36 = vor.u32 %v3290_v34, %v2648_v33  ;;  %v3253_v39 = vld [vmem:[%s4997_s3 + $0x10c] sm:$0xf]  ;;  %v2492_v43 = vld [vmem:[%s4997_s3 + $0xf0] sm:$0xf]  ;;  %v3251_v44 = vld [vmem:[%s4997_s3 + $0xf8] sm:$0xf0] }
  0x34   :  { %444 = vmatpush.bf16.msrb.mxu0 %v2225_v17  ;;  %v2413_v17 = vor.u32 %v3229_v15, %v2410_v16  ;;  %v2636_v47 = vld [vmem:[%s4997_s3 + $0x210] sm:$0xf]  ;;  %v3287_v48 = vld [vmem:[%s4997_s3 + $0x218] sm:$0xf0]  ;;  %v2548_v49 = vld [vmem:[%s4997_s3 + $0x158] sm:$0xf] }
  0x35   :  { %458 = vmatpush.bf16.msrb.mxu1 %v2321_v20  ;;  %969 = vmatpush.bf16.msrb.mxu2 %v2409_v26  ;;  %v2401_v20 = vor.u32 %v3226_v18, %v2398_v19  ;;  %v3256_v26 = vld [vmem:[%s4997_s3 + $0x124] sm:$0xf]  ;;  %v2637_v50 = vor.u32 %v3287_v48, %v2636_v47  ;;  %v3250_v53 = vld [vmem:[%s4997_s3 + $0xf4] sm:$0xf]  ;;  %v2624_v58 = vld [vmem:[%s4997_s3 + $0x1f8] sm:$0xf] }
  0x36   :  { %v3264_v51 = vld [vmem:[%s4997_s3 + $0x160] sm:$0xf0]  ;;  %v2536_v61 = vld [vmem:[%s4997_s3 + $0x140] sm:$0xf]  ;;  %v3261_v62 = vld [vmem:[%s4997_s3 + $0x148] sm:$0xf0] }
  0x37   :  { %v2549_v52 = vor.u32 %v3264_v51, %v2548_v49  ;;  %v3248_v57 = vld [vmem:[%s4997_s3 + $0xe0] sm:$0xf0]  ;;  %v2537_v0 = vor.u32 %v3261_v62, %v2536_v61  ;;  %v3247_v1 = vld [vmem:[%s4997_s3 + $0xdc] sm:$0xf]  ;;  %v2468_v4 = vld [vmem:[%s4997_s3 + $0xc0] sm:$0xf] }
  0x38   :  { %445 = vmatpush.bf16.msrb.mxu0 %v2213_v28  ;;  %v2518_v28 = vld [vmem:[%s4997_s3 + $0x12c] sm:$0xf0]  ;;  %v3245_v5 = vld [vmem:[%s4997_s3 + $0xc8] sm:$0xf0]  ;;  %v3278_v18 = vld [vmem:[%s4997_s3 + $0x1d0] sm:$0xf0] }
  0x39   :  { %459 = vmatpush.bf16.msrb.mxu1 %v2309_v32  ;;  %970 = vmatpush.bf16.msrb.mxu2 %v2397_v38  ;;  %v2521_v31 = vor.u32 %v3256_v26, %v2518_v28  ;;  %v2505_v32 = vor.u32 %v3254_v30, %v2504_v29  ;;  %v2561_v38 = vor.u32 %v3267_v37, %v2560_v35  ;;  %v3281_v8 = vld [vmem:[%s4997_s3 + $0x1e8] sm:$0xf0]  ;;  %v2470_v15 = vld [vmem:[%s4997_s3 + $0xcc] sm:$0xf0]  ;;  %v3255_v21 = vld [vmem:[%s4997_s3 + $0x118] sm:$0xf0] }
  0x3a   :  { %v2469_v7 = vor.u32 %v3245_v5, %v2468_v4  ;;  %v2512_v19 = vld [vmem:[%s4997_s3 + $0x110] sm:$0xf]  ;;  %v2638_v24 = vld [vmem:[%s4997_s3 + $0x21c] sm:$0xf0]  ;;  %v2500_v28 = vld [vmem:[%s4997_s3 + $0xf8] sm:$0xf] }
  0x3b   :  { %983 = vmatpush.bf16.msrb.mxu3 %v2505_v32  ;;  %v2513_v22 = vor.u32 %v3255_v21, %v2512_v19  ;;  %v2588_v26 = vld [vmem:[%s4997_s3 + $0x1b0] sm:$0xf]  ;;  %v3252_v30 = vld [vmem:[%s4997_s3 + $0x100] sm:$0xf0]  ;;  %v3283_v32 = vld [vmem:[%s4997_s3 + $0x1fc] sm:$0xf] }
  0x3c   :  { %446 = vmatpush.bf16.msrb.mxu0 %v2201_v40  ;;  %v2506_v40 = vld [vmem:[%s4997_s3 + $0x114] sm:$0xf0]  ;;  %v2626_v33 = vld [vmem:[%s4997_s3 + $0x204] sm:$0xf0]  ;;  %v2488_v37 = vld [vmem:[%s4997_s3 + $0xe0] sm:$0xf] }
  0x3d   :  { %460 = vmatpush.bf16.msrb.mxu1 %v2297_v46  ;;  %971 = vmatpush.bf16.msrb.mxu2 %v2385_v54  ;;  %v2509_v41 = vor.u32 %v3253_v39, %v2506_v40  ;;  %v2493_v46 = vor.u32 %v3251_v44, %v2492_v43  ;;  %v2494_v54 = vld [vmem:[%s4997_s3 + $0xfc] sm:$0xf0]  ;;  %v2629_v34 = vor.u32 %v3283_v32, %v2626_v33  ;;  %v2576_v35 = vld [vmem:[%s4997_s3 + $0x198] sm:$0xf]  ;;  %v3249_v39 = vld [vmem:[%s4997_s3 + $0xe8] sm:$0xf0] }
  0x3e   :  { %v2497_v55 = vor.u32 %v3250_v53, %v2494_v54  ;;  %v2489_v40 = vor.u32 %v3249_v39, %v2488_v37  ;;  %v2614_v43 = vld [vmem:[%s4997_s3 + $0x1ec] sm:$0xf0]  ;;  %v4104_v44 = vld [vmem:[%s4998_s2] sm:$0x7]  ;;  %v3269_v48 = vld [vmem:[%s4997_s3 + $0x188] sm:$0xf0] }
  0x3f   :  { %984 = vmatpush.bf16.msrb.mxu3 %v2493_v46  ;;  %v2564_v47 = vld [vmem:[%s4997_s3 + $0x180] sm:$0xf]  ;;  %v2476_v49 = vld [vmem:[%s4997_s3 + $0xc8] sm:$0xf]  ;;  %v3277_v54 = vld [vmem:[%s4997_s3 + $0x1cc] sm:$0xf] }
  0x40   :  { %447 = vmatpush.bf16.msrb.mxu0 %v2189_v56  ;;  %v2480_v56 = vld [vmem:[%s4997_s3 + $0xd8] sm:$0xf]  ;;  %v2565_v51 = vor.u32 %v3269_v48, %v2564_v47  ;;  %v3274_v62 = vld [vmem:[%s4997_s3 + $0x1b4] sm:$0xf]  ;;  %v113_v5 = vperm.slane %v4104_v44, 1 }
  0x41   :  { %461 = vmatpush.bf16.msrb.mxu1 %v2285_v60  ;;  %972 = vmatpush.bf16.msrb.mxu2 %v2373_v2  ;;  %v2481_v59 = vor.u32 %v3248_v57, %v2480_v56  ;;  %v3284_v60 = vld [vmem:[%s4997_s3 + $0x200] sm:$0xf0]  ;;  %v2482_v2 = vld [vmem:[%s4997_s3 + $0xe4] sm:$0xf0]  ;;  %v2464_v56 = vld [vmem:[%s4997_s3 + $0xb0] sm:$0xf] }
  0x42   :  { %v2566_v19 = vld [vmem:[%s4997_s3 + $0x18c] sm:$0xf0]  ;;  %v2404_v39 = vld [vmem:[%s4997_s3 + $0x38] sm:$0xf]  ;;  %v2632_v47 = vld [vmem:[%s4997_s3 + $0x200] sm:$0xf] }
  0x43   :  { %448 = vmatmul.bf16.vlgmr.msrb.gmra.mxu0 %v3707_v42  ;;  %v2530_v42 = vld [vmem:[%s4997_s3 + $0x144] sm:$0xf0]  ;;  %985 = vmatpush.bf16.msrb.mxu3 %v2481_v59  ;;  %v3243_v59 = vld [vmem:[%s4997_s3 + $0xb8] sm:$0xf0]  ;;  %v3285_v48 = vld [vmem:[%s4997_s3 + $0x208] sm:$0xf0] }
  0x44   :  { %462 = vmatmul.bf16.vlgmr.msrb.gmra.mxu1 %v3715_v45  ;;  %v2422_v45 = vld [vmem:[%s4997_s3 + $0x6c] sm:$0xf0]  ;;  %v2533_v13 = vor.u32 %v3259_v10, %v2530_v42  ;;  %993 = vmatpush.bf16.msra.mxu0 %v2649_v36  ;;  %v3258_v10 = vld [vmem:[%s4997_s3 + $0x130] sm:$0xf0]  ;;  %v3272_v36 = vld [vmem:[%s4997_s3 + $0x1a0] sm:$0xf0]  ;;  %v2465_v61 = vor.u32 %v3243_v59, %v2464_v56 }
  0x45   :  { %1007 = vmatpush.bf16.msra.mxu1 %v2461_v63  ;;  %1021 = vmatpush.bf16.msra.mxu2 %v2557_v3  ;;  %v2425_v14 = vor.u32 %v3232_v12, %v2422_v45  ;;  %v2625_v63 = vor.u32 %v3284_v60, %v2624_v58  ;;  %v2485_v3 = vor.u32 %v3247_v1, %v2482_v2  ;;  %v3289_v12 = vld [vmem:[%s4997_s3 + $0x22c] sm:$0xf]  ;;  %v2650_v45 = vld [vmem:[%s4997_s3 + $0x234] sm:$0xf0]  ;;  %v3282_v56 = vld [vmem:[%s4997_s3 + $0x1f0] sm:$0xf0] }
  0x46   :  { %v3222_v59 = vld [vmem:[%s4997_s3 + $0x10] sm:$0xf0] }
  0x47   :  { %986 = vmatpush.bf16.msrb.mxu3 %v2469_v7  ;;  %v2578_v7 = vld [vmem:[%s4997_s3 + $0x1a4] sm:$0xf0] }
  0x48   :  { %994 = vmatpush.bf16.msra.mxu0 %v2637_v50  ;;  %v112_v50 = vperm.slane %v4104_v44, 0 }
  0x49   :  { %1008 = vmatpush.bf16.msra.mxu1 %v2449_v6  ;;  %1022 = vmatpush.bf16.msra.mxu2 %v2545_v9  ;;  %v2612_v6 = vld [vmem:[%s4997_s3 + $0x1e0] sm:$0xf]  ;;  %v2524_v9 = vld [vmem:[%s4997_s3 + $0x128] sm:$0xf] }
  0x4a   :  { %v2613_v42 = vor.u32 %v3281_v8, %v2612_v6  ;;  %v3271_v6 = vld [vmem:[%s4997_s3 + $0x19c] sm:$0xf]  ;;  %v2440_v8 = vld [vmem:[%s4997_s3 + $0x80] sm:$0xf] }
  0x4c   :  { %995 = vmatpush.bf16.msra.mxu0 %v2625_v63  ;;  %v2590_v63 = vld [vmem:[%s4997_s3 + $0x1bc] sm:$0xf0] }
  0x4d   :  { %1009 = vmatpush.bf16.msra.mxu1 %v2437_v11  ;;  %1023 = vmatpush.bf16.msra.mxu2 %v2533_v13  ;;  %v2525_v11 = vor.u32 %v3258_v10, %v2524_v9  ;;  %v2653_v13 = vor.u32 %v3289_v12, %v2650_v45  ;;  %v2593_v2 = vor.u32 %v3274_v62, %v2590_v63  ;;  %v3279_v62 = vld [vmem:[%s4997_s3 + $0x1d8] sm:$0xf0] }
  0x4f   :  { %1035 = vmatpush.bf16.msra.mxu3 %v2653_v13 }
  0x50   :  { %996 = vmatpush.bf16.msra.mxu0 %v2613_v42  ;;  %v2581_v42 = vor.u32 %v3271_v6, %v2578_v7 }
  0x51   :  { %1010 = vmatpush.bf16.msra.mxu1 %v2425_v14  ;;  %1024 = vmatpush.bf16.msra.mxu2 %v2521_v31  ;;  %v3244_v14 = vld [vmem:[%s4997_s3 + $0xc4] sm:$0xf]  ;;  %v2501_v31 = vor.u32 %v3252_v30, %v2500_v28  ;;  %v2416_v30 = vld [vmem:[%s4997_s3 + $0x50] sm:$0xf] }
  0x52   :  { %v2473_v16 = vor.u32 %v3244_v14, %v2470_v15 }
  0x55   :  { %1011 = vmatpush.bf16.msra.mxu1 %v2413_v17  ;;  %1025 = vmatpush.bf16.msra.mxu2 %v2509_v41  ;;  %v2600_v17 = vld [vmem:[%s4997_s3 + $0x1c8] sm:$0xf]  ;;  %v3280_v41 = vld [vmem:[%s4997_s3 + $0x1e4] sm:$0xf] }
  0x56   :  { %v2617_v46 = vor.u32 %v3280_v41, %v2614_v43 }
  0x59   :  { %1012 = vmatpush.bf16.msra.mxu1 %v2401_v20  ;;  %1026 = vmatpush.bf16.msra.mxu2 %v2497_v55  ;;  %v2601_v20 = vor.u32 %v3278_v18, %v2600_v17  ;;  %v2602_v55 = vld [vmem:[%s4997_s3 + $0x1d4] sm:$0xf0]  ;;  %v3268_v18 = vld [vmem:[%s4997_s3 + $0x184] sm:$0xf] }
  0x5a   :  { %v2605_v58 = vor.u32 %v3277_v54, %v2602_v55  ;;  %v2633_v54 = vor.u32 %v3285_v48, %v2632_v47  ;;  %v2620_v55 = vld [vmem:[%s4997_s3 + $0x1e8] sm:$0xf]  ;;  %v3299_v47 = vld [vmem:[%s4999_s5 + $0x34] sm:$0xf0] }
  0x5b   :  { %997 = vmatpush.bf16.msra.mxu0 %v2601_v20  ;;  %v2428_v20 = vld [vmem:[%s4997_s3 + $0x68] sm:$0xf] }
  0x5d   :  { %1013 = vmatpush.bf16.msra.mxu1 %v2389_v23  ;;  %1027 = vmatpush.bf16.msra.mxu2 %v2485_v3  ;;  %v3286_v23 = vld [vmem:[%s4997_s3 + $0x214] sm:$0xf]  ;;  %v3240_v3 = vld [vmem:[%s4997_s3 + $0xa0] sm:$0xf0] }
  0x5e   :  { %v2641_v25 = vor.u32 %v3286_v23, %v2638_v24  ;;  %v3291_v23 = vld [vmem:[%s4997_s3 + $0x238] sm:$0xf0]  ;;  %v2569_v24 = vor.u32 %v3268_v18, %v2566_v19  ;;  %v2716_v19 = vld [vmem:[%s4999_s5 + $0x70] sm:$0xf] }
  0x60   :  { %1036 = vmatpush.bf16.msra.mxu3 %v2641_v25  ;;  %v3234_v25 = vld [vmem:[%s4997_s3 + $0x70] sm:$0xf0] }
  0x61   :  { %1014 = vmatpush.bf16.msra.mxu1 %v2377_v27  ;;  %1028 = vmatpush.bf16.msra.mxu2 %v2473_v16  ;;  %v3275_v27 = vld [vmem:[%s4997_s3 + $0x1b8] sm:$0xf0]  ;;  %v2656_v16 = vld [vmem:[%s4997_s3 + $0x230] sm:$0xf] }
  0x62   :  { %v2589_v29 = vor.u32 %v3275_v27, %v2588_v26  ;;  %v2429_v26 = vor.u32 %v3234_v25, %v2428_v20  ;;  %v3307_v20 = vld [vmem:[%s4999_s5 + $0x74] sm:$0xf0]  ;;  %v2780_v25 = vld [vmem:[%s4999_s5 + $0xf0] sm:$0xf] }
  0x64   :  { %998 = vmatpush.bf16.msra.mxu0 %v2589_v29  ;;  %1037 = vmatpush.bf16.msra.mxu3 %v2629_v34  ;;  %v2657_v29 = vor.u32 %v3291_v23, %v2656_v16  ;;  %v2644_v34 = vld [vmem:[%s4997_s3 + $0x218] sm:$0xf]  ;;  %v3305_v23 = vld [vmem:[%s4999_s5 + $0x64] sm:$0xf0] }
  0x65   :  { %1063 = vmatpush.bf16.msrb.mxu1 %v2561_v38  ;;  %v2577_v38 = vor.u32 %v3272_v36, %v2576_v35  ;;  %v3288_v35 = vld [vmem:[%s4997_s3 + $0x220] sm:$0xf0] }
  0x68   :  { %999 = vmatpush.bf16.msra.mxu0 %v2577_v38  ;;  %1038 = vmatpush.bf16.msra.mxu3 %v2617_v46  ;;  %v2645_v46 = vor.u32 %v3288_v35, %v2644_v34  ;;  %v2692_v34 = vld [vmem:[%s4999_s5 + $0x40] sm:$0xf]  ;;  %v3301_v35 = vld [vmem:[%s4999_s5 + $0x44] sm:$0xf0] }
  0x69   :  { %1064 = vmatpush.bf16.msrb.mxu1 %v2549_v52  ;;  %v3246_v52 = vld [vmem:[%s4997_s3 + $0xd0] sm:$0xf0] }
  0x6a   :  { %v2477_v53 = vor.u32 %v3246_v52, %v2476_v49  ;;  %v3225_v52 = vld [vmem:[%s4997_s3 + $0x28] sm:$0xf0] }
  0x6c   :  { %1000 = vmatpush.bf16.msra.mxu0 %v2565_v51  ;;  %1039 = vmatpush.bf16.msra.mxu3 %v2605_v58  ;;  %v2392_v51 = vld [vmem:[%s4997_s3 + $0x20] sm:$0xf]  ;;  %v2380_v58 = vld [vmem:[%s4997_s3 + $0x8] sm:$0xf] }
  0x6d   :  { %1065 = vmatpush.bf16.msrb.mxu1 %v2537_v0  ;;  %v2452_v0 = vld [vmem:[%s4997_s3 + $0x98] sm:$0xf]  ;;  %v2381_v63 = vor.u32 %v3222_v59, %v2380_v58  ;;  %v3302_v58 = vld [vmem:[%s4999_s5 + $0x54] sm:$0xf]  ;;  %v2702_v59 = vld [vmem:[%s4999_s5 + $0x58] sm:$0xf0] }
  0x6e   :  { %v2453_v4 = vor.u32 %v3240_v3, %v2452_v0 }
  0x70   :  { %1049 = vmatpush.bf16.msrb.mxu0 %v2465_v61  ;;  %1040 = vmatpush.bf16.msra.mxu3 %v2593_v2  ;;  %v2608_v61 = vld [vmem:[%s4997_s3 + $0x1d0] sm:$0xf]  ;;  %v114_v2 = vperm.slane %v4104_v44, 2  ;;  %v3273_v44 = vld [vmem:[%s4997_s3 + $0x1a8] sm:$0xf0] }
  0x71   :  { %1066 = vmatpush.bf16.msrb.mxu1 %v2525_v11  ;;  %v3237_v11 = vld [vmem:[%s4997_s3 + $0x88] sm:$0xf0] }
  0x72   :  { %v2441_v45 = vor.u32 %v3237_v11, %v2440_v8  ;;  %v2584_v8 = vld [vmem:[%s4997_s3 + $0x1a0] sm:$0xf] }
  0x74   :  { %1050 = vmatpush.bf16.msrb.mxu0 %v2453_v4  ;;  %1041 = vmatpush.bf16.msra.mxu3 %v2581_v42  ;;  %v2596_v4 = vld [vmem:[%s4997_s3 + $0x1b8] sm:$0xf] }
  0x75   :  { %1067 = vmatpush.bf16.msrb.mxu1 %v2513_v22 }
  0x78   :  { %1051 = vmatpush.bf16.msrb.mxu0 %v2441_v45  ;;  %1042 = vmatpush.bf16.msra.mxu3 %v2569_v24  ;;  %v3270_v45 = vld [vmem:[%s4997_s3 + $0x190] sm:$0xf0] }
  0x79   :  { %1068 = vmatpush.bf16.msrb.mxu1 %v2501_v31  ;;  %v3231_v31 = vld [vmem:[%s4997_s3 + $0x58] sm:$0xf0] }
  0x7a   :  { %v2417_v36 = vor.u32 %v3231_v31, %v2416_v30  ;;  %v2772_v31 = vld [vmem:[%s4999_s5 + $0xe0] sm:$0xf] }
  0x7c   :  { %1052 = vmatpush.bf16.msrb.mxu0 %v2429_v26  ;;  %v3323_v26 = vld [vmem:[%s4999_s5 + $0xf4] sm:$0xf0] }
  0x7d   :  { %1069 = vmatpush.bf16.msrb.mxu1 %v2489_v40  ;;  %v3228_v40 = vld [vmem:[%s4997_s3 + $0x40] sm:$0xf0] }
  0x7e   :  { %v2405_v49 = vor.u32 %v3228_v40, %v2404_v39  ;;  %v2764_v40 = vld [vmem:[%s4999_s5 + $0xd0] sm:$0xf] }
  0x80   :  { %1053 = vmatpush.bf16.msrb.mxu0 %v2417_v36  ;;  %v2693_v36 = vor.u32 %v3301_v35, %v2692_v34  ;;  %v3337_v34 = vld [vmem:[%s4999_s5 + $0x164] sm:$0xf0]  ;;  %v3294_v35 = vld [vmem:[%s4999_s5 + $0x14] sm:$0xf] }
  0x81   :  { %1070 = vmatpush.bf16.msrb.mxu1 %v2477_v53 }
  0x84   :  { %1054 = vmatpush.bf16.msrb.mxu0 %v2405_v49  ;;  %v3304_v49 = vld [vmem:[%s4999_s5 + $0x64] sm:$0xf] }
  0xa0   :  { %v393_v57 = vpop.f32.mrf.mxu0 }
  0xa1   :  { %v394_v1 = vadd.f32 %v393_v57, %v112_v50  ;;  %v2393_v57 = vor.u32 %v3225_v52, %v2392_v51  ;;  %v2756_v51 = vld [vmem:[%s4999_s5 + $0xc0] sm:$0xf] }
  0xa3   :  { %v407_v60 = vpop.f32.mrf.mxu1  ;;  %1055 = vmatpush.bf16.msrb.mxu0 %v2393_v57 }
  0xa4   :  { %v408_v9 = vadd.f32 %v407_v60, %v394_v1  ;;  %v2621_v60 = vor.u32 %v3282_v56, %v2620_v55  ;;  %v2609_v1 = vor.u32 %v3279_v62, %v2608_v61  ;;  %v2676_v55 = vld [vmem:[%s4999_s5 + $0x20] sm:$0xf]  ;;  %v3297_v56 = vld [vmem:[%s4999_s5 + $0x24] sm:$0xf0]  ;;  %v2748_v61 = vld [vmem:[%s4999_s5 + $0xb0] sm:$0xf] }
  0xa5   :  { %v2677_v57 = vor.u32 %v3297_v56, %v2676_v55  ;;  %v3315_v62 = vld [vmem:[%s4999_s5 + $0xb4] sm:$0xf0]  ;;  %v2758_v55 = vld [vmem:[%s4999_s5 + $0xc8] sm:$0xf0] }
  0xa6   :  { %v468_v21 = vmax.f32 %v408_v9, 0.0 }
  0xa7   :  { %v421_v10 = vpop.f32.mrf.mxu2  ;;  %1056 = vmatpush.bf16.msrb.mxu0 %v2381_v63  ;;  %v2749_v63 = vor.u32 %v3315_v62, %v2748_v61  ;;  %v2820_v61 = vld [vmem:[%s4999_s5 + $0x140] sm:$0xf]  ;;  %v3333_v62 = vld [vmem:[%s4999_s5 + $0x144] sm:$0xf0] }
  0xa8   :  { %v395_v12 = vpop.f32.mrf.mxu0  ;;  %v422_v17 = vadd.f32 %v421_v10, %v113_v5  ;;  %v2585_v10 = vor.u32 %v3273_v44, %v2584_v8  ;;  %v2660_v8 = vld [vmem:[%s4999_s5] sm:$0xf]  ;;  %v3293_v44 = vld [vmem:[%s4999_s5 + $0x4] sm:$0xf0] }
  0xa9   :  { %v396_v13 = vadd.f32 %v395_v12, %v112_v50  ;;  %v435_v14 = vpop.f32.mrf.mxu3  ;;  %v2572_v12 = vld [vmem:[%s4997_s3 + $0x188] sm:$0xf] }
  0xaa   :  { %v436_v28 = vadd.f32 %v435_v14, %v422_v17 }
  0xab   :  { %v409_v15 = vpop.f32.mrf.mxu1 }
  0xac   :  { %v410_v22 = vadd.f32 %v409_v15, %v396_v13  ;;  %v469_v41 = vmax.f32 %v436_v28, 0.0  ;;  %v2573_v15 = vor.u32 %v3270_v45, %v2572_v12  ;;  %v2700_v28 = vld [vmem:[%s4999_s5 + $0x50] sm:$0xf]  ;;  %v3322_v12 = vld [vmem:[%s4999_s5 + $0xf4] sm:$0xf] }
  0xae   :  { %v471_v27 = vmax.f32 %v410_v22, 0.0  ;;  %v2708_v22 = vld [vmem:[%s4999_s5 + $0x60] sm:$0xf] }
  0xaf   :  { %v423_v33 = vpop.f32.mrf.mxu2  ;;  %v2709_v24 = vor.u32 %v3305_v23, %v2708_v22  ;;  %v2678_v22 = vld [vmem:[%s4999_s5 + $0x28] sm:$0xf0]  ;;  %v3320_v23 = vld [vmem:[%s4999_s5 + $0xe4] sm:$0xf] }
  0xb0   :  { %v4180_v32 = vpack.c.bf16 %v471_v27, %v468_v21  ;;  %v424_v37 = vadd.f32 %v423_v33, %v113_v5  ;;  %v3276_v5 = vld [vmem:[%s4997_s3 + $0x1c0] sm:$0xf0]  ;;  %v2717_v21 = vor.u32 %v3307_v20, %v2716_v19  ;;  %v2781_v27 = vor.u32 %v3323_v26, %v2780_v25  ;;  %v3339_v19 = vld [vmem:[%s4999_s5 + $0x174] sm:$0xf0] }
  0xb1   :  { %v437_v38 = vpop.f32.mrf.mxu3  ;;  %v2597_v6 = vor.u32 %v3276_v5, %v2596_v4  ;;  %v2694_v4 = vld [vmem:[%s4999_s5 + $0x48] sm:$0xf0]  ;;  %v2740_v5 = vld [vmem:[%s4999_s5 + $0xa0] sm:$0xf]  ;;  %v3296_v20 = vld [vmem:[%s4999_s5 + $0x24] sm:$0xf] }
  0xb2   :  { %973 = vmatmul.bf16.vlgmr.msrb.gmra.mxu2 %v4180_v32  ;;  %1015 = vmatmul.bf16.vlgmr.msra.gmra.mxu1 %v4180_v32  ;;  %v438_v43 = vadd.f32 %v437_v38, %v424_v37  ;;  %v3306_v37 = vld [vmem:[%s4999_s5 + $0x74] sm:$0xf]  ;;  %v2718_v38 = vld [vmem:[%s4999_s5 + $0x78] sm:$0xf0]  ;;  %v2681_v25 = vor.u32 %v3296_v20, %v2678_v22  ;;  %v3328_v20 = vld [vmem:[%s4999_s5 + $0x124] sm:$0xf] }
  0xb3   :  { %1077 = vmatpush.bf16.msrb.mxu2 %v2657_v29  ;;  %v3303_v29 = vld [vmem:[%s4999_s5 + $0x54] sm:$0xf0]  ;;  %v2721_v39 = vor.u32 %v3306_v37, %v2718_v38  ;;  %v2670_v37 = vld [vmem:[%s4999_s5 + $0x18] sm:$0xf0]  ;;  %v3318_v38 = vld [vmem:[%s4999_s5 + $0xd4] sm:$0xf] }
  0xb4   :  { %v472_v50 = vmax.f32 %v438_v43, 0.0  ;;  %v2701_v30 = vor.u32 %v3303_v29, %v2700_v28  ;;  %v3309_v28 = vld [vmem:[%s4999_s5 + $0x84] sm:$0xf0]  ;;  %v3338_v29 = vld [vmem:[%s4999_s5 + $0x174] sm:$0xf] }
  0xb6   :  { %v475_v53 = vpack.c.bf16 %v472_v50, %v469_v41  ;;  %v3319_v41 = vld [vmem:[%s4999_s5 + $0xd4] sm:$0xf0]  ;;  %v2710_v50 = vld [vmem:[%s4999_s5 + $0x68] sm:$0xf0] }
  0xb7   :  { %1078 = vmatpush.bf16.msrb.mxu2 %v2645_v46  ;;  %v2765_v43 = vor.u32 %v3319_v41, %v2764_v40  ;;  %v2684_v46 = vld [vmem:[%s4999_s5 + $0x30] sm:$0xf]  ;;  %v2713_v52 = vor.u32 %v3304_v49, %v2710_v50  ;;  %v2673_v40 = vor.u32 %v3294_v35, %v2670_v37  ;;  %v3335_v50 = vld [vmem:[%s4999_s5 + $0x154] sm:$0xf0]  ;;  %v2788_v37 = vld [vmem:[%s4999_s5 + $0x100] sm:$0xf] }
  0xb8   :  { %987 = vmatmul.bf16.vlgmr.msrb.gmra.mxu3 %v475_v53  ;;  %v2685_v48 = vor.u32 %v3299_v47, %v2684_v46  ;;  %v2838_v46 = vld [vmem:[%s4999_s5 + $0x168] sm:$0xf0]  ;;  %v2828_v49 = vld [vmem:[%s4999_s5 + $0x150] sm:$0xf] }
  0xb9   :  { %1394 = vmatpush.bf16.msrb.mxu3 %v2717_v21 }
  0xbb   :  { %1079 = vmatpush.bf16.msrb.mxu2 %v2633_v54 }
  0xbd   :  { %1395 = vmatpush.bf16.msrb.mxu3 %v2709_v24  ;;  %v2774_v24 = vld [vmem:[%s4999_s5 + $0xe8] sm:$0xf0] }
  0xbe   :  { %v2777_v26 = vor.u32 %v3320_v23, %v2774_v24  ;;  %v2796_v23 = vld [vmem:[%s4999_s5 + $0x110] sm:$0xf]  ;;  %v3327_v24 = vld [vmem:[%s4999_s5 + $0x114] sm:$0xf0] }
  0xbf   :  { %1080 = vmatpush.bf16.msrb.mxu2 %v2621_v60  ;;  %v2705_v60 = vor.u32 %v3302_v58, %v2702_v59  ;;  %v3334_v58 = vld [vmem:[%s4999_s5 + $0x154] sm:$0xf]  ;;  %v2830_v59 = vld [vmem:[%s4999_s5 + $0x158] sm:$0xf0] }
  0xc0   :  { %v449_v0 = vpop.f32.mrf.mxu0 }
  0xc1   :  { %v463_v3 = vpop.f32.mrf.mxu1  ;;  %v450_v7 = vadd.f32 %v449_v0, %v114_v2  ;;  %1396 = vmatpush.bf16.msrb.mxu3 %v2701_v30  ;;  %v2668_v0 = vld [vmem:[%s4999_s5 + $0x10] sm:$0xf] }
  0xc2   :  { %1029 = vmatmul.bf16.vlgmr.msra.gmra.mxu2 %v475_v53  ;;  %1071 = vmatmul.bf16.vlgmr.msrb.gmra.mxu1 %v475_v53  ;;  %v3317_v53 = vld [vmem:[%s4999_s5 + $0xc4] sm:$0xf0] }
  0xc3   :  { %1081 = vmatpush.bf16.msrb.mxu2 %v2609_v1  ;;  %v464_v42 = vadd.f32 %v463_v3, %v450_v7  ;;  %v2757_v54 = vor.u32 %v3317_v53, %v2756_v51  ;;  %v3295_v1 = vld [vmem:[%s4999_s5 + $0x14] sm:$0xf0]  ;;  %v3300_v3 = vld [vmem:[%s4999_s5 + $0x44] sm:$0xf]  ;;  %v3313_v7 = vld [vmem:[%s4999_s5 + $0xa4] sm:$0xf0] }
  0xc4   :  { %v3292_v51 = vld [vmem:[%s4999_s5 + $0x4] sm:$0xf]  ;;  %v2662_v53 = vld [vmem:[%s4999_s5 + $0x8] sm:$0xf0] }
  0xc5   :  { %v470_v16 = vmax.f32 %v464_v42, 0.0  ;;  %1397 = vmatpush.bf16.msrb.mxu3 %v2693_v36  ;;  %v3298_v42 = vld [vmem:[%s4999_s5 + $0x34] sm:$0xf]  ;;  %v2665_v56 = vor.u32 %v3292_v51, %v2662_v53  ;;  %v3355_v53 = vld [vmem:[%s5001_s7 + $0x74] sm:$0xf0] }
  0xc7   :  { %1082 = vmatpush.bf16.msrb.mxu2 %v2597_v6  ;;  %v2697_v6 = vor.u32 %v3300_v3, %v2694_v4  ;;  %v3332_v3 = vld [vmem:[%s4999_s5 + $0x144] sm:$0xf]  ;;  %v2822_v4 = vld [vmem:[%s4999_s5 + $0x148] sm:$0xf0] }
  0xc8   :  { %v451_v9 = vpop.f32.mrf.mxu0 }
  0xc9   :  { %v452_v11 = vadd.f32 %v451_v9, %v114_v2  ;;  %v465_v13 = vpop.f32.mrf.mxu1  ;;  %1398 = vmatpush.bf16.msrb.mxu3 %v2685_v48  ;;  %v2669_v2 = vor.u32 %v3295_v1, %v2668_v0  ;;  %v2741_v9 = vor.u32 %v3313_v7, %v2740_v5  ;;  %v2821_v0 = vor.u32 %v3333_v62, %v2820_v61  ;;  %v2750_v1 = vld [vmem:[%s4999_s5 + $0xb8] sm:$0xf0]  ;;  %v3331_v7 = vld [vmem:[%s4999_s5 + $0x134] sm:$0xf0]  ;;  %v3354_v62 = vld [vmem:[%s5001_s7 + $0x74] sm:$0xf] }
  0xca   :  { %v2825_v5 = vor.u32 %v3332_v3, %v2822_v4 }
  0xcb   :  { %v466_v14 = vadd.f32 %v465_v13, %v452_v11  ;;  %1083 = vmatpush.bf16.msrb.mxu2 %v2585_v10  ;;  %v2661_v10 = vor.u32 %v3293_v44, %v2660_v8  ;;  %v2686_v11 = vld [vmem:[%s4999_s5 + $0x38] sm:$0xf0]  ;;  %v3312_v8 = vld [vmem:[%s4999_s5 + $0xa4] sm:$0xf] }
  0xcc   :  { %v2689_v45 = vor.u32 %v3298_v42, %v2686_v11  ;;  %v2782_v13 = vld [vmem:[%s4999_s5 + $0xf8] sm:$0xf0] }
  0xcd   :  { %v473_v17 = vmax.f32 %v466_v14, 0.0  ;;  %1399 = vmatpush.bf16.msrb.mxu3 %v2677_v57  ;;  %v2732_v14 = vld [vmem:[%s4999_s5 + $0x90] sm:$0xf] }
  0xcf   :  { %v476_v18 = vpack.c.bf16 %v473_v17, %v470_v16  ;;  %1084 = vmatpush.bf16.msrb.mxu2 %v2573_v15  ;;  %v3311_v15 = vld [vmem:[%s4999_s5 + $0x94] sm:$0xf0]  ;;  %v2785_v16 = vor.u32 %v3322_v12, %v2782_v13  ;;  %v3330_v12 = vld [vmem:[%s4999_s5 + $0x134] sm:$0xf] }
  0xd0   :  { %v2733_v17 = vor.u32 %v3311_v15, %v2732_v14  ;;  %v2804_v14 = vld [vmem:[%s4999_s5 + $0x120] sm:$0xf]  ;;  %v3329_v15 = vld [vmem:[%s4999_s5 + $0x124] sm:$0xf0] }
  0xd1   :  { %1001 = vmatmul.bf16.vlgmr.msra.gmra.mxu0 %v476_v18  ;;  %1043 = vmatmul.bf16.vlgmr.msra.gmra.mxu3 %v476_v18 }
  0xd2   :  { %1085 = vmatmul.bf16.vlgmr.msrb.gmra.mxu2 %v476_v18  ;;  %1408 = vmatpush.bf16.msra.mxu0 %v2781_v27  ;;  %v2844_v18 = vld [vmem:[%s4999_s5 + $0x170] sm:$0xf]  ;;  %v2724_v27 = vld [vmem:[%s4999_s5 + $0x80] sm:$0xf] }
  0xd3   :  { %1436 = vmatpush.bf16.msra.mxu2 %v2721_v39  ;;  %1400 = vmatpush.bf16.msrb.mxu3 %v2669_v2  ;;  %v2845_v21 = vor.u32 %v3339_v19, %v2844_v18  ;;  %v2725_v30 = vor.u32 %v3309_v28, %v2724_v27  ;;  %v2766_v39 = vld [vmem:[%s4999_s5 + $0xd8] sm:$0xf0]  ;;  %v2726_v27 = vld [vmem:[%s4999_s5 + $0x88] sm:$0xf0]  ;;  %v4521_v28 = vld [vmem:[%s5000_s4] sm:$0x7] }
  0xd4   :  { %v2769_v41 = vor.u32 %v3318_v38, %v2766_v39  ;;  %v2734_v18 = vld [vmem:[%s4999_s5 + $0x98] sm:$0xf0]  ;;  %v3325_v38 = vld [vmem:[%s4999_s5 + $0x104] sm:$0xf0] }
  0xd5   :  { %1422 = vmatpush.bf16.msra.mxu1 %v2845_v21  ;;  %v2806_v21 = vld [vmem:[%s4999_s5 + $0x128] sm:$0xf0]  ;;  %v2789_v39 = vor.u32 %v3325_v38, %v2788_v37  ;;  %v2892_v38 = vld [vmem:[%s5001_s7 + $0x50] sm:$0xf] }
  0xd6   :  { %v2809_v22 = vor.u32 %v3328_v20, %v2806_v21 }
  0xd7   :  { %1437 = vmatpush.bf16.msra.mxu2 %v2713_v52  ;;  %1401 = vmatpush.bf16.msrb.mxu3 %v2661_v10  ;;  %v2829_v52 = vor.u32 %v3335_v50, %v2828_v49  ;;  %v576_v49 = vperm.slane %v4521_v28, 1 }
  0xdb   :  { %1438 = vmatpush.bf16.msra.mxu2 %v2705_v60  ;;  %1450 = vmatpush.bf16.msra.mxu3 %v2785_v16  ;;  %v2833_v60 = vor.u32 %v3334_v58, %v2830_v59  ;;  %v3310_v16 = vld [vmem:[%s4999_s5 + $0x94] sm:$0xf] }
  0xdc   :  { %v2737_v19 = vor.u32 %v3310_v16, %v2734_v18 }
  0xdf   :  { %1439 = vmatpush.bf16.msra.mxu2 %v2697_v6  ;;  %1451 = vmatpush.bf16.msra.mxu3 %v2777_v26  ;;  %v2812_v6 = vld [vmem:[%s4999_s5 + $0x130] sm:$0xf]  ;;  %v2797_v26 = vor.u32 %v3327_v24, %v2796_v23 }
  0xe0   :  { %v2813_v44 = vor.u32 %v3331_v7, %v2812_v6 }
  0xe1   :  { %1057 = vmatmul.bf16.vlgmr.msrb.gmra.mxu0 %v4180_v32  ;;  %v3321_v32 = vld [vmem:[%s4999_s5 + $0xe4] sm:$0xf0] }
  0xe2   :  { %v2773_v33 = vor.u32 %v3321_v32, %v2772_v31  ;;  %v2846_v31 = vld [vmem:[%s4999_s5 + $0x178] sm:$0xf0] }
  0xe3   :  { %1440 = vmatpush.bf16.msra.mxu2 %v2689_v45  ;;  %v2849_v32 = vor.u32 %v3338_v29, %v2846_v31  ;;  %1452 = vmatpush.bf16.msra.mxu3 %v2769_v41  ;;  %v2814_v45 = vld [vmem:[%s4999_s5 + $0x138] sm:$0xf0]  ;;  %v3326_v31 = vld [vmem:[%s4999_s5 + $0x114] sm:$0xf]  ;;  %v3324_v41 = vld [vmem:[%s4999_s5 + $0x104] sm:$0xf] }
  0xe4   :  { %1409 = vmatpush.bf16.msra.mxu0 %v2773_v33  ;;  %v2836_v33 = vld [vmem:[%s4999_s5 + $0x160] sm:$0xf]  ;;  %v2817_v13 = vor.u32 %v3330_v12, %v2814_v45 }
  0xe5   :  { %v2837_v36 = vor.u32 %v3337_v34, %v2836_v33  ;;  %v575_v33 = vperm.slane %v4521_v28, 0 }
  0xe7   :  { %1441 = vmatpush.bf16.msra.mxu2 %v2681_v25  ;;  %1423 = vmatpush.bf16.msra.mxu1 %v2837_v36  ;;  %v3308_v25 = vld [vmem:[%s4999_s5 + $0x84] sm:$0xf] }
  0xe8   :  { %1410 = vmatpush.bf16.msra.mxu0 %v2765_v43  ;;  %v3336_v43 = vld [vmem:[%s4999_s5 + $0x164] sm:$0xf] }
  0xe9   :  { %v2841_v47 = vor.u32 %v3336_v43, %v2838_v46  ;;  %v2790_v43 = vld [vmem:[%s4999_s5 + $0x108] sm:$0xf0] }
  0xeb   :  { %1442 = vmatpush.bf16.msra.mxu2 %v2673_v40  ;;  %1424 = vmatpush.bf16.msra.mxu1 %v2829_v52  ;;  %v2908_v52 = vld [vmem:[%s5001_s7 + $0x70] sm:$0xf] }
  0xec   :  { %1411 = vmatpush.bf16.msra.mxu0 %v2757_v54  ;;  %v3316_v54 = vld [vmem:[%s4999_s5 + $0xc4] sm:$0xf] }
  0xed   :  { %v2761_v57 = vor.u32 %v3316_v54, %v2758_v55 }
  0xef   :  { %1443 = vmatpush.bf16.msra.mxu2 %v2665_v56  ;;  %1453 = vmatpush.bf16.msra.mxu3 %v2761_v57  ;;  %v2909_v56 = vor.u32 %v3355_v53, %v2908_v52  ;;  %v2966_v52 = vld [vmem:[%s5001_s7 + $0xe8] sm:$0xf0] }
  0xf0   :  { %1412 = vmatpush.bf16.msra.mxu0 %v2749_v63  ;;  %v3314_v63 = vld [vmem:[%s4999_s5 + $0xb4] sm:$0xf]  ;;  %1425 = vmatpush.bf16.msra.mxu1 %v2821_v0 }
  0xf1   :  { %v2753_v2 = vor.u32 %v3314_v63, %v2750_v1  ;;  %v2910_v63 = vld [vmem:[%s5001_s7 + $0x78] sm:$0xf0] }
  0xf2   :  { %v2913_v4 = vor.u32 %v3354_v62, %v2910_v63  ;;  %v3366_v62 = vld [vmem:[%s5001_s7 + $0xd4] sm:$0xf]  ;;  %v2958_v63 = vld [vmem:[%s5001_s7 + $0xd8] sm:$0xf0] }
  0xf3   :  { %1454 = vmatpush.bf16.msra.mxu3 %v2753_v2 }
  0xf4   :  { %1413 = vmatpush.bf16.msra.mxu0 %v2741_v9  ;;  %v2742_v9 = vld [vmem:[%s4999_s5 + $0xa8] sm:$0xf0]  ;;  %1426 = vmatpush.bf16.msra.mxu1 %v2813_v44 }
  0xf5   :  { %v2745_v11 = vor.u32 %v3312_v8, %v2742_v9  ;;  %v577_v9 = vperm.slane %v4521_v28, 2 }
  0xf7   :  { %1455 = vmatpush.bf16.msra.mxu3 %v2745_v11 }
  0xf8   :  { %1414 = vmatpush.bf16.msra.mxu0 %v2733_v17  ;;  %v2805_v17 = vor.u32 %v3329_v15, %v2804_v14 }
  0xfa   :  { %1427 = vmatpush.bf16.msra.mxu1 %v2805_v17 }
  0xfb   :  { %1456 = vmatpush.bf16.msra.mxu3 %v2737_v19 }
  0xfc   :  { %1415 = vmatpush.bf16.msra.mxu0 %v2725_v30  ;;  %v2729_v30 = vor.u32 %v3308_v25, %v2726_v27  ;;  %v3353_v27 = vld [vmem:[%s5001_s7 + $0x64] sm:$0xf0] }
  0xfe   :  { %1428 = vmatpush.bf16.msra.mxu1 %v2797_v26  ;;  %v2900_v26 = vld [vmem:[%s5001_s7 + $0x60] sm:$0xf] }
  0xff   :  { %1457 = vmatpush.bf16.msra.mxu3 %v2729_v30  ;;  %v2901_v28 = vor.u32 %v3353_v27, %v2900_v26  ;;  %v3371_v30 = vld [vmem:[%s5001_s7 + $0xf4] sm:$0xf0]  ;;  %v3361_v26 = vld [vmem:[%s5001_s7 + $0xa4] sm:$0xf0]  ;;  %v3342_v27 = vld [vmem:[%s5001_s7 + $0x14] sm:$0xf] }
 0x100   :  { %1464 = vmatpush.bf16.msrb.mxu0 %v2849_v32  ;;  %v2798_v32 = vld [vmem:[%s4999_s5 + $0x118] sm:$0xf0] }
 0x101   :  { %v2801_v34 = vor.u32 %v3326_v31, %v2798_v32  ;;  %v3352_v31 = vld [vmem:[%s5001_s7 + $0x64] sm:$0xf] }
 0x102   :  { %1429 = vmatpush.bf16.msra.mxu1 %v2789_v39  ;;  %v3351_v39 = vld [vmem:[%s5001_s7 + $0x54] sm:$0xf0] }
 0x104   :  { %1465 = vmatpush.bf16.msrb.mxu0 %v2841_v47  ;;  %v2793_v47 = vor.u32 %v3324_v41, %v2790_v43  ;;  %v2893_v41 = vor.u32 %v3351_v39, %v2892_v38  ;;  %v3369_v43 = vld [vmem:[%s5001_s7 + $0xe4] sm:$0xf0]  ;;  %v3359_v38 = vld [vmem:[%s5001_s7 + $0x94] sm:$0xf0]  ;;  %v3340_v39 = vld [vmem:[%s5001_s7 + $0x4] sm:$0xf] }
 0x106   :  { %1682 = vmatpush.bf16.msrb.mxu1 %v2909_v56  ;;  %v2956_v56 = vld [vmem:[%s5001_s7 + $0xd0] sm:$0xf] }
 0x108   :  { %1466 = vmatpush.bf16.msrb.mxu0 %v2833_v60 }
 0x10a   :  { %1683 = vmatpush.bf16.msrb.mxu1 %v2901_v28  ;;  %v2862_v28 = vld [vmem:[%s5001_s7 + $0x18] sm:$0xf0] }
 0x10c   :  { %1467 = vmatpush.bf16.msrb.mxu0 %v2825_v5 }
 0x10e   :  { %1684 = vmatpush.bf16.msrb.mxu1 %v2893_v41 }
 0x110   :  { %1468 = vmatpush.bf16.msrb.mxu0 %v2817_v13 }
 0x114   :  { %1469 = vmatpush.bf16.msrb.mxu0 %v2809_v22 }
 0x118   :  { %1470 = vmatpush.bf16.msrb.mxu0 %v2801_v34  ;;  %v3370_v34 = vld [vmem:[%s5001_s7 + $0xf4] sm:$0xf] }
 0x11c   :  { %1471 = vmatpush.bf16.msrb.mxu0 %v2793_v47  ;;  %v2894_v47 = vld [vmem:[%s5001_s7 + $0x58] sm:$0xf0] }
 0x12f   :  { %v1016_v29 = vpop.f32.mrf.mxu1 }
 0x130   :  { %v1017_v60 = vadd.f32 %v1016_v29, %v576_v49  ;;  %v2972_v29 = vld [vmem:[%s5001_s7 + $0xf0] sm:$0xf] }
 0x131   :  { %v2973_v32 = vor.u32 %v3371_v30, %v2972_v29  ;;  %v2865_v30 = vor.u32 %v3342_v27, %v2862_v28 }
 0x133   :  { %1696 = vmatpush.bf16.msrb.mxu2 %v2973_v32  ;;  %v2934_v32 = vld [vmem:[%s5001_s7 + $0xa8] sm:$0xf0] }
 0x135   :  { %v4426_v48 = vpop.f32.mrf.mxu2 }
 0x136   :  { %v975_v46 = vadd.f32 %v4426_v48, %v575_v33 }
 0x137   :  { %v1018_v54 = vpop.f32.mrf.mxu1 }
 0x138   :  { %v1019_v0 = vadd.f32 %v1018_v54, %v576_v49  ;;  %v2884_v54 = vld [vmem:[%s5001_s7 + $0x40] sm:$0xf] }
 0x13b   :  { %v988_v10 = vpop.f32.mrf.mxu3 }
 0x13c   :  { %v989_v50 = vadd.f32 %v988_v10, %v975_v46  ;;  %v3350_v46 = vld [vmem:[%s5001_s7 + $0x54] sm:$0xf] }
 0x13d   :  { %v976_v42 = vpop.f32.mrf.mxu2 }
 0x13e   :  { %v977_v51 = vadd.f32 %v976_v42, %v575_v33  ;;  %v2902_v33 = vld [vmem:[%s5001_s7 + $0x68] sm:$0xf0] }
 0x13f   :  { %v1072_v10 = vpop.f32.mrf.mxu1 }
 0x143   :  { %v990_v35 = vpop.f32.mrf.mxu3 }
 0x144   :  { %v991_v57 = vadd.f32 %v990_v35, %v977_v51  ;;  %v2974_v35 = vld [vmem:[%s5001_s7 + $0xf8] sm:$0xf0]  ;;  %v3368_v51 = vld [vmem:[%s5001_s7 + $0xe4] sm:$0xf] }
 0x145   :  { %v1030_v36 = vpop.f32.mrf.mxu2  ;;  %v2977_v37 = vor.u32 %v3370_v34, %v2974_v35  ;;  %v2969_v53 = vor.u32 %v3368_v51, %v2966_v52  ;;  %v2852_v34 = vld [vmem:[%s5001_s7] sm:$0xf]  ;;  %v3341_v35 = vld [vmem:[%s5001_s7 + $0x4] sm:$0xf0]  ;;  %v3356_v52 = vld [vmem:[%s5001_s7 + $0x84] sm:$0xf] }
 0x146   :  { %v1031_v1 = vadd.f32 %v1030_v36, %v1017_v60  ;;  %v2905_v36 = vor.u32 %v3352_v31, %v2902_v33  ;;  %v3360_v31 = vld [vmem:[%s5001_s7 + $0xa4] sm:$0xf]  ;;  %v3357_v51 = vld [vmem:[%s5001_s7 + $0x84] sm:$0xf0] }
 0x147   :  { %v1074_v18 = vpop.f32.mrf.mxu1  ;;  %v2937_v33 = vor.u32 %v3360_v31, %v2934_v32 }
 0x14d   :  { %v1032_v58 = vpop.f32.mrf.mxu2 }
 0x14e   :  { %v1002_v40 = vpop.f32.mrf.mxu0  ;;  %v1033_v5 = vadd.f32 %v1032_v58, %v1019_v0  ;;  %v3348_v58 = vld [vmem:[%s5001_s7 + $0x44] sm:$0xf]  ;;  %v2961_v0 = vor.u32 %v3366_v62, %v2958_v63  ;;  %v3036_v62 = vld [vmem:[%s5002_s9 + $0x70] sm:$0xf]  ;;  %v3387_v63 = vld [vmem:[%s5002_s9 + $0x74] sm:$0xf0] }
 0x14f   :  { %v1003_v48 = vadd.f32 %v1002_v40, %v989_v50  ;;  %v2964_v40 = vld [vmem:[%s5001_s7 + $0xe0] sm:$0xf]  ;;  %v2897_v50 = vor.u32 %v3350_v46, %v2894_v47  ;;  %v3358_v46 = vld [vmem:[%s5001_s7 + $0x94] sm:$0xf]  ;;  %v2926_v47 = vld [vmem:[%s5001_s7 + $0x98] sm:$0xf0] }
 0x150   :  { %v2965_v49 = vor.u32 %v3369_v43, %v2964_v40  ;;  %v2854_v40 = vld [vmem:[%s5001_s7 + $0x8] sm:$0xf0] }
 0x151   :  { %v1091_v2 = vmax.f32 %v1003_v48, 0.0  ;;  %v3367_v48 = vld [vmem:[%s5001_s7 + $0xd4] sm:$0xf0]  ;;  %v2857_v43 = vor.u32 %v3340_v39, %v2854_v40 }
 0x152   :  { %1697 = vmatpush.bf16.msrb.mxu2 %v2965_v49  ;;  %v2957_v60 = vor.u32 %v3367_v48, %v2956_v56  ;;  %v2929_v49 = vor.u32 %v3358_v46, %v2926_v47  ;;  %v3100_v48 = vld [vmem:[%s5002_s9 + $0xf0] sm:$0xf] }
 0x154   :  { %v1044_v55 = vpop.f32.mrf.mxu3 }
 0x155   :  { %v1045_v6 = vadd.f32 %v1044_v55, %v1031_v1  ;;  %v1086_v45 = vpop.f32.mrf.mxu2  ;;  %v3349_v55 = vld [vmem:[%s5001_s7 + $0x44] sm:$0xf0]  ;;  %v2876_v1 = vld [vmem:[%s5001_s7 + $0x30] sm:$0xf] }
 0x156   :  { %v1004_v59 = vpop.f32.mrf.mxu0  ;;  %1698 = vmatpush.bf16.msrb.mxu2 %v2957_v60 }
 0x157   :  { %v1005_v61 = vadd.f32 %v1004_v59, %v991_v57  ;;  %v1092_v11 = vmax.f32 %v1045_v6, 0.0  ;;  %v2885_v57 = vor.u32 %v3349_v55, %v2884_v54  ;;  %v2886_v59 = vld [vmem:[%s5001_s7 + $0x48] sm:$0xf0]  ;;  %v3346_v6 = vld [vmem:[%s5001_s7 + $0x34] sm:$0xf] }
 0x158   :  { %v2918_v54 = vld [vmem:[%s5001_s7 + $0x88] sm:$0xf0] }
 0x159   :  { %v1094_v3 = vmax.f32 %v1005_v61, 0.0  ;;  %v2889_v61 = vor.u32 %v3348_v58, %v2886_v59  ;;  %1685 = vmatpush.bf16.msrb.mxu1 %v2885_v57  ;;  %v2921_v55 = vor.u32 %v3356_v52, %v2918_v54  ;;  %v3403_v58 = vld [vmem:[%s5002_s9 + $0xf4] sm:$0xf0]  ;;  %v3402_v59 = vld [vmem:[%s5002_s9 + $0xf4] sm:$0xf] }
 0x15a   :  { %v3101_v60 = vor.u32 %v3403_v58, %v3100_v48  ;;  %v3022_v58 = vld [vmem:[%s5002_s9 + $0x58] sm:$0xf0] }
 0x15b   :  { %v1097_v7 = vpack.c.bf16 %v1094_v3, %v1091_v2  ;;  %v3347_v2 = vld [vmem:[%s5001_s7 + $0x34] sm:$0xf0]  ;;  %v2948_v3 = vld [vmem:[%s5001_s7 + $0xc0] sm:$0xf] }
 0x15c   :  { %v1046_v8 = vpop.f32.mrf.mxu3 }
 0x15d   :  { %v1047_v44 = vadd.f32 %v1046_v8, %v1033_v5  ;;  %1402 = vmatmul.bf16.vlgmr.msrb.gmra.mxu3 %v1097_v7  ;;  %1444 = vmatmul.bf16.vlgmr.msra.gmra.mxu2 %v1097_v7  ;;  %v1088_v21 = vpop.f32.mrf.mxu2  ;;  %v3365_v5 = vld [vmem:[%s5001_s7 + $0xc4] sm:$0xf0]  ;;  %v2878_v7 = vld [vmem:[%s5001_s7 + $0x38] sm:$0xf0] }
 0x15e   :  { %v1058_v42 = vpop.f32.mrf.mxu0  ;;  %1710 = vmatpush.bf16.msrb.mxu3 %v2913_v4  ;;  %v2877_v4 = vor.u32 %v3347_v2, %v2876_v1  ;;  %v2949_v8 = vor.u32 %v3365_v5, %v2948_v3  ;;  %v3037_v1 = vor.u32 %v3387_v63, %v3036_v62  ;;  %v3386_v2 = vld [vmem:[%s5002_s9 + $0x74] sm:$0xf]  ;;  %v3038_v3 = vld [vmem:[%s5002_s9 + $0x78] sm:$0xf0]  ;;  %v3396_v62 = vld [vmem:[%s5002_s9 + $0xc4] sm:$0xf] }
 0x15f   :  { %v1095_v12 = vmax.f32 %v1047_v44, 0.0  ;;  %v1059_v14 = vadd.f32 %v1058_v42, %v577_v9  ;;  %v2881_v44 = vor.u32 %v3346_v6, %v2878_v7  ;;  %v3041_v5 = vor.u32 %v3386_v2, %v3038_v3  ;;  %v3401_v6 = vld [vmem:[%s5002_s9 + $0xe4] sm:$0xf0]  ;;  %v3400_v7 = vld [vmem:[%s5002_s9 + $0xe4] sm:$0xf] }
 0x160   :  { %1686 = vmatpush.bf16.msrb.mxu1 %v2877_v4  ;;  %1699 = vmatpush.bf16.msrb.mxu2 %v2949_v8  ;;  %v3092_v4 = vld [vmem:[%s5002_s9 + $0xe0] sm:$0xf]  ;;  %v3094_v8 = vld [vmem:[%s5002_s9 + $0xe8] sm:$0xf0]  ;;  %v3381_v3 = vld [vmem:[%s5002_s9 + $0x44] sm:$0xf0] }
 0x161   :  { %v1098_v13 = vpack.c.bf16 %v1095_v12, %v1092_v11  ;;  %v1073_v15 = vadd.f32 %v1072_v10, %v1059_v14  ;;  %v2950_v10 = vld [vmem:[%s5001_s7 + $0xc8] sm:$0xf0]  ;;  %v2868_v11 = vld [vmem:[%s5001_s7 + $0x20] sm:$0xf]  ;;  %v3345_v12 = vld [vmem:[%s5001_s7 + $0x24] sm:$0xf0] }
 0x162   :  { %1711 = vmatpush.bf16.msrb.mxu3 %v2905_v36  ;;  %v3363_v14 = vld [vmem:[%s5001_s7 + $0xb4] sm:$0xf0]  ;;  %v2924_v36 = vld [vmem:[%s5001_s7 + $0x90] sm:$0xf]  ;;  %v3012_v2 = vld [vmem:[%s5002_s9 + $0x40] sm:$0xf] }
 0x163   :  { %1416 = vmatmul.bf16.vlgmr.msra.gmra.mxu0 %v1098_v13  ;;  %v1087_v19 = vadd.f32 %v1086_v45, %v1073_v15  ;;  %v2940_v45 = vld [vmem:[%s5001_s7 + $0xb0] sm:$0xf]  ;;  %v3344_v15 = vld [vmem:[%s5001_s7 + $0x24] sm:$0xf]  ;;  %v2925_v41 = vor.u32 %v3359_v38, %v2924_v36 }
 0x164   :  { %1724 = vmatpush.bf16.msra.mxu0 %v2977_v37  ;;  %v2853_v37 = vor.u32 %v3341_v35, %v2852_v34 }
 0x165   :  { %v1093_v23 = vmax.f32 %v1087_v19, 0.0  ;;  %v3362_v19 = vld [vmem:[%s5001_s7 + $0xb4] sm:$0xf] }
 0x166   :  { %v1060_v16 = vpop.f32.mrf.mxu0  ;;  %1712 = vmatpush.bf16.msrb.mxu3 %v2897_v50  ;;  %v2916_v50 = vld [vmem:[%s5001_s7 + $0x80] sm:$0xf] }
 0x167   :  { %v1061_v17 = vadd.f32 %v1060_v16, %v577_v9  ;;  %v3364_v9 = vld [vmem:[%s5001_s7 + $0xc4] sm:$0xf]  ;;  %v2870_v16 = vld [vmem:[%s5001_s7 + $0x28] sm:$0xf0] }
 0x168   :  { %1725 = vmatpush.bf16.msra.mxu0 %v2969_v53  ;;  %v2953_v42 = vor.u32 %v3364_v9, %v2950_v10  ;;  %v2917_v53 = vor.u32 %v3357_v51, %v2916_v50  ;;  %v3097_v9 = vor.u32 %v3400_v7, %v3094_v8  ;;  %v3028_v10 = vld [vmem:[%s5002_s9 + $0x60] sm:$0xf]  ;;  %v3399_v50 = vld [vmem:[%s5002_s9 + $0xd4] sm:$0xf0]  ;;  %v3398_v51 = vld [vmem:[%s5002_s9 + $0xd4] sm:$0xf] }
 0x169   :  { %v1075_v20 = vadd.f32 %v1074_v18, %v1061_v17  ;;  %v2941_v17 = vor.u32 %v3363_v14, %v2940_v45  ;;  %v2873_v18 = vor.u32 %v3344_v15, %v2870_v16  ;;  %v3030_v45 = vld [vmem:[%s5002_s9 + $0x68] sm:$0xf0]  ;;  %v1148_v14 = vld [vmem:[%s5003_s6] sm:$0x3]  ;;  %v3068_v8 = vld [vmem:[%s5002_s9 + $0xb0] sm:$0xf] }
 0x16a   :  { %1713 = vmatpush.bf16.msrb.mxu3 %v2889_v61  ;;  %v3102_v61 = vld [vmem:[%s5002_s9 + $0xf8] sm:$0xf0] }
 0x16b   :  { %v1089_v22 = vadd.f32 %v1088_v21, %v1075_v20  ;;  %v2942_v20 = vld [vmem:[%s5001_s7 + $0xb8] sm:$0xf0]  ;;  %1700 = vmatpush.bf16.msrb.mxu2 %v2941_v17 }
 0x16c   :  { %1726 = vmatpush.bf16.msra.mxu0 %v2961_v0  ;;  %v2945_v21 = vor.u32 %v3362_v19, %v2942_v20  ;;  %v3105_v0 = vor.u32 %v3402_v59, %v3102_v61  ;;  %v3397_v61 = vld [vmem:[%s5002_s9 + $0xc4] sm:$0xf0] }
 0x16d   :  { %v1096_v24 = vmax.f32 %v1089_v22, 0.0  ;;  %1458 = vmatmul.bf16.vlgmr.msra.gmra.mxu3 %v1098_v13  ;;  %v2869_v13 = vor.u32 %v3345_v12, %v2868_v11  ;;  %v2860_v22 = vld [vmem:[%s5001_s7 + $0x10] sm:$0xf]  ;;  %v3384_v11 = vld [vmem:[%s5002_s9 + $0x64] sm:$0xf] }
 0x16e   :  { %1714 = vmatpush.bf16.msrb.mxu3 %v2881_v44  ;;  %v3093_v44 = vor.u32 %v3401_v6, %v3092_v4  ;;  %v3013_v4 = vor.u32 %v3381_v3, %v3012_v2  ;;  %v3014_v6 = vld [vmem:[%s5002_s9 + $0x48] sm:$0xf0] }
 0x16f   :  { %v1099_v25 = vpack.c.bf16 %v1096_v24, %v1093_v23  ;;  %1687 = vmatpush.bf16.msrb.mxu1 %v2869_v13  ;;  %v3343_v23 = vld [vmem:[%s5001_s7 + $0x14] sm:$0xf0]  ;;  %v2932_v24 = vld [vmem:[%s5001_s7 + $0xa0] sm:$0xf]  ;;  %v3033_v13 = vor.u32 %v3384_v11, %v3030_v45 }
 0x170   :  { %1727 = vmatpush.bf16.msra.mxu0 %v2953_v42  ;;  %v2933_v29 = vor.u32 %v3361_v26, %v2932_v24  ;;  %v3385_v42 = vld [vmem:[%s5002_s9 + $0x64] sm:$0xf0]  ;;  %v3379_v45 = vld [vmem:[%s5002_s9 + $0x34] sm:$0xf0] }
 0x171   :  { %1430 = vmatmul.bf16.vlgmr.msra.gmra.mxu1 %v1099_v25  ;;  %v3029_v12 = vor.u32 %v3385_v42, %v3028_v10  ;;  %v3070_v42 = vld [vmem:[%s5002_s9 + $0xb8] sm:$0xf0] }
 0x172   :  { %1715 = vmatpush.bf16.msrb.mxu3 %v2873_v18  ;;  %1701 = vmatpush.bf16.msrb.mxu2 %v2933_v29  ;;  %v1150_v18 = vperm.slane %v1148_v14, 0 }
 0x173   :  { %1472 = vmatmul.bf16.vlgmr.msrb.gmra.mxu0 %v1099_v25  ;;  %v2861_v25 = vor.u32 %v3343_v23, %v2860_v22 }
 0x174   :  { %1728 = vmatpush.bf16.msra.mxu0 %v2945_v21  ;;  %v1151_v21 = vperm.slane %v1148_v14, 1 }
 0x175   :  { %1688 = vmatpush.bf16.msrb.mxu1 %v2861_v25 }
 0x176   :  { %1716 = vmatpush.bf16.msrb.mxu3 %v2865_v30  ;;  %1702 = vmatpush.bf16.msrb.mxu2 %v2925_v41 }
 0x178   :  { %1729 = vmatpush.bf16.msra.mxu0 %v2937_v33 }
 0x179   :  { %1689 = vmatpush.bf16.msrb.mxu1 %v2853_v37 }
 0x17a   :  { %1717 = vmatpush.bf16.msrb.mxu3 %v2857_v43  ;;  %1703 = vmatpush.bf16.msrb.mxu2 %v2917_v53  ;;  %v3086_v53 = vld [vmem:[%s5002_s9 + $0xd8] sm:$0xf0] }
 0x17b   :  { %v3089_v54 = vor.u32 %v3398_v51, %v3086_v53  ;;  %v2980_v51 = vld [vmem:[%s5002_s9] sm:$0xf]  ;;  %v3372_v53 = vld [vmem:[%s5002_s9 + $0x4] sm:$0xf] }
 0x17c   :  { %1730 = vmatpush.bf16.msra.mxu0 %v2929_v49  ;;  %v3084_v49 = vld [vmem:[%s5002_s9 + $0xd0] sm:$0xf] }
 0x17d   :  { %1942 = vmatpush.bf16.msra.mxu1 %v3037_v1  ;;  %v3085_v52 = vor.u32 %v3399_v50, %v3084_v49  ;;  %v3046_v49 = vld [vmem:[%s5002_s9 + $0x88] sm:$0xf0] }
 0x17e   :  { %1956 = vmatpush.bf16.msra.mxu2 %v3101_v60  ;;  %1970 = vmatpush.bf16.msra.mxu3 %v3041_v5  ;;  %v3076_v60 = vld [vmem:[%s5002_s9 + $0xc0] sm:$0xf]  ;;  %v3380_v5 = vld [vmem:[%s5002_s9 + $0x44] sm:$0xf] }
 0x17f   :  { %v3077_v63 = vor.u32 %v3397_v61, %v3076_v60  ;;  %v3017_v7 = vor.u32 %v3380_v5, %v3014_v6  ;;  %v3409_v60 = vld [vmem:[%s5004_s11 + $0x28] sm:$0xff] }
 0x180   :  { %1731 = vmatpush.bf16.msra.mxu0 %v2921_v55  ;;  %v3020_v55 = vld [vmem:[%s5002_s9 + $0x50] sm:$0xf] }
 0x181   :  { %1943 = vmatpush.bf16.msra.mxu1 %v3029_v12  ;;  %v3004_v12 = vld [vmem:[%s5002_s9 + $0x30] sm:$0xf] }
 0x182   :  { %1957 = vmatpush.bf16.msra.mxu2 %v3093_v44  ;;  %1971 = vmatpush.bf16.msra.mxu3 %v3033_v13  ;;  %v3395_v44 = vld [vmem:[%s5002_s9 + $0xb4] sm:$0xf0]  ;;  %v3378_v13 = vld [vmem:[%s5002_s9 + $0x34] sm:$0xf]  ;;  %v3005_v14 = vor.u32 %v3379_v45, %v3004_v12 }
 0x183   :  { %v3069_v10 = vor.u32 %v3395_v44, %v3068_v8 }
 0x184   :  { %1984 = vmatpush.bf16.msrb.mxu0 %v3105_v0  ;;  %v3078_v0 = vld [vmem:[%s5002_s9 + $0xc8] sm:$0xf0] }
 0x185   :  { %v3081_v1 = vor.u32 %v3396_v62, %v3078_v0  ;;  %v1516_v62 = vld [vmem:[%s5005_s8] sm:$0x3] }
 0x186   :  { %1958 = vmatpush.bf16.msra.mxu2 %v3085_v52  ;;  %v3373_v52 = vld [vmem:[%s5002_s9 + $0x4] sm:$0xf0]  ;;  %v1518_v3 = vperm.slane %v1516_v62, 0 }
 0x188   :  { %1985 = vmatpush.bf16.msrb.mxu0 %v3097_v9  ;;  %v3394_v9 = vld [vmem:[%s5002_s9 + $0xb4] sm:$0xf] }
 0x189   :  { %v3073_v11 = vor.u32 %v3394_v9, %v3070_v42 }
 0x18a   :  { %1959 = vmatpush.bf16.msra.mxu2 %v3077_v63 }
 0x18c   :  { %1986 = vmatpush.bf16.msrb.mxu0 %v3089_v54  ;;  %v2981_v54 = vor.u32 %v3373_v52, %v2980_v51 }
 0x18e   :  { %1960 = vmatpush.bf16.msra.mxu2 %v3069_v10 }
 0x190   :  { %1987 = vmatpush.bf16.msrb.mxu0 %v3081_v1  ;;  %v1519_v1 = vperm.slane %v1516_v62, 1 }
 0x194   :  { %1988 = vmatpush.bf16.msrb.mxu0 %v3073_v11 }
 0x1e0   :  { %v1403_v56 = vpop.f32.mrf.mxu3  ;;  %v1417_v57 = vpop.f32.mrf.mxu0 }
 0x1e1   :  { %v1445_v17 = vpop.f32.mrf.mxu2  ;;  %v1404_v20 = vadd.f32 %v1403_v56, %v1150_v18  ;;  %v3383_v56 = vld [vmem:[%s5002_s9 + $0x54] sm:$0xf0] }
 0x1e2   :  { %v1446_v26 = vadd.f32 %v1445_v17, %v1151_v21  ;;  %v3021_v48 = vor.u32 %v3383_v56, %v3020_v55  ;;  %v3060_v17 = vld [vmem:[%s5002_s9 + $0xa0] sm:$0xf]  ;;  %v2982_v55 = vld [vmem:[%s5002_s9 + $0x8] sm:$0xf0] }
 0x1e3   :  { %v1418_v25 = vadd.f32 %v1417_v57, %v1404_v20  ;;  %v3382_v57 = vld [vmem:[%s5002_s9 + $0x54] sm:$0xf]  ;;  %v2985_v56 = vor.u32 %v3372_v53, %v2982_v55 }
 0x1e4   :  { %v3025_v59 = vor.u32 %v3382_v57, %v3022_v58  ;;  %1944 = vmatpush.bf16.msra.mxu1 %v3021_v48  ;;  %v3411_v57 = vld [vmem:[%s5004_s11 + $0x38] sm:$0xff]  ;;  %v3410_v58 = vld [vmem:[%s5004_s11 + $0x30] sm:$0xff] }
 0x1e5   :  { %v3419_v48 = vld [vmem:[%s5004_s11 + $0x78] sm:$0xff] }
 0x1e6   :  { %1972 = vmatpush.bf16.msra.mxu3 %v3025_v59  ;;  %v3418_v59 = vld [vmem:[%s5004_s11 + $0x70] sm:$0xff] }
 0x1e8   :  { %v1405_v15 = vpop.f32.mrf.mxu3  ;;  %v1419_v16 = vpop.f32.mrf.mxu0  ;;  %1945 = vmatpush.bf16.msra.mxu1 %v3013_v4 }
 0x1e9   :  { %v1406_v24 = vadd.f32 %v1405_v15, %v1150_v18  ;;  %v1447_v27 = vpop.f32.mrf.mxu2  ;;  %v3006_v15 = vld [vmem:[%s5002_s9 + $0x38] sm:$0xf0]  ;;  %v3393_v18 = vld [vmem:[%s5002_s9 + $0xa4] sm:$0xf0] }
 0x1ea   :  { %v1448_v32 = vadd.f32 %v1447_v27, %v1151_v21  ;;  %1973 = vmatpush.bf16.msra.mxu3 %v3017_v7  ;;  %v3061_v20 = vor.u32 %v3393_v18, %v3060_v17  ;;  %v3062_v21 = vld [vmem:[%s5002_s9 + $0xa8] sm:$0xf0] }
 0x1eb   :  { %v1420_v28 = vadd.f32 %v1419_v16, %v1406_v24  ;;  %v3009_v16 = vor.u32 %v3378_v13, %v3006_v15  ;;  %v3377_v24 = vld [vmem:[%s5002_s9 + $0x24] sm:$0xf0]  ;;  %v2998_v27 = vld [vmem:[%s5002_s9 + $0x28] sm:$0xf0] }
 0x1ec   :  { %1946 = vmatpush.bf16.msra.mxu1 %v3005_v14  ;;  %1961 = vmatpush.bf16.msra.mxu2 %v3061_v20  ;;  %v3417_v20 = vld [vmem:[%s5004_s11 + $0x68] sm:$0xff] }
 0x1ee   :  { %v1431_v19 = vpop.f32.mrf.mxu1  ;;  %1974 = vmatpush.bf16.msra.mxu3 %v3009_v16 }
 0x1ef   :  { %v1432_v29 = vadd.f32 %v1431_v19, %v1418_v25  ;;  %v3392_v19 = vld [vmem:[%s5002_s9 + $0xa4] sm:$0xf] }
 0x1f0   :  { %v1459_v22 = vpop.f32.mrf.mxu3  ;;  %v1473_v23 = vpop.f32.mrf.mxu0  ;;  %v3376_v25 = vld [vmem:[%s5002_s9 + $0x24] sm:$0xf] }
 0x1f1   :  { %v1460_v30 = vadd.f32 %v1459_v22, %v1446_v26  ;;  %v1478_v35 = vmax.f32 %v1432_v29, 0.0  ;;  %v3065_v22 = vor.u32 %v3392_v19, %v3062_v21  ;;  %v3052_v29 = vld [vmem:[%s5002_s9 + $0x90] sm:$0xf]  ;;  %v3408_v19 = vld [vmem:[%s5004_s11 + $0x20] sm:$0xff]  ;;  %v3407_v21 = vld [vmem:[%s5004_s11 + $0x18] sm:$0xff] }
 0x1f3   :  { %v1474_v36 = vadd.f32 %v1473_v23, %v1460_v30  ;;  %v2996_v23 = vld [vmem:[%s5002_s9 + $0x20] sm:$0xf]  ;;  %1989 = vmatpush.bf16.msrb.mxu0 %v3065_v22  ;;  %v3391_v30 = vld [vmem:[%s5002_s9 + $0x94] sm:$0xf0] }
 0x1f4   :  { %v2997_v26 = vor.u32 %v3377_v24, %v2996_v23  ;;  %v3416_v22 = vld [vmem:[%s5004_s11 + $0x60] sm:$0xff]  ;;  %v3406_v23 = vld [vmem:[%s5004_s11 + $0x10] sm:$0xff]  ;;  %v3415_v24 = vld [vmem:[%s5004_s11 + $0x58] sm:$0xff] }
 0x1f5   :  { %v1479_v43 = vmax.f32 %v1474_v36, 0.0  ;;  %v3375_v36 = vld [vmem:[%s5002_s9 + $0x14] sm:$0xf0] }
 0x1f6   :  { %v1433_v31 = vpop.f32.mrf.mxu1  ;;  %1947 = vmatpush.bf16.msra.mxu1 %v2997_v26  ;;  %v3414_v26 = vld [vmem:[%s5004_s11 + $0x50] sm:$0xff] }
 0x1f7   :  { %v1434_v33 = vadd.f32 %v1433_v31, %v1420_v28  ;;  %v3001_v28 = vor.u32 %v3376_v25, %v2998_v27  ;;  %v3390_v31 = vld [vmem:[%s5002_s9 + $0x94] sm:$0xf]  ;;  %v3405_v25 = vld [vmem:[%s5004_s11 + $0x8] sm:$0xff]  ;;  %v3404_v27 = vld [vmem:[%s5004_s11] sm:$0xff] }
 0x1f8   :  { %v1461_v34 = vpop.f32.mrf.mxu3  ;;  %v1475_v39 = vpop.f32.mrf.mxu0 }
 0x1f9   :  { %v1480_v37 = vmax.f32 %v1434_v33, 0.0  ;;  %v1462_v38 = vadd.f32 %v1461_v34, %v1448_v32  ;;  %v3053_v32 = vor.u32 %v3391_v30, %v3052_v29  ;;  %v3054_v33 = vld [vmem:[%s5002_s9 + $0x98] sm:$0xf0]  ;;  %1975 = vmatpush.bf16.msra.mxu3 %v3001_v28  ;;  %v3413_v28 = vld [vmem:[%s5004_s11 + $0x48] sm:$0xff]  ;;  %v3412_v29 = vld [vmem:[%s5004_s11 + $0x40] sm:$0xff] }
 0x1fa   :  { %v3057_v34 = vor.u32 %v3390_v31, %v3054_v33  ;;  %v1776_v31 = vld [vmem:[%s5007_s10] sm:$0x3] }
 0x1fb   :  { %v1482_v40 = vpack.c.bf16 %v1480_v37, %v1478_v35  ;;  %v1476_v41 = vadd.f32 %v1475_v39, %v1462_v38  ;;  %v2988_v35 = vld [vmem:[%s5002_s9 + $0x10] sm:$0xf]  ;;  %v3374_v37 = vld [vmem:[%s5002_s9 + $0x14] sm:$0xf]  ;;  %1962 = vmatpush.bf16.msra.mxu2 %v3053_v32  ;;  %v2990_v39 = vld [vmem:[%s5002_s9 + $0x18] sm:$0xf0] }
 0x1fc   :  { %v2989_v38 = vor.u32 %v3375_v36, %v2988_v35  ;;  %1990 = vmatpush.bf16.msrb.mxu0 %v3057_v34  ;;  %v1778_v33 = vperm.slane %v1776_v31, 0  ;;  %v1779_v36 = vperm.slane %v1776_v31, 1 }
 0x1fd   :  { %v1481_v46 = vmax.f32 %v1476_v41, 0.0  ;;  %1690 = vmatmul.bf16.vlgmr.msrb.gmra.mxu1 %v1482_v40  ;;  %1718 = vmatmul.bf16.vlgmr.msrb.gmra.mxu3 %v1482_v40  ;;  %v2993_v40 = vor.u32 %v3374_v37, %v2990_v39  ;;  %v3044_v41 = vld [vmem:[%s5002_s9 + $0x80] sm:$0xf] }
 0x1fe   :  { %1948 = vmatpush.bf16.msra.mxu1 %v2989_v38 }
 0x1ff   :  { %v1483_v47 = vpack.c.bf16 %v1481_v46, %v1479_v43  ;;  %v3389_v43 = vld [vmem:[%s5002_s9 + $0x84] sm:$0xf0]  ;;  %v3388_v46 = vld [vmem:[%s5002_s9 + $0x84] sm:$0xf]  ;;  %1976 = vmatpush.bf16.msra.mxu3 %v2993_v40 }
 0x200   :  { %v3049_v50 = vor.u32 %v3388_v46, %v3046_v49 }
 0x201   :  { %1704 = vmatmul.bf16.vlgmr.msrb.gmra.mxu2 %v1483_v47  ;;  %1732 = vmatmul.bf16.vlgmr.msra.gmra.mxu0 %v1483_v47  ;;  %v3045_v47 = vor.u32 %v3389_v43, %v3044_v41 }
 0x202   :  { %1991 = vmatpush.bf16.msrb.mxu0 %v3049_v50  ;;  %1949 = vmatpush.bf16.msra.mxu1 %v2981_v54 }
 0x203   :  { %1963 = vmatpush.bf16.msra.mxu2 %v3045_v47  ;;  %1977 = vmatpush.bf16.msra.mxu3 %v2985_v56 }
 0x206   :  { %2136 = vmatpush.bf16.msrb.mxu1 %v3411_v57 }
 0x207   :  { %2150 = vmatpush.bf16.msrb.mxu2 %v3419_v48 }
 0x20a   :  { %2137 = vmatpush.bf16.msrb.mxu1 %v3410_v58 }
 0x20b   :  { %2151 = vmatpush.bf16.msrb.mxu2 %v3418_v59  ;;  %v3420_v59 = vld [vmem:[%s5006_s12] ss:$0 sm:$0xff] }
 0x20e   :  { %2138 = vmatpush.bf16.msrb.mxu1 %v3409_v60 }
 0x20f   :  { %2152 = vmatpush.bf16.msrb.mxu2 %v3417_v20 }
 0x212   :  { %2139 = vmatpush.bf16.msrb.mxu1 %v3408_v19 }
 0x213   :  { %2153 = vmatpush.bf16.msrb.mxu2 %v3416_v22 }
 0x216   :  { %2140 = vmatpush.bf16.msrb.mxu1 %v3407_v21 }
 0x217   :  { %2154 = vmatpush.bf16.msrb.mxu2 %v3415_v24 }
 0x21a   :  { %2141 = vmatpush.bf16.msrb.mxu1 %v3406_v23 }
 0x21b   :  { %2155 = vmatpush.bf16.msrb.mxu2 %v3414_v26 }
 0x21e   :  { %2142 = vmatpush.bf16.msrb.mxu1 %v3405_v25 }
 0x21f   :  { %2156 = vmatpush.bf16.msrb.mxu2 %v3413_v28 }
 0x222   :  { %2143 = vmatpush.bf16.msrb.mxu1 %v3404_v27 }
 0x223   :  { %2157 = vmatpush.bf16.msrb.mxu2 %v3412_v29 }
 0x27a   :  { %v1691_v61 = vpop.f32.mrf.mxu1 }
 0x27b   :  { %v1692_v7 = vadd.f32 %v1691_v61, %v1518_v3 }
 0x27e   :  { %v1733_v63 = vpop.f32.mrf.mxu0 }
 0x280   :  { %v1719_v0 = vpop.f32.mrf.mxu3 }
 0x281   :  { %v1720_v4 = vadd.f32 %v1719_v0, %v1519_v1 }
 0x282   :  { %v1693_v5 = vpop.f32.mrf.mxu1 }
 0x283   :  { %v1734_v8 = vadd.f32 %v1733_v63, %v1720_v4  ;;  %v1694_v10 = vadd.f32 %v1693_v5, %v1518_v3 }
 0x284   :  { %v1705_v2 = vpop.f32.mrf.mxu2 }
 0x285   :  { %v1706_v42 = vadd.f32 %v1705_v2, %v1692_v7  ;;  %v1739_v45 = vmax.f32 %v1734_v8, 0.0 }
 0x286   :  { %v1735_v9 = vpop.f32.mrf.mxu0 }
 0x287   :  { %v1738_v15 = vmax.f32 %v1706_v42, 0.0 }
 0x288   :  { %v1721_v6 = vpop.f32.mrf.mxu3 }
 0x289   :  { %v1722_v44 = vadd.f32 %v1721_v6, %v1519_v1 }
 0x28b   :  { %v1736_v11 = vadd.f32 %v1735_v9, %v1722_v44 }
 0x28c   :  { %v1707_v12 = vpop.f32.mrf.mxu2 }
 0x28d   :  { %v1741_v13 = vmax.f32 %v1736_v11, 0.0  ;;  %v1708_v14 = vadd.f32 %v1707_v12, %v1694_v10 }
 0x28f   :  { %v1743_v16 = vpack.c.bf16 %v1741_v13, %v1739_v45  ;;  %v1740_v17 = vmax.f32 %v1708_v14, 0.0 }
 0x291   :  { %v1742_v18 = vpack.c.bf16 %v1740_v17, %v1738_v15  ;;  %1964 = vmatmul.bf16.vlgmr.msra.gmra.mxu2 %v1743_v16  ;;  %1992 = vmatmul.bf16.vlgmr.msrb.gmra.mxu0 %v1743_v16 }
 0x293   :  { %1950 = vmatmul.bf16.vlgmr.msra.gmra.mxu1 %v1742_v18  ;;  %1978 = vmatmul.bf16.vlgmr.msra.gmra.mxu3 %v1742_v18 }
 0x30e   :  { %v1993_v34 = vpop.f32.mrf.mxu0 }
 0x310   :  { %v1951_v30 = vpop.f32.mrf.mxu1 }
 0x311   :  { %v1952_v38 = vadd.f32 %v1951_v30, %v1778_v33 }
 0x314   :  { %v1965_v32 = vpop.f32.mrf.mxu2 }
 0x315   :  { %v1966_v39 = vadd.f32 %v1965_v32, %v1952_v38 }
 0x316   :  { %v1979_v35 = vpop.f32.mrf.mxu3  ;;  %v1995_v53 = vpop.f32.mrf.mxu0 }
 0x317   :  { %v1980_v40 = vadd.f32 %v1979_v35, %v1779_v36  ;;  %v1998_v49 = vmax.f32 %v1966_v39, 0.0 }
 0x318   :  { %v1953_v37 = vpop.f32.mrf.mxu1 }
 0x319   :  { %v1954_v41 = vadd.f32 %v1953_v37, %v1778_v33  ;;  %v1994_v50 = vadd.f32 %v1993_v34, %v1980_v40 }
 0x31b   :  { %v1999_v56 = vmax.f32 %v1994_v50, 0.0 }
 0x31c   :  { %v1967_v43 = vpop.f32.mrf.mxu2 }
 0x31d   :  { %v1968_v46 = vadd.f32 %v1967_v43, %v1954_v41 }
 0x31e   :  { %v1981_v47 = vpop.f32.mrf.mxu3 }
 0x31f   :  { %v2000_v51 = vmax.f32 %v1968_v46, 0.0  ;;  %v1982_v52 = vadd.f32 %v1981_v47, %v1779_v36 }
 0x321   :  { %v2002_v54 = vpack.c.bf16 %v2000_v51, %v1998_v49  ;;  %v1996_v55 = vadd.f32 %v1995_v53, %v1982_v52 }
 0x323   :  { %v2001_v57 = vmax.f32 %v1996_v55, 0.0  ;;  %2144 = vmatmul.bf16.vlgmr.msrb.gmra.mxu1 %v2002_v54 }
 0x325   :  { %v2003_v48 = vpack.c.bf16 %v2001_v57, %v1999_v56 }
 0x327   :  { %2158 = vmatmul.bf16.vlgmr.msrb.gmra.mxu2 %v2003_v48 }
 0x3a0   :  { %v2145_v58 = vpop.f32.mrf.mxu1 }
 0x3a1   :  { %v2146_v60 = vadd.f32 %v3420_v59, %v2145_v58 }
 0x3a8   :  { %v2147_v63 = vpop.f32.mrf.mxu1 }
 0x3a9   :  { %v2148_v0 = vadd.f32 %v3420_v59, %v2147_v63 }
 0x3aa   :  { %v2159_v61 = vpop.f32.mrf.mxu2 }
 0x3ab   :  { %v2160_v62 = vadd.f32 %v2159_v61, %v2146_v60 }
 0x3ad   :  { %2164 = vst [vmem:[%s5008_s13] sm:$0xff] %v2160_v62 }
 0x3b2   :  { %v2161_v1 = vpop.f32.mrf.mxu2 }
 0x3b3   :  { %v2162_v2 = vadd.f32 %v2161_v1, %v2148_v0 }
 0x3b5   :  { %2165 = vst [vmem:[%s5008_s13 + $0x8] sm:$0xff] %v2162_v2 }

</bundles_post_ra>
